<compile_context>
chip_gen: v6e
topology: v6e:2x2x1
jax: 0.10.0
libtpu: 0.0.40
codegen_flags: <defaults>
</compile_context>

<pallas_src>
import functools

import jax
import jax.numpy as jnp
from jax import lax
from jax.experimental import pallas as pl
from jax.experimental.pallas import tpu as pltpu

DOWNSAMPLE = 2
PATCH = 2 ** DOWNSAMPLE            # 4x4 patches
PAD = 128                          # lane-dense padded feature width

# synthetic model hyper-parameters (small, consistent with the module)
IN_CH = 3
D_MODEL = 32
HEADS = 4
DH = D_MODEL // HEADS
HIDDEN = 64
C_OUT = 16
PATCH_DIM = IN_CH * PATCH * PATCH  # 48

# packed weight-matrix indices (each a zero-padded 128x128 slab)
EMB, WQ, WK, WV, PROJ, FC1, FC2, HEAD = range(8)
# packed bias / layernorm vector indices (each a zero-padded (128,) row)
(EMB_B, LN_IN_G, LN_IN_B, LN1_G, LN1_B, BQ, BK, BV, PROJ_B,
 LN2_G, LN2_B, FC1_B, FC2_B, LN_OUT_G, LN_OUT_B, HEAD_B) = range(16)


# ----------------------------------------------------------------------------
# Fused Swin-style stage (runs entirely inside a Pallas kernel)
# ----------------------------------------------------------------------------
def _swin_core(x, m_ref, V, *, d_model, heads, dh):
    """embed -> LN -> [MHSA + MLP block] -> LN -> head on one image.

    x:     (seq, 128) activation slab; real features in lanes [0, d_model),
           padded lanes are exactly zero (invariant preserved throughout).
    m_ref: (8, 128, 128) packed zero-padded weight matrices (VMEM ref).
    V:     (16, 128) packed zero-padded bias / layernorm vectors (loaded).
    """
    lane = lax.broadcasted_iota(jnp.int32, (1, PAD), 1)
    feat_mask = lane < d_model
    inv_d = 1.0 / float(d_model)
    attn_scale = 1.0 / float(dh) ** 0.5

    def dot(a, b):
        return jnp.dot(a, b, preferred_element_type=jnp.float32)

    def layernorm(t, g, b):
        mean = jnp.sum(t, axis=-1, keepdims=True) * inv_d
        tc = jnp.where(feat_mask, t - mean, 0.0)
        var = jnp.sum(tc * tc, axis=-1, keepdims=True) * inv_d
        return tc * lax.rsqrt(var + 1e-5) * g + b

    h = dot(x, m_ref[EMB]) + V[EMB_B]
    h = layernorm(h, V[LN_IN_G], V[LN_IN_B])

    # ---- multi-head self-attention (all heads in this grid step) ----------
    hn = layernorm(h, V[LN1_G], V[LN1_B])
    q = dot(hn, m_ref[WQ]) + V[BQ]
    k = dot(hn, m_ref[WK]) + V[BK]
    v = dot(hn, m_ref[WV]) + V[BV]

    attn = jnp.zeros_like(h)
    for hd in range(heads):
        hm = jnp.where((lane >= hd * dh) & (lane < (hd + 1) * dh), 1.0, 0.0)
        s = lax.dot_general(q * hm, k, (((1,), (1,)), ((), ())),
                            preferred_element_type=jnp.float32) * attn_scale
        s = s - jnp.max(s, axis=-1, keepdims=True)
        p = jnp.exp(s)
        p = p * pl.reciprocal(jnp.sum(p, axis=-1, keepdims=True), approx=True)
        attn = attn + dot(p, v * hm)          # head hd lands in its own lanes

    h = h + dot(attn, m_ref[PROJ]) + V[PROJ_B]

    # ---- MLP ---------------------------------------------------------------
    hn = layernorm(h, V[LN2_G], V[LN2_B])
    y = jax.nn.gelu(dot(hn, m_ref[FC1]) + V[FC1_B])   # tanh-approx GELU
    h = h + dot(y, m_ref[FC2]) + V[FC2_B]

    h = layernorm(h, V[LN_OUT_G], V[LN_OUT_B])
    return dot(h, m_ref[HEAD]) + V[HEAD_B]


# ----------------------------------------------------------------------------
# Pallas kernels
# ----------------------------------------------------------------------------
def _encoder_kernel(x_ref, m_ref, v_ref, feat_ref, pwr_ref, *, d_model, heads, dh):
    feat = _swin_core(x_ref[0], m_ref, v_ref[...],
                      d_model=d_model, heads=heads, dh=dh)
    feat_ref[0] = feat
    # per-image partial sum of squared channel symbols (padded lanes are 0)
    pwr_ref[0] = jnp.sum(feat * feat, keepdims=True)


def _awgn_kernel(scale_ref, f_ref, n_ref, o_ref):
    o_ref[0] = f_ref[0] + scale_ref[0, 0] * n_ref[0]


def _decoder_kernel(f_ref, x_ref, m_ref, v_ref, recon_ref, sq_ref,
                    *, d_model, heads, dh):
    recon = _swin_core(f_ref[0], m_ref, v_ref[...],
                       d_model=d_model, heads=heads, dh=dh)
    recon_ref[0] = recon
    # fused distortion reduction: sum((x - clamp(recon,0,1))^2) for this image
    d = x_ref[0] - jnp.clip(recon, 0.0, 1.0)
    sq_ref[0] = jnp.sum(d * d, keepdims=True)


# ----------------------------------------------------------------------------
# pallas_call wrappers
# ----------------------------------------------------------------------------
def _encode(patches, mats, vecs):
    b, seq, _ = patches.shape
    kernel = functools.partial(_encoder_kernel, d_model=D_MODEL, heads=HEADS, dh=DH)
    return pl.pallas_call(
        kernel,
        out_shape=(jax.ShapeDtypeStruct((b, seq, PAD), jnp.float32),
                   jax.ShapeDtypeStruct((b, 1, 1), jnp.float32)),
        grid=(b,),
        in_specs=[pl.BlockSpec((1, seq, PAD), lambda i: (i, 0, 0)),
                  pl.BlockSpec(mats.shape, lambda i: (0, 0, 0)),
                  pl.BlockSpec(vecs.shape, lambda i: (0, 0))],
        out_specs=(pl.BlockSpec((1, seq, PAD), lambda i: (i, 0, 0)),
                   pl.BlockSpec((1, 1, 1), lambda i: (i, 0, 0))),
        compiler_params=pltpu.CompilerParams(dimension_semantics=("parallel",)),
    )(patches, mats, vecs)


def _awgn(feature, noise, scale):
    b, seq, _ = feature.shape
    return pl.pallas_call(
        _awgn_kernel,
        out_shape=jax.ShapeDtypeStruct((b, seq, PAD), jnp.float32),
        grid=(b,),
        in_specs=[pl.BlockSpec((1, 1), lambda i: (0, 0),
                               memory_space=pltpu.MemorySpace.SMEM),
                  pl.BlockSpec((1, seq, PAD), lambda i: (i, 0, 0)),
                  pl.BlockSpec((1, seq, PAD), lambda i: (i, 0, 0))],
        out_specs=pl.BlockSpec((1, seq, PAD), lambda i: (i, 0, 0)),
        compiler_params=pltpu.CompilerParams(dimension_semantics=("parallel",)),
    )(scale, feature, noise)


def _decode(noisy, patches, mats, vecs):
    b, seq, _ = noisy.shape
    kernel = functools.partial(_decoder_kernel, d_model=D_MODEL, heads=HEADS, dh=DH)
    return pl.pallas_call(
        kernel,
        out_shape=(jax.ShapeDtypeStruct((b, seq, PAD), jnp.float32),
                   jax.ShapeDtypeStruct((b, 1, 1), jnp.float32)),
        grid=(b,),
        in_specs=[pl.BlockSpec((1, seq, PAD), lambda i: (i, 0, 0)),
                  pl.BlockSpec((1, seq, PAD), lambda i: (i, 0, 0)),
                  pl.BlockSpec(mats.shape, lambda i: (0, 0, 0)),
                  pl.BlockSpec(vecs.shape, lambda i: (0, 0))],
        out_specs=(pl.BlockSpec((1, seq, PAD), lambda i: (i, 0, 0)),
                   pl.BlockSpec((1, 1, 1), lambda i: (i, 0, 0))),
        compiler_params=pltpu.CompilerParams(dimension_semantics=("parallel",)),
    )(noisy, patches, mats, vecs)


# ----------------------------------------------------------------------------
# Forward pass (3 pallas_calls total when the channel is active)
# ----------------------------------------------------------------------------
@functools.partial(jax.jit, static_argnames=("given_snr", "pass_channel"))
def swinjscc_forward(x, params, noise_key, *, given_snr, pass_channel=True):
    b, cin, hh, ww = x.shape
    pp = PATCH
    gh, gw = hh // pp, ww // pp
    seq = gh * gw
    real_dim = cin * pp * pp

    # patchify once; pad the feature (lane) axis to 128 exactly once.
    patches = x.reshape(b, cin, gh, pp, gw, pp).transpose(0, 2, 4, 1, 3, 5)
    patches = patches.reshape(b, seq, real_dim)
    patches = jnp.pad(patches, ((0, 0), (0, 0), (0, PAD - real_dim)))

    feature, pwr_part = _encode(patches, params["enc_mats"], params["enc_vecs"])

    real_feat_numel = b * seq * C_OUT
    CBR = real_feat_numel / 2.0 / x.size
    chan_param = given_snr

    if pass_channel:
        # power normalise -> AWGN at given_snr -> de-normalise
        # (== feature + sigma*sqrt(2*avg_pwr)*noise, sigma^2 = 1/(2*10^(snr/10)))
        noise = jax.random.normal(noise_key, feature.shape, jnp.float32)
        avg_pwr = jnp.sum(pwr_part) / real_feat_numel
        coef = float(10.0 ** (-given_snr / 20.0))         # sqrt(2*sigma^2)
        scale = (coef * jnp.sqrt(avg_pwr)).astype(jnp.float32).reshape(1, 1)
        noisy = _awgn(feature, noise, scale)
    else:
        noisy = feature

    recon_p, sq_part = _decode(noisy, patches,
                               params["dec_mats"], params["dec_vecs"])

    # un-patchify (single slice of the padded lanes, once, at the very end)
    recon = recon_p[:, :, :real_dim]
    recon = recon.reshape(b, gh, gw, cin, pp, pp).transpose(0, 3, 1, 4, 2, 5)
    recon = recon.reshape(b, cin, hh, ww)

    sq = jnp.sum(sq_part)                                   # trivial (B,) sum
    mse_mean = sq * (255.0 * 255.0) / x.size                # MSE(255*x, 255*clamp)
    loss_g_mean = sq / x.size                               # MSE distortion
    return recon, CBR, chan_param, mse_mean, loss_g_mean


# ----------------------------------------------------------------------------
# Deterministic parameter init (weights packed & zero-padded to 128 lanes)
# ----------------------------------------------------------------------------
def _pad_mat(w):
    out = jnp.zeros((PAD, PAD), jnp.float32)
    return out.at[: w.shape[0], : w.shape[1]].set(w)


def _branch_params(key, d_in, d_model, hidden, d_out):
    ks = jax.random.split(key, 8)

    def dense(k, i, o):
        return jax.random.normal(k, (i, o), jnp.float32) * 0.02

    mats = jnp.stack([
        _pad_mat(dense(ks[0], d_in, d_model)),      # EMB
        _pad_mat(dense(ks[1], d_model, d_model)),   # WQ
        _pad_mat(dense(ks[2], d_model, d_model)),   # WK
        _pad_mat(dense(ks[3], d_model, d_model)),   # WV
        _pad_mat(dense(ks[4], d_model, d_model)),   # PROJ
        _pad_mat(dense(ks[5], d_model, hidden)),    # FC1
        _pad_mat(dense(ks[6], hidden, d_model)),    # FC2
        _pad_mat(dense(ks[7], d_model, d_out)),     # HEAD
    ])
    vecs = jnp.zeros((16, PAD), jnp.float32)        # all biases zero
    for g in (LN_IN_G, LN1_G, LN2_G, LN_OUT_G):     # LN gammas: 1 on real lanes,
        vecs = vecs.at[g, :d_model].set(1.0)        # 0 on padded lanes
    return mats, vecs


def init_params(key):
    ke, kd = jax.random.split(key)
    enc_m, enc_v = _branch_params(ke, PATCH_DIM, D_MODEL, HIDDEN, C_OUT)
    dec_m, dec_v = _branch_params(kd, C_OUT, D_MODEL, HIDDEN, PATCH_DIM)
    return dict(enc_mats=enc_m, enc_vecs=enc_v, dec_mats=dec_m, dec_vecs=dec_v)


# ----------------------------------------------------------------------------
if __name__ == "__main__":
    key = jax.random.PRNGKey(0)
    pkey, xkey, nkey = jax.random.split(key, 3)

    params = init_params(pkey)
    # B=2, NCHW RGB image in [0,1]
    x = jax.random.uniform(xkey, (2, 3, 32, 32), dtype=jnp.float32)

    recon, CBR, chan_param, mse_mean, loss_G = swinjscc_forward(
        x, params, nkey, given_snr=10.0, pass_channel=True)

    jax.block_until_ready((recon, mse_mean, loss_G))
    assert recon.shape == x.shape
    assert bool(jnp.isfinite(mse_mean)) and bool(jnp.isfinite(loss_G))
    print("KERNEL_OK")
</pallas_src>

<mosaic_0001>
module attributes {stable_mosaic.version = 11 : i64} {
  func.func @_encoder_kernel(%arg0: i32, %arg1: memref<1x64x128xf32, #tpu.memory_space<vmem>>, %arg2: memref<8x128x128xf32, #tpu.memory_space<vmem>>, %arg3: memref<16x128xf32, #tpu.memory_space<vmem>>, %arg4: memref<1x64x128xf32, #tpu.memory_space<vmem>>, %arg5: memref<1x1x1xf32, #tpu.memory_space<vmem>>) attributes {dimension_semantics = [#tpu.dimension_semantics<parallel>], iteration_bounds = array<i64: 2>, scalar_prefetch = 0 : i64, scratch_operands = 0 : i64, tpu.core_type = #tpu.core_type<tc>, window_params = [{transform_indices = @transform_0, window_bounds = array<i64: 1, 64, 128>}, {pipeline_mode = #tpu.pipeline_mode<synchronous>, transform_indices = @transform_1, window_bounds = array<i64: 8, 128, 128>}, {pipeline_mode = #tpu.pipeline_mode<synchronous>, transform_indices = @transform_2, window_bounds = array<i64: 16, 128>}, {transform_indices = @transform_3, window_bounds = array<i64: 1, 64, 128>}, {transform_indices = @transform_4, window_bounds = array<i64: 1, 1, 1>}]} {
    %c0 = arith.constant 0 : index
    %c0_0 = arith.constant 0 : index
    %c0_1 = arith.constant 0 : index
    %0 = vector.load %arg1[%c0, %c0_0, %c0_1] : memref<1x64x128xf32, #tpu.memory_space<vmem>>, vector<1x64x128xf32>
    %1 = vector.shape_cast %0 : vector<1x64x128xf32> to vector<64x128xf32>
    %c0_2 = arith.constant 0 : index
    %c0_3 = arith.constant 0 : index
    %2 = vector.load %arg3[%c0_2, %c0_3] : memref<16x128xf32, #tpu.memory_space<vmem>>, vector<16x128xf32>
    %3 = tpu.iota {dimensions = array<i32: 1>} : vector<1x128xi32>
    %c32_i32 = arith.constant 32 : i32
    %4 = vector.broadcast %c32_i32 : i32 to vector<1x128xi32>
    %5 = arith.cmpi slt, %3, %4 : vector<1x128xi32>
    %c0_4 = arith.constant 0 : index
    %c0_5 = arith.constant 0 : index
    %c0_6 = arith.constant 0 : index
    %6 = vector.load %arg2[%c0_4, %c0_5, %c0_6] : memref<8x128x128xf32, #tpu.memory_space<vmem>>, vector<1x128x128xf32>
    %7 = vector.shape_cast %6 : vector<1x128x128xf32> to vector<128x128xf32>
    %cst = arith.constant dense<0.000000e+00> : vector<64x128xf32>
    %8 = tpu.matmul %1, %7, %cst {dimension_numbers = #tpu.dot_dimension_numbers<[1], [0], [0], [1], [0, 0, 1, 1], [], []>} : vector<64x128xf32>, vector<128x128xf32>, vector<64x128xf32> -> vector<64x128xf32>
    %9 = vector.extract_strided_slice %2 {offsets = [0, 0], sizes = [1, 128], strides = [1, 1]} : vector<16x128xf32> to vector<1x128xf32>
    %10 = vector.shape_cast %9 : vector<1x128xf32> to vector<128xf32>
    %11 = vector.shape_cast %10 : vector<128xf32> to vector<1x128xf32>
    %12 = vector.broadcast %11 : vector<1x128xf32> to vector<64x128xf32>
    %13 = arith.addf %8, %12 : vector<64x128xf32>
    %14 = vector.extract_strided_slice %2 {offsets = [1, 0], sizes = [1, 128], strides = [1, 1]} : vector<16x128xf32> to vector<1x128xf32>
    %15 = vector.shape_cast %14 : vector<1x128xf32> to vector<128xf32>
    %16 = vector.extract_strided_slice %2 {offsets = [2, 0], sizes = [1, 128], strides = [1, 1]} : vector<16x128xf32> to vector<1x128xf32>
    %17 = vector.shape_cast %16 : vector<1x128xf32> to vector<128xf32>
    %cst_7 = arith.constant dense<0.000000e+00> : vector<64xf32>
    %18 = vector.multi_reduction <add>, %13, %cst_7 [1] : vector<64x128xf32> to vector<64xf32>
    %19 = vector.shape_cast %18 : vector<64xf32> to vector<64x1xf32>
    %cst_8 = arith.constant 3.125000e-02 : f32
    %20 = vector.broadcast %cst_8 : f32 to vector<64x1xf32>
    %21 = arith.mulf %19, %20 : vector<64x1xf32>
    %22 = vector.broadcast %21 : vector<64x1xf32> to vector<64x128xf32>
    %23 = arith.subf %13, %22 : vector<64x128xf32>
    %cst_9 = arith.constant 0.000000e+00 : f32
    %24 = vector.shape_cast %5 : vector<1x128xi1> to vector<1x128xi1>
    %25 = vector.broadcast %24 : vector<1x128xi1> to vector<64x128xi1>
    %26 = vector.broadcast %cst_9 : f32 to vector<64x128xf32>
    %27 = arith.select %25, %23, %26 : vector<64x128xi1>, vector<64x128xf32>
    %28 = arith.mulf %27, %27 : vector<64x128xf32>
    %cst_10 = arith.constant dense<0.000000e+00> : vector<64xf32>
    %29 = vector.multi_reduction <add>, %28, %cst_10 [1] : vector<64x128xf32> to vector<64xf32>
    %30 = vector.shape_cast %29 : vector<64xf32> to vector<64x1xf32>
    %cst_11 = arith.constant 3.125000e-02 : f32
    %31 = vector.broadcast %cst_11 : f32 to vector<64x1xf32>
    %32 = arith.mulf %30, %31 : vector<64x1xf32>
    %cst_12 = arith.constant 9.99999974E-6 : f32
    %33 = vector.broadcast %cst_12 : f32 to vector<64x1xf32>
    %34 = arith.addf %32, %33 : vector<64x1xf32>
    %35 = math.rsqrt %34 : vector<64x1xf32>
    %36 = vector.broadcast %35 : vector<64x1xf32> to vector<64x128xf32>
    %37 = arith.mulf %27, %36 : vector<64x128xf32>
    %38 = vector.shape_cast %15 : vector<128xf32> to vector<1x128xf32>
    %39 = vector.broadcast %38 : vector<1x128xf32> to vector<64x128xf32>
    %40 = arith.mulf %37, %39 : vector<64x128xf32>
    %41 = vector.shape_cast %17 : vector<128xf32> to vector<1x128xf32>
    %42 = vector.broadcast %41 : vector<1x128xf32> to vector<64x128xf32>
    %43 = arith.addf %40, %42 : vector<64x128xf32>
    %44 = vector.extract_strided_slice %2 {offsets = [3, 0], sizes = [1, 128], strides = [1, 1]} : vector<16x128xf32> to vector<1x128xf32>
    %45 = vector.shape_cast %44 : vector<1x128xf32> to vector<128xf32>
    %46 = vector.extract_strided_slice %2 {offsets = [4, 0], sizes = [1, 128], strides = [1, 1]} : vector<16x128xf32> to vector<1x128xf32>
    %47 = vector.shape_cast %46 : vector<1x128xf32> to vector<128xf32>
    %cst_13 = arith.constant dense<0.000000e+00> : vector<64xf32>
    %48 = vector.multi_reduction <add>, %43, %cst_13 [1] : vector<64x128xf32> to vector<64xf32>
    %49 = vector.shape_cast %48 : vector<64xf32> to vector<64x1xf32>
    %cst_14 = arith.constant 3.125000e-02 : f32
    %50 = vector.broadcast %cst_14 : f32 to vector<64x1xf32>
    %51 = arith.mulf %49, %50 : vector<64x1xf32>
    %52 = vector.broadcast %51 : vector<64x1xf32> to vector<64x128xf32>
    %53 = arith.subf %43, %52 : vector<64x128xf32>
    %cst_15 = arith.constant 0.000000e+00 : f32
    %54 = vector.shape_cast %5 : vector<1x128xi1> to vector<1x128xi1>
    %55 = vector.broadcast %54 : vector<1x128xi1> to vector<64x128xi1>
    %56 = vector.broadcast %cst_15 : f32 to vector<64x128xf32>
    %57 = arith.select %55, %53, %56 : vector<64x128xi1>, vector<64x128xf32>
    %58 = arith.mulf %57, %57 : vector<64x128xf32>
    %cst_16 = arith.constant dense<0.000000e+00> : vector<64xf32>
    %59 = vector.multi_reduction <add>, %58, %cst_16 [1] : vector<64x128xf32> to vector<64xf32>
    %60 = vector.shape_cast %59 : vector<64xf32> to vector<64x1xf32>
    %cst_17 = arith.constant 3.125000e-02 : f32
    %61 = vector.broadcast %cst_17 : f32 to vector<64x1xf32>
    %62 = arith.mulf %60, %61 : vector<64x1xf32>
    %cst_18 = arith.constant 9.99999974E-6 : f32
    %63 = vector.broadcast %cst_18 : f32 to vector<64x1xf32>
    %64 = arith.addf %62, %63 : vector<64x1xf32>
    %65 = math.rsqrt %64 : vector<64x1xf32>
    %66 = vector.broadcast %65 : vector<64x1xf32> to vector<64x128xf32>
    %67 = arith.mulf %57, %66 : vector<64x128xf32>
    %68 = vector.shape_cast %45 : vector<128xf32> to vector<1x128xf32>
    %69 = vector.broadcast %68 : vector<1x128xf32> to vector<64x128xf32>
    %70 = arith.mulf %67, %69 : vector<64x128xf32>
    %71 = vector.shape_cast %47 : vector<128xf32> to vector<1x128xf32>
    %72 = vector.broadcast %71 : vector<1x128xf32> to vector<64x128xf32>
    %73 = arith.addf %70, %72 : vector<64x128xf32>
    %c1 = arith.constant 1 : index
    %c0_19 = arith.constant 0 : index
    %c0_20 = arith.constant 0 : index
    %74 = vector.load %arg2[%c1, %c0_19, %c0_20] : memref<8x128x128xf32, #tpu.memory_space<vmem>>, vector<1x128x128xf32>
    %75 = vector.shape_cast %74 : vector<1x128x128xf32> to vector<128x128xf32>
    %cst_21 = arith.constant dense<0.000000e+00> : vector<64x128xf32>
    %76 = tpu.matmul %73, %75, %cst_21 {dimension_numbers = #tpu.dot_dimension_numbers<[1], [0], [0], [1], [0, 0, 1, 1], [], []>} : vector<64x128xf32>, vector<128x128xf32>, vector<64x128xf32> -> vector<64x128xf32>
    %77 = vector.extract_strided_slice %2 {offsets = [5, 0], sizes = [1, 128], strides = [1, 1]} : vector<16x128xf32> to vector<1x128xf32>
    %78 = vector.shape_cast %77 : vector<1x128xf32> to vector<128xf32>
    %79 = vector.shape_cast %78 : vector<128xf32> to vector<1x128xf32>
    %80 = vector.broadcast %79 : vector<1x128xf32> to vector<64x128xf32>
    %81 = arith.addf %76, %80 : vector<64x128xf32>
    %c2 = arith.constant 2 : index
    %c0_22 = arith.constant 0 : index
    %c0_23 = arith.constant 0 : index
    %82 = vector.load %arg2[%c2, %c0_22, %c0_23] : memref<8x128x128xf32, #tpu.memory_space<vmem>>, vector<1x128x128xf32>
    %83 = vector.shape_cast %82 : vector<1x128x128xf32> to vector<128x128xf32>
    %cst_24 = arith.constant dense<0.000000e+00> : vector<64x128xf32>
    %84 = tpu.matmul %73, %83, %cst_24 {dimension_numbers = #tpu.dot_dimension_numbers<[1], [0], [0], [1], [0, 0, 1, 1], [], []>} : vector<64x128xf32>, vector<128x128xf32>, vector<64x128xf32> -> vector<64x128xf32>
    %85 = vector.extract_strided_slice %2 {offsets = [6, 0], sizes = [1, 128], strides = [1, 1]} : vector<16x128xf32> to vector<1x128xf32>
    %86 = vector.shape_cast %85 : vector<1x128xf32> to vector<128xf32>
    %87 = vector.shape_cast %86 : vector<128xf32> to vector<1x128xf32>
    %88 = vector.broadcast %87 : vector<1x128xf32> to vector<64x128xf32>
    %89 = arith.addf %84, %88 : vector<64x128xf32>
    %c3 = arith.constant 3 : index
    %c0_25 = arith.constant 0 : index
    %c0_26 = arith.constant 0 : index
    %90 = vector.load %arg2[%c3, %c0_25, %c0_26] : memref<8x128x128xf32, #tpu.memory_space<vmem>>, vector<1x128x128xf32>
    %91 = vector.shape_cast %90 : vector<1x128x128xf32> to vector<128x128xf32>
    %cst_27 = arith.constant dense<0.000000e+00> : vector<64x128xf32>
    %92 = tpu.matmul %73, %91, %cst_27 {dimension_numbers = #tpu.dot_dimension_numbers<[1], [0], [0], [1], [0, 0, 1, 1], [], []>} : vector<64x128xf32>, vector<128x128xf32>, vector<64x128xf32> -> vector<64x128xf32>
    %93 = vector.extract_strided_slice %2 {offsets = [7, 0], sizes = [1, 128], strides = [1, 1]} : vector<16x128xf32> to vector<1x128xf32>
    %94 = vector.shape_cast %93 : vector<1x128xf32> to vector<128xf32>
    %95 = vector.shape_cast %94 : vector<128xf32> to vector<1x128xf32>
    %96 = vector.broadcast %95 : vector<1x128xf32> to vector<64x128xf32>
    %97 = arith.addf %92, %96 : vector<64x128xf32>
    %cst_28 = arith.constant 0.000000e+00 : f32
    %98 = vector.broadcast %cst_28 : f32 to vector<64x128xf32>
    %c0_i32 = arith.constant 0 : i32
    %99 = vector.broadcast %c0_i32 : i32 to vector<1x128xi32>
    %100 = arith.cmpi sge, %3, %99 : vector<1x128xi32>
    %c8_i32 = arith.constant 8 : i32
    %101 = vector.broadcast %c8_i32 : i32 to vector<1x128xi32>
    %102 = arith.cmpi slt, %3, %101 : vector<1x128xi32>
    %103 = arith.andi %100, %102 : vector<1x128xi1>
    %cst_29 = arith.constant 1.000000e+00 : f32
    %cst_30 = arith.constant 0.000000e+00 : f32
    %104 = vector.broadcast %cst_29 : f32 to vector<1x128xf32>
    %105 = vector.broadcast %cst_30 : f32 to vector<1x128xf32>
    %106 = arith.select %103, %104, %105 : vector<1x128xi1>, vector<1x128xf32>
    %107 = vector.broadcast %106 : vector<1x128xf32> to vector<64x128xf32>
    %108 = arith.mulf %81, %107 : vector<64x128xf32>
    %cst_31 = arith.constant dense<0.000000e+00> : vector<64x64xf32>
    %109 = tpu.matmul %108, %89, %cst_31 {dimension_numbers = #tpu.dot_dimension_numbers<[1], [1], [0], [0], [0, 0, 1, 0], [], []>} : vector<64x128xf32>, vector<64x128xf32>, vector<64x64xf32> -> vector<64x64xf32>
    %cst_32 = arith.constant 0.353553385 : f32
    %110 = vector.broadcast %cst_32 : f32 to vector<64x64xf32>
    %111 = arith.mulf %109, %110 : vector<64x64xf32>
    %cst_33 = arith.constant dense<0xFF800000> : vector<64xf32>
    %112 = vector.multi_reduction <maximumf>, %111, %cst_33 [1] : vector<64x64xf32> to vector<64xf32>
    %113 = vector.shape_cast %112 : vector<64xf32> to vector<64x1xf32>
    %114 = vector.broadcast %113 : vector<64x1xf32> to vector<64x64xf32>
    %115 = arith.subf %111, %114 : vector<64x64xf32>
    %116 = math.exp %115 : vector<64x64xf32>
    %cst_34 = arith.constant dense<0.000000e+00> : vector<64xf32>
    %117 = vector.multi_reduction <add>, %116, %cst_34 [1] : vector<64x64xf32> to vector<64xf32>
    %118 = vector.shape_cast %117 : vector<64xf32> to vector<64x1xf32>
    %119 = tpu.reciprocal %118 {approx = true} : vector<64x1xf32> -> vector<64x1xf32>
    %120 = vector.broadcast %119 : vector<64x1xf32> to vector<64x64xf32>
    %121 = arith.mulf %116, %120 : vector<64x64xf32>
    %122 = vector.broadcast %106 : vector<1x128xf32> to vector<64x128xf32>
    %123 = arith.mulf %97, %122 : vector<64x128xf32>
    %cst_35 = arith.constant dense<0.000000e+00> : vector<64x128xf32>
    %124 = tpu.matmul %121, %123, %cst_35 {dimension_numbers = #tpu.dot_dimension_numbers<[1], [0], [0], [1], [0, 0, 1, 1], [], []>} : vector<64x64xf32>, vector<64x128xf32>, vector<64x128xf32> -> vector<64x128xf32>
    %125 = arith.addf %98, %124 : vector<64x128xf32>
    %c8_i32_36 = arith.constant 8 : i32
    %126 = vector.broadcast %c8_i32_36 : i32 to vector<1x128xi32>
    %127 = arith.cmpi sge, %3, %126 : vector<1x128xi32>
    %c16_i32 = arith.constant 16 : i32
    %128 = vector.broadcast %c16_i32 : i32 to vector<1x128xi32>
    %129 = arith.cmpi slt, %3, %128 : vector<1x128xi32>
    %130 = arith.andi %127, %129 : vector<1x128xi1>
    %cst_37 = arith.constant 1.000000e+00 : f32
    %cst_38 = arith.constant 0.000000e+00 : f32
    %131 = vector.broadcast %cst_37 : f32 to vector<1x128xf32>
    %132 = vector.broadcast %cst_38 : f32 to vector<1x128xf32>
    %133 = arith.select %130, %131, %132 : vector<1x128xi1>, vector<1x128xf32>
    %134 = vector.broadcast %133 : vector<1x128xf32> to vector<64x128xf32>
    %135 = arith.mulf %81, %134 : vector<64x128xf32>
    %cst_39 = arith.constant dense<0.000000e+00> : vector<64x64xf32>
    %136 = tpu.matmul %135, %89, %cst_39 {dimension_numbers = #tpu.dot_dimension_numbers<[1], [1], [0], [0], [0, 0, 1, 0], [], []>} : vector<64x128xf32>, vector<64x128xf32>, vector<64x64xf32> -> vector<64x64xf32>
    %cst_40 = arith.constant 0.353553385 : f32
    %137 = vector.broadcast %cst_40 : f32 to vector<64x64xf32>
    %138 = arith.mulf %136, %137 : vector<64x64xf32>
    %cst_41 = arith.constant dense<0xFF800000> : vector<64xf32>
    %139 = vector.multi_reduction <maximumf>, %138, %cst_41 [1] : vector<64x64xf32> to vector<64xf32>
    %140 = vector.shape_cast %139 : vector<64xf32> to vector<64x1xf32>
    %141 = vector.broadcast %140 : vector<64x1xf32> to vector<64x64xf32>
    %142 = arith.subf %138, %141 : vector<64x64xf32>
    %143 = math.exp %142 : vector<64x64xf32>
    %cst_42 = arith.constant dense<0.000000e+00> : vector<64xf32>
    %144 = vector.multi_reduction <add>, %143, %cst_42 [1] : vector<64x64xf32> to vector<64xf32>
    %145 = vector.shape_cast %144 : vector<64xf32> to vector<64x1xf32>
    %146 = tpu.reciprocal %145 {approx = true} : vector<64x1xf32> -> vector<64x1xf32>
    %147 = vector.broadcast %146 : vector<64x1xf32> to vector<64x64xf32>
    %148 = arith.mulf %143, %147 : vector<64x64xf32>
    %149 = vector.broadcast %133 : vector<1x128xf32> to vector<64x128xf32>
    %150 = arith.mulf %97, %149 : vector<64x128xf32>
    %cst_43 = arith.constant dense<0.000000e+00> : vector<64x128xf32>
    %151 = tpu.matmul %148, %150, %cst_43 {dimension_numbers = #tpu.dot_dimension_numbers<[1], [0], [0], [1], [0, 0, 1, 1], [], []>} : vector<64x64xf32>, vector<64x128xf32>, vector<64x128xf32> -> vector<64x128xf32>
    %152 = arith.addf %125, %151 : vector<64x128xf32>
    %c16_i32_44 = arith.constant 16 : i32
    %153 = vector.broadcast %c16_i32_44 : i32 to vector<1x128xi32>
    %154 = arith.cmpi sge, %3, %153 : vector<1x128xi32>
    %c24_i32 = arith.constant 24 : i32
    %155 = vector.broadcast %c24_i32 : i32 to vector<1x128xi32>
    %156 = arith.cmpi slt, %3, %155 : vector<1x128xi32>
    %157 = arith.andi %154, %156 : vector<1x128xi1>
    %cst_45 = arith.constant 1.000000e+00 : f32
    %cst_46 = arith.constant 0.000000e+00 : f32
    %158 = vector.broadcast %cst_45 : f32 to vector<1x128xf32>
    %159 = vector.broadcast %cst_46 : f32 to vector<1x128xf32>
    %160 = arith.select %157, %158, %159 : vector<1x128xi1>, vector<1x128xf32>
    %161 = vector.broadcast %160 : vector<1x128xf32> to vector<64x128xf32>
    %162 = arith.mulf %81, %161 : vector<64x128xf32>
    %cst_47 = arith.constant dense<0.000000e+00> : vector<64x64xf32>
    %163 = tpu.matmul %162, %89, %cst_47 {dimension_numbers = #tpu.dot_dimension_numbers<[1], [1], [0], [0], [0, 0, 1, 0], [], []>} : vector<64x128xf32>, vector<64x128xf32>, vector<64x64xf32> -> vector<64x64xf32>
    %cst_48 = arith.constant 0.353553385 : f32
    %164 = vector.broadcast %cst_48 : f32 to vector<64x64xf32>
    %165 = arith.mulf %163, %164 : vector<64x64xf32>
    %cst_49 = arith.constant dense<0xFF800000> : vector<64xf32>
    %166 = vector.multi_reduction <maximumf>, %165, %cst_49 [1] : vector<64x64xf32> to vector<64xf32>
    %167 = vector.shape_cast %166 : vector<64xf32> to vector<64x1xf32>
    %168 = vector.broadcast %167 : vector<64x1xf32> to vector<64x64xf32>
    %169 = arith.subf %165, %168 : vector<64x64xf32>
    %170 = math.exp %169 : vector<64x64xf32>
    %cst_50 = arith.constant dense<0.000000e+00> : vector<64xf32>
    %171 = vector.multi_reduction <add>, %170, %cst_50 [1] : vector<64x64xf32> to vector<64xf32>
    %172 = vector.shape_cast %171 : vector<64xf32> to vector<64x1xf32>
    %173 = tpu.reciprocal %172 {approx = true} : vector<64x1xf32> -> vector<64x1xf32>
    %174 = vector.broadcast %173 : vector<64x1xf32> to vector<64x64xf32>
    %175 = arith.mulf %170, %174 : vector<64x64xf32>
    %176 = vector.broadcast %160 : vector<1x128xf32> to vector<64x128xf32>
    %177 = arith.mulf %97, %176 : vector<64x128xf32>
    %cst_51 = arith.constant dense<0.000000e+00> : vector<64x128xf32>
    %178 = tpu.matmul %175, %177, %cst_51 {dimension_numbers = #tpu.dot_dimension_numbers<[1], [0], [0], [1], [0, 0, 1, 1], [], []>} : vector<64x64xf32>, vector<64x128xf32>, vector<64x128xf32> -> vector<64x128xf32>
    %179 = arith.addf %152, %178 : vector<64x128xf32>
    %c24_i32_52 = arith.constant 24 : i32
    %180 = vector.broadcast %c24_i32_52 : i32 to vector<1x128xi32>
    %181 = arith.cmpi sge, %3, %180 : vector<1x128xi32>
    %c32_i32_53 = arith.constant 32 : i32
    %182 = vector.broadcast %c32_i32_53 : i32 to vector<1x128xi32>
    %183 = arith.cmpi slt, %3, %182 : vector<1x128xi32>
    %184 = arith.andi %181, %183 : vector<1x128xi1>
    %cst_54 = arith.constant 1.000000e+00 : f32
    %cst_55 = arith.constant 0.000000e+00 : f32
    %185 = vector.broadcast %cst_54 : f32 to vector<1x128xf32>
    %186 = vector.broadcast %cst_55 : f32 to vector<1x128xf32>
    %187 = arith.select %184, %185, %186 : vector<1x128xi1>, vector<1x128xf32>
    %188 = vector.broadcast %187 : vector<1x128xf32> to vector<64x128xf32>
    %189 = arith.mulf %81, %188 : vector<64x128xf32>
    %cst_56 = arith.constant dense<0.000000e+00> : vector<64x64xf32>
    %190 = tpu.matmul %189, %89, %cst_56 {dimension_numbers = #tpu.dot_dimension_numbers<[1], [1], [0], [0], [0, 0, 1, 0], [], []>} : vector<64x128xf32>, vector<64x128xf32>, vector<64x64xf32> -> vector<64x64xf32>
    %cst_57 = arith.constant 0.353553385 : f32
    %191 = vector.broadcast %cst_57 : f32 to vector<64x64xf32>
    %192 = arith.mulf %190, %191 : vector<64x64xf32>
    %cst_58 = arith.constant dense<0xFF800000> : vector<64xf32>
    %193 = vector.multi_reduction <maximumf>, %192, %cst_58 [1] : vector<64x64xf32> to vector<64xf32>
    %194 = vector.shape_cast %193 : vector<64xf32> to vector<64x1xf32>
    %195 = vector.broadcast %194 : vector<64x1xf32> to vector<64x64xf32>
    %196 = arith.subf %192, %195 : vector<64x64xf32>
    %197 = math.exp %196 : vector<64x64xf32>
    %cst_59 = arith.constant dense<0.000000e+00> : vector<64xf32>
    %198 = vector.multi_reduction <add>, %197, %cst_59 [1] : vector<64x64xf32> to vector<64xf32>
    %199 = vector.shape_cast %198 : vector<64xf32> to vector<64x1xf32>
    %200 = tpu.reciprocal %199 {approx = true} : vector<64x1xf32> -> vector<64x1xf32>
    %201 = vector.broadcast %200 : vector<64x1xf32> to vector<64x64xf32>
    %202 = arith.mulf %197, %201 : vector<64x64xf32>
    %203 = vector.broadcast %187 : vector<1x128xf32> to vector<64x128xf32>
    %204 = arith.mulf %97, %203 : vector<64x128xf32>
    %cst_60 = arith.constant dense<0.000000e+00> : vector<64x128xf32>
    %205 = tpu.matmul %202, %204, %cst_60 {dimension_numbers = #tpu.dot_dimension_numbers<[1], [0], [0], [1], [0, 0, 1, 1], [], []>} : vector<64x64xf32>, vector<64x128xf32>, vector<64x128xf32> -> vector<64x128xf32>
    %206 = arith.addf %179, %205 : vector<64x128xf32>
    %c4 = arith.constant 4 : index
    %c0_61 = arith.constant 0 : index
    %c0_62 = arith.constant 0 : index
    %207 = vector.load %arg2[%c4, %c0_61, %c0_62] : memref<8x128x128xf32, #tpu.memory_space<vmem>>, vector<1x128x128xf32>
    %208 = vector.shape_cast %207 : vector<1x128x128xf32> to vector<128x128xf32>
    %cst_63 = arith.constant dense<0.000000e+00> : vector<64x128xf32>
    %209 = tpu.matmul %206, %208, %cst_63 {dimension_numbers = #tpu.dot_dimension_numbers<[1], [0], [0], [1], [0, 0, 1, 1], [], []>} : vector<64x128xf32>, vector<128x128xf32>, vector<64x128xf32> -> vector<64x128xf32>
    %210 = arith.addf %43, %209 : vector<64x128xf32>
    %211 = vector.extract_strided_slice %2 {offsets = [8, 0], sizes = [1, 128], strides = [1, 1]} : vector<16x128xf32> to vector<1x128xf32>
    %212 = vector.shape_cast %211 : vector<1x128xf32> to vector<128xf32>
    %213 = vector.shape_cast %212 : vector<128xf32> to vector<1x128xf32>
    %214 = vector.broadcast %213 : vector<1x128xf32> to vector<64x128xf32>
    %215 = arith.addf %210, %214 : vector<64x128xf32>
    %216 = vector.extract_strided_slice %2 {offsets = [9, 0], sizes = [1, 128], strides = [1, 1]} : vector<16x128xf32> to vector<1x128xf32>
    %217 = vector.shape_cast %216 : vector<1x128xf32> to vector<128xf32>
    %218 = vector.extract_strided_slice %2 {offsets = [10, 0], sizes = [1, 128], strides = [1, 1]} : vector<16x128xf32> to vector<1x128xf32>
    %219 = vector.shape_cast %218 : vector<1x128xf32> to vector<128xf32>
    %cst_64 = arith.constant dense<0.000000e+00> : vector<64xf32>
    %220 = vector.multi_reduction <add>, %215, %cst_64 [1] : vector<64x128xf32> to vector<64xf32>
    %221 = vector.shape_cast %220 : vector<64xf32> to vector<64x1xf32>
    %cst_65 = arith.constant 3.125000e-02 : f32
    %222 = vector.broadcast %cst_65 : f32 to vector<64x1xf32>
    %223 = arith.mulf %221, %222 : vector<64x1xf32>
    %224 = vector.broadcast %223 : vector<64x1xf32> to vector<64x128xf32>
    %225 = arith.subf %215, %224 : vector<64x128xf32>
    %cst_66 = arith.constant 0.000000e+00 : f32
    %226 = vector.shape_cast %5 : vector<1x128xi1> to vector<1x128xi1>
    %227 = vector.broadcast %226 : vector<1x128xi1> to vector<64x128xi1>
    %228 = vector.broadcast %cst_66 : f32 to vector<64x128xf32>
    %229 = arith.select %227, %225, %228 : vector<64x128xi1>, vector<64x128xf32>
    %230 = arith.mulf %229, %229 : vector<64x128xf32>
    %cst_67 = arith.constant dense<0.000000e+00> : vector<64xf32>
    %231 = vector.multi_reduction <add>, %230, %cst_67 [1] : vector<64x128xf32> to vector<64xf32>
    %232 = vector.shape_cast %231 : vector<64xf32> to vector<64x1xf32>
    %cst_68 = arith.constant 3.125000e-02 : f32
    %233 = vector.broadcast %cst_68 : f32 to vector<64x1xf32>
    %234 = arith.mulf %232, %233 : vector<64x1xf32>
    %cst_69 = arith.constant 9.99999974E-6 : f32
    %235 = vector.broadcast %cst_69 : f32 to vector<64x1xf32>
    %236 = arith.addf %234, %235 : vector<64x1xf32>
    %237 = math.rsqrt %236 : vector<64x1xf32>
    %238 = vector.broadcast %237 : vector<64x1xf32> to vector<64x128xf32>
    %239 = arith.mulf %229, %238 : vector<64x128xf32>
    %240 = vector.shape_cast %217 : vector<128xf32> to vector<1x128xf32>
    %241 = vector.broadcast %240 : vector<1x128xf32> to vector<64x128xf32>
    %242 = arith.mulf %239, %241 : vector<64x128xf32>
    %243 = vector.shape_cast %219 : vector<128xf32> to vector<1x128xf32>
    %244 = vector.broadcast %243 : vector<1x128xf32> to vector<64x128xf32>
    %245 = arith.addf %242, %244 : vector<64x128xf32>
    %c5 = arith.constant 5 : index
    %c0_70 = arith.constant 0 : index
    %c0_71 = arith.constant 0 : index
    %246 = vector.load %arg2[%c5, %c0_70, %c0_71] : memref<8x128x128xf32, #tpu.memory_space<vmem>>, vector<1x128x128xf32>
    %247 = vector.shape_cast %246 : vector<1x128x128xf32> to vector<128x128xf32>
    %cst_72 = arith.constant dense<0.000000e+00> : vector<64x128xf32>
    %248 = tpu.matmul %245, %247, %cst_72 {dimension_numbers = #tpu.dot_dimension_numbers<[1], [0], [0], [1], [0, 0, 1, 1], [], []>} : vector<64x128xf32>, vector<128x128xf32>, vector<64x128xf32> -> vector<64x128xf32>
    %249 = vector.extract_strided_slice %2 {offsets = [11, 0], sizes = [1, 128], strides = [1, 1]} : vector<16x128xf32> to vector<1x128xf32>
    %250 = vector.shape_cast %249 : vector<1x128xf32> to vector<128xf32>
    %251 = vector.shape_cast %250 : vector<128xf32> to vector<1x128xf32>
    %252 = vector.broadcast %251 : vector<1x128xf32> to vector<64x128xf32>
    %253 = arith.addf %248, %252 : vector<64x128xf32>
    %254 = arith.mulf %253, %253 : vector<64x128xf32>
    %255 = arith.mulf %253, %254 : vector<64x128xf32>
    %cst_73 = arith.constant 4.471500e-02 : f32
    %256 = vector.broadcast %cst_73 : f32 to vector<64x128xf32>
    %257 = arith.mulf %256, %255 : vector<64x128xf32>
    %258 = arith.addf %253, %257 : vector<64x128xf32>
    %cst_74 = arith.constant 0.797884583 : f32
    %259 = vector.broadcast %cst_74 : f32 to vector<64x128xf32>
    %260 = arith.mulf %259, %258 : vector<64x128xf32>
    %261 = math.tanh %260 : vector<64x128xf32>
    %cst_75 = arith.constant 1.000000e+00 : f32
    %262 = vector.broadcast %cst_75 : f32 to vector<64x128xf32>
    %263 = arith.addf %262, %261 : vector<64x128xf32>
    %cst_76 = arith.constant 5.000000e-01 : f32
    %264 = vector.broadcast %cst_76 : f32 to vector<64x128xf32>
    %265 = arith.mulf %264, %263 : vector<64x128xf32>
    %266 = arith.mulf %253, %265 : vector<64x128xf32>
    %c6 = arith.constant 6 : index
    %c0_77 = arith.constant 0 : index
    %c0_78 = arith.constant 0 : index
    %267 = vector.load %arg2[%c6, %c0_77, %c0_78] : memref<8x128x128xf32, #tpu.memory_space<vmem>>, vector<1x128x128xf32>
    %268 = vector.shape_cast %267 : vector<1x128x128xf32> to vector<128x128xf32>
    %cst_79 = arith.constant dense<0.000000e+00> : vector<64x128xf32>
    %269 = tpu.matmul %266, %268, %cst_79 {dimension_numbers = #tpu.dot_dimension_numbers<[1], [0], [0], [1], [0, 0, 1, 1], [], []>} : vector<64x128xf32>, vector<128x128xf32>, vector<64x128xf32> -> vector<64x128xf32>
    %270 = arith.addf %215, %269 : vector<64x128xf32>
    %271 = vector.extract_strided_slice %2 {offsets = [12, 0], sizes = [1, 128], strides = [1, 1]} : vector<16x128xf32> to vector<1x128xf32>
    %272 = vector.shape_cast %271 : vector<1x128xf32> to vector<128xf32>
    %273 = vector.shape_cast %272 : vector<128xf32> to vector<1x128xf32>
    %274 = vector.broadcast %273 : vector<1x128xf32> to vector<64x128xf32>
    %275 = arith.addf %270, %274 : vector<64x128xf32>
    %276 = vector.extract_strided_slice %2 {offsets = [13, 0], sizes = [1, 128], strides = [1, 1]} : vector<16x128xf32> to vector<1x128xf32>
    %277 = vector.shape_cast %276 : vector<1x128xf32> to vector<128xf32>
    %278 = vector.extract_strided_slice %2 {offsets = [14, 0], sizes = [1, 128], strides = [1, 1]} : vector<16x128xf32> to vector<1x128xf32>
    %279 = vector.shape_cast %278 : vector<1x128xf32> to vector<128xf32>
    %cst_80 = arith.constant dense<0.000000e+00> : vector<64xf32>
    %280 = vector.multi_reduction <add>, %275, %cst_80 [1] : vector<64x128xf32> to vector<64xf32>
    %281 = vector.shape_cast %280 : vector<64xf32> to vector<64x1xf32>
    %cst_81 = arith.constant 3.125000e-02 : f32
    %282 = vector.broadcast %cst_81 : f32 to vector<64x1xf32>
    %283 = arith.mulf %281, %282 : vector<64x1xf32>
    %284 = vector.broadcast %283 : vector<64x1xf32> to vector<64x128xf32>
    %285 = arith.subf %275, %284 : vector<64x128xf32>
    %cst_82 = arith.constant 0.000000e+00 : f32
    %286 = vector.shape_cast %5 : vector<1x128xi1> to vector<1x128xi1>
    %287 = vector.broadcast %286 : vector<1x128xi1> to vector<64x128xi1>
    %288 = vector.broadcast %cst_82 : f32 to vector<64x128xf32>
    %289 = arith.select %287, %285, %288 : vector<64x128xi1>, vector<64x128xf32>
    %290 = arith.mulf %289, %289 : vector<64x128xf32>
    %cst_83 = arith.constant dense<0.000000e+00> : vector<64xf32>
    %291 = vector.multi_reduction <add>, %290, %cst_83 [1] : vector<64x128xf32> to vector<64xf32>
    %292 = vector.shape_cast %291 : vector<64xf32> to vector<64x1xf32>
    %cst_84 = arith.constant 3.125000e-02 : f32
    %293 = vector.broadcast %cst_84 : f32 to vector<64x1xf32>
    %294 = arith.mulf %292, %293 : vector<64x1xf32>
    %cst_85 = arith.constant 9.99999974E-6 : f32
    %295 = vector.broadcast %cst_85 : f32 to vector<64x1xf32>
    %296 = arith.addf %294, %295 : vector<64x1xf32>
    %297 = math.rsqrt %296 : vector<64x1xf32>
    %298 = vector.broadcast %297 : vector<64x1xf32> to vector<64x128xf32>
    %299 = arith.mulf %289, %298 : vector<64x128xf32>
    %300 = vector.shape_cast %277 : vector<128xf32> to vector<1x128xf32>
    %301 = vector.broadcast %300 : vector<1x128xf32> to vector<64x128xf32>
    %302 = arith.mulf %299, %301 : vector<64x128xf32>
    %303 = vector.shape_cast %279 : vector<128xf32> to vector<1x128xf32>
    %304 = vector.broadcast %303 : vector<1x128xf32> to vector<64x128xf32>
    %305 = arith.addf %302, %304 : vector<64x128xf32>
    %c7 = arith.constant 7 : index
    %c0_86 = arith.constant 0 : index
    %c0_87 = arith.constant 0 : index
    %306 = vector.load %arg2[%c7, %c0_86, %c0_87] : memref<8x128x128xf32, #tpu.memory_space<vmem>>, vector<1x128x128xf32>
    %307 = vector.shape_cast %306 : vector<1x128x128xf32> to vector<128x128xf32>
    %cst_88 = arith.constant dense<0.000000e+00> : vector<64x128xf32>
    %308 = tpu.matmul %305, %307, %cst_88 {dimension_numbers = #tpu.dot_dimension_numbers<[1], [0], [0], [1], [0, 0, 1, 1], [], []>} : vector<64x128xf32>, vector<128x128xf32>, vector<64x128xf32> -> vector<64x128xf32>
    %309 = vector.extract_strided_slice %2 {offsets = [15, 0], sizes = [1, 128], strides = [1, 1]} : vector<16x128xf32> to vector<1x128xf32>
    %310 = vector.shape_cast %309 : vector<1x128xf32> to vector<128xf32>
    %311 = vector.shape_cast %310 : vector<128xf32> to vector<1x128xf32>
    %312 = vector.broadcast %311 : vector<1x128xf32> to vector<64x128xf32>
    %313 = arith.addf %308, %312 : vector<64x128xf32>
    %c0_89 = arith.constant 0 : index
    %c0_90 = arith.constant 0 : index
    %c0_91 = arith.constant 0 : index
    %314 = vector.load %arg4[%c0_89, %c0_90, %c0_91] : memref<1x64x128xf32, #tpu.memory_space<vmem>>, vector<1x64x128xf32>
    %315 = vector.shape_cast %314 : vector<1x64x128xf32> to vector<64x128xf32>
    %316 = vector.shape_cast %313 : vector<64x128xf32> to vector<1x64x128xf32>
    tpu.vector_store %arg4[%c0_89, %c0_90, %c0_91], %316 {strides = array<i32>} : memref<1x64x128xf32, #tpu.memory_space<vmem>>, vector<1x64x128xf32>,
    %317 = arith.mulf %313, %313 : vector<64x128xf32>
    %318 = vector.shape_cast %317 : vector<64x128xf32> to vector<1x64x128xf32>
    %cst_92 = arith.constant dense<0.000000e+00> : vector<1xf32>
    %319 = vector.multi_reduction <add>, %318, %cst_92 [1, 2] : vector<1x64x128xf32> to vector<1xf32>
    %320 = vector.shape_cast %319 : vector<1xf32> to vector<1x1x1xf32>
    %321 = vector.extract %320[0, 0, 0] : f32 from vector<1x1x1xf32>
    %322 = vector.broadcast %321 : f32 to vector<1x1xf32>
    %c0_93 = arith.constant 0 : index
    %c0_94 = arith.constant 0 : index
    %c0_95 = arith.constant 0 : index
    %323 = vector.load %arg5[%c0_93, %c0_94, %c0_95] : memref<1x1x1xf32, #tpu.memory_space<vmem>>, vector<1x1x1xf32>
    %324 = vector.shape_cast %323 : vector<1x1x1xf32> to vector<1x1xf32>
    %325 = vector.shape_cast %322 : vector<1x1xf32> to vector<1x1x1xf32>
    tpu.vector_store %arg5[%c0_93, %c0_94, %c0_95], %325 {strides = array<i32>} : memref<1x1x1xf32, #tpu.memory_space<vmem>>, vector<1x1x1xf32>,
    return
  }
  func.func @transform_0(%arg0: i32) -> (i32, i32, i32) {
    %c0_i32 = arith.constant 0 : i32
    %c0_i32_0 = arith.constant 0 : i32
    %c0_i32_1 = arith.constant 0 : i32
    return %arg0, %c0_i32, %c0_i32_0 : i32, i32, i32
  }
  func.func @transform_1(%arg0: i32) -> (i32, i32, i32) {
    %c0_i32 = arith.constant 0 : i32
    %c0_i32_0 = arith.constant 0 : i32
    %c0_i32_1 = arith.constant 0 : i32
    %c0_i32_2 = arith.constant 0 : i32
    return %c0_i32, %c0_i32_0, %c0_i32_1 : i32, i32, i32
  }
  func.func @transform_2(%arg0: i32) -> (i32, i32) {
    %c0_i32 = arith.constant 0 : i32
    %c0_i32_0 = arith.constant 0 : i32
    %c0_i32_1 = arith.constant 0 : i32
    return %c0_i32, %c0_i32_0 : i32, i32
  }
  func.func @transform_3(%arg0: i32) -> (i32, i32, i32) {
    %c0_i32 = arith.constant 0 : i32
    %c0_i32_0 = arith.constant 0 : i32
    %c0_i32_1 = arith.constant 0 : i32
    return %arg0, %c0_i32, %c0_i32_0 : i32, i32, i32
  }
  func.func @transform_4(%arg0: i32) -> (i32, i32, i32) {
    %c0_i32 = arith.constant 0 : i32
    %c0_i32_0 = arith.constant 0 : i32
    %c0_i32_1 = arith.constant 0 : i32
    return %arg0, %c0_i32, %c0_i32_0 : i32, i32, i32
  }
}

module attributes {stable_mosaic.version = 11 : i64} {
  func.func @_awgn_kernel(%arg0: i32, %arg1: memref<1x1xf32, #tpu.memory_space<smem>>, %arg2: memref<1x64x128xf32, #tpu.memory_space<vmem>>, %arg3: memref<1x64x128xf32, #tpu.memory_space<vmem>>, %arg4: memref<1x64x128xf32, #tpu.memory_space<vmem>>) attributes {dimension_semantics = [#tpu.dimension_semantics<parallel>], iteration_bounds = array<i64: 2>, scalar_prefetch = 0 : i64, scratch_operands = 0 : i64, tpu.core_type = #tpu.core_type<tc>, window_params = [{transform_indices = @transform_0, window_bounds = array<i64: 1, 1>}, {transform_indices = @transform_1, window_bounds = array<i64: 1, 64, 128>}, {transform_indices = @transform_2, window_bounds = array<i64: 1, 64, 128>}, {transform_indices = @transform_3, window_bounds = array<i64: 1, 64, 128>}]} {
    %c0 = arith.constant 0 : index
    %c0_0 = arith.constant 0 : index
    %c0_1 = arith.constant 0 : index
    %0 = vector.load %arg2[%c0, %c0_0, %c0_1] : memref<1x64x128xf32, #tpu.memory_space<vmem>>, vector<1x64x128xf32>
    %1 = vector.shape_cast %0 : vector<1x64x128xf32> to vector<64x128xf32>
    %c0_2 = arith.constant 0 : index
    %c0_3 = arith.constant 0 : index
    %2 = memref.load %arg1[%c0_2, %c0_3] : memref<1x1xf32, #tpu.memory_space<smem>>
    %c0_4 = arith.constant 0 : index
    %c0_5 = arith.constant 0 : index
    %c0_6 = arith.constant 0 : index
    %3 = vector.load %arg3[%c0_4, %c0_5, %c0_6] : memref<1x64x128xf32, #tpu.memory_space<vmem>>, vector<1x64x128xf32>
    %4 = vector.shape_cast %3 : vector<1x64x128xf32> to vector<64x128xf32>
    %5 = vector.broadcast %2 : f32 to vector<64x128xf32>
    %6 = arith.mulf %5, %4 : vector<64x128xf32>
    %7 = arith.addf %1, %6 : vector<64x128xf32>
    %c0_7 = arith.constant 0 : index
    %c0_8 = arith.constant 0 : index
    %c0_9 = arith.constant 0 : index
    %8 = vector.load %arg4[%c0_7, %c0_8, %c0_9] : memref<1x64x128xf32, #tpu.memory_space<vmem>>, vector<1x64x128xf32>
    %9 = vector.shape_cast %8 : vector<1x64x128xf32> to vector<64x128xf32>
    %10 = vector.shape_cast %7 : vector<64x128xf32> to vector<1x64x128xf32>
    tpu.vector_store %arg4[%c0_7, %c0_8, %c0_9], %10 {strides = array<i32>} : memref<1x64x128xf32, #tpu.memory_space<vmem>>, vector<1x64x128xf32>,
    return
  }
  func.func @transform_0(%arg0: i32) -> (i32, i32) {
    %c0_i32 = arith.constant 0 : i32
    %c0_i32_0 = arith.constant 0 : i32
    %c0_i32_1 = arith.constant 0 : i32
    return %c0_i32, %c0_i32_0 : i32, i32
  }
  func.func @transform_1(%arg0: i32) -> (i32, i32, i32) {
    %c0_i32 = arith.constant 0 : i32
    %c0_i32_0 = arith.constant 0 : i32
    %c0_i32_1 = arith.constant 0 : i32
    return %arg0, %c0_i32, %c0_i32_0 : i32, i32, i32
  }
  func.func @transform_2(%arg0: i32) -> (i32, i32, i32) {
    %c0_i32 = arith.constant 0 : i32
    %c0_i32_0 = arith.constant 0 : i32
    %c0_i32_1 = arith.constant 0 : i32
    return %arg0, %c0_i32, %c0_i32_0 : i32, i32, i32
  }
  func.func @transform_3(%arg0: i32) -> (i32, i32, i32) {
    %c0_i32 = arith.constant 0 : i32
    %c0_i32_0 = arith.constant 0 : i32
    %c0_i32_1 = arith.constant 0 : i32
    return %arg0, %c0_i32, %c0_i32_0 : i32, i32, i32
  }
}

module attributes {stable_mosaic.version = 11 : i64} {
  func.func @_decoder_kernel(%arg0: i32, %arg1: memref<1x64x128xf32, #tpu.memory_space<vmem>>, %arg2: memref<1x64x128xf32, #tpu.memory_space<vmem>>, %arg3: memref<8x128x128xf32, #tpu.memory_space<vmem>>, %arg4: memref<16x128xf32, #tpu.memory_space<vmem>>, %arg5: memref<1x64x128xf32, #tpu.memory_space<vmem>>, %arg6: memref<1x1x1xf32, #tpu.memory_space<vmem>>) attributes {dimension_semantics = [#tpu.dimension_semantics<parallel>], iteration_bounds = array<i64: 2>, scalar_prefetch = 0 : i64, scratch_operands = 0 : i64, tpu.core_type = #tpu.core_type<tc>, window_params = [{transform_indices = @transform_0, window_bounds = array<i64: 1, 64, 128>}, {transform_indices = @transform_1, window_bounds = array<i64: 1, 64, 128>}, {pipeline_mode = #tpu.pipeline_mode<synchronous>, transform_indices = @transform_2, window_bounds = array<i64: 8, 128, 128>}, {pipeline_mode = #tpu.pipeline_mode<synchronous>, transform_indices = @transform_3, window_bounds = array<i64: 16, 128>}, {transform_indices = @transform_4, window_bounds = array<i64: 1, 64, 128>}, {transform_indices = @transform_5, window_bounds = array<i64: 1, 1, 1>}]} {
    %c0 = arith.constant 0 : index
    %c0_0 = arith.constant 0 : index
    %c0_1 = arith.constant 0 : index
    %0 = vector.load %arg1[%c0, %c0_0, %c0_1] : memref<1x64x128xf32, #tpu.memory_space<vmem>>, vector<1x64x128xf32>
    %1 = vector.shape_cast %0 : vector<1x64x128xf32> to vector<64x128xf32>
    %c0_2 = arith.constant 0 : index
    %c0_3 = arith.constant 0 : index
    %2 = vector.load %arg4[%c0_2, %c0_3] : memref<16x128xf32, #tpu.memory_space<vmem>>, vector<16x128xf32>
    %3 = tpu.iota {dimensions = array<i32: 1>} : vector<1x128xi32>
    %c32_i32 = arith.constant 32 : i32
    %4 = vector.broadcast %c32_i32 : i32 to vector<1x128xi32>
    %5 = arith.cmpi slt, %3, %4 : vector<1x128xi32>
    %c0_4 = arith.constant 0 : index
    %c0_5 = arith.constant 0 : index
    %c0_6 = arith.constant 0 : index
    %6 = vector.load %arg3[%c0_4, %c0_5, %c0_6] : memref<8x128x128xf32, #tpu.memory_space<vmem>>, vector<1x128x128xf32>
    %7 = vector.shape_cast %6 : vector<1x128x128xf32> to vector<128x128xf32>
    %cst = arith.constant dense<0.000000e+00> : vector<64x128xf32>
    %8 = tpu.matmul %1, %7, %cst {dimension_numbers = #tpu.dot_dimension_numbers<[1], [0], [0], [1], [0, 0, 1, 1], [], []>} : vector<64x128xf32>, vector<128x128xf32>, vector<64x128xf32> -> vector<64x128xf32>
    %9 = vector.extract_strided_slice %2 {offsets = [0, 0], sizes = [1, 128], strides = [1, 1]} : vector<16x128xf32> to vector<1x128xf32>
    %10 = vector.shape_cast %9 : vector<1x128xf32> to vector<128xf32>
    %11 = vector.shape_cast %10 : vector<128xf32> to vector<1x128xf32>
    %12 = vector.broadcast %11 : vector<1x128xf32> to vector<64x128xf32>
    %13 = arith.addf %8, %12 : vector<64x128xf32>
    %14 = vector.extract_strided_slice %2 {offsets = [1, 0], sizes = [1, 128], strides = [1, 1]} : vector<16x128xf32> to vector<1x128xf32>
    %15 = vector.shape_cast %14 : vector<1x128xf32> to vector<128xf32>
    %16 = vector.extract_strided_slice %2 {offsets = [2, 0], sizes = [1, 128], strides = [1, 1]} : vector<16x128xf32> to vector<1x128xf32>
    %17 = vector.shape_cast %16 : vector<1x128xf32> to vector<128xf32>
    %cst_7 = arith.constant dense<0.000000e+00> : vector<64xf32>
    %18 = vector.multi_reduction <add>, %13, %cst_7 [1] : vector<64x128xf32> to vector<64xf32>
    %19 = vector.shape_cast %18 : vector<64xf32> to vector<64x1xf32>
    %cst_8 = arith.constant 3.125000e-02 : f32
    %20 = vector.broadcast %cst_8 : f32 to vector<64x1xf32>
    %21 = arith.mulf %19, %20 : vector<64x1xf32>
    %22 = vector.broadcast %21 : vector<64x1xf32> to vector<64x128xf32>
    %23 = arith.subf %13, %22 : vector<64x128xf32>
    %cst_9 = arith.constant 0.000000e+00 : f32
    %24 = vector.shape_cast %5 : vector<1x128xi1> to vector<1x128xi1>
    %25 = vector.broadcast %24 : vector<1x128xi1> to vector<64x128xi1>
    %26 = vector.broadcast %cst_9 : f32 to vector<64x128xf32>
    %27 = arith.select %25, %23, %26 : vector<64x128xi1>, vector<64x128xf32>
    %28 = arith.mulf %27, %27 : vector<64x128xf32>
    %cst_10 = arith.constant dense<0.000000e+00> : vector<64xf32>
    %29 = vector.multi_reduction <add>, %28, %cst_10 [1] : vector<64x128xf32> to vector<64xf32>
    %30 = vector.shape_cast %29 : vector<64xf32> to vector<64x1xf32>
    %cst_11 = arith.constant 3.125000e-02 : f32
    %31 = vector.broadcast %cst_11 : f32 to vector<64x1xf32>
    %32 = arith.mulf %30, %31 : vector<64x1xf32>
    %cst_12 = arith.constant 9.99999974E-6 : f32
    %33 = vector.broadcast %cst_12 : f32 to vector<64x1xf32>
    %34 = arith.addf %32, %33 : vector<64x1xf32>
    %35 = math.rsqrt %34 : vector<64x1xf32>
    %36 = vector.broadcast %35 : vector<64x1xf32> to vector<64x128xf32>
    %37 = arith.mulf %27, %36 : vector<64x128xf32>
    %38 = vector.shape_cast %15 : vector<128xf32> to vector<1x128xf32>
    %39 = vector.broadcast %38 : vector<1x128xf32> to vector<64x128xf32>
    %40 = arith.mulf %37, %39 : vector<64x128xf32>
    %41 = vector.shape_cast %17 : vector<128xf32> to vector<1x128xf32>
    %42 = vector.broadcast %41 : vector<1x128xf32> to vector<64x128xf32>
    %43 = arith.addf %40, %42 : vector<64x128xf32>
    %44 = vector.extract_strided_slice %2 {offsets = [3, 0], sizes = [1, 128], strides = [1, 1]} : vector<16x128xf32> to vector<1x128xf32>
    %45 = vector.shape_cast %44 : vector<1x128xf32> to vector<128xf32>
    %46 = vector.extract_strided_slice %2 {offsets = [4, 0], sizes = [1, 128], strides = [1, 1]} : vector<16x128xf32> to vector<1x128xf32>
    %47 = vector.shape_cast %46 : vector<1x128xf32> to vector<128xf32>
    %cst_13 = arith.constant dense<0.000000e+00> : vector<64xf32>
    %48 = vector.multi_reduction <add>, %43, %cst_13 [1] : vector<64x128xf32> to vector<64xf32>
    %49 = vector.shape_cast %48 : vector<64xf32> to vector<64x1xf32>
    %cst_14 = arith.constant 3.125000e-02 : f32
    %50 = vector.broadcast %cst_14 : f32 to vector<64x1xf32>
    %51 = arith.mulf %49, %50 : vector<64x1xf32>
    %52 = vector.broadcast %51 : vector<64x1xf32> to vector<64x128xf32>
    %53 = arith.subf %43, %52 : vector<64x128xf32>
    %cst_15 = arith.constant 0.000000e+00 : f32
    %54 = vector.shape_cast %5 : vector<1x128xi1> to vector<1x128xi1>
    %55 = vector.broadcast %54 : vector<1x128xi1> to vector<64x128xi1>
    %56 = vector.broadcast %cst_15 : f32 to vector<64x128xf32>
    %57 = arith.select %55, %53, %56 : vector<64x128xi1>, vector<64x128xf32>
    %58 = arith.mulf %57, %57 : vector<64x128xf32>
    %cst_16 = arith.constant dense<0.000000e+00> : vector<64xf32>
    %59 = vector.multi_reduction <add>, %58, %cst_16 [1] : vector<64x128xf32> to vector<64xf32>
    %60 = vector.shape_cast %59 : vector<64xf32> to vector<64x1xf32>
    %cst_17 = arith.constant 3.125000e-02 : f32
    %61 = vector.broadcast %cst_17 : f32 to vector<64x1xf32>
    %62 = arith.mulf %60, %61 : vector<64x1xf32>
    %cst_18 = arith.constant 9.99999974E-6 : f32
    %63 = vector.broadcast %cst_18 : f32 to vector<64x1xf32>
    %64 = arith.addf %62, %63 : vector<64x1xf32>
    %65 = math.rsqrt %64 : vector<64x1xf32>
    %66 = vector.broadcast %65 : vector<64x1xf32> to vector<64x128xf32>
    %67 = arith.mulf %57, %66 : vector<64x128xf32>
    %68 = vector.shape_cast %45 : vector<128xf32> to vector<1x128xf32>
    %69 = vector.broadcast %68 : vector<1x128xf32> to vector<64x128xf32>
    %70 = arith.mulf %67, %69 : vector<64x128xf32>
    %71 = vector.shape_cast %47 : vector<128xf32> to vector<1x128xf32>
    %72 = vector.broadcast %71 : vector<1x128xf32> to vector<64x128xf32>
    %73 = arith.addf %70, %72 : vector<64x128xf32>
    %c1 = arith.constant 1 : index
    %c0_19 = arith.constant 0 : index
    %c0_20 = arith.constant 0 : index
    %74 = vector.load %arg3[%c1, %c0_19, %c0_20] : memref<8x128x128xf32, #tpu.memory_space<vmem>>, vector<1x128x128xf32>
    %75 = vector.shape_cast %74 : vector<1x128x128xf32> to vector<128x128xf32>
    %cst_21 = arith.constant dense<0.000000e+00> : vector<64x128xf32>
    %76 = tpu.matmul %73, %75, %cst_21 {dimension_numbers = #tpu.dot_dimension_numbers<[1], [0], [0], [1], [0, 0, 1, 1], [], []>} : vector<64x128xf32>, vector<128x128xf32>, vector<64x128xf32> -> vector<64x128xf32>
    %77 = vector.extract_strided_slice %2 {offsets = [5, 0], sizes = [1, 128], strides = [1, 1]} : vector<16x128xf32> to vector<1x128xf32>
    %78 = vector.shape_cast %77 : vector<1x128xf32> to vector<128xf32>
    %79 = vector.shape_cast %78 : vector<128xf32> to vector<1x128xf32>
    %80 = vector.broadcast %79 : vector<1x128xf32> to vector<64x128xf32>
    %81 = arith.addf %76, %80 : vector<64x128xf32>
    %c2 = arith.constant 2 : index
    %c0_22 = arith.constant 0 : index
    %c0_23 = arith.constant 0 : index
    %82 = vector.load %arg3[%c2, %c0_22, %c0_23] : memref<8x128x128xf32, #tpu.memory_space<vmem>>, vector<1x128x128xf32>
    %83 = vector.shape_cast %82 : vector<1x128x128xf32> to vector<128x128xf32>
    %cst_24 = arith.constant dense<0.000000e+00> : vector<64x128xf32>
    %84 = tpu.matmul %73, %83, %cst_24 {dimension_numbers = #tpu.dot_dimension_numbers<[1], [0], [0], [1], [0, 0, 1, 1], [], []>} : vector<64x128xf32>, vector<128x128xf32>, vector<64x128xf32> -> vector<64x128xf32>
    %85 = vector.extract_strided_slice %2 {offsets = [6, 0], sizes = [1, 128], strides = [1, 1]} : vector<16x128xf32> to vector<1x128xf32>
    %86 = vector.shape_cast %85 : vector<1x128xf32> to vector<128xf32>
    %87 = vector.shape_cast %86 : vector<128xf32> to vector<1x128xf32>
    %88 = vector.broadcast %87 : vector<1x128xf32> to vector<64x128xf32>
    %89 = arith.addf %84, %88 : vector<64x128xf32>
    %c3 = arith.constant 3 : index
    %c0_25 = arith.constant 0 : index
    %c0_26 = arith.constant 0 : index
    %90 = vector.load %arg3[%c3, %c0_25, %c0_26] : memref<8x128x128xf32, #tpu.memory_space<vmem>>, vector<1x128x128xf32>
    %91 = vector.shape_cast %90 : vector<1x128x128xf32> to vector<128x128xf32>
    %cst_27 = arith.constant dense<0.000000e+00> : vector<64x128xf32>
    %92 = tpu.matmul %73, %91, %cst_27 {dimension_numbers = #tpu.dot_dimension_numbers<[1], [0], [0], [1], [0, 0, 1, 1], [], []>} : vector<64x128xf32>, vector<128x128xf32>, vector<64x128xf32> -> vector<64x128xf32>
    %93 = vector.extract_strided_slice %2 {offsets = [7, 0], sizes = [1, 128], strides = [1, 1]} : vector<16x128xf32> to vector<1x128xf32>
    %94 = vector.shape_cast %93 : vector<1x128xf32> to vector<128xf32>
    %95 = vector.shape_cast %94 : vector<128xf32> to vector<1x128xf32>
    %96 = vector.broadcast %95 : vector<1x128xf32> to vector<64x128xf32>
    %97 = arith.addf %92, %96 : vector<64x128xf32>
    %cst_28 = arith.constant 0.000000e+00 : f32
    %98 = vector.broadcast %cst_28 : f32 to vector<64x128xf32>
    %c0_i32 = arith.constant 0 : i32
    %99 = vector.broadcast %c0_i32 : i32 to vector<1x128xi32>
    %100 = arith.cmpi sge, %3, %99 : vector<1x128xi32>
    %c8_i32 = arith.constant 8 : i32
    %101 = vector.broadcast %c8_i32 : i32 to vector<1x128xi32>
    %102 = arith.cmpi slt, %3, %101 : vector<1x128xi32>
    %103 = arith.andi %100, %102 : vector<1x128xi1>
    %cst_29 = arith.constant 1.000000e+00 : f32
    %cst_30 = arith.constant 0.000000e+00 : f32
    %104 = vector.broadcast %cst_29 : f32 to vector<1x128xf32>
    %105 = vector.broadcast %cst_30 : f32 to vector<1x128xf32>
    %106 = arith.select %103, %104, %105 : vector<1x128xi1>, vector<1x128xf32>
    %107 = vector.broadcast %106 : vector<1x128xf32> to vector<64x128xf32>
    %108 = arith.mulf %81, %107 : vector<64x128xf32>
    %cst_31 = arith.constant dense<0.000000e+00> : vector<64x64xf32>
    %109 = tpu.matmul %108, %89, %cst_31 {dimension_numbers = #tpu.dot_dimension_numbers<[1], [1], [0], [0], [0, 0, 1, 0], [], []>} : vector<64x128xf32>, vector<64x128xf32>, vector<64x64xf32> -> vector<64x64xf32>
    %cst_32 = arith.constant 0.353553385 : f32
    %110 = vector.broadcast %cst_32 : f32 to vector<64x64xf32>
    %111 = arith.mulf %109, %110 : vector<64x64xf32>
    %cst_33 = arith.constant dense<0xFF800000> : vector<64xf32>
    %112 = vector.multi_reduction <maximumf>, %111, %cst_33 [1] : vector<64x64xf32> to vector<64xf32>
    %113 = vector.shape_cast %112 : vector<64xf32> to vector<64x1xf32>
    %114 = vector.broadcast %113 : vector<64x1xf32> to vector<64x64xf32>
    %115 = arith.subf %111, %114 : vector<64x64xf32>
    %116 = math.exp %115 : vector<64x64xf32>
    %cst_34 = arith.constant dense<0.000000e+00> : vector<64xf32>
    %117 = vector.multi_reduction <add>, %116, %cst_34 [1] : vector<64x64xf32> to vector<64xf32>
    %118 = vector.shape_cast %117 : vector<64xf32> to vector<64x1xf32>
    %119 = tpu.reciprocal %118 {approx = true} : vector<64x1xf32> -> vector<64x1xf32>
    %120 = vector.broadcast %119 : vector<64x1xf32> to vector<64x64xf32>
    %121 = arith.mulf %116, %120 : vector<64x64xf32>
    %122 = vector.broadcast %106 : vector<1x128xf32> to vector<64x128xf32>
    %123 = arith.mulf %97, %122 : vector<64x128xf32>
    %cst_35 = arith.constant dense<0.000000e+00> : vector<64x128xf32>
    %124 = tpu.matmul %121, %123, %cst_35 {dimension_numbers = #tpu.dot_dimension_numbers<[1], [0], [0], [1], [0, 0, 1, 1], [], []>} : vector<64x64xf32>, vector<64x128xf32>, vector<64x128xf32> -> vector<64x128xf32>
    %125 = arith.addf %98, %124 : vector<64x128xf32>
    %c8_i32_36 = arith.constant 8 : i32
    %126 = vector.broadcast %c8_i32_36 : i32 to vector<1x128xi32>
    %127 = arith.cmpi sge, %3, %126 : vector<1x128xi32>
    %c16_i32 = arith.constant 16 : i32
    %128 = vector.broadcast %c16_i32 : i32 to vector<1x128xi32>
    %129 = arith.cmpi slt, %3, %128 : vector<1x128xi32>
    %130 = arith.andi %127, %129 : vector<1x128xi1>
    %cst_37 = arith.constant 1.000000e+00 : f32
    %cst_38 = arith.constant 0.000000e+00 : f32
    %131 = vector.broadcast %cst_37 : f32 to vector<1x128xf32>
    %132 = vector.broadcast %cst_38 : f32 to vector<1x128xf32>
    %133 = arith.select %130, %131, %132 : vector<1x128xi1>, vector<1x128xf32>
    %134 = vector.broadcast %133 : vector<1x128xf32> to vector<64x128xf32>
    %135 = arith.mulf %81, %134 : vector<64x128xf32>
    %cst_39 = arith.constant dense<0.000000e+00> : vector<64x64xf32>
    %136 = tpu.matmul %135, %89, %cst_39 {dimension_numbers = #tpu.dot_dimension_numbers<[1], [1], [0], [0], [0, 0, 1, 0], [], []>} : vector<64x128xf32>, vector<64x128xf32>, vector<64x64xf32> -> vector<64x64xf32>
    %cst_40 = arith.constant 0.353553385 : f32
    %137 = vector.broadcast %cst_40 : f32 to vector<64x64xf32>
    %138 = arith.mulf %136, %137 : vector<64x64xf32>
    %cst_41 = arith.constant dense<0xFF800000> : vector<64xf32>
    %139 = vector.multi_reduction <maximumf>, %138, %cst_41 [1] : vector<64x64xf32> to vector<64xf32>
    %140 = vector.shape_cast %139 : vector<64xf32> to vector<64x1xf32>
    %141 = vector.broadcast %140 : vector<64x1xf32> to vector<64x64xf32>
    %142 = arith.subf %138, %141 : vector<64x64xf32>
    %143 = math.exp %142 : vector<64x64xf32>
    %cst_42 = arith.constant dense<0.000000e+00> : vector<64xf32>
    %144 = vector.multi_reduction <add>, %143, %cst_42 [1] : vector<64x64xf32> to vector<64xf32>
    %145 = vector.shape_cast %144 : vector<64xf32> to vector<64x1xf32>
    %146 = tpu.reciprocal %145 {approx = true} : vector<64x1xf32> -> vector<64x1xf32>
    %147 = vector.broadcast %146 : vector<64x1xf32> to vector<64x64xf32>
    %148 = arith.mulf %143, %147 : vector<64x64xf32>
    %149 = vector.broadcast %133 : vector<1x128xf32> to vector<64x128xf32>
    %150 = arith.mulf %97, %149 : vector<64x128xf32>
    %cst_43 = arith.constant dense<0.000000e+00> : vector<64x128xf32>
    %151 = tpu.matmul %148, %150, %cst_43 {dimension_numbers = #tpu.dot_dimension_numbers<[1], [0], [0], [1], [0, 0, 1, 1], [], []>} : vector<64x64xf32>, vector<64x128xf32>, vector<64x128xf32> -> vector<64x128xf32>
    %152 = arith.addf %125, %151 : vector<64x128xf32>
    %c16_i32_44 = arith.constant 16 : i32
    %153 = vector.broadcast %c16_i32_44 : i32 to vector<1x128xi32>
    %154 = arith.cmpi sge, %3, %153 : vector<1x128xi32>
    %c24_i32 = arith.constant 24 : i32
    %155 = vector.broadcast %c24_i32 : i32 to vector<1x128xi32>
    %156 = arith.cmpi slt, %3, %155 : vector<1x128xi32>
    %157 = arith.andi %154, %156 : vector<1x128xi1>
    %cst_45 = arith.constant 1.000000e+00 : f32
    %cst_46 = arith.constant 0.000000e+00 : f32
    %158 = vector.broadcast %cst_45 : f32 to vector<1x128xf32>
    %159 = vector.broadcast %cst_46 : f32 to vector<1x128xf32>
    %160 = arith.select %157, %158, %159 : vector<1x128xi1>, vector<1x128xf32>
    %161 = vector.broadcast %160 : vector<1x128xf32> to vector<64x128xf32>
    %162 = arith.mulf %81, %161 : vector<64x128xf32>
    %cst_47 = arith.constant dense<0.000000e+00> : vector<64x64xf32>
    %163 = tpu.matmul %162, %89, %cst_47 {dimension_numbers = #tpu.dot_dimension_numbers<[1], [1], [0], [0], [0, 0, 1, 0], [], []>} : vector<64x128xf32>, vector<64x128xf32>, vector<64x64xf32> -> vector<64x64xf32>
    %cst_48 = arith.constant 0.353553385 : f32
    %164 = vector.broadcast %cst_48 : f32 to vector<64x64xf32>
    %165 = arith.mulf %163, %164 : vector<64x64xf32>
    %cst_49 = arith.constant dense<0xFF800000> : vector<64xf32>
    %166 = vector.multi_reduction <maximumf>, %165, %cst_49 [1] : vector<64x64xf32> to vector<64xf32>
    %167 = vector.shape_cast %166 : vector<64xf32> to vector<64x1xf32>
    %168 = vector.broadcast %167 : vector<64x1xf32> to vector<64x64xf32>
    %169 = arith.subf %165, %168 : vector<64x64xf32>
    %170 = math.exp %169 : vector<64x64xf32>
    %cst_50 = arith.constant dense<0.000000e+00> : vector<64xf32>
    %171 = vector.multi_reduction <add>, %170, %cst_50 [1] : vector<64x64xf32> to vector<64xf32>
    %172 = vector.shape_cast %171 : vector<64xf32> to vector<64x1xf32>
    %173 = tpu.reciprocal %172 {approx = true} : vector<64x1xf32> -> vector<64x1xf32>
    %174 = vector.broadcast %173 : vector<64x1xf32> to vector<64x64xf32>
    %175 = arith.mulf %170, %174 : vector<64x64xf32>
    %176 = vector.broadcast %160 : vector<1x128xf32> to vector<64x128xf32>
    %177 = arith.mulf %97, %176 : vector<64x128xf32>
    %cst_51 = arith.constant dense<0.000000e+00> : vector<64x128xf32>
    %178 = tpu.matmul %175, %177, %cst_51 {dimension_numbers = #tpu.dot_dimension_numbers<[1], [0], [0], [1], [0, 0, 1, 1], [], []>} : vector<64x64xf32>, vector<64x128xf32>, vector<64x128xf32> -> vector<64x128xf32>
    %179 = arith.addf %152, %178 : vector<64x128xf32>
    %c24_i32_52 = arith.constant 24 : i32
    %180 = vector.broadcast %c24_i32_52 : i32 to vector<1x128xi32>
    %181 = arith.cmpi sge, %3, %180 : vector<1x128xi32>
    %c32_i32_53 = arith.constant 32 : i32
    %182 = vector.broadcast %c32_i32_53 : i32 to vector<1x128xi32>
    %183 = arith.cmpi slt, %3, %182 : vector<1x128xi32>
    %184 = arith.andi %181, %183 : vector<1x128xi1>
    %cst_54 = arith.constant 1.000000e+00 : f32
    %cst_55 = arith.constant 0.000000e+00 : f32
    %185 = vector.broadcast %cst_54 : f32 to vector<1x128xf32>
    %186 = vector.broadcast %cst_55 : f32 to vector<1x128xf32>
    %187 = arith.select %184, %185, %186 : vector<1x128xi1>, vector<1x128xf32>
    %188 = vector.broadcast %187 : vector<1x128xf32> to vector<64x128xf32>
    %189 = arith.mulf %81, %188 : vector<64x128xf32>
    %cst_56 = arith.constant dense<0.000000e+00> : vector<64x64xf32>
    %190 = tpu.matmul %189, %89, %cst_56 {dimension_numbers = #tpu.dot_dimension_numbers<[1], [1], [0], [0], [0, 0, 1, 0], [], []>} : vector<64x128xf32>, vector<64x128xf32>, vector<64x64xf32> -> vector<64x64xf32>
    %cst_57 = arith.constant 0.353553385 : f32
    %191 = vector.broadcast %cst_57 : f32 to vector<64x64xf32>
    %192 = arith.mulf %190, %191 : vector<64x64xf32>
    %cst_58 = arith.constant dense<0xFF800000> : vector<64xf32>
    %193 = vector.multi_reduction <maximumf>, %192, %cst_58 [1] : vector<64x64xf32> to vector<64xf32>
    %194 = vector.shape_cast %193 : vector<64xf32> to vector<64x1xf32>
    %195 = vector.broadcast %194 : vector<64x1xf32> to vector<64x64xf32>
    %196 = arith.subf %192, %195 : vector<64x64xf32>
    %197 = math.exp %196 : vector<64x64xf32>
    %cst_59 = arith.constant dense<0.000000e+00> : vector<64xf32>
    %198 = vector.multi_reduction <add>, %197, %cst_59 [1] : vector<64x64xf32> to vector<64xf32>
    %199 = vector.shape_cast %198 : vector<64xf32> to vector<64x1xf32>
    %200 = tpu.reciprocal %199 {approx = true} : vector<64x1xf32> -> vector<64x1xf32>
    %201 = vector.broadcast %200 : vector<64x1xf32> to vector<64x64xf32>
    %202 = arith.mulf %197, %201 : vector<64x64xf32>
    %203 = vector.broadcast %187 : vector<1x128xf32> to vector<64x128xf32>
    %204 = arith.mulf %97, %203 : vector<64x128xf32>
    %cst_60 = arith.constant dense<0.000000e+00> : vector<64x128xf32>
    %205 = tpu.matmul %202, %204, %cst_60 {dimension_numbers = #tpu.dot_dimension_numbers<[1], [0], [0], [1], [0, 0, 1, 1], [], []>} : vector<64x64xf32>, vector<64x128xf32>, vector<64x128xf32> -> vector<64x128xf32>
    %206 = arith.addf %179, %205 : vector<64x128xf32>
    %c4 = arith.constant 4 : index
    %c0_61 = arith.constant 0 : index
    %c0_62 = arith.constant 0 : index
    %207 = vector.load %arg3[%c4, %c0_61, %c0_62] : memref<8x128x128xf32, #tpu.memory_space<vmem>>, vector<1x128x128xf32>
    %208 = vector.shape_cast %207 : vector<1x128x128xf32> to vector<128x128xf32>
    %cst_63 = arith.constant dense<0.000000e+00> : vector<64x128xf32>
    %209 = tpu.matmul %206, %208, %cst_63 {dimension_numbers = #tpu.dot_dimension_numbers<[1], [0], [0], [1], [0, 0, 1, 1], [], []>} : vector<64x128xf32>, vector<128x128xf32>, vector<64x128xf32> -> vector<64x128xf32>
    %210 = arith.addf %43, %209 : vector<64x128xf32>
    %211 = vector.extract_strided_slice %2 {offsets = [8, 0], sizes = [1, 128], strides = [1, 1]} : vector<16x128xf32> to vector<1x128xf32>
    %212 = vector.shape_cast %211 : vector<1x128xf32> to vector<128xf32>
    %213 = vector.shape_cast %212 : vector<128xf32> to vector<1x128xf32>
    %214 = vector.broadcast %213 : vector<1x128xf32> to vector<64x128xf32>
    %215 = arith.addf %210, %214 : vector<64x128xf32>
    %216 = vector.extract_strided_slice %2 {offsets = [9, 0], sizes = [1, 128], strides = [1, 1]} : vector<16x128xf32> to vector<1x128xf32>
    %217 = vector.shape_cast %216 : vector<1x128xf32> to vector<128xf32>
    %218 = vector.extract_strided_slice %2 {offsets = [10, 0], sizes = [1, 128], strides = [1, 1]} : vector<16x128xf32> to vector<1x128xf32>
    %219 = vector.shape_cast %218 : vector<1x128xf32> to vector<128xf32>
    %cst_64 = arith.constant dense<0.000000e+00> : vector<64xf32>
    %220 = vector.multi_reduction <add>, %215, %cst_64 [1] : vector<64x128xf32> to vector<64xf32>
    %221 = vector.shape_cast %220 : vector<64xf32> to vector<64x1xf32>
    %cst_65 = arith.constant 3.125000e-02 : f32
    %222 = vector.broadcast %cst_65 : f32 to vector<64x1xf32>
    %223 = arith.mulf %221, %222 : vector<64x1xf32>
    %224 = vector.broadcast %223 : vector<64x1xf32> to vector<64x128xf32>
    %225 = arith.subf %215, %224 : vector<64x128xf32>
    %cst_66 = arith.constant 0.000000e+00 : f32
    %226 = vector.shape_cast %5 : vector<1x128xi1> to vector<1x128xi1>
    %227 = vector.broadcast %226 : vector<1x128xi1> to vector<64x128xi1>
    %228 = vector.broadcast %cst_66 : f32 to vector<64x128xf32>
    %229 = arith.select %227, %225, %228 : vector<64x128xi1>, vector<64x128xf32>
    %230 = arith.mulf %229, %229 : vector<64x128xf32>
    %cst_67 = arith.constant dense<0.000000e+00> : vector<64xf32>
    %231 = vector.multi_reduction <add>, %230, %cst_67 [1] : vector<64x128xf32> to vector<64xf32>
    %232 = vector.shape_cast %231 : vector<64xf32> to vector<64x1xf32>
    %cst_68 = arith.constant 3.125000e-02 : f32
    %233 = vector.broadcast %cst_68 : f32 to vector<64x1xf32>
    %234 = arith.mulf %232, %233 : vector<64x1xf32>
    %cst_69 = arith.constant 9.99999974E-6 : f32
    %235 = vector.broadcast %cst_69 : f32 to vector<64x1xf32>
    %236 = arith.addf %234, %235 : vector<64x1xf32>
    %237 = math.rsqrt %236 : vector<64x1xf32>
    %238 = vector.broadcast %237 : vector<64x1xf32> to vector<64x128xf32>
    %239 = arith.mulf %229, %238 : vector<64x128xf32>
    %240 = vector.shape_cast %217 : vector<128xf32> to vector<1x128xf32>
    %241 = vector.broadcast %240 : vector<1x128xf32> to vector<64x128xf32>
    %242 = arith.mulf %239, %241 : vector<64x128xf32>
    %243 = vector.shape_cast %219 : vector<128xf32> to vector<1x128xf32>
    %244 = vector.broadcast %243 : vector<1x128xf32> to vector<64x128xf32>
    %245 = arith.addf %242, %244 : vector<64x128xf32>
    %c5 = arith.constant 5 : index
    %c0_70 = arith.constant 0 : index
    %c0_71 = arith.constant 0 : index
    %246 = vector.load %arg3[%c5, %c0_70, %c0_71] : memref<8x128x128xf32, #tpu.memory_space<vmem>>, vector<1x128x128xf32>
    %247 = vector.shape_cast %246 : vector<1x128x128xf32> to vector<128x128xf32>
    %cst_72 = arith.constant dense<0.000000e+00> : vector<64x128xf32>
    %248 = tpu.matmul %245, %247, %cst_72 {dimension_numbers = #tpu.dot_dimension_numbers<[1], [0], [0], [1], [0, 0, 1, 1], [], []>} : vector<64x128xf32>, vector<128x128xf32>, vector<64x128xf32> -> vector<64x128xf32>
    %249 = vector.extract_strided_slice %2 {offsets = [11, 0], sizes = [1, 128], strides = [1, 1]} : vector<16x128xf32> to vector<1x128xf32>
    %250 = vector.shape_cast %249 : vector<1x128xf32> to vector<128xf32>
    %251 = vector.shape_cast %250 : vector<128xf32> to vector<1x128xf32>
    %252 = vector.broadcast %251 : vector<1x128xf32> to vector<64x128xf32>
    %253 = arith.addf %248, %252 : vector<64x128xf32>
    %254 = arith.mulf %253, %253 : vector<64x128xf32>
    %255 = arith.mulf %253, %254 : vector<64x128xf32>
    %cst_73 = arith.constant 4.471500e-02 : f32
    %256 = vector.broadcast %cst_73 : f32 to vector<64x128xf32>
    %257 = arith.mulf %256, %255 : vector<64x128xf32>
    %258 = arith.addf %253, %257 : vector<64x128xf32>
    %cst_74 = arith.constant 0.797884583 : f32
    %259 = vector.broadcast %cst_74 : f32 to vector<64x128xf32>
    %260 = arith.mulf %259, %258 : vector<64x128xf32>
    %261 = math.tanh %260 : vector<64x128xf32>
    %cst_75 = arith.constant 1.000000e+00 : f32
    %262 = vector.broadcast %cst_75 : f32 to vector<64x128xf32>
    %263 = arith.addf %262, %261 : vector<64x128xf32>
    %cst_76 = arith.constant 5.000000e-01 : f32
    %264 = vector.broadcast %cst_76 : f32 to vector<64x128xf32>
    %265 = arith.mulf %264, %263 : vector<64x128xf32>
    %266 = arith.mulf %253, %265 : vector<64x128xf32>
    %c6 = arith.constant 6 : index
    %c0_77 = arith.constant 0 : index
    %c0_78 = arith.constant 0 : index
    %267 = vector.load %arg3[%c6, %c0_77, %c0_78] : memref<8x128x128xf32, #tpu.memory_space<vmem>>, vector<1x128x128xf32>
    %268 = vector.shape_cast %267 : vector<1x128x128xf32> to vector<128x128xf32>
    %cst_79 = arith.constant dense<0.000000e+00> : vector<64x128xf32>
    %269 = tpu.matmul %266, %268, %cst_79 {dimension_numbers = #tpu.dot_dimension_numbers<[1], [0], [0], [1], [0, 0, 1, 1], [], []>} : vector<64x128xf32>, vector<128x128xf32>, vector<64x128xf32> -> vector<64x128xf32>
    %270 = arith.addf %215, %269 : vector<64x128xf32>
    %271 = vector.extract_strided_slice %2 {offsets = [12, 0], sizes = [1, 128], strides = [1, 1]} : vector<16x128xf32> to vector<1x128xf32>
    %272 = vector.shape_cast %271 : vector<1x128xf32> to vector<128xf32>
    %273 = vector.shape_cast %272 : vector<128xf32> to vector<1x128xf32>
    %274 = vector.broadcast %273 : vector<1x128xf32> to vector<64x128xf32>
    %275 = arith.addf %270, %274 : vector<64x128xf32>
    %276 = vector.extract_strided_slice %2 {offsets = [13, 0], sizes = [1, 128], strides = [1, 1]} : vector<16x128xf32> to vector<1x128xf32>
    %277 = vector.shape_cast %276 : vector<1x128xf32> to vector<128xf32>
    %278 = vector.extract_strided_slice %2 {offsets = [14, 0], sizes = [1, 128], strides = [1, 1]} : vector<16x128xf32> to vector<1x128xf32>
    %279 = vector.shape_cast %278 : vector<1x128xf32> to vector<128xf32>
    %cst_80 = arith.constant dense<0.000000e+00> : vector<64xf32>
    %280 = vector.multi_reduction <add>, %275, %cst_80 [1] : vector<64x128xf32> to vector<64xf32>
    %281 = vector.shape_cast %280 : vector<64xf32> to vector<64x1xf32>
    %cst_81 = arith.constant 3.125000e-02 : f32
    %282 = vector.broadcast %cst_81 : f32 to vector<64x1xf32>
    %283 = arith.mulf %281, %282 : vector<64x1xf32>
    %284 = vector.broadcast %283 : vector<64x1xf32> to vector<64x128xf32>
    %285 = arith.subf %275, %284 : vector<64x128xf32>
    %cst_82 = arith.constant 0.000000e+00 : f32
    %286 = vector.shape_cast %5 : vector<1x128xi1> to vector<1x128xi1>
    %287 = vector.broadcast %286 : vector<1x128xi1> to vector<64x128xi1>
    %288 = vector.broadcast %cst_82 : f32 to vector<64x128xf32>
    %289 = arith.select %287, %285, %288 : vector<64x128xi1>, vector<64x128xf32>
    %290 = arith.mulf %289, %289 : vector<64x128xf32>
    %cst_83 = arith.constant dense<0.000000e+00> : vector<64xf32>
    %291 = vector.multi_reduction <add>, %290, %cst_83 [1] : vector<64x128xf32> to vector<64xf32>
    %292 = vector.shape_cast %291 : vector<64xf32> to vector<64x1xf32>
    %cst_84 = arith.constant 3.125000e-02 : f32
    %293 = vector.broadcast %cst_84 : f32 to vector<64x1xf32>
    %294 = arith.mulf %292, %293 : vector<64x1xf32>
    %cst_85 = arith.constant 9.99999974E-6 : f32
    %295 = vector.broadcast %cst_85 : f32 to vector<64x1xf32>
    %296 = arith.addf %294, %295 : vector<64x1xf32>
    %297 = math.rsqrt %296 : vector<64x1xf32>
    %298 = vector.broadcast %297 : vector<64x1xf32> to vector<64x128xf32>
    %299 = arith.mulf %289, %298 : vector<64x128xf32>
    %300 = vector.shape_cast %277 : vector<128xf32> to vector<1x128xf32>
    %301 = vector.broadcast %300 : vector<1x128xf32> to vector<64x128xf32>
    %302 = arith.mulf %299, %301 : vector<64x128xf32>
    %303 = vector.shape_cast %279 : vector<128xf32> to vector<1x128xf32>
    %304 = vector.broadcast %303 : vector<1x128xf32> to vector<64x128xf32>
    %305 = arith.addf %302, %304 : vector<64x128xf32>
    %c7 = arith.constant 7 : index
    %c0_86 = arith.constant 0 : index
    %c0_87 = arith.constant 0 : index
    %306 = vector.load %arg3[%c7, %c0_86, %c0_87] : memref<8x128x128xf32, #tpu.memory_space<vmem>>, vector<1x128x128xf32>
    %307 = vector.shape_cast %306 : vector<1x128x128xf32> to vector<128x128xf32>
    %cst_88 = arith.constant dense<0.000000e+00> : vector<64x128xf32>
    %308 = tpu.matmul %305, %307, %cst_88 {dimension_numbers = #tpu.dot_dimension_numbers<[1], [0], [0], [1], [0, 0, 1, 1], [], []>} : vector<64x128xf32>, vector<128x128xf32>, vector<64x128xf32> -> vector<64x128xf32>
    %309 = vector.extract_strided_slice %2 {offsets = [15, 0], sizes = [1, 128], strides = [1, 1]} : vector<16x128xf32> to vector<1x128xf32>
    %310 = vector.shape_cast %309 : vector<1x128xf32> to vector<128xf32>
    %311 = vector.shape_cast %310 : vector<128xf32> to vector<1x128xf32>
    %312 = vector.broadcast %311 : vector<1x128xf32> to vector<64x128xf32>
    %313 = arith.addf %308, %312 : vector<64x128xf32>
    %c0_89 = arith.constant 0 : index
    %c0_90 = arith.constant 0 : index
    %c0_91 = arith.constant 0 : index
    %314 = vector.load %arg5[%c0_89, %c0_90, %c0_91] : memref<1x64x128xf32, #tpu.memory_space<vmem>>, vector<1x64x128xf32>
    %315 = vector.shape_cast %314 : vector<1x64x128xf32> to vector<64x128xf32>
    %316 = vector.shape_cast %313 : vector<64x128xf32> to vector<1x64x128xf32>
    tpu.vector_store %arg5[%c0_89, %c0_90, %c0_91], %316 {strides = array<i32>} : memref<1x64x128xf32, #tpu.memory_space<vmem>>, vector<1x64x128xf32>,
    %c0_92 = arith.constant 0 : index
    %c0_93 = arith.constant 0 : index
    %c0_94 = arith.constant 0 : index
    %317 = vector.load %arg2[%c0_92, %c0_93, %c0_94] : memref<1x64x128xf32, #tpu.memory_space<vmem>>, vector<1x64x128xf32>
    %318 = vector.shape_cast %317 : vector<1x64x128xf32> to vector<64x128xf32>
    %cst_95 = arith.constant 0.000000e+00 : f32
    %cst_96 = arith.constant 1.000000e+00 : f32
    %319 = vector.broadcast %cst_95 : f32 to vector<64x128xf32>
    %320 = arith.maximumf %319, %313 : vector<64x128xf32>
    %321 = vector.broadcast %cst_96 : f32 to vector<64x128xf32>
    %322 = arith.minimumf %321, %320 : vector<64x128xf32>
    %323 = arith.subf %318, %322 : vector<64x128xf32>
    %324 = arith.mulf %323, %323 : vector<64x128xf32>
    %325 = vector.shape_cast %324 : vector<64x128xf32> to vector<1x64x128xf32>
    %cst_97 = arith.constant dense<0.000000e+00> : vector<1xf32>
    %326 = vector.multi_reduction <add>, %325, %cst_97 [1, 2] : vector<1x64x128xf32> to vector<1xf32>
    %327 = vector.shape_cast %326 : vector<1xf32> to vector<1x1x1xf32>
    %328 = vector.extract %327[0, 0, 0] : f32 from vector<1x1x1xf32>
    %329 = vector.broadcast %328 : f32 to vector<1x1xf32>
    %c0_98 = arith.constant 0 : index
    %c0_99 = arith.constant 0 : index
    %c0_100 = arith.constant 0 : index
    %330 = vector.load %arg6[%c0_98, %c0_99, %c0_100] : memref<1x1x1xf32, #tpu.memory_space<vmem>>, vector<1x1x1xf32>
    %331 = vector.shape_cast %330 : vector<1x1x1xf32> to vector<1x1xf32>
    %332 = vector.shape_cast %329 : vector<1x1xf32> to vector<1x1x1xf32>
    tpu.vector_store %arg6[%c0_98, %c0_99, %c0_100], %332 {strides = array<i32>} : memref<1x1x1xf32, #tpu.memory_space<vmem>>, vector<1x1x1xf32>,
    return
  }
  func.func @transform_0(%arg0: i32) -> (i32, i32, i32) {
    %c0_i32 = arith.constant 0 : i32
    %c0_i32_0 = arith.constant 0 : i32
    %c0_i32_1 = arith.constant 0 : i32
    return %arg0, %c0_i32, %c0_i32_0 : i32, i32, i32
  }
  func.func @transform_1(%arg0: i32) -> (i32, i32, i32) {
    %c0_i32 = arith.constant 0 : i32
    %c0_i32_0 = arith.constant 0 : i32
    %c0_i32_1 = arith.constant 0 : i32
    return %arg0, %c0_i32, %c0_i32_0 : i32, i32, i32
  }
  func.func @transform_2(%arg0: i32) -> (i32, i32, i32) {
    %c0_i32 = arith.constant 0 : i32
    %c0_i32_0 = arith.constant 0 : i32
    %c0_i32_1 = arith.constant 0 : i32
    %c0_i32_2 = arith.constant 0 : i32
    return %c0_i32, %c0_i32_0, %c0_i32_1 : i32, i32, i32
  }
  func.func @transform_3(%arg0: i32) -> (i32, i32) {
    %c0_i32 = arith.constant 0 : i32
    %c0_i32_0 = arith.constant 0 : i32
    %c0_i32_1 = arith.constant 0 : i32
    return %c0_i32, %c0_i32_0 : i32, i32
  }
  func.func @transform_4(%arg0: i32) -> (i32, i32, i32) {
    %c0_i32 = arith.constant 0 : i32
    %c0_i32_0 = arith.constant 0 : i32
    %c0_i32_1 = arith.constant 0 : i32
    return %arg0, %c0_i32, %c0_i32_0 : i32, i32, i32
  }
  func.func @transform_5(%arg0: i32) -> (i32, i32, i32) {
    %c0_i32 = arith.constant 0 : i32
    %c0_i32_0 = arith.constant 0 : i32
    %c0_i32_1 = arith.constant 0 : i32
    return %arg0, %c0_i32, %c0_i32_0 : i32, i32, i32
  }
}

</mosaic_0001>

<bundles_post_ra>
// kernel: swinjscc_forward.4
= control target key start
LH: loop header
LB: loop body
LE: loop exit
PB: predicated region body
PF: predicated region fallthrough
CT: control target
= control target key end

     0   :  { %s356_s14 = smov 0   ;;  %s386_s0 = inlined_call_operand.<no memory space> [shape: f32[1,1], index: 0, kind: input, shape index: {}]   ;;  %s387_s1 = inlined_call_operand.vmem [shape: f32[2,64,128], index: 1, kind: input, shape index: {}]   ;;  %s388_s2 = inlined_call_operand.vmem [shape: f32[2,64,128], index: 2, kind: input, shape index: {}]   ;;  %s389_s3 = inlined_call_operand.vmem [shape: f32[2,64,128], index: 3, kind: output, shape index: {}]  }
   0x1   :  { %8 = sst [smem:[#allocation2]] %s386_s0 }
   0x2 LB: > { %s301_s15 = sadd.s32 4294967295, %s331_s14   ;;  %p305_p0 = scmp.ge.s32.totalorder %s331_s14, 1  ;;  %s331_s14 = sphi %s356_s14, %s14_s14  }
   0x3   : > { %p148_p1 = scmp.lt.s32.totalorder %s331_s14, 3 }
   0x5   : > { %p149_p2 = pnand %p305_p0, %p148_p1 }
   0x6   : > { %p177_p3 = scmp.lt.s32.totalorder (!%p149_p2), %s301_s15, 1  ;;  %s200_s16 = sld [smem:[#allocation2]] (!%p149_p2) }
   0x7   : > { %152 = sbr.rel (%p149_p2) target bundleno = 26 (0x1a), region = 32 }
   0xc   : > { %s391_s15 = smov (!%p177_p3, %s301_s15), 1  ;;  %v209_v2 = vstv %s200_s16 }
   0xd   : > { %s314_s17 = sshll.u32 %s391_s15, 6 }
   0xe   : > { %s181_s19 = scalar_lea.vmem %s387_s1, %s314_s17  ;;  %s186_s22 = scalar_lea.vmem %s388_s2, %s314_s17 }
   0xf   : > { %v192_v0 = vld [vmem:[%s181_s19] sm:$0xff]  ;;  %v193_v3 = vld [vmem:[%s181_s19 + $0x8] sm:$0xff]  ;;  %v194_v6 = vld [vmem:[%s181_s19 + $0x10] sm:$0xff]  ;;  %s373_s25 = scalar_lea.vmem %s389_s3, %s314_s17 }
  0x10   : > { %v201_v1 = vld [vmem:[%s186_s22] sm:$0xff]  ;;  %v202_v5 = vld [vmem:[%s186_s22 + $0x8] sm:$0xff]  ;;  %v203_v7 = vld [vmem:[%s186_s22 + $0x10] sm:$0xff] }
  0x11   : > { %v210_v4 = vmul.f32 %v209_v2, %v201_v1  ;;  %v211_v8 = vmul.f32 %v209_v2, %v202_v5  ;;  %v212_v9 = vmul.f32 %v209_v2, %v203_v7  ;;  %v195_v10 = vld [vmem:[%s181_s19 + $0x18] sm:$0xff]  ;;  %v196_v12 = vld [vmem:[%s181_s19 + $0x20] sm:$0xff]  ;;  %v197_v16 = vld [vmem:[%s181_s19 + $0x28] sm:$0xff] }
  0x12   : > { %v204_v11 = vld [vmem:[%s186_s22 + $0x18] sm:$0xff]  ;;  %v205_v15 = vld [vmem:[%s186_s22 + $0x20] sm:$0xff]  ;;  %v206_v17 = vld [vmem:[%s186_s22 + $0x28] sm:$0xff] }
  0x13   : > { %v218_v13 = vadd.f32 %v210_v4, %v192_v0  ;;  %v213_v14 = vmul.f32 %v209_v2, %v204_v11  ;;  %v219_v18 = vadd.f32 %v211_v8, %v193_v3  ;;  %v220_v19 = vadd.f32 %v212_v9, %v194_v6  ;;  %v198_v22 = vld [vmem:[%s181_s19 + $0x30] sm:$0xff]  ;;  %v199_v26 = vld [vmem:[%s181_s19 + $0x38] sm:$0xff] }
  0x14   : > { %v214_v20 = vmul.f32 %v209_v2, %v205_v15  ;;  %v215_v21 = vmul.f32 %v209_v2, %v206_v17  ;;  %v207_v23 = vld [vmem:[%s186_s22 + $0x30] sm:$0xff]  ;;  %v208_v27 = vld [vmem:[%s186_s22 + $0x38] sm:$0xff] }
  0x15   : > { %226 = vst [vmem:[%s373_s25] sm:$0xff] %v218_v13  ;;  %v221_v24 = vadd.f32 %v213_v14, %v195_v10  ;;  %v216_v25 = vmul.f32 %v209_v2, %v207_v23  ;;  %227 = vst [vmem:[%s373_s25 + $0x8] sm:$0xff] %v219_v18  ;;  %v217_v30 = vmul.f32 %v209_v2, %v208_v27 }
  0x16   : > { %228 = vst [vmem:[%s373_s25 + $0x10] sm:$0xff] %v220_v19  ;;  %v222_v28 = vadd.f32 %v214_v20, %v196_v12  ;;  %v223_v29 = vadd.f32 %v215_v21, %v197_v16 }
  0x17   : > { %229 = vst [vmem:[%s373_s25 + $0x18] sm:$0xff] %v221_v24  ;;  %v224_v31 = vadd.f32 %v216_v25, %v198_v22  ;;  %v225_v32 = vadd.f32 %v217_v30, %v199_v26 }
  0x18   : > { %230 = vst [vmem:[%s373_s25 + $0x20] sm:$0xff] %v222_v28  ;;  %231 = vst [vmem:[%s373_s25 + $0x28] sm:$0xff] %v223_v29 }
  0x19   : > { %232 = vst [vmem:[%s373_s25 + $0x30] sm:$0xff] %v224_v31  ;;  %233 = vst [vmem:[%s373_s25 + $0x38] sm:$0xff] %v225_v32 }
  0x1a PF: > { %s14_s14 = sadd.s32 1, %s331_s14  }
  0x1b   : > { %p11_p4 = scmp.ge.s32.totalorder %s14_s14, 4  }
  0x1d   :  { %13 = sbr.rel (!%p11_p4) target bundleno = 2 (0x2), region = 65 }

// kernel: swinjscc_forward.3
= control target key start
LH: loop header
LB: loop body
LE: loop exit
PB: predicated region body
PF: predicated region fallthrough
CT: control target
= control target key end

     0   :  { %s4652_s15 = smov 0   ;;  %s6188_s0 = inlined_call_operand.vmem [shape: f32[2,64,128], index: 0, kind: input, shape index: {}]   ;;  %s6189_s1 = inlined_call_operand.vmem [shape: f32[8,128,128], index: 1, kind: input, shape index: {}]   ;;  %s6190_s2 = inlined_call_operand.vmem [shape: f32[16,128], index: 2, kind: input, shape index: {}]   ;;  %s6191_s3 = inlined_call_operand.vmem [shape: f32[2,64,128], index: 3, kind: output, shape index: {0}]   ;;  %s6192_s4 = inlined_call_operand.vmem [shape: f32[2,1,1], index: 4, kind: output, shape index: {1}]  }
   0x1 LB: > { %s3344_s16 = sadd.s32 4294967295, %s4624_s15   ;;  %p3348_p0 = scmp.ge.s32.totalorder %s4624_s15, 1  ;;  %s4624_s15 = sphi %s4652_s15, %s15_s15  }
   0x2   : > { %p165_p1 = scmp.lt.s32.totalorder %s4624_s15, 3 }
   0x4   : > { %p166_p2 = pnand %p3348_p0, %p165_p1 }
   0x6   : > { %169 = sbr.rel (%p166_p2) target bundleno = 4554 (0x11ca), region = 32 }
   0xb   : > { %v235_v0 = vld [vmem:[%s6189_s1 + $0x78] sm:$0xff]  ;;  %v234_v1 = vld [vmem:[%s6189_s1 + $0x70] sm:$0xff]  ;;  %p194_p3 = scmp.lt.s32.totalorder %s3344_s16, 1  ;;  %v233_v2 = vld [vmem:[%s6189_s1 + $0x68] sm:$0xff]  ;;  %v217_v24 = vlaneseq  ;;  %vm1090_vm10 = vcmask 523264   ;;  %vm3262_vm11 = vcmask 0  }
   0xc   : > { %3821 = vmatprep.subr.mxu0 %v235_v0  ;;  %v232_v3 = vld [vmem:[%s6189_s1 + $0x60] sm:$0xff]  ;;  %v231_v4 = vld [vmem:[%s6189_s1 + $0x58] sm:$0xff]  ;;  %v230_v6 = vld [vmem:[%s6189_s1 + $0x50] sm:$0xff] }
   0xd   : > { %3822 = vmatpush3.msra.mxu0 %v235_v0  ;;  %s6250_s16 = smov (!%p194_p3, %s3344_s16), 1  ;;  %v229_v7 = vld [vmem:[%s6189_s1 + $0x48] sm:$0xff]  ;;  %v228_v8 = vld [vmem:[%s6189_s1 + $0x40] sm:$0xff]  ;;  %v227_v9 = vld [vmem:[%s6189_s1 + $0x38] sm:$0xff]  ;;  %v4726_v25 = vshrl.u32 %v217_v24, 7  ;;  %v4737_v45 = vand.u32 127, %v217_v24 }
   0xe   : > { %3823 = vmatprep.subr.mxu0 %v234_v1  ;;  %s3499_s25 = sshll.u32 %s6250_s16, 6  ;;  %v226_v10 = vld [vmem:[%s6189_s1 + $0x30] sm:$0xff]  ;;  %v225_v11 = vld [vmem:[%s6189_s1 + $0x28] sm:$0xff]  ;;  %v224_v12 = vld [vmem:[%s6189_s1 + $0x20] sm:$0xff]  ;;  %s206_s10 = scalar_lea.vmem %s6192_s4, %s6250_s16 }
   0xf   : > { %3824 = vmatpush3.msra.mxu0 %v234_v1  ;;  %s4680_s28 = scalar_lea.vmem %s6188_s0, %s3499_s25  ;;  %v223_v13 = vld [vmem:[%s6189_s1 + $0x18] sm:$0xff]  ;;  %v222_v14 = vld [vmem:[%s6189_s1 + $0x10] sm:$0xff]  ;;  %v221_v15 = vld [vmem:[%s6189_s1 + $0x8] sm:$0xff]  ;;  %6213 = vst [vmem:[#allocation2_spill] sm:$0xff] %v4726_v25  ;;  %v6200_v26 = vsub.s32 0, %v4726_v25  ;;  %vm219_vm0 = vcmp.lt.s32.totalorder %v4737_v45, 32  ;;  %s6171_s8 = scalar_lea.vmem %s6191_s3, %s3499_s25 }
  0x10   : > { %3825 = vmatprep.subr.mxu0 %v233_v2  ;;  %v207_v5 = vld [vmem:[%s4680_s28] sm:$0xff]  ;;  %v208_v17 = vld [vmem:[%s4680_s28 + $0x8] sm:$0xff]  ;;  %v209_v18 = vld [vmem:[%s4680_s28 + $0x10] sm:$0xff]  ;;  %6214 = vst [vmem:[#allocation3_spill] sm:$0xff] %v4737_v45  ;;  %vm1666_vm1 = vcmp.ge.s32.totalorder %v4737_v45, 16  ;;  %vm1667_vm2 = vcmp.lt.s32.totalorder %v4737_v45, 24 }
  0x11   : > { %3826 = vmatpush3.msra.mxu0 %v233_v2  ;;  %3853 = vmatprep.mubr.f32.mxu0 %v207_v5  ;;  %v220_v16 = vld [vmem:[%s6189_s1] sm:$0xff]  ;;  %v210_v19 = vld [vmem:[%s4680_s28 + $0x18] sm:$0xff]  ;;  %v212_v21 = vld [vmem:[%s4680_s28 + $0x28] sm:$0xff]  ;;  %vm2024_vm3 = vcmp.ge.s32.totalorder %v4737_v45, 24  ;;  %vm1187_vm6 = vcmp.ge.s32.totalorder %v4737_v45, 8  ;;  %vm1188_vm7 = vcmp.lt.s32.totalorder %v4737_v45, 16 }
  0x12   : > { %3827 = vmatprep.subr.mxu0 %v232_v3  ;;  %v211_v20 = vld [vmem:[%s4680_s28 + $0x20] sm:$0xff]  ;;  %v213_v22 = vld [vmem:[%s4680_s28 + $0x30] sm:$0xff]  ;;  %v214_v23 = vld [vmem:[%s4680_s28 + $0x38] sm:$0xff]  ;;  %vm966_vm8 = vcmp.lt.s32.totalorder %v4737_v45, 8 }
  0x13   : > { %3828 = vmatpush3.msra.mxu0 %v232_v3  ;;  %v4732_v27 = vld [vmem:[%s6190_s2] sm:$0xff]  ;;  %vm1668_vm4 = vmand %vm1666_vm1, %vm1667_vm2 }
  0x14   : > { %3829 = vmatprep.subr.mxu0 %v231_v4  ;;  %v239_v29 = vrot.slane %v4732_v27, %v6200_v26  ;;  %vm2025_vm5 = vmand %vm2024_vm3, %vm219_vm0 }
  0x15   : > { %3830 = vmatpush3.msra.mxu0 %v231_v4  ;;  %vm1189_vm9 = vmand %vm1187_vm6, %vm1188_vm7 }
  0x16   : > { %3831 = vmatprep.subr.mxu0 %v230_v6 }
  0x17   : > { %3832 = vmatpush3.msra.mxu0 %v230_v6 }
  0x18   : > { %3833 = vmatprep.subr.mxu0 %v229_v7 }
  0x19   : > { %3834 = vmatpush3.msra.mxu0 %v229_v7 }
  0x1a   : > { %3835 = vmatprep.subr.mxu0 %v228_v8 }
  0x1b   : > { %3836 = vmatpush3.msra.mxu0 %v228_v8 }
  0x1c   : > { %3837 = vmatprep.subr.mxu0 %v227_v9 }
  0x1d   : > { %3838 = vmatpush3.msra.mxu0 %v227_v9 }
  0x1e   : > { %3839 = vmatprep.subr.mxu0 %v226_v10 }
  0x1f   : > { %3840 = vmatpush3.msra.mxu0 %v226_v10 }
  0x20   : > { %3841 = vmatprep.subr.mxu0 %v225_v11 }
  0x21   : > { %3842 = vmatpush3.msra.mxu0 %v225_v11 }
  0x22   : > { %3843 = vmatprep.subr.mxu0 %v224_v12 }
  0x23   : > { %3844 = vmatpush3.msra.mxu0 %v224_v12 }
  0x24   : > { %3845 = vmatprep.subr.mxu0 %v223_v13 }
  0x25   : > { %3846 = vmatpush3.msra.mxu0 %v223_v13 }
  0x26   : > { %3847 = vmatprep.subr.mxu0 %v222_v14 }
  0x27   : > { %3848 = vmatpush3.msra.mxu0 %v222_v14 }
  0x28   : > { %3849 = vmatprep.subr.mxu0 %v221_v15 }
  0x29   : > { %3850 = vmatpush3.msra.mxu0 %v221_v15 }
  0x2a   : > { %3851 = vmatprep.subr.mxu0 %v220_v16 }
  0x2b   : > { %3852 = vmatpush3.msra.mxu0 %v220_v16 }
  0x2c   : > { %3854 = vmatmul.mubr.f32.vlgmr.msra.gmra.mxu0 %v208_v17 }
  0x2d   : > { %3856 = vmatprep.mubr.f32.mxu0 %v209_v18 }
  0x30   : > { %3857 = vmatmul.mubr.f32.gmra.mxu0 %v210_v19 }
  0x31   : > { %3859 = vmatprep.mubr.f32.mxu0 %v211_v20 }
  0x34   : > { %3860 = vmatmul.mubr.f32.gmra.mxu0 %v212_v21 }
  0x35   : > { %3862 = vmatprep.mubr.f32.mxu0 %v213_v22 }
  0x38   : > { %3863 = vmatmul.mubr.f32.gmra.mxu0 %v214_v23 }
  0xec   : > { %v3855_v28 = vpop.f32.mrf.mxu0 }
  0xed   : > { %v312_v34 = vadd.f32 %v3855_v28, %v239_v29 }
  0xee   : > { %v306_v30 = vpop.f32.mrf.mxu0 }
  0xef   : > { %v307_v31 = vadd.f32 %v306_v30, %v239_v29 }
  0xf0   : > { %v3858_v32 = vpop.f32.mrf.mxu0 }
  0xf1   : > { %345 = vadd.xlane.f32.xlu0 %v307_v31  ;;  %v322_v38 = vadd.f32 %v3858_v32, %v239_v29 }
  0xf2   : > { %v316_v33 = vpop.f32.mrf.mxu0 }
  0xf3   : > { %v317_v35 = vadd.f32 %v316_v33, %v239_v29 }
  0xf4   : > { %v3861_v36 = vpop.f32.mrf.mxu0 }
  0xf5   : > { %349 = vadd.xlane.f32.xlu1 %v317_v35  ;;  %347 = vadd.xlane.f32.xlu0 %v312_v34  ;;  %v332_v42 = vadd.f32 %v3861_v36, %v239_v29 }
  0xf6   : > { %v326_v37 = vpop.f32.mrf.mxu0 }
  0xf7   : > { %v327_v39 = vadd.f32 %v326_v37, %v239_v29 }
  0xf8   : > { %v3864_v40 = vpop.f32.mrf.mxu0 }
  0xf9   : > { %351 = vadd.xlane.f32.xlu1 %v322_v38  ;;  %353 = vadd.xlane.f32.xlu0 %v327_v39  ;;  %v342_v44 = vadd.f32 %v3864_v40, %v239_v29 }
  0xfa   : > { %v336_v41 = vpop.f32.mrf.mxu0 }
  0xfb   : > { %v337_v43 = vadd.f32 %v336_v41, %v239_v29 }
  0xfd   : > { %355 = vadd.xlane.f32.xlu1 %v332_v42  ;;  %357 = vadd.xlane.f32.xlu0 %v337_v43 }
 0x101   : > { %359 = vadd.xlane.f32.xlu1 %v342_v44 }
 0x17a   : > { %v346_v46 = vpop.xlane.xlu0 %345 }
 0x17b   : > { %v361_v47 = vmul.f32 0.03125, %v346_v46 }
 0x17d   : > { %v369_v48 = vsub.f32 %v307_v31, %v361_v47 }
 0x17e   : > { %v350_v49 = vpop.xlane.xlu1 %349  ;;  %v348_v50 = vpop.xlane.xlu0 %347 }
 0x17f   : > { %v363_v51 = vmul.f32 0.03125, %v350_v49  ;;  %v362_v52 = vmul.f32 0.03125, %v348_v50  ;;  %v4742_v53 = vsel %vm219_vm0, %v369_v48, 0.0  ;;  %v6198_v48 = vsub.s32 2, %v4726_v25 }
 0x180   : > { %v387_v54 = vmul.f32 %v4742_v53, %v4742_v53 }
 0x181   : > { %v371_v55 = vsub.f32 %v317_v35, %v363_v51  ;;  %v370_v56 = vsub.f32 %v312_v34, %v362_v52 }
 0x182   : > { %v352_v57 = vpop.xlane.xlu1 %351  ;;  %395 = vadd.xlane.f32.xlu0 %v387_v54  ;;  %v354_v58 = vpop.xlane.xlu0 %353 }
 0x183   : > { %v364_v59 = vmul.f32 0.03125, %v352_v57  ;;  %v365_v60 = vmul.f32 0.03125, %v354_v58  ;;  %v4748_v61 = vsel %vm219_vm0, %v371_v55, 0.0  ;;  %v4752_v62 = vsel %vm219_vm0, %v370_v56, 0.0 }
 0x184   : > { %v389_v63 = vmul.f32 %v4748_v61, %v4748_v61  ;;  %v388_v0 = vmul.f32 %v4752_v62, %v4752_v62  ;;  %v458_v56 = vrot.slane %v4732_v27, %v6198_v48 }
 0x185   : > { %v372_v1 = vsub.f32 %v322_v38, %v364_v59  ;;  %v373_v2 = vsub.f32 %v327_v39, %v365_v60 }
 0x186   : > { %v356_v3 = vpop.xlane.xlu1 %355  ;;  %399 = vadd.xlane.f32.xlu0 %v389_v63  ;;  %397 = vadd.xlane.f32.xlu1 %v388_v0  ;;  %v358_v4 = vpop.xlane.xlu0 %357 }
 0x187   : > { %v366_v5 = vmul.f32 0.03125, %v356_v3  ;;  %v367_v6 = vmul.f32 0.03125, %v358_v4  ;;  %v4760_v7 = vsel %vm219_vm0, %v372_v1, 0.0  ;;  %v4764_v8 = vsel %vm219_vm0, %v373_v2, 0.0 }
 0x188   : > { %v390_v9 = vmul.f32 %v4760_v7, %v4760_v7  ;;  %v391_v10 = vmul.f32 %v4764_v8, %v4764_v8 }
 0x189   : > { %v374_v11 = vsub.f32 %v332_v42, %v366_v5  ;;  %v375_v12 = vsub.f32 %v337_v43, %v367_v6 }
 0x18a   : > { %v360_v13 = vpop.xlane.xlu1 %359  ;;  %401 = vadd.xlane.f32.xlu1 %v390_v9  ;;  %403 = vadd.xlane.f32.xlu0 %v391_v10 }
 0x18b   : > { %v368_v14 = vmul.f32 0.03125, %v360_v13  ;;  %v4772_v15 = vsel %vm219_vm0, %v374_v11, 0.0  ;;  %v4776_v16 = vsel %vm219_vm0, %v375_v12, 0.0 }
 0x18c   : > { %v392_v17 = vmul.f32 %v4772_v15, %v4772_v15  ;;  %v393_v18 = vmul.f32 %v4776_v16, %v4776_v16 }
 0x18d   : > { %v376_v19 = vsub.f32 %v342_v44, %v368_v14  ;;  %v6199_v44 = vsub.s32 1, %v4726_v25 }
 0x18e   : > { %405 = vadd.xlane.f32.xlu1 %v392_v17  ;;  %407 = vadd.xlane.f32.xlu0 %v393_v18 }
 0x18f   : > { %v4784_v20 = vsel %vm219_vm0, %v376_v19, 0.0  ;;  %v446_v51 = vrot.slane %v4732_v27, %v6199_v44 }
 0x190   : > { %v394_v21 = vmul.f32 %v4784_v20, %v4784_v20 }
 0x192   : > { %409 = vadd.xlane.f32.xlu1 %v394_v21 }
 0x20b   : > { %v396_v22 = vpop.xlane.xlu0 %395 }
 0x20c   : > { %v411_v23 = vmul.f32 0.03125, %v396_v22 }
 0x20e   : > { %v419_v24 = vadd.f32 1e-05, %v411_v23 }
 0x20f   : > { %v398_v28 = vpop.xlane.xlu1 %397  ;;  %v400_v29 = vpop.xlane.xlu0 %399 }
 0x210   : > { %4408 = vrsqrt.f32 %v419_v24  ;;  %v412_v30 = vmul.f32 0.03125, %v398_v28  ;;  %v413_v31 = vmul.f32 0.03125, %v400_v29  ;;  %v3384_v24 = vld [vmem:[%s6189_s1 + $0x178] sm:$0xff]  ;;  %v3383_v28 = vld [vmem:[%s6189_s1 + $0x170] sm:$0xff]  ;;  %v3366_v29 = vld [vmem:[%s6189_s1 + $0xe8] sm:$0xff] }
 0x211   : > { %3909 = vmatprep.subr.mxu0 %v3384_v24 }
 0x212   : > { %v420_v32 = vadd.f32 1e-05, %v412_v30  ;;  %v421_v33 = vadd.f32 1e-05, %v413_v31  ;;  %3910 = vmatpush3.msra.mxu0 %v3384_v24  ;;  %v3379_v24 = vld [vmem:[%s6189_s1 + $0x150] sm:$0xff] }
 0x213   : > { %v402_v34 = vpop.xlane.xlu1 %401  ;;  %v404_v35 = vpop.xlane.xlu0 %403  ;;  %3911 = vmatprep.subr.mxu0 %v3383_v28 }
 0x214   : > { %4410 = vrsqrt.f32 %v420_v32  ;;  %v414_v36 = vmul.f32 0.03125, %v402_v34  ;;  %v415_v37 = vmul.f32 0.03125, %v404_v35  ;;  %3912 = vmatpush3.msra.mxu0 %v3383_v28  ;;  %v3378_v28 = vld [vmem:[%s6189_s1 + $0x148] sm:$0xff] }
 0x215   : > { %4412 = vrsqrt.f32 %v421_v33 }
 0x216   : > { %v422_v38 = vadd.f32 1e-05, %v414_v36  ;;  %v423_v39 = vadd.f32 1e-05, %v415_v37 }
 0x217   : > { %v406_v40 = vpop.xlane.xlu1 %405  ;;  %v408_v41 = vpop.xlane.xlu0 %407 }
 0x218   : > { %4414 = vrsqrt.f32 %v422_v38  ;;  %v416_v42 = vmul.f32 0.03125, %v406_v40  ;;  %v417_v43 = vmul.f32 0.03125, %v408_v41 }
 0x219   : > { %4416 = vrsqrt.f32 %v423_v39 }
 0x21a   : > { %v424_v46 = vadd.f32 1e-05, %v416_v42  ;;  %v425_v47 = vadd.f32 1e-05, %v417_v43 }
 0x21b   : > { %v410_v49 = vpop.xlane.xlu1 %409 }
 0x21c   : > { %4418 = vrsqrt.f32 %v424_v46  ;;  %v418_v50 = vmul.f32 0.03125, %v410_v49 }
 0x21d   : > { %v4409_v52 = vpop.eup %4408  ;;  %4420 = vrsqrt.f32 %v425_v47 }
 0x21e   : > { %v426_v54 = vadd.f32 1e-05, %v418_v50  ;;  %v435_v55 = vmul.f32 %v4409_v52, %v4742_v53 }
 0x220   : > { %4422 = vrsqrt.f32 %v426_v54  ;;  %v447_v57 = vmul.f32 %v446_v51, %v435_v55 }
 0x221   : > { %v4411_v58 = vpop.eup %4410 }
 0x222   : > { %v4413_v59 = vpop.eup %4412  ;;  %v4797_v60 = vadd.f32 %v458_v56, %v447_v57  ;;  %v436_v63 = vmul.f32 %v4411_v58, %v4752_v62 }
 0x223   : > { %v437_v0 = vmul.f32 %v4413_v59, %v4748_v61 }
 0x224   : > { %6215 = vst [vmem:[#allocation4_spill] sm:$0xff] %v4797_v60  ;;  %467 = vadd.xlane.f32.xlu0 %v4797_v60  ;;  %v448_v1 = vmul.f32 %v446_v51, %v436_v63 }
 0x225   : > { %v4415_v2 = vpop.eup %4414  ;;  %v449_v3 = vmul.f32 %v446_v51, %v437_v0 }
 0x226   : > { %v4417_v53 = vpop.eup %4416  ;;  %v4802_v4 = vadd.f32 %v458_v56, %v448_v1  ;;  %v438_v5 = vmul.f32 %v4415_v2, %v4760_v7 }
 0x227   : > { %v4805_v6 = vadd.f32 %v458_v56, %v449_v3  ;;  %v439_v9 = vmul.f32 %v4417_v53, %v4764_v8 }
 0x228   : > { %6216 = vst [vmem:[#allocation5_spill] sm:$0xff] %v4802_v4  ;;  %469 = vadd.xlane.f32.xlu1 %v4802_v4  ;;  %v450_v10 = vmul.f32 %v446_v51, %v438_v5 }
 0x229   : > { %6217 = vst [vmem:[#allocation6_spill] sm:$0xff] %v4805_v6  ;;  %v4419_v62 = vpop.eup %4418  ;;  %471 = vadd.xlane.f32.xlu0 %v4805_v6  ;;  %v451_v61 = vmul.f32 %v446_v51, %v439_v9 }
 0x22a   : > { %v4421_v11 = vpop.eup %4420  ;;  %v4810_v12 = vadd.f32 %v458_v56, %v450_v10  ;;  %v440_v13 = vmul.f32 %v4419_v62, %v4772_v15 }
 0x22b   : > { %v4813_v14 = vadd.f32 %v458_v56, %v451_v61  ;;  %v441_v7 = vmul.f32 %v4421_v11, %v4776_v16  ;;  %v3368_v16 = vld [vmem:[%s6189_s1 + $0xf8] sm:$0xff]  ;;  %v3382_v61 = vld [vmem:[%s6189_s1 + $0x168] sm:$0xff] }
 0x22c   : > { %6218 = vst [vmem:[#allocation7_spill] sm:$0xff] %v4810_v12  ;;  %473 = vadd.xlane.f32.xlu1 %v4810_v12  ;;  %v452_v17 = vmul.f32 %v446_v51, %v440_v13  ;;  %3865 = vmatprep.subr.mxu1 %v3368_v16 }
 0x22d   : > { %6219 = vst [vmem:[#allocation8_spill] sm:$0xff] %v4813_v14  ;;  %v4423_v8 = vpop.eup %4422  ;;  %475 = vadd.xlane.f32.xlu0 %v4813_v14  ;;  %v453_v18 = vmul.f32 %v446_v51, %v441_v7  ;;  %3866 = vmatpush3.msra.mxu1 %v3368_v16  ;;  %v3365_v7 = vld [vmem:[%s6189_s1 + $0xe0] sm:$0xff]  ;;  %v3363_v16 = vld [vmem:[%s6189_s1 + $0xd0] sm:$0xff] }
 0x22e   : > { %v4818_v19 = vadd.f32 %v458_v56, %v452_v17  ;;  %v442_v21 = vmul.f32 %v4423_v8, %v4784_v20  ;;  %v3367_v20 = vld [vmem:[%s6189_s1 + $0xf0] sm:$0xff]  ;;  %3913 = vmatprep.subr.mxu0 %v3382_v61  ;;  %v3381_v17 = vld [vmem:[%s6189_s1 + $0x160] sm:$0xff] }
 0x22f   : > { %v4821_v22 = vadd.f32 %v458_v56, %v453_v18  ;;  %3867 = vmatprep.subr.mxu1 %v3367_v20  ;;  %3914 = vmatpush3.msra.mxu0 %v3382_v61  ;;  %v3364_v18 = vld [vmem:[%s6189_s1 + $0xd8] sm:$0xff] }
 0x230   : > { %6220 = vst [vmem:[#allocation9_spill] sm:$0xff] %v4818_v19  ;;  %477 = vadd.xlane.f32.xlu1 %v4818_v19  ;;  %v454_v15 = vmul.f32 %v446_v51, %v442_v21  ;;  %3868 = vmatpush3.msra.mxu1 %v3367_v20  ;;  %v3362_v20 = vld [vmem:[%s6189_s1 + $0xc8] sm:$0xff] }
 0x231   : > { %6221 = vst [vmem:[#allocation10_spill] sm:$0xff] %v4821_v22  ;;  %479 = vadd.xlane.f32.xlu0 %v4821_v22  ;;  %3869 = vmatprep.subr.mxu1 %v3366_v29 }
 0x232   : > { %v4825_v23 = vadd.f32 %v458_v56, %v454_v15  ;;  %3870 = vmatpush3.msra.mxu1 %v3366_v29  ;;  %3915 = vmatprep.subr.mxu0 %v3381_v17  ;;  %v3380_v15 = vld [vmem:[%s6189_s1 + $0x158] sm:$0xff]  ;;  %v3361_v29 = vld [vmem:[%s6189_s1 + $0xc0] sm:$0xff] }
 0x233   : > { %3871 = vmatprep.subr.mxu1 %v3365_v7  ;;  %3916 = vmatpush3.msra.mxu0 %v3381_v17 }
 0x234   : > { %6222 = vst [vmem:[#allocation11_spill] sm:$0xff] %v4825_v23  ;;  %481 = vadd.xlane.f32.xlu1 %v4825_v23  ;;  %3872 = vmatpush3.msra.mxu1 %v3365_v7 }
 0x235   : > { %3873 = vmatprep.subr.mxu1 %v3364_v18  ;;  %3917 = vmatprep.subr.mxu0 %v3380_v15 }
 0x236   : > { %3874 = vmatpush3.msra.mxu1 %v3364_v18  ;;  %3918 = vmatpush3.msra.mxu0 %v3380_v15  ;;  %v6197_v15 = vsub.s32 3, %v4726_v25 }
 0x237   : > { %3875 = vmatprep.subr.mxu1 %v3363_v16  ;;  %3919 = vmatprep.subr.mxu0 %v3379_v24 }
 0x238   : > { %3876 = vmatpush3.msra.mxu1 %v3363_v16  ;;  %3920 = vmatpush3.msra.mxu0 %v3379_v24 }
 0x239   : > { %3877 = vmatprep.subr.mxu1 %v3362_v20  ;;  %3921 = vmatprep.subr.mxu0 %v3378_v28 }
 0x23a   : > { %3878 = vmatpush3.msra.mxu1 %v3362_v20  ;;  %3922 = vmatpush3.msra.mxu0 %v3378_v28  ;;  %v6196_v20 = vsub.s32 4, %v4726_v25 }
 0x23b   : > { %3879 = vmatprep.subr.mxu1 %v3361_v29 }
 0x23c   : > { %3880 = vmatpush3.msra.mxu1 %v3361_v29 }
 0x2ad   : > { %v468_v30 = vpop.xlane.xlu0 %467 }
 0x2ae   : > { %v483_v31 = vmul.f32 0.03125, %v468_v30  ;;  %v3377_v30 = vld [vmem:[%s6189_s1 + $0x140] sm:$0xff] }
 0x2af   : > { %3923 = vmatprep.subr.mxu0 %v3377_v30 }
 0x2b0   : > { %v491_v32 = vsub.f32 %v4797_v60, %v483_v31  ;;  %v3360_v31 = vld [vmem:[%s6189_s1 + $0xb8] sm:$0xff]  ;;  %3924 = vmatpush3.msra.mxu0 %v3377_v30 }
 0x2b1   : > { %v470_v33 = vpop.xlane.xlu1 %469  ;;  %3881 = vmatprep.subr.mxu1 %v3360_v31 }
 0x2b2   : > { %v484_v34 = vmul.f32 0.03125, %v470_v33  ;;  %v472_v35 = vpop.xlane.xlu0 %471  ;;  %v4846_v36 = vsel %vm219_vm0, %v491_v32, 0.0  ;;  %v3376_v32 = vld [vmem:[%s6189_s1 + $0x138] sm:$0xff]  ;;  %v3359_v33 = vld [vmem:[%s6189_s1 + $0xb0] sm:$0xff]  ;;  %3882 = vmatpush3.msra.mxu1 %v3360_v31  ;;  %v566_v31 = vrot.slane %v4732_v27, %v6197_v15 }
 0x2b3   : > { %v485_v37 = vmul.f32 0.03125, %v472_v35  ;;  %v507_v38 = vmul.f32 %v4846_v36, %v4846_v36  ;;  %3925 = vmatprep.subr.mxu0 %v3376_v32  ;;  %3883 = vmatprep.subr.mxu1 %v3359_v33  ;;  %v3358_v35 = vld [vmem:[%s6189_s1 + $0xa8] sm:$0xff] }
 0x2b4   : > { %v492_v39 = vsub.f32 %v4802_v4, %v484_v34  ;;  %v3375_v34 = vld [vmem:[%s6189_s1 + $0x130] sm:$0xff]  ;;  %3926 = vmatpush3.msra.mxu0 %v3376_v32  ;;  %3884 = vmatpush3.msra.mxu1 %v3359_v33 }
 0x2b5   : > { %v493_v40 = vsub.f32 %v4805_v6, %v485_v37  ;;  %v474_v41 = vpop.xlane.xlu1 %473  ;;  %515 = vadd.xlane.f32.xlu0 %v507_v38  ;;  %v3374_v37 = vld [vmem:[%s6189_s1 + $0x128] sm:$0xff]  ;;  %3927 = vmatprep.subr.mxu0 %v3375_v34  ;;  %v3357_v38 = vld [vmem:[%s6189_s1 + $0xa0] sm:$0xff] }
 0x2b6   : > { %v486_v42 = vmul.f32 0.03125, %v474_v41  ;;  %v476_v43 = vpop.xlane.xlu0 %475  ;;  %v4854_v46 = vsel %vm219_vm0, %v492_v39, 0.0  ;;  %3885 = vmatprep.subr.mxu1 %v3358_v35  ;;  %3928 = vmatpush3.msra.mxu0 %v3375_v34  ;;  %v3373_v39 = vld [vmem:[%s6189_s1 + $0x120] sm:$0xff]  ;;  %v3372_v41 = vld [vmem:[%s6189_s1 + $0x118] sm:$0xff] }
 0x2b7   : > { %v487_v47 = vmul.f32 0.03125, %v476_v43  ;;  %v508_v49 = vmul.f32 %v4854_v46, %v4854_v46  ;;  %v4860_v50 = vsel %vm219_vm0, %v493_v40, 0.0  ;;  %3886 = vmatpush3.msra.mxu1 %v3358_v35  ;;  %3929 = vmatprep.subr.mxu0 %v3374_v37  ;;  %v3356_v40 = vld [vmem:[%s6189_s1 + $0x98] sm:$0xff]  ;;  %v3371_v43 = vld [vmem:[%s6189_s1 + $0x110] sm:$0xff]  ;;  %v578_v35 = vrot.slane %v4732_v27, %v6196_v20 }
 0x2b8   : > { %v494_v51 = vsub.f32 %v4810_v12, %v486_v42  ;;  %v509_v52 = vmul.f32 %v4860_v50, %v4860_v50  ;;  %3887 = vmatprep.subr.mxu1 %v3357_v38  ;;  %3930 = vmatpush3.msra.mxu0 %v3374_v37  ;;  %v3355_v42 = vld [vmem:[%s6189_s1 + $0x90] sm:$0xff] }
 0x2b9   : > { %v495_v54 = vsub.f32 %v4813_v14, %v487_v47  ;;  %517 = vadd.xlane.f32.xlu1 %v508_v49  ;;  %v478_v55 = vpop.xlane.xlu1 %477  ;;  %3888 = vmatpush3.msra.mxu1 %v3357_v38  ;;  %v3354_v47 = vld [vmem:[%s6189_s1 + $0x88] sm:$0xff] }
 0x2ba   : > { %v488_v56 = vmul.f32 0.03125, %v478_v55  ;;  %519 = vadd.xlane.f32.xlu0 %v509_v52  ;;  %v480_v57 = vpop.xlane.xlu0 %479  ;;  %v4868_v58 = vsel %vm219_vm0, %v494_v51, 0.0  ;;  %3931 = vmatprep.subr.mxu0 %v3373_v39  ;;  %v3370_v49 = vld [vmem:[%s6189_s1 + $0x108] sm:$0xff]  ;;  %v3353_v51 = vld [vmem:[%s6189_s1 + $0x80] sm:$0xff] }
 0x2bb   : > { %v489_v59 = vmul.f32 0.03125, %v480_v57  ;;  %v510_v63 = vmul.f32 %v4868_v58, %v4868_v58  ;;  %v4874_v0 = vsel %vm219_vm0, %v495_v54, 0.0  ;;  %3889 = vmatprep.subr.mxu1 %v3356_v40  ;;  %3932 = vmatpush3.msra.mxu0 %v3373_v39  ;;  %v3369_v52 = vld [vmem:[%s6189_s1 + $0x100] sm:$0xff]  ;;  %v4983_v54 = vld [vmem:[%s6189_s1 + $0x1f8] sm:$0xff] }
 0x2bc   : > { %v496_v1 = vsub.f32 %v4818_v19, %v488_v56  ;;  %v511_v2 = vmul.f32 %v4874_v0, %v4874_v0  ;;  %3890 = vmatpush3.msra.mxu1 %v3356_v40  ;;  %3933 = vmatprep.subr.mxu0 %v3372_v41 }
 0x2bd   : > { %v497_v3 = vsub.f32 %v4821_v22, %v489_v59  ;;  %521 = vadd.xlane.f32.xlu1 %v510_v63  ;;  %v482_v53 = vpop.xlane.xlu1 %481  ;;  %3891 = vmatprep.subr.mxu1 %v3355_v42 }
 0x2be   : > { %v490_v5 = vmul.f32 0.03125, %v482_v53  ;;  %523 = vadd.xlane.f32.xlu0 %v511_v2  ;;  %v4882_v9 = vsel %vm219_vm0, %v496_v1, 0.0  ;;  %3934 = vmatpush3.msra.mxu0 %v3372_v41 }
 0x2bf   : > { %v512_v10 = vmul.f32 %v4882_v9, %v4882_v9  ;;  %v4888_v62 = vsel %vm219_vm0, %v497_v3, 0.0  ;;  %3892 = vmatpush3.msra.mxu1 %v3355_v42  ;;  %3935 = vmatprep.subr.mxu0 %v3371_v43 }
 0x2c0   : > { %v498_v11 = vsub.f32 %v4825_v23, %v490_v5  ;;  %v513_v13 = vmul.f32 %v4888_v62, %v4888_v62  ;;  %3893 = vmatprep.subr.mxu1 %v3354_v47  ;;  %3936 = vmatpush3.msra.mxu0 %v3371_v43 }
 0x2c1   : > { %525 = vadd.xlane.f32.xlu1 %v512_v10  ;;  %3894 = vmatpush3.msra.mxu1 %v3354_v47 }
 0x2c2   : > { %527 = vadd.xlane.f32.xlu0 %v513_v13  ;;  %v4904_v8 = vsel %vm219_vm0, %v498_v11, 0.0  ;;  %3937 = vmatprep.subr.mxu0 %v3370_v49 }
 0x2c3   : > { %v514_v21 = vmul.f32 %v4904_v8, %v4904_v8  ;;  %3895 = vmatprep.subr.mxu1 %v3353_v51  ;;  %3938 = vmatpush3.msra.mxu0 %v3370_v49 }
 0x2c4   : > { %3896 = vmatpush3.msra.mxu1 %v3353_v51  ;;  %3939 = vmatprep.subr.mxu0 %v3369_v52 }
 0x2c5   : > { %529 = vadd.xlane.f32.xlu1 %v514_v21  ;;  %3953 = vmatprep.subr.mxu1 %v4983_v54 }
 0x2c6   : > { %3940 = vmatpush3.msra.mxu0 %v3369_v52 }
 0x33e   : > { %v516_v55 = vpop.xlane.xlu0 %515 }
 0x33f   : > { %v531_v56 = vmul.f32 0.03125, %v516_v55 }
 0x341   : > { %v539_v57 = vadd.f32 1e-05, %v531_v56 }
 0x342   : > { %v518_v59 = vpop.xlane.xlu1 %517 }
 0x343   : > { %4424 = vrsqrt.f32 %v539_v57  ;;  %v532_v63 = vmul.f32 0.03125, %v518_v59  ;;  %v520_v1 = vpop.xlane.xlu0 %519 }
 0x344   : > { %v533_v2 = vmul.f32 0.03125, %v520_v1 }
 0x345   : > { %v540_v3 = vadd.f32 1e-05, %v532_v63 }
 0x346   : > { %v541_v53 = vadd.f32 1e-05, %v533_v2  ;;  %v522_v5 = vpop.xlane.xlu1 %521 }
 0x347   : > { %4426 = vrsqrt.f32 %v540_v3  ;;  %v534_v10 = vmul.f32 0.03125, %v522_v5  ;;  %v524_v61 = vpop.xlane.xlu0 %523  ;;  %v3397_v3 = vld [vmem:[%s6189_s1 + $0x1e0] sm:$0xff] }
 0x348   : > { %4428 = vrsqrt.f32 %v541_v53  ;;  %v535_v11 = vmul.f32 0.03125, %v524_v61 }
 0x349   : > { %v542_v13 = vadd.f32 1e-05, %v534_v10 }
 0x34a   : > { %v543_v7 = vadd.f32 1e-05, %v535_v11  ;;  %v526_v17 = vpop.xlane.xlu1 %525 }
 0x34b   : > { %4430 = vrsqrt.f32 %v542_v13  ;;  %v536_v18 = vmul.f32 0.03125, %v526_v17  ;;  %v528_v21 = vpop.xlane.xlu0 %527 }
 0x34c   : > { %4432 = vrsqrt.f32 %v543_v7  ;;  %v537_v16 = vmul.f32 0.03125, %v528_v21  ;;  %v3395_v7 = vld [vmem:[%s6189_s1 + $0x1d0] sm:$0xff]  ;;  %v3392_v21 = vld [vmem:[%s6189_s1 + $0x1b8] sm:$0xff] }
 0x34d   : > { %v544_v24 = vadd.f32 1e-05, %v536_v18  ;;  %v3394_v18 = vld [vmem:[%s6189_s1 + $0x1c8] sm:$0xff] }
 0x34e   : > { %v545_v28 = vadd.f32 1e-05, %v537_v16  ;;  %v530_v29 = vpop.xlane.xlu1 %529  ;;  %v3391_v16 = vld [vmem:[%s6189_s1 + $0x1b0] sm:$0xff] }
 0x34f   : > { %4434 = vrsqrt.f32 %v544_v24  ;;  %v538_v30 = vmul.f32 0.03125, %v530_v29  ;;  %v3390_v24 = vld [vmem:[%s6189_s1 + $0x1a8] sm:$0xff]  ;;  %v3388_v29 = vld [vmem:[%s6189_s1 + $0x198] sm:$0xff] }
 0x350   : > { %v4425_v32 = vpop.eup %4424  ;;  %4436 = vrsqrt.f32 %v545_v28  ;;  %v3389_v28 = vld [vmem:[%s6189_s1 + $0x1a0] sm:$0xff] }
 0x351   : > { %v546_v33 = vadd.f32 1e-05, %v538_v30  ;;  %v555_v34 = vmul.f32 %v4425_v32, %v4846_v36  ;;  %v3387_v30 = vld [vmem:[%s6189_s1 + $0x190] sm:$0xff]  ;;  %v3385_v32 = vld [vmem:[%s6189_s1 + $0x180] sm:$0xff] }
 0x353   : > { %4438 = vrsqrt.f32 %v546_v33  ;;  %v567_v37 = vmul.f32 %v566_v31, %v555_v34  ;;  %v6195_v33 = vsub.s32 5, %v4726_v25 }
 0x354   : > { %v4427_v38 = vpop.eup %4426 }
 0x355   : > { %v4429_v39 = vpop.eup %4428  ;;  %v4995_v40 = vadd.f32 %v578_v35, %v567_v37  ;;  %v556_v41 = vmul.f32 %v4427_v38, %v4854_v46  ;;  %v3399_v46 = vld [vmem:[%s6189_s1 + $0x1f0] sm:$0xff]  ;;  %v607_v34 = vrot.slane %v4732_v27, %v6195_v33  ;;  %v4626_v37 = vmov 0.0  }
 0x356   : > { %v557_v42 = vmul.f32 %v4429_v39, %v4860_v50  ;;  %v5084_v38 = vsel %vm1668_vm4, 1.0, %v4626_v37  ;;  %v5086_v39 = vsel %vm2025_vm5, 1.0, %v4626_v37 }
 0x357   : > { %3897 = vmatprep.mubr.f32.mxu1 %v4995_v40  ;;  %3941 = vmatprep.mubr.f32.mxu0 %v4995_v40  ;;  %v568_v43 = vmul.f32 %v566_v31, %v556_v41 }
 0x358   : > { %v4431_v36 = vpop.eup %4430  ;;  %v569_v47 = vmul.f32 %v566_v31, %v557_v42 }
 0x359   : > { %v4433_v49 = vpop.eup %4432  ;;  %v5001_v51 = vadd.f32 %v578_v35, %v568_v43  ;;  %v558_v52 = vmul.f32 %v4431_v36, %v4868_v58  ;;  %v3398_v58 = vld [vmem:[%s6189_s1 + $0x1e8] sm:$0xff] }
 0x35a   : > { %v5004_v55 = vadd.f32 %v578_v35, %v569_v47  ;;  %v559_v50 = vmul.f32 %v4433_v49, %v4874_v0 }
 0x35b   : > { %3898 = vmatmul.mubr.f32.vlgmr.msra.gmra.mxu1 %v5001_v51  ;;  %3942 = vmatmul.mubr.f32.vlgmr.msra.gmra.mxu0 %v5001_v51  ;;  %v570_v56 = vmul.f32 %v566_v31, %v558_v52  ;;  %v5103_v52 = vsel %vm966_vm8, 1.0, %v4626_v37 }
 0x35c   : > { %v4435_v57 = vpop.eup %4434  ;;  %3954 = vmatpush3.msra.mxu1 %v4983_v54  ;;  %3900 = vmatprep.mubr.f32.mxu1 %v5004_v55  ;;  %v571_v59 = vmul.f32 %v566_v31, %v559_v50 }
 0x35d   : > { %v4437_v63 = vpop.eup %4436  ;;  %3944 = vmatprep.mubr.f32.mxu0 %v5004_v55  ;;  %3955 = vmatprep.subr.mxu1 %v3399_v46  ;;  %v5018_v0 = vadd.f32 %v578_v35, %v570_v56  ;;  %v560_v1 = vmul.f32 %v4435_v57, %v4882_v9  ;;  %v3396_v9 = vld [vmem:[%s6189_s1 + $0x1d8] sm:$0xff] }
 0x35e   : > { %3956 = vmatpush3.msra.mxu1 %v3399_v46  ;;  %v5021_v2 = vadd.f32 %v578_v35, %v571_v59  ;;  %v561_v54 = vmul.f32 %v4437_v63, %v4888_v62 }
 0x35f   : > { %3957 = vmatprep.subr.mxu1 %v3398_v58  ;;  %3901 = vmatmul.mubr.f32.gmra.mxu1 %v5018_v0  ;;  %v572_v53 = vmul.f32 %v566_v31, %v560_v1 }
 0x360   : > { %v4439_v5 = vpop.eup %4438  ;;  %3945 = vmatmul.mubr.f32.gmra.mxu0 %v5018_v0  ;;  %3958 = vmatpush3.msra.mxu1 %v3398_v58  ;;  %v573_v10 = vmul.f32 %v566_v31, %v561_v54 }
 0x361   : > { %3903 = vmatprep.mubr.f32.mxu1 %v5021_v2  ;;  %3947 = vmatprep.mubr.f32.mxu0 %v5021_v2  ;;  %v584_v62 = vadd.f32 %v578_v35, %v572_v53  ;;  %v562_v61 = vmul.f32 %v4439_v5, %v4904_v8  ;;  %v3393_v8 = vld [vmem:[%s6189_s1 + $0x1c0] sm:$0xff] }
 0x362   : > { %3959 = vmatprep.subr.mxu1 %v3397_v3  ;;  %v585_v11 = vadd.f32 %v578_v35, %v573_v10  ;;  %v6194_v10 = vsub.s32 6, %v4726_v25 }
 0x363   : > { %3960 = vmatpush3.msra.mxu1 %v3397_v3  ;;  %v574_v13 = vmul.f32 %v566_v31, %v562_v61  ;;  %v3386_v31 = vld [vmem:[%s6189_s1 + $0x188] sm:$0xff] }
 0x364   : > { %3961 = vmatprep.subr.mxu1 %v3396_v9  ;;  %3904 = vmatmul.mubr.f32.gmra.mxu1 %v584_v62 }
 0x365   : > { %3948 = vmatmul.mubr.f32.gmra.mxu0 %v584_v62  ;;  %3962 = vmatpush3.msra.mxu1 %v3396_v9  ;;  %v586_v17 = vadd.f32 %v578_v35, %v574_v13 }
 0x366   : > { %3906 = vmatprep.mubr.f32.mxu1 %v585_v11  ;;  %3950 = vmatprep.mubr.f32.mxu0 %v585_v11 }
 0x367   : > { %3963 = vmatprep.subr.mxu1 %v3395_v7 }
 0x368   : > { %3964 = vmatpush3.msra.mxu1 %v3395_v7 }
 0x369   : > { %3965 = vmatprep.subr.mxu1 %v3394_v18  ;;  %3907 = vmatmul.mubr.f32.gmra.mxu1 %v586_v17 }
 0x36a   : > { %3951 = vmatmul.mubr.f32.gmra.mxu0 %v586_v17  ;;  %3966 = vmatpush3.msra.mxu1 %v3394_v18  ;;  %v733_v18 = vrot.slane %v4732_v27, %v6194_v10 }
 0x36b   : > { %3967 = vmatprep.subr.mxu1 %v3393_v8  ;;  %3985 = vmatprep.mubr.f32.mxu1 %v4995_v40 }
 0x36c   : > { %3968 = vmatpush3.msra.mxu1 %v3393_v8 }
 0x36d   : > { %3969 = vmatprep.subr.mxu1 %v3392_v21 }
 0x36e   : > { %3970 = vmatpush3.msra.mxu1 %v3392_v21 }
 0x36f   : > { %3971 = vmatprep.subr.mxu1 %v3391_v16 }
 0x370   : > { %3972 = vmatpush3.msra.mxu1 %v3391_v16 }
 0x371   : > { %3973 = vmatprep.subr.mxu1 %v3390_v24 }
 0x372   : > { %3974 = vmatpush3.msra.mxu1 %v3390_v24 }
 0x373   : > { %3975 = vmatprep.subr.mxu1 %v3389_v28 }
 0x374   : > { %3976 = vmatpush3.msra.mxu1 %v3389_v28 }
 0x375   : > { %3977 = vmatprep.subr.mxu1 %v3388_v29 }
 0x376   : > { %3978 = vmatpush3.msra.mxu1 %v3388_v29 }
 0x377   : > { %3979 = vmatprep.subr.mxu1 %v3387_v30 }
 0x378   : > { %3980 = vmatpush3.msra.mxu1 %v3387_v30 }
 0x379   : > { %3981 = vmatprep.subr.mxu1 %v3386_v31 }
 0x37a   : > { %3982 = vmatpush3.msra.mxu1 %v3386_v31 }
 0x37b   : > { %3983 = vmatprep.subr.mxu1 %v3385_v32 }
 0x37c   : > { %3984 = vmatpush3.msra.mxu1 %v3385_v32 }
 0x37d   : > { %3986 = vmatmul.mubr.f32.vlgmr.msra.gmra.mxu1 %v5001_v51 }
 0x37e   : > { %3988 = vmatprep.mubr.f32.mxu1 %v5004_v55  ;;  %v5105_v55 = vsel %vm1189_vm9, 1.0, %v4626_v37 }
 0x381   : > { %3989 = vmatmul.mubr.f32.gmra.mxu1 %v5018_v0 }
 0x382   : > { %3991 = vmatprep.mubr.f32.mxu1 %v5021_v2 }
 0x385   : > { %3992 = vmatmul.mubr.f32.gmra.mxu1 %v584_v62 }
 0x386   : > { %3994 = vmatprep.mubr.f32.mxu1 %v585_v11 }
 0x389   : > { %3995 = vmatmul.mubr.f32.gmra.mxu1 %v586_v17 }
 0x41b   : > { %v3899_v35 = vpop.f32.mrf.mxu1  ;;  %v5088_v40 = vpop.f32.mrf.mxu0 }
 0x41c   : > { %v5090_v41 = vadd.f32 %v3899_v35, %v607_v34 }
 0x41d   : > { %v674_v42 = vpop.f32.mrf.mxu1  ;;  %v5093_v43 = vpop.f32.mrf.mxu0 }
 0x41e   : > { %v5097_v36 = vmul.f32 %v5084_v38, %v5090_v41  ;;  %v5101_v47 = vmul.f32 %v5086_v39, %v5090_v41  ;;  %v675_v49 = vadd.f32 %v674_v42, %v607_v34  ;;  %v5255_v10 = vadd.f32 %v5093_v43, %v733_v18 }
 0x41f   : > { %v3902_v51 = vpop.f32.mrf.mxu1  ;;  %v970_v45 = vmul.f32 %v5103_v52, %v5090_v41  ;;  %v1192_v23 = vmul.f32 %v5105_v55, %v5090_v41 }
 0x420   : > { %v5107_v46 = vadd.f32 %v3902_v51, %v607_v34  ;;  %v3946_v50 = vpop.f32.mrf.mxu0  ;;  %v969_v57 = vmul.f32 %v5103_v52, %v675_v49  ;;  %v1191_v58 = vmul.f32 %v5105_v55, %v675_v49  ;;  %v5112_v59 = vmul.f32 %v5084_v38, %v675_v49 }
 0x421   : > { %v684_v56 = vpop.f32.mrf.mxu1  ;;  %v5121_v2 = vmul.f32 %v5086_v39, %v675_v49 }
 0x422   : > { %v5114_v63 = vadd.f32 %v684_v56, %v607_v34  ;;  %v810_v0 = vpop.f32.mrf.mxu0  ;;  %v5118_v1 = vmul.f32 %v5084_v38, %v5107_v46  ;;  %4013 = vmatprep.mubr.f32.mxu0 %v969_v57  ;;  %4041 = vmatprep.mubr.f32.mxu1 %v1191_v58  ;;  %v5125_v54 = vmul.f32 %v5086_v39, %v5107_v46  ;;  %v6193_v56 = vsub.s32 7, %v4726_v25  ;;  %v4616_v58 = vld [vmem:[%s6190_s2] sm:$0xff] }
 0x423   : > { %v5202_v57 = vadd.f32 %v3946_v50, %v733_v18 }
 0x424   : > { %v3905_v3 = vpop.f32.mrf.mxu1  ;;  %v5129_v53 = vmul.f32 %v5084_v38, %v5114_v63  ;;  %v5133_v5 = vmul.f32 %v5086_v39, %v5114_v63  ;;  %v971_v14 = vmul.f32 %v5103_v52, %v5114_v63 }
 0x425   : > { %v5136_v9 = vadd.f32 %v3905_v3, %v607_v34  ;;  %v3949_v62 = vpop.f32.mrf.mxu0  ;;  %v859_v3 = vrot.slane %v4616_v58, %v6193_v56 }
 0x426   : > { %v694_v61 = vpop.f32.mrf.mxu1  ;;  %v5189_v49 = vadd.f32 %v3949_v62, %v733_v18  ;;  %v5213_v62 = vadd.f32 %v810_v0, %v733_v18  ;;  %v5228_v0 = vadd.f32 %v5088_v40, %v733_v18 }
 0x427   : > { %v5138_v11 = vadd.f32 %v694_v61, %v607_v34  ;;  %v820_v13 = vpop.f32.mrf.mxu0  ;;  %v5142_v7 = vmul.f32 %v5084_v38, %v5136_v9  ;;  %v5146_v17 = vmul.f32 %v5086_v39, %v5136_v9 }
 0x428   : > { %v5195_v51 = vadd.f32 %v820_v13, %v733_v18 }
 0x429   : > { %6223 = vst [vmem:[#allocation12_spill] sm:$0xff] %v5146_v17  ;;  %v3908_v8 = vpop.f32.mrf.mxu1  ;;  %v5153_v21 = vmul.f32 %v5084_v38, %v5138_v11  ;;  %v5157_v16 = vmul.f32 %v5086_v39, %v5138_v11 }
 0x42a   : > { %v5159_v24 = vadd.f32 %v3908_v8, %v607_v34  ;;  %v3952_v28 = vpop.f32.mrf.mxu0 }
 0x42b   : > { %6224 = vst [vmem:[#allocation13_spill] sm:$0xff] %v5157_v16  ;;  %v5161_v29 = vadd.f32 %v3952_v28, %v733_v18  ;;  %v704_v30 = vpop.f32.mrf.mxu1 }
 0x42c   : > { %v5163_v31 = vadd.f32 %v704_v30, %v607_v34  ;;  %v830_v32 = vpop.f32.mrf.mxu0  ;;  %v5167_v27 = vmul.f32 %v5084_v38, %v5159_v24  ;;  %v5175_v37 = vmul.f32 %v5086_v39, %v5159_v24 }
 0x42d   : > { %v5169_v35 = vadd.f32 %v830_v32, %v733_v18  ;;  %3997 = vmatprep.subr.mxu0 %v5161_v29  ;;  %4025 = vmatprep.subr.mxu1 %v5161_v29 }
 0x42e   : > { %6225 = vst [vmem:[#allocation14_spill] sm:$0xff] %v5175_v37  ;;  %3998 = vmatpush3.xpose.msra.mxu0 %v5161_v29  ;;  %4026 = vmatpush3.xpose.msra.mxu1 %v5161_v29  ;;  %v5181_v34 = vmul.f32 %v5084_v38, %v5163_v31  ;;  %v5187_v42 = vmul.f32 %v5086_v39, %v5163_v31 }
 0x42f   : > { %3999 = vmatprep.subr.mxu0 %v5169_v35  ;;  %4027 = vmatprep.subr.mxu1 %v5169_v35 }
 0x430   : > { %6226 = vst [vmem:[#allocation15_spill] sm:$0xff] %v5187_v42 }
 0x432   : > { %4000 = vmatpush3.xpose.msra.mxu0 %v5169_v35  ;;  %4028 = vmatpush3.xpose.msra.mxu1 %v5169_v35 }
 0x433   : > { %4001 = vmatprep.subr.mxu0 %v5189_v49  ;;  %4029 = vmatprep.subr.mxu1 %v5189_v49 }
 0x436   : > { %4002 = vmatpush3.xpose.msra.mxu0 %v5189_v49  ;;  %4030 = vmatpush3.xpose.msra.mxu1 %v5189_v49 }
 0x437   : > { %4003 = vmatprep.subr.mxu0 %v5195_v51  ;;  %4031 = vmatprep.subr.mxu1 %v5195_v51 }
 0x43a   : > { %4004 = vmatpush3.xpose.msra.mxu0 %v5195_v51  ;;  %4032 = vmatpush3.xpose.msra.mxu1 %v5195_v51 }
 0x43b   : > { %4005 = vmatprep.subr.mxu0 %v5202_v57  ;;  %4033 = vmatprep.subr.mxu1 %v5202_v57 }
 0x43d   : > { %v3987_v61 = vpop.f32.mrf.mxu1 }
 0x43e   : > { %v5215_v50 = vadd.f32 %v3987_v61, %v859_v3  ;;  %4006 = vmatpush3.xpose.msra.mxu0 %v5202_v57  ;;  %4034 = vmatpush3.xpose.msra.mxu1 %v5202_v57 }
 0x43f   : > { %v926_v13 = vpop.f32.mrf.mxu1  ;;  %4007 = vmatprep.subr.mxu0 %v5213_v62  ;;  %4035 = vmatprep.subr.mxu1 %v5213_v62 }
 0x440   : > { %v5221_v8 = vadd.f32 %v926_v13, %v859_v3  ;;  %v5225_v28 = vmul.f32 %v5086_v39, %v5215_v50  ;;  %v5232_v32 = vmul.f32 %v5084_v38, %v5215_v50 }
 0x441   : > { %v3990_v30 = vpop.f32.mrf.mxu1 }
 0x442   : > { %v5234_v58 = vadd.f32 %v3990_v30, %v859_v3  ;;  %4008 = vmatpush3.xpose.msra.mxu0 %v5213_v62  ;;  %4036 = vmatpush3.xpose.msra.mxu1 %v5213_v62  ;;  %v5242_v40 = vmul.f32 %v5086_v39, %v5221_v8  ;;  %v5246_v13 = vmul.f32 %v5084_v38, %v5221_v8 }
 0x443   : > { %v936_v61 = vpop.f32.mrf.mxu1  ;;  %4009 = vmatprep.subr.mxu0 %v5228_v0  ;;  %4037 = vmatprep.subr.mxu1 %v5228_v0 }
 0x444   : > { %v5248_v56 = vadd.f32 %v936_v61, %v859_v3  ;;  %v5252_v30 = vmul.f32 %v5086_v39, %v5234_v58  ;;  %v5259_v20 = vmul.f32 %v5084_v38, %v5234_v58 }
 0x445   : > { %v3993_v33 = vpop.f32.mrf.mxu1 }
 0x446   : > { %v952_v15 = vadd.f32 %v3993_v33, %v859_v3  ;;  %4010 = vmatpush3.xpose.msra.mxu0 %v5228_v0  ;;  %4038 = vmatpush3.xpose.msra.mxu1 %v5228_v0  ;;  %v5267_v61 = vmul.f32 %v5086_v39, %v5248_v56  ;;  %v5271_v43 = vmul.f32 %v5084_v38, %v5248_v56 }
 0x447   : > { %v946_v48 = vpop.f32.mrf.mxu1  ;;  %4011 = vmatprep.subr.mxu0 %v5255_v10  ;;  %4039 = vmatprep.subr.mxu1 %v5255_v10 }
 0x448   : > { %v947_v18 = vadd.f32 %v946_v48, %v859_v3  ;;  %v5274_v33 = vmul.f32 %v5086_v39, %v952_v15  ;;  %v5277_v26 = vmul.f32 %v5084_v38, %v952_v15 }
 0x449   : > { %v3996_v44 = vpop.f32.mrf.mxu1 }
 0x44a   : > { %v5281_v22 = vadd.f32 %v3996_v44, %v859_v3  ;;  %4012 = vmatpush3.xpose.msra.mxu0 %v5255_v10  ;;  %4040 = vmatpush3.xpose.msra.mxu1 %v5255_v10  ;;  %v5290_v19 = vmul.f32 %v5086_v39, %v947_v18  ;;  %v5293_v6 = vmul.f32 %v5084_v38, %v947_v18 }
 0x44b   : > { %v956_v48 = vpop.f32.mrf.mxu1  ;;  %v1193_v44 = vmul.f32 %v5105_v55, %v5114_v63 }
 0x44c   : > { %v957_v12 = vadd.f32 %v956_v48, %v859_v3  ;;  %v1407_v60 = vmul.f32 %v5105_v55, %v5281_v22  ;;  %v1186_v41 = vmul.f32 %v5103_v52, %v5281_v22  ;;  %v5303_v4 = vmul.f32 %v5086_v39, %v5281_v22 }
 0x44d   : > { %4014 = vmatmul.mubr.f32.vlgmr.msra.gmra.mxu0 %v970_v45  ;;  %4042 = vmatmul.mubr.f32.vlgmr.msra.gmra.mxu1 %v1192_v23  ;;  %v972_v45 = vmul.f32 %v5103_v52, %v5107_v46  ;;  %v973_v23 = vmul.f32 %v5103_v52, %v5138_v11 }
 0x44e   : > { %4016 = vmatprep.mubr.f32.mxu0 %v971_v14  ;;  %4044 = vmatprep.mubr.f32.mxu1 %v1193_v44  ;;  %v1406_v25 = vmul.f32 %v5105_v55, %v957_v12  ;;  %v1185_v3 = vmul.f32 %v5103_v52, %v957_v12  ;;  %v5308_v63 = vmul.f32 %v5086_v39, %v957_v12 }
 0x44f   : > { %4053 = vmatprep.subr.mxu0 %v1407_v60  ;;  %4081 = vmatprep.subr.mxu1 %v1186_v41  ;;  %v5311_v48 = vmul.f32 %v5084_v38, %v957_v12  ;;  %v1194_v14 = vmul.f32 %v5105_v55, %v5107_v46  ;;  %v1195_v39 = vmul.f32 %v5105_v55, %v5138_v11 }
 0x450   : > { %4054 = vmatpush3.msra.mxu0 %v1407_v60  ;;  %4082 = vmatpush3.msra.mxu1 %v1186_v41  ;;  %v1405_v60 = vmul.f32 %v5105_v55, %v952_v15  ;;  %v1184_v12 = vmul.f32 %v5103_v52, %v952_v15  ;;  %v1404_v46 = vmul.f32 %v5105_v55, %v947_v18 }
 0x451   : > { %4055 = vmatprep.subr.mxu0 %v1406_v25  ;;  %4083 = vmatprep.subr.mxu1 %v1185_v3  ;;  %v1183_v44 = vmul.f32 %v5103_v52, %v947_v18  ;;  %v974_v41 = vmul.f32 %v5103_v52, %v5136_v9  ;;  %v975_v15 = vmul.f32 %v5103_v52, %v5163_v31 }
 0x452   : > { %4017 = vmatmul.mubr.f32.gmra.mxu0 %v972_v45  ;;  %4045 = vmatmul.mubr.f32.gmra.mxu1 %v1194_v14  ;;  %v1197_v11 = vmul.f32 %v5105_v55, %v5163_v31  ;;  %v1403_v18 = vmul.f32 %v5105_v55, %v5234_v58  ;;  %v1181_v45 = vmul.f32 %v5103_v52, %v5248_v56 }
 0x453   : > { %4056 = vmatpush3.msra.mxu0 %v1406_v25  ;;  %4084 = vmatpush3.msra.mxu1 %v1185_v3  ;;  %v1196_v25 = vmul.f32 %v5105_v55, %v5136_v9  ;;  %v1182_v3 = vmul.f32 %v5103_v52, %v5234_v58  ;;  %v1402_v9 = vmul.f32 %v5105_v55, %v5248_v56 }
 0x454   : > { %4019 = vmatprep.mubr.f32.mxu0 %v973_v23  ;;  %4047 = vmatprep.mubr.f32.mxu1 %v1195_v39  ;;  %v976_v31 = vmul.f32 %v5103_v52, %v5159_v24  ;;  %v1198_v14 = vmul.f32 %v5105_v55, %v5159_v24  ;;  %v1401_v58 = vmul.f32 %v5105_v55, %v5215_v50 }
 0x455   : > { %4057 = vmatprep.subr.mxu0 %v1405_v60  ;;  %4085 = vmatprep.subr.mxu1 %v1184_v12  ;;  %v1180_v23 = vmul.f32 %v5103_v52, %v5215_v50  ;;  %v1400_v56 = vmul.f32 %v5105_v55, %v5221_v8  ;;  %v1179_v24 = vmul.f32 %v5103_v52, %v5221_v8 }
 0x456   : > { %4058 = vmatpush3.msra.mxu0 %v1405_v60  ;;  %4086 = vmatpush3.msra.mxu1 %v1184_v12  ;;  %v5355_v39 = vmul.f32 %v5084_v38, %v5281_v22 }
 0x457   : > { %4059 = vmatprep.subr.mxu0 %v1404_v46  ;;  %4087 = vmatprep.subr.mxu1 %v1183_v44 }
 0x458   : > { %4020 = vmatmul.mubr.f32.gmra.mxu0 %v974_v41  ;;  %4048 = vmatmul.mubr.f32.gmra.mxu1 %v1196_v25 }
 0x459   : > { %4060 = vmatpush3.msra.mxu0 %v1404_v46  ;;  %4088 = vmatpush3.msra.mxu1 %v1183_v44 }
 0x45a   : > { %4022 = vmatprep.mubr.f32.mxu0 %v975_v15  ;;  %4050 = vmatprep.mubr.f32.mxu1 %v1197_v11 }
 0x45b   : > { %4061 = vmatprep.subr.mxu0 %v1403_v18  ;;  %4089 = vmatprep.subr.mxu1 %v1182_v3 }
 0x45c   : > { %4062 = vmatpush3.msra.mxu0 %v1403_v18  ;;  %4090 = vmatpush3.msra.mxu1 %v1182_v3 }
 0x45d   : > { %4063 = vmatprep.subr.mxu0 %v1402_v9  ;;  %4091 = vmatprep.subr.mxu1 %v1181_v45 }
 0x45e   : > { %4023 = vmatmul.mubr.f32.gmra.mxu0 %v976_v31  ;;  %4051 = vmatmul.mubr.f32.gmra.mxu1 %v1198_v14 }
 0x45f   : > { %4064 = vmatpush3.msra.mxu0 %v1402_v9  ;;  %4092 = vmatpush3.msra.mxu1 %v1181_v45 }
 0x460   : > { %4065 = vmatprep.subr.mxu0 %v1401_v58  ;;  %4093 = vmatprep.subr.mxu1 %v1180_v23 }
 0x461   : > { %4066 = vmatpush3.msra.mxu0 %v1401_v58  ;;  %4094 = vmatpush3.msra.mxu1 %v1180_v23 }
 0x462   : > { %4067 = vmatprep.subr.mxu0 %v1400_v56  ;;  %4095 = vmatprep.subr.mxu1 %v1179_v24 }
 0x463   : > { %4068 = vmatpush3.msra.mxu0 %v1400_v56  ;;  %4096 = vmatpush3.msra.mxu1 %v1179_v24 }
 0x464   : > { %4109 = vmatprep.subr.mxu0 %v5161_v29  ;;  %4137 = vmatprep.subr.mxu1 %v5355_v39 }
 0x50d   : > { %v4043_v50 = vpop.f32.mrf.mxu1 }
 0x50e   : > { %v1305_v55 = vmul.f32 0.35355338, %v4043_v50 }
 0x50f   : > { %v1265_v60 = vpop.f32.mrf.mxu1 }
 0x510   : > { %v1304_v12 = vmul.f32 0.35355338, %v1265_v60  ;;  %v1315_v52 = vsel %vm1090_vm10, %v1305_v55, -inf }
 0x511   : > { %1316 = vmax.xlane.f32.xlu1 %v1315_v52 }
 0x512   : > { %v4046_v8 = vpop.f32.mrf.mxu1  ;;  %v1312_v46 = vsel %vm1090_vm10, %v1304_v12, -inf }
 0x513   : > { %v1307_v44 = vmul.f32 0.35355338, %v4046_v8  ;;  %1313 = vmax.xlane.f32.xlu0 %v1312_v46 }
 0x514   : > { %v1275_v22 = vpop.f32.mrf.mxu1 }
 0x515   : > { %v1306_v38 = vmul.f32 0.35355338, %v1275_v22  ;;  %v1321_v41 = vsel %vm1090_vm10, %v1307_v44, -inf }
 0x516   : > { %1322 = vmax.xlane.f32.xlu1 %v1321_v41 }
 0x517   : > { %v1318_v25 = vsel %vm1090_vm10, %v1306_v38, -inf }
 0x518   : > { %v4049_v15 = vpop.f32.mrf.mxu1  ;;  %1319 = vmax.xlane.f32.xlu0 %v1318_v25 }
 0x519   : > { %v1309_v11 = vmul.f32 0.35355338, %v4049_v15 }
 0x51a   : > { %v1285_v18 = vpop.f32.mrf.mxu1 }
 0x51b   : > { %v1308_v3 = vmul.f32 0.35355338, %v1285_v18  ;;  %v1327_v9 = vsel %vm1090_vm10, %v1309_v11, -inf }
 0x51c   : > { %1328 = vmax.xlane.f32.xlu1 %v1327_v9 }
 0x51d   : > { %v1324_v45 = vsel %vm1090_vm10, %v1308_v3, -inf }
 0x51e   : > { %v4052_v31 = vpop.f32.mrf.mxu1  ;;  %1325 = vmax.xlane.f32.xlu0 %v1324_v45 }
 0x51f   : > { %v1311_v14 = vmul.f32 0.35355338, %v4052_v31 }
 0x520   : > { %v1295_v58 = vpop.f32.mrf.mxu1 }
 0x521   : > { %v1310_v23 = vmul.f32 0.35355338, %v1295_v58  ;;  %v1333_v56 = vsel %vm1090_vm10, %v1311_v14, -inf }
 0x522   : > { %1334 = vmax.xlane.f32.xlu1 %v1333_v56 }
 0x523   : > { %v1330_v24 = vsel %vm1090_vm10, %v1310_v23, -inf }
 0x524   : > { %1331 = vmax.xlane.f32.xlu0 %v1330_v24 }
 0x59a   : > { %v1317_v50 = vpop.xlane.xlu1 %1316 }
 0x59b   : > { %v1337_v60 = vsub.f32 %v1305_v55, %v1317_v50 }
 0x59c   : > { %v1314_v52 = vpop.xlane.xlu0 %1313 }
 0x59d   : > { %v1346_v8 = vmul.f32 1.442695, %v1337_v60  ;;  %v1336_v46 = vsub.f32 %v1304_v12, %v1314_v52 }
 0x59f   : > { %4440 = vpow2.f32 %v1346_v8  ;;  %v1344_v22 = vmul.f32 1.442695, %v1336_v46  ;;  %v1323_v41 = vpop.xlane.xlu1 %1322 }
 0x5a0   : > { %v1339_v25 = vsub.f32 %v1307_v44, %v1323_v41  ;;  %v4015_v44 = vpop.f32.mrf.mxu0 }
 0x5a1   : > { %4442 = vpow2.f32 %v1344_v22  ;;  %v1320_v15 = vpop.xlane.xlu0 %1319 }
 0x5a2   : > { %v1350_v18 = vmul.f32 1.442695, %v1339_v25  ;;  %v1338_v9 = vsub.f32 %v1306_v38, %v1320_v15  ;;  %v1043_v41 = vpop.f32.mrf.mxu0 }
 0x5a4   : > { %4444 = vpow2.f32 %v1350_v18  ;;  %v1348_v45 = vmul.f32 1.442695, %v1338_v9  ;;  %v4018_v15 = vpop.f32.mrf.mxu0 }
 0x5a5   : > { %v1329_v31 = vpop.xlane.xlu1 %1328 }
 0x5a6   : > { %4446 = vpow2.f32 %v1348_v45  ;;  %v1341_v58 = vsub.f32 %v1309_v11, %v1329_v31  ;;  %v1053_v31 = vpop.f32.mrf.mxu0 }
 0x5a7   : > { %v1326_v56 = vpop.xlane.xlu0 %1325 }
 0x5a8   : > { %v1354_v24 = vmul.f32 1.442695, %v1341_v58  ;;  %v1340_v37 = vsub.f32 %v1308_v3, %v1326_v56 }
 0x5aa   : > { %4448 = vpow2.f32 %v1354_v24  ;;  %v1352_v55 = vmul.f32 1.442695, %v1340_v37  ;;  %v4021_v24 = vpop.f32.mrf.mxu0 }
 0x5ab   : > { %v1335_v50 = vpop.xlane.xlu1 %1334 }
 0x5ac   : > { %v5367_v12 = vpop.eup %4440  ;;  %4450 = vpow2.f32 %v1352_v55  ;;  %v1343_v60 = vsub.f32 %v1311_v14, %v1335_v50  ;;  %v5393_v55 = vmul.f32 0.35355338, %v4015_v44  ;;  %v5407_v44 = vmul.f32 0.35355338, %v1053_v31 }
 0x5ad   : > { %v1332_v52 = vpop.xlane.xlu0 %1331  ;;  %v1363_v38 = vsel %vm1090_vm10, %v5367_v12, 0.0 }
 0x5ae   : > { %v5371_v8 = vpop.eup %4442  ;;  %v1358_v46 = vmul.f32 1.442695, %v1343_v60  ;;  %v1342_v22 = vsub.f32 %v1310_v23, %v1332_v52  ;;  %1364 = vadd.xlane.f32.xlu1 %v1363_v38  ;;  %v5399_v52 = vmul.f32 0.35355338, %v1043_v41  ;;  %v5411_v41 = vmul.f32 0.35355338, %v4021_v24 }
 0x5af   : > { %v1360_v11 = vsel %vm1090_vm10, %v5371_v8, 0.0 }
 0x5b0   : > { %4452 = vpow2.f32 %v1358_v46  ;;  %v1356_v37 = vmul.f32 1.442695, %v1342_v22  ;;  %1361 = vadd.xlane.f32.xlu0 %v1360_v11  ;;  %v1063_v46 = vpop.f32.mrf.mxu0  ;;  %v5403_v22 = vmul.f32 0.35355338, %v4018_v15  ;;  %v1094_v11 = vsel %vm1090_vm10, %v5393_v55, -inf }
 0x5b1   : > { %v5375_v3 = vpop.eup %4444  ;;  %v1097_v15 = vsel %vm1090_vm10, %v5407_v44, -inf }
 0x5b2   : > { %4454 = vpow2.f32 %v1356_v37  ;;  %v1369_v14 = vsel %vm1090_vm10, %v5375_v3, 0.0  ;;  %v1091_v37 = vsel %vm1090_vm10, %v5399_v52, -inf }
 0x5b3   : > { %v5379_v25 = vpop.eup %4446  ;;  %1370 = vadd.xlane.f32.xlu1 %v1369_v14  ;;  %v4024_v14 = vpop.f32.mrf.mxu0 }
 0x5b4   : > { %v1366_v23 = vsel %vm1090_vm10, %v5379_v25, 0.0  ;;  %v5419_v31 = vmul.f32 0.35355338, %v4024_v14 }
 0x5b5   : > { %1367 = vadd.xlane.f32.xlu0 %v1366_v23  ;;  %v1100_v23 = vsel %vm1090_vm10, %v5403_v22, -inf }
 0x5b7   : > { %v5383_v18 = vpop.eup %4448 }
 0x5b8   : > { %v1375_v9 = vsel %vm1090_vm10, %v5383_v18, 0.0 }
 0x5b9   : > { %v5387_v45 = vpop.eup %4450  ;;  %1376 = vadd.xlane.f32.xlu1 %v1375_v9  ;;  %v5415_v9 = vmul.f32 0.35355338, %v1063_v46  ;;  %v1112_v46 = vsel %vm1090_vm10, %v5419_v31, -inf }
 0x5ba   : > { %v1372_v58 = vsel %vm1090_vm10, %v5387_v45, 0.0 }
 0x5bb   : > { %1373 = vadd.xlane.f32.xlu0 %v1372_v58  ;;  %v1073_v58 = vpop.f32.mrf.mxu0  ;;  %v1103_v24 = vsel %vm1090_vm10, %v5415_v9, -inf }
 0x5bd   : > { %v5391_v56 = vpop.eup %4452 }
 0x5be   : > { %v1381_v50 = vsel %vm1090_vm10, %v5391_v56, 0.0 }
 0x5bf   : > { %v5397_v60 = vpop.eup %4454  ;;  %1382 = vadd.xlane.f32.xlu1 %v1381_v50  ;;  %v1106_v50 = vsel %vm1090_vm10, %v5411_v41, -inf }
 0x5c0   : > { %v1378_v38 = vsel %vm1090_vm10, %v5397_v60, 0.0 }
 0x5c1   : > { %1379 = vadd.xlane.f32.xlu0 %v1378_v38  ;;  %v5423_v38 = vmul.f32 0.35355338, %v1073_v58 }
 0x5c3   : > { %1095 = vmax.xlane.f32.xlu1 %v1094_v11  ;;  %v1109_v11 = vsel %vm1090_vm10, %v5423_v38, -inf }
 0x5c5   : > { %1092 = vmax.xlane.f32.xlu0 %v1091_v37 }
 0x5c7   : > { %1101 = vmax.xlane.f32.xlu1 %v1100_v23 }
 0x5c9   : > { %1098 = vmax.xlane.f32.xlu0 %v1097_v15 }
 0x5cb   : > { %1107 = vmax.xlane.f32.xlu1 %v1106_v50 }
 0x5cd   : > { %1104 = vmax.xlane.f32.xlu0 %v1103_v24 }
 0x5cf   : > { %1113 = vmax.xlane.f32.xlu1 %v1112_v46 }
 0x5d1   : > { %1110 = vmax.xlane.f32.xlu0 %v1109_v11 }
 0x637   : > { %v1365_v37 = vpop.xlane.xlu1 %1364 }
 0x638   : > { %4456 = vrcp.f32 %v1365_v37 }
 0x639   : > { %v1362_v14 = vpop.xlane.xlu0 %1361 }
 0x63a   : > { %4458 = vrcp.f32 %v1362_v14 }
 0x63c   : > { %v1371_v23 = vpop.xlane.xlu1 %1370 }
 0x63d   : > { %4460 = vrcp.f32 %v1371_v23 }
 0x63e   : > { %v1368_v15 = vpop.xlane.xlu0 %1367 }
 0x63f   : > { %4462 = vrcp.f32 %v1368_v15 }
 0x642   : > { %v1377_v58 = vpop.xlane.xlu1 %1376 }
 0x643   : > { %4464 = vrcp.f32 %v1377_v58 }
 0x644   : > { %v1374_v50 = vpop.xlane.xlu0 %1373 }
 0x645   : > { %4466 = vrcp.f32 %v1374_v50  ;;  %v4457_v24 = vpop.eup %4456 }
 0x646   : > { %v1393_v16 = vmul.f32 %v4457_v24, %v5367_v12 }
 0x647   : > { %v4459_v42 = vpop.eup %4458 }
 0x648   : > { %v1383_v17 = vpop.xlane.xlu1 %1382  ;;  %v1392_v46 = vmul.f32 %v4459_v42, %v5371_v8 }
 0x649   : > { %4468 = vrcp.f32 %v1383_v17 }
 0x64a   : > { %v1380_v11 = vpop.xlane.xlu0 %1379  ;;  %4069 = vmatprep.mubr.msk.f32.mxu0 %vm1090_vm10, %v1392_v46  ;;  %v4461_v37 = vpop.eup %4460 }
 0x64b   : > { %4470 = vrcp.f32 %v1380_v11  ;;  %4070 = vmatmul.mubr.msk.f32.vlgmr.msra.gmra.mxu0 %vm1090_vm10, %v1393_v16  ;;  %v1395_v15 = vmul.f32 %v4461_v37, %v5375_v3 }
 0x64c   : > { %v4463_v14 = vpop.eup %4462  ;;  %4110 = vmatpush3.xpose.msra.mxu0 %v5161_v29 }
 0x64d   : > { %4111 = vmatprep.subr.mxu0 %v5169_v35  ;;  %v1394_v23 = vmul.f32 %v4463_v14, %v5379_v25 }
 0x64f   : > { %4072 = vmatprep.mubr.msk.f32.mxu0 %vm1090_vm10, %v1394_v23 }
 0x650   : > { %4073 = vmatmul.mubr.msk.f32.gmra.mxu0 %vm1090_vm10, %v1395_v15  ;;  %v4465_v17 = vpop.eup %4464 }
 0x651   : > { %4112 = vmatpush3.xpose.msra.mxu0 %v5169_v35  ;;  %v1397_v12 = vmul.f32 %v4465_v17, %v5383_v18 }
 0x652   : > { %v4467_v42 = vpop.eup %4466  ;;  %4113 = vmatprep.subr.mxu0 %v5189_v49 }
 0x653   : > { %v1396_v16 = vmul.f32 %v4467_v42, %v5387_v45 }
 0x655   : > { %4075 = vmatprep.mubr.msk.f32.mxu0 %vm1090_vm10, %v1396_v16  ;;  %4114 = vmatpush3.xpose.msra.mxu0 %v5189_v49 }
 0x656   : > { %4076 = vmatmul.mubr.msk.f32.gmra.mxu0 %vm1090_vm10, %v1397_v12  ;;  %4115 = vmatprep.subr.mxu0 %v5195_v51  ;;  %v4469_v8 = vpop.eup %4468 }
 0x657   : > { %v1399_v58 = vmul.f32 %v4469_v8, %v5391_v56 }
 0x658   : > { %v4471_v3 = vpop.eup %4470 }
 0x659   : > { %v1398_v25 = vmul.f32 %v4471_v3, %v5397_v60  ;;  %4116 = vmatpush3.xpose.msra.mxu0 %v5195_v51 }
 0x65a   : > { %4117 = vmatprep.subr.mxu0 %v5202_v57 }
 0x65b   : > { %4078 = vmatprep.mubr.msk.f32.mxu0 %vm1090_vm10, %v1398_v25 }
 0x65c   : > { %4079 = vmatmul.mubr.msk.f32.gmra.mxu0 %vm1090_vm10, %v1399_v58 }
 0x65d   : > { %4125 = vmatprep.mubr.f32.mxu0 %v5112_v59  ;;  %4118 = vmatpush3.xpose.msra.mxu0 %v5202_v57 }
 0x65e   : > { %4119 = vmatprep.subr.mxu0 %v5213_v62 }
 0x661   : > { %4120 = vmatpush3.xpose.msra.mxu0 %v5213_v62 }
 0x662   : > { %4121 = vmatprep.subr.mxu0 %v5228_v0 }
 0x665   : > { %4122 = vmatpush3.xpose.msra.mxu0 %v5228_v0 }
 0x666   : > { %4123 = vmatprep.subr.mxu0 %v5255_v10 }
 0x669   : > { %4124 = vmatpush3.xpose.msra.mxu0 %v5255_v10 }
 0x66a   : > { %4193 = vmatprep.subr.mxu0 %v5303_v4 }
 0x66c   : > { %4126 = vmatmul.mubr.f32.vlgmr.msra.gmra.mxu0 %v5097_v36 }
 0x66d   : > { %4128 = vmatprep.mubr.f32.mxu0 %v5129_v53  ;;  %4194 = vmatpush3.msra.mxu0 %v5303_v4 }
 0x66e   : > { %4195 = vmatprep.subr.mxu0 %v5308_v63 }
 0x66f   : > { %4196 = vmatpush3.msra.mxu0 %v5308_v63 }
 0x670   : > { %4129 = vmatmul.mubr.f32.gmra.mxu0 %v5118_v1  ;;  %4197 = vmatprep.subr.mxu0 %v5274_v33  ;;  %v1096_v1 = vpop.xlane.xlu1 %1095 }
 0x671   : > { %4131 = vmatprep.mubr.f32.mxu0 %v5153_v21  ;;  %4198 = vmatpush3.msra.mxu0 %v5274_v33 }
 0x672   : > { %4199 = vmatprep.subr.mxu0 %v5290_v19 }
 0x673   : > { %4200 = vmatpush3.msra.mxu0 %v5290_v19 }
 0x674   : > { %4132 = vmatmul.mubr.f32.gmra.mxu0 %v5142_v7  ;;  %4201 = vmatprep.subr.mxu0 %v5252_v30  ;;  %v1093_v7 = vpop.xlane.xlu0 %1092 }
 0x675   : > { %4134 = vmatprep.mubr.f32.mxu0 %v5181_v34  ;;  %4202 = vmatpush3.msra.mxu0 %v5252_v30  ;;  %v1115_v30 = vsub.f32 %v5399_v52, %v1093_v7 }
 0x676   : > { %4203 = vmatprep.subr.mxu0 %v5267_v61 }
 0x677   : > { %4204 = vmatpush3.msra.mxu0 %v5267_v61  ;;  %v1123_v50 = vmul.f32 1.442695, %v1115_v30 }
 0x678   : > { %4135 = vmatmul.mubr.f32.gmra.mxu0 %v5167_v27  ;;  %4205 = vmatprep.subr.mxu0 %v5225_v28  ;;  %v1102_v27 = vpop.xlane.xlu1 %1101  ;;  %v1099_v34 = vpop.xlane.xlu0 %1098 }
 0x679   : > { %4206 = vmatpush3.msra.mxu0 %v5225_v28  ;;  %v1118_v61 = vsub.f32 %v5403_v22, %v1102_v27  ;;  %v1117_v45 = vsub.f32 %v5407_v44, %v1099_v34 }
 0x67a   : > { %4207 = vmatprep.subr.mxu0 %v5242_v40 }
 0x67b   : > { %4208 = vmatpush3.msra.mxu0 %v5242_v40  ;;  %v1116_v40 = vsub.f32 %v5393_v55, %v1096_v1  ;;  %v1129_v46 = vmul.f32 1.442695, %v1118_v61  ;;  %v1127_v22 = vmul.f32 1.442695, %v1117_v45 }
 0x67c   : > { %v1108_v33 = vpop.xlane.xlu1 %1107  ;;  %v1105_v56 = vpop.xlane.xlu0 %1104 }
 0x67d   : > { %v1125_v18 = vmul.f32 1.442695, %v1116_v40  ;;  %v1120_v55 = vsub.f32 %v5411_v41, %v1108_v33  ;;  %v1119_v44 = vsub.f32 %v5415_v9, %v1105_v56 }
 0x67f   : > { %4472 = vpow2.f32 %v1125_v18  ;;  %v1133_v16 = vmul.f32 1.442695, %v1120_v55  ;;  %v1131_v25 = vmul.f32 1.442695, %v1119_v44 }
 0x680   : > { %v1114_v14 = vpop.xlane.xlu1 %1113  ;;  %4474 = vpow2.f32 %v1123_v50  ;;  %v1111_v42 = vpop.xlane.xlu0 %1110 }
 0x681   : > { %4476 = vpow2.f32 %v1129_v46  ;;  %v1122_v12 = vsub.f32 %v5419_v31, %v1114_v14  ;;  %v1121_v58 = vsub.f32 %v5423_v38, %v1111_v42 }
 0x682   : > { %4478 = vpow2.f32 %v1127_v22 }
 0x683   : > { %4480 = vpow2.f32 %v1133_v16  ;;  %v1137_v31 = vmul.f32 1.442695, %v1122_v12  ;;  %v1135_v61 = vmul.f32 1.442695, %v1121_v58 }
 0x684   : > { %4482 = vpow2.f32 %v1131_v25 }
 0x685   : > { %4484 = vpow2.f32 %v1137_v31 }
 0x686   : > { %4486 = vpow2.f32 %v1135_v61 }
 0x70b   : > { %v5486_v4 = vpop.f32.mrf.mxu0 }
 0x70d   : > { %v5488_v19 = vpop.f32.mrf.mxu0 }
 0x710   : > { %v5490_v36 = vpop.f32.mrf.mxu0 }
 0x712   : > { %v5492_v59 = vpop.f32.mrf.mxu0 }
 0x716   : > { %v5494_v53 = vpop.f32.mrf.mxu0 }
 0x718   : > { %v5496_v21 = vpop.f32.mrf.mxu0 }
 0x71c   : > { %v5498_v28 = vpop.f32.mrf.mxu0 }
 0x71e   : > { %v5503_v63 = vpop.f32.mrf.mxu0 }
 0x72c   : > { %v4127_v60 = vpop.f32.mrf.mxu0 }
 0x72d   : > { %v5506_v24 = vmul.f32 0.35355338, %v4127_v60  ;;  %v5535_v60 = vpop.eup %4472 }
 0x72e   : > { %v1744_v11 = vpop.f32.mrf.mxu0  ;;  %v5538_v46 = vpop.eup %4474  ;;  %v1142_v55 = vsel %vm1090_vm10, %v5535_v60, 0.0 }
 0x72f   : > { %v5509_v37 = vmul.f32 0.35355338, %v1744_v11  ;;  %v1794_v52 = vsel %vm1090_vm10, %v5506_v24, -inf  ;;  %v5540_v11 = vpop.eup %4476  ;;  %v1139_v22 = vsel %vm1090_vm10, %v5538_v46, 0.0 }
 0x730   : > { %1795 = vmax.xlane.f32.xlu1 %v1794_v52  ;;  %v4130_v23 = vpop.f32.mrf.mxu0  ;;  %v5544_v52 = vpop.eup %4478  ;;  %v1148_v14 = vsel %vm1090_vm10, %v5540_v11, 0.0 }
 0x731   : > { %v5514_v15 = vmul.f32 0.35355338, %v4130_v23  ;;  %v1791_v17 = vsel %vm1090_vm10, %v5509_v37, -inf  ;;  %v5550_v23 = vpop.eup %4480  ;;  %v1145_v44 = vsel %vm1090_vm10, %v5544_v52, 0.0 }
 0x732   : > { %v1754_v41 = vpop.f32.mrf.mxu0  ;;  %1792 = vmax.xlane.f32.xlu0 %v1791_v17  ;;  %v5554_v17 = vpop.eup %4482  ;;  %v1154_v42 = vsel %vm1090_vm10, %v5550_v23, 0.0 }
 0x733   : > { %v5519_v8 = vmul.f32 0.35355338, %v1754_v41  ;;  %v1800_v3 = vsel %vm1090_vm10, %v5514_v15, -inf  ;;  %v5558_v41 = vpop.eup %4484  ;;  %v1151_v16 = vsel %vm1090_vm10, %v5554_v17, 0.0 }
 0x734   : > { %1801 = vmax.xlane.f32.xlu1 %v1800_v3  ;;  %v4133_v9 = vpop.f32.mrf.mxu0  ;;  %v5562_v12 = vpop.eup %4486  ;;  %v1160_v3 = vsel %vm1090_vm10, %v5558_v41, 0.0 }
 0x735   : > { %v5524_v1 = vmul.f32 0.35355338, %v4133_v9  ;;  %v1797_v7 = vsel %vm1090_vm10, %v5519_v8, -inf  ;;  %v1157_v9 = vsel %vm1090_vm10, %v5562_v12, 0.0 }
 0x736   : > { %v1764_v27 = vpop.f32.mrf.mxu0  ;;  %1798 = vmax.xlane.f32.xlu0 %v1797_v7 }
 0x737   : > { %v5528_v34 = vmul.f32 0.35355338, %v1764_v27  ;;  %v1806_v40 = vsel %vm1090_vm10, %v5524_v1, -inf }
 0x738   : > { %1807 = vmax.xlane.f32.xlu1 %v1806_v40  ;;  %v4136_v30 = vpop.f32.mrf.mxu0 }
 0x739   : > { %v1790_v33 = vmul.f32 0.35355338, %v4136_v30  ;;  %v1803_v38 = vsel %vm1090_vm10, %v5528_v34, -inf }
 0x73a   : > { %v1774_v18 = vpop.f32.mrf.mxu0  ;;  %1804 = vmax.xlane.f32.xlu0 %v1803_v38 }
 0x73b   : > { %v1789_v45 = vmul.f32 0.35355338, %v1774_v18  ;;  %v1812_v56 = vsel %vm1090_vm10, %v1790_v33, -inf }
 0x73c   : > { %1813 = vmax.xlane.f32.xlu1 %v1812_v56 }
 0x73d   : > { %v1809_v50 = vsel %vm1090_vm10, %v1789_v45, -inf }
 0x73e   : > { %1810 = vmax.xlane.f32.xlu0 %v1809_v50 }
 0x740   : > { %1143 = vadd.xlane.f32.xlu1 %v1142_v55 }
 0x742   : > { %1140 = vadd.xlane.f32.xlu0 %v1139_v22 }
 0x744   : > { %1149 = vadd.xlane.f32.xlu1 %v1148_v14 }
 0x746   : > { %1146 = vadd.xlane.f32.xlu0 %v1145_v44 }
 0x748   : > { %1155 = vadd.xlane.f32.xlu1 %v1154_v42 }
 0x74a   : > { %1152 = vadd.xlane.f32.xlu0 %v1151_v16 }
 0x74c   : > { %1161 = vadd.xlane.f32.xlu1 %v1160_v3 }
 0x74e   : > { %1158 = vadd.xlane.f32.xlu0 %v1157_v9 }
 0x7b9   : > { %v1796_v25 = vpop.xlane.xlu1 %1795 }
 0x7ba   : > { %v1816_v58 = vsub.f32 %v5506_v24, %v1796_v25 }
 0x7bb   : > { %v1793_v7 = vpop.xlane.xlu0 %1792 }
 0x7bc   : > { %v1825_v27 = vmul.f32 1.442695, %v1816_v58  ;;  %v1815_v31 = vsub.f32 %v5509_v37, %v1793_v7 }
 0x7bd   : > { %v1802_v40 = vpop.xlane.xlu1 %1801 }
 0x7be   : > { %4488 = vpow2.f32 %v1825_v27  ;;  %v1823_v30 = vmul.f32 1.442695, %v1815_v31  ;;  %v1818_v61 = vsub.f32 %v5514_v15, %v1802_v40 }
 0x7bf   : > { %v1799_v38 = vpop.xlane.xlu0 %1798 }
 0x7c0   : > { %4490 = vpow2.f32 %v1823_v30  ;;  %v1829_v18 = vmul.f32 1.442695, %v1818_v61  ;;  %v1817_v56 = vsub.f32 %v5519_v8, %v1799_v38 }
 0x7c1   : > { %v1808_v50 = vpop.xlane.xlu1 %1807 }
 0x7c2   : > { %4492 = vpow2.f32 %v1829_v18  ;;  %v1827_v55 = vmul.f32 1.442695, %v1817_v56  ;;  %v1820_v22 = vsub.f32 %v5524_v1, %v1808_v50 }
 0x7c3   : > { %v1805_v24 = vpop.xlane.xlu0 %1804 }
 0x7c4   : > { %4494 = vpow2.f32 %v1827_v55  ;;  %v1833_v14 = vmul.f32 1.442695, %v1820_v22  ;;  %v1819_v37 = vsub.f32 %v5528_v34, %v1805_v24 }
 0x7c5   : > { %v1814_v44 = vpop.xlane.xlu1 %1813 }
 0x7c6   : > { %4496 = vpow2.f32 %v1833_v14  ;;  %v1831_v42 = vmul.f32 1.442695, %v1819_v37  ;;  %v1822_v16 = vsub.f32 %v1790_v33, %v1814_v44 }
 0x7c7   : > { %v1811_v15 = vpop.xlane.xlu0 %1810 }
 0x7c8   : > { %4498 = vpow2.f32 %v1831_v42  ;;  %v1837_v3 = vmul.f32 1.442695, %v1822_v16  ;;  %v1821_v9 = vsub.f32 %v1789_v45, %v1811_v15 }
 0x7c9   : > { %v1144_v25 = vpop.xlane.xlu1 %1143 }
 0x7ca   : > { %4500 = vpow2.f32 %v1837_v3  ;;  %v1835_v8 = vmul.f32 1.442695, %v1821_v9 }
 0x7cb   : > { %v5574_v58 = vpop.eup %4488  ;;  %4502 = vrcp.f32 %v1144_v25  ;;  %v1141_v1 = vpop.xlane.xlu0 %1140 }
 0x7cc   : > { %4504 = vpow2.f32 %v1835_v8  ;;  %v1842_v7 = vsel %vm1090_vm10, %v5574_v58, 0.0 }
 0x7cd   : > { %v5578_v34 = vpop.eup %4490  ;;  %4506 = vrcp.f32 %v1141_v1  ;;  %1843 = vadd.xlane.f32.xlu1 %v1842_v7  ;;  %v1150_v33 = vpop.xlane.xlu1 %1149 }
 0x7ce   : > { %v1839_v27 = vsel %vm1090_vm10, %v5578_v34, 0.0  ;;  %4508 = vrcp.f32 %v1150_v33 }
 0x7cf   : > { %v5582_v45 = vpop.eup %4492  ;;  %1840 = vadd.xlane.f32.xlu0 %v1839_v27  ;;  %v1147_v31 = vpop.xlane.xlu0 %1146 }
 0x7d0   : > { %4510 = vrcp.f32 %v1147_v31  ;;  %v1848_v40 = vsel %vm1090_vm10, %v5582_v45, 0.0 }
 0x7d1   : > { %v5586_v30 = vpop.eup %4494  ;;  %1849 = vadd.xlane.f32.xlu1 %v1848_v40  ;;  %v1156_v61 = vpop.xlane.xlu1 %1155 }
 0x7d2   : > { %v1845_v38 = vsel %vm1090_vm10, %v5586_v30, 0.0  ;;  %4512 = vrcp.f32 %v1156_v61 }
 0x7d3   : > { %v5590_v18 = vpop.eup %4496  ;;  %1846 = vadd.xlane.f32.xlu0 %v1845_v38  ;;  %v1153_v56 = vpop.xlane.xlu0 %1152 }
 0x7d4   : > { %4514 = vrcp.f32 %v1153_v56  ;;  %v1854_v50 = vsel %vm1090_vm10, %v5590_v18, 0.0 }
 0x7d5   : > { %v5594_v55 = vpop.eup %4498  ;;  %1855 = vadd.xlane.f32.xlu1 %v1854_v50  ;;  %v1162_v22 = vpop.xlane.xlu1 %1161 }
 0x7d6   : > { %v1851_v24 = vsel %vm1090_vm10, %v5594_v55, 0.0  ;;  %4516 = vrcp.f32 %v1162_v22 }
 0x7d7   : > { %v5598_v14 = vpop.eup %4500  ;;  %1852 = vadd.xlane.f32.xlu0 %v1851_v24  ;;  %v1159_v37 = vpop.xlane.xlu0 %1158 }
 0x7d8   : > { %v4503_v44 = vpop.eup %4502  ;;  %4518 = vrcp.f32 %v1159_v37  ;;  %v1860_v42 = vsel %vm1090_vm10, %v5598_v14, 0.0 }
 0x7d9   : > { %v5602_v16 = vpop.eup %4504  ;;  %1861 = vadd.xlane.f32.xlu1 %v1860_v42  ;;  %v1172_v8 = vmul.f32 %v4503_v44, %v5535_v60 }
 0x7da   : > { %v4507_v15 = vpop.eup %4506  ;;  %v1857_v3 = vsel %vm1090_vm10, %v5602_v16, 0.0 }
 0x7db   : > { %1858 = vadd.xlane.f32.xlu0 %v1857_v3  ;;  %v1171_v9 = vmul.f32 %v4507_v15, %v5538_v46  ;;  %v4509_v25 = vpop.eup %4508 }
 0x7dc   : > { %v1174_v27 = vmul.f32 %v4509_v25, %v5540_v11 }
 0x7dd   : > { %v4511_v1 = vpop.eup %4510  ;;  %4097 = vmatprep.mubr.msk.f32.mxu1 %vm1090_vm10, %v1171_v9 }
 0x7de   : > { %4098 = vmatmul.mubr.msk.f32.vlgmr.msra.gmra.mxu1 %vm1090_vm10, %v1172_v8  ;;  %v1173_v7 = vmul.f32 %v4511_v1, %v5544_v52 }
 0x7df   : > { %4138 = vmatpush3.msra.mxu1 %v5355_v39  ;;  %v4513_v33 = vpop.eup %4512 }
 0x7e0   : > { %4139 = vmatprep.subr.mxu1 %v5311_v48  ;;  %4100 = vmatprep.mubr.msk.f32.mxu1 %vm1090_vm10, %v1173_v7  ;;  %v1176_v39 = vmul.f32 %v4513_v33, %v5550_v23 }
 0x7e1   : > { %v4515_v46 = vpop.eup %4514  ;;  %4140 = vmatpush3.msra.mxu1 %v5311_v48 }
 0x7e2   : > { %4141 = vmatprep.subr.mxu1 %v5277_v26  ;;  %4101 = vmatmul.mubr.msk.f32.gmra.mxu1 %vm1090_vm10, %v1174_v27  ;;  %v1175_v60 = vmul.f32 %v4515_v46, %v5554_v17 }
 0x7e3   : > { %4142 = vmatpush3.msra.mxu1 %v5277_v26  ;;  %v4517_v52 = vpop.eup %4516 }
 0x7e4   : > { %4143 = vmatprep.subr.mxu1 %v5293_v6  ;;  %4103 = vmatprep.mubr.msk.f32.mxu1 %vm1090_vm10, %v1175_v60  ;;  %v1178_v26 = vmul.f32 %v4517_v52, %v5558_v41 }
 0x7e5   : > { %v4519_v31 = vpop.eup %4518  ;;  %4144 = vmatpush3.msra.mxu1 %v5293_v6 }
 0x7e6   : > { %4145 = vmatprep.subr.mxu1 %v5259_v20  ;;  %4104 = vmatmul.mubr.msk.f32.gmra.mxu1 %vm1090_vm10, %v1176_v39  ;;  %v1177_v48 = vmul.f32 %v4519_v31, %v5562_v12 }
 0x7e7   : > { %4146 = vmatpush3.msra.mxu1 %v5259_v20 }
 0x7e8   : > { %4147 = vmatprep.subr.mxu1 %v5271_v43  ;;  %4106 = vmatprep.mubr.msk.f32.mxu1 %vm1090_vm10, %v1177_v48 }
 0x7e9   : > { %4148 = vmatpush3.msra.mxu1 %v5271_v43 }
 0x7ea   : > { %4149 = vmatprep.subr.mxu1 %v5232_v32  ;;  %4107 = vmatmul.mubr.msk.f32.gmra.mxu1 %vm1090_vm10, %v1178_v26 }
 0x7eb   : > { %4150 = vmatpush3.msra.mxu1 %v5232_v32 }
 0x7ec   : > { %4151 = vmatprep.subr.mxu1 %v5246_v13 }
 0x7ed   : > { %4152 = vmatpush3.msra.mxu1 %v5246_v13 }
 0x7ee   : > { %4165 = vmatprep.subr.mxu1 %v5161_v29 }
 0x856   : > { %v1844_v6 = vpop.xlane.xlu1 %1843 }
 0x857   : > { %4520 = vrcp.f32 %v1844_v6 }
 0x858   : > { %v1841_v20 = vpop.xlane.xlu0 %1840 }
 0x859   : > { %4522 = vrcp.f32 %v1841_v20 }
 0x85a   : > { %v1850_v11 = vpop.xlane.xlu1 %1849 }
 0x85b   : > { %4524 = vrcp.f32 %v1850_v11 }
 0x85c   : > { %v1847_v23 = vpop.xlane.xlu0 %1846 }
 0x85d   : > { %4526 = vrcp.f32 %v1847_v23 }
 0x85e   : > { %v1856_v43 = vpop.xlane.xlu1 %1855 }
 0x85f   : > { %4528 = vrcp.f32 %v1856_v43 }
 0x860   : > { %v1853_v17 = vpop.xlane.xlu0 %1852 }
 0x861   : > { %4530 = vrcp.f32 %v1853_v17 }
 0x862   : > { %v1862_v41 = vpop.xlane.xlu1 %1861 }
 0x863   : > { %4532 = vrcp.f32 %v1862_v41 }
 0x864   : > { %v1859_v32 = vpop.xlane.xlu0 %1858  ;;  %v4521_v12 = vpop.eup %4520 }
 0x865   : > { %4534 = vrcp.f32 %v1859_v32  ;;  %v1872_v61 = vmul.f32 %v4521_v12, %v5574_v58 }
 0x866   : > { %v4523_v13 = vpop.eup %4522 }
 0x867   : > { %v1871_v40 = vmul.f32 %v4523_v13, %v5578_v34 }
 0x868   : > { %v4525_v38 = vpop.eup %4524 }
 0x869   : > { %4153 = vmatprep.mubr.msk.f32.mxu1 %vm1090_vm10, %v1871_v40  ;;  %v1874_v22 = vmul.f32 %v4525_v38, %v5582_v45 }
 0x86a   : > { %v4527_v56 = vpop.eup %4526  ;;  %4154 = vmatmul.mubr.msk.f32.vlgmr.msra.gmra.mxu1 %vm1090_vm10, %v1872_v61 }
 0x86b   : > { %4166 = vmatpush3.xpose.msra.mxu1 %v5161_v29  ;;  %v1873_v50 = vmul.f32 %v4527_v56, %v5586_v30 }
 0x86c   : > { %4167 = vmatprep.subr.mxu1 %v5169_v35  ;;  %v4529_v24 = vpop.eup %4528 }
 0x86d   : > { %4156 = vmatprep.mubr.msk.f32.mxu1 %vm1090_vm10, %v1873_v50  ;;  %v1876_v29 = vmul.f32 %v4529_v24, %v5590_v18 }
 0x86e   : > { %v4531_v34 = vpop.eup %4530  ;;  %4157 = vmatmul.mubr.msk.f32.gmra.mxu1 %vm1090_vm10, %v1874_v22 }
 0x86f   : > { %4168 = vmatpush3.xpose.msra.mxu1 %v5169_v35  ;;  %v1875_v58 = vmul.f32 %v4531_v34, %v5594_v55 }
 0x870   : > { %4169 = vmatprep.subr.mxu1 %v5189_v49  ;;  %v4533_v37 = vpop.eup %4532 }
 0x871   : > { %4159 = vmatprep.mubr.msk.f32.mxu1 %vm1090_vm10, %v1875_v58  ;;  %v1878_v35 = vmul.f32 %v4533_v37, %v5598_v14 }
 0x872   : > { %v4535_v30 = vpop.eup %4534  ;;  %4160 = vmatmul.mubr.msk.f32.gmra.mxu1 %vm1090_vm10, %v1876_v29 }
 0x873   : > { %4170 = vmatpush3.xpose.msra.mxu1 %v5189_v49  ;;  %v1877_v45 = vmul.f32 %v4535_v30, %v5602_v16  ;;  %v6228_v49 = vld [vmem:[#allocation12_spill] sm:$0xff] }
 0x874   : > { %4171 = vmatprep.subr.mxu1 %v5195_v51 }
 0x875   : > { %4162 = vmatprep.mubr.msk.f32.mxu1 %vm1090_vm10, %v1877_v45 }
 0x876   : > { %4163 = vmatmul.mubr.msk.f32.gmra.mxu1 %vm1090_vm10, %v1878_v35 }
 0x877   : > { %4172 = vmatpush3.xpose.msra.mxu1 %v5195_v51  ;;  %4181 = vmatprep.mubr.f32.mxu1 %v5121_v2  ;;  %v6227_v2 = vld [vmem:[#allocation13_spill] sm:$0xff]  ;;  %v6229_v51 = vld [vmem:[#allocation15_spill] sm:$0xff] }
 0x878   : > { %4173 = vmatprep.subr.mxu1 %v5202_v57 }
 0x87b   : > { %4174 = vmatpush3.xpose.msra.mxu1 %v5202_v57  ;;  %v6230_v57 = vld [vmem:[#allocation14_spill] sm:$0xff] }
 0x87c   : > { %4175 = vmatprep.subr.mxu1 %v5213_v62 }
 0x87f   : > { %4176 = vmatpush3.xpose.msra.mxu1 %v5213_v62 }
 0x880   : > { %4177 = vmatprep.subr.mxu1 %v5228_v0 }
 0x883   : > { %4178 = vmatpush3.xpose.msra.mxu1 %v5228_v0 }
 0x884   : > { %4179 = vmatprep.subr.mxu1 %v5255_v10 }
 0x887   : > { %4180 = vmatpush3.xpose.msra.mxu1 %v5255_v10 }
 0x88a   : > { %4182 = vmatmul.mubr.f32.vlgmr.msra.gmra.mxu1 %v5101_v47 }
 0x88b   : > { %4184 = vmatprep.mubr.f32.mxu1 %v5133_v5 }
 0x88e   : > { %4185 = vmatmul.mubr.f32.gmra.mxu1 %v5125_v54 }
 0x88f   : > { %4187 = vmatprep.mubr.f32.mxu1 %v6227_v2 }
 0x892   : > { %4188 = vmatmul.mubr.f32.gmra.mxu1 %v6228_v49 }
 0x893   : > { %4190 = vmatprep.mubr.f32.mxu1 %v6229_v51 }
 0x896   : > { %4191 = vmatmul.mubr.f32.gmra.mxu1 %v6230_v57 }
 0x89e   : > { %v4099_v62 = vpop.f32.mrf.mxu1 }
 0x89f   : > { %v1633_v5 = vadd.f32 %v4099_v62, %v5486_v4 }
 0x8a0   : > { %v1627_v0 = vpop.f32.mrf.mxu1 }
 0x8a1   : > { %v1628_v42 = vadd.f32 %v1627_v0, %v5488_v19 }
 0x8a2   : > { %v4102_v18 = vpop.f32.mrf.mxu1 }
 0x8a3   : > { %v1643_v3 = vadd.f32 %v4102_v18, %v5490_v36 }
 0x8a4   : > { %v1637_v55 = vpop.f32.mrf.mxu1 }
 0x8a5   : > { %v1638_v8 = vadd.f32 %v1637_v55, %v5492_v59 }
 0x8a6   : > { %v4105_v14 = vpop.f32.mrf.mxu1 }
 0x8a7   : > { %v1653_v33 = vadd.f32 %v4105_v14, %v5494_v53 }
 0x8a8   : > { %v1647_v10 = vpop.f32.mrf.mxu1 }
 0x8a9   : > { %v1648_v19 = vadd.f32 %v1647_v10, %v5496_v21 }
 0x8aa   : > { %v4108_v44 = vpop.f32.mrf.mxu1 }
 0x8ab   : > { %v1663_v36 = vadd.f32 %v4108_v44, %v5498_v28 }
 0x8ac   : > { %v5677_v47 = vpop.f32.mrf.mxu1 }
 0x92a   : > { %v4155_v54 = vpop.f32.mrf.mxu1 }
 0x92b   : > { %v5681_v16 = vadd.f32 %v4155_v54, %v1633_v5 }
 0x92c   : > { %v1977_v15 = vpop.f32.mrf.mxu1 }
 0x92d   : > { %v5684_v9 = vadd.f32 %v1977_v15, %v1628_v42 }
 0x92e   : > { %v4158_v25 = vpop.f32.mrf.mxu1 }
 0x92f   : > { %v5687_v1 = vadd.f32 %v4158_v25, %v1643_v3 }
 0x930   : > { %v1987_v7 = vpop.f32.mrf.mxu1 }
 0x931   : > { %v5690_v27 = vadd.f32 %v1987_v7, %v1638_v8 }
 0x932   : > { %v4161_v4 = vpop.f32.mrf.mxu1 }
 0x933   : > { %v5693_v46 = vadd.f32 %v4161_v4, %v1653_v33 }
 0x934   : > { %v1997_v60 = vpop.f32.mrf.mxu1 }
 0x935   : > { %v5696_v52 = vadd.f32 %v1997_v60, %v1648_v19 }
 0x936   : > { %v4164_v39 = vpop.f32.mrf.mxu1 }
 0x937   : > { %v5698_v31 = vadd.f32 %v4164_v39, %v1663_v36 }
 0x938   : > { %v5700_v59 = vpop.f32.mrf.mxu1 }
 0x94a   : > { %v4183_v48 = vpop.f32.mrf.mxu1 }
 0x94b   : > { %v2141_v26 = vmul.f32 0.35355338, %v4183_v48 }
 0x94c   : > { %v2101_v53 = vpop.f32.mrf.mxu1 }
 0x94d   : > { %v2140_v6 = vmul.f32 0.35355338, %v2101_v53  ;;  %v2151_v20 = vsel %vm1090_vm10, %v2141_v26, -inf }
 0x94e   : > { %2152 = vmax.xlane.f32.xlu1 %v2151_v20  ;;  %v4186_v21 = vpop.f32.mrf.mxu1 }
 0x94f   : > { %v2143_v11 = vmul.f32 0.35355338, %v4186_v21  ;;  %v2148_v23 = vsel %vm1090_vm10, %v2140_v6, -inf }
 0x950   : > { %2149 = vmax.xlane.f32.xlu0 %v2148_v23  ;;  %v2111_v28 = vpop.f32.mrf.mxu1 }
 0x951   : > { %v2142_v43 = vmul.f32 0.35355338, %v2111_v28  ;;  %v2157_v17 = vsel %vm1090_vm10, %v2143_v11, -inf }
 0x952   : > { %2158 = vmax.xlane.f32.xlu1 %v2157_v17  ;;  %v4189_v41 = vpop.f32.mrf.mxu1  ;;  %v3448_v17 = vld [vmem:[%s6189_s1 + $0x278] sm:$0xff] }
 0x953   : > { %v2145_v32 = vmul.f32 0.35355338, %v4189_v41  ;;  %v2154_v12 = vsel %vm1090_vm10, %v2142_v43, -inf  ;;  %4221 = vmatprep.subr.mxu0 %v3448_v17 }
 0x954   : > { %2155 = vmax.xlane.f32.xlu0 %v2154_v12  ;;  %v2121_v13 = vpop.f32.mrf.mxu1 }
 0x955   : > { %v2144_v40 = vmul.f32 0.35355338, %v2121_v13  ;;  %v2163_v61 = vsel %vm1090_vm10, %v2145_v32, -inf }
 0x956   : > { %2164 = vmax.xlane.f32.xlu1 %v2163_v61  ;;  %v4192_v38 = vpop.f32.mrf.mxu1 }
 0x957   : > { %v2147_v56 = vmul.f32 0.35355338, %v4192_v38  ;;  %v2160_v50 = vsel %vm1090_vm10, %v2144_v40, -inf }
 0x958   : > { %2161 = vmax.xlane.f32.xlu0 %v2160_v50  ;;  %v2131_v22 = vpop.f32.mrf.mxu1 }
 0x959   : > { %v2146_v24 = vmul.f32 0.35355338, %v2131_v22  ;;  %v2169_v34 = vsel %vm1090_vm10, %v2147_v56, -inf }
 0x95a   : > { %2170 = vmax.xlane.f32.xlu1 %v2169_v34 }
 0x95b   : > { %v2166_v58 = vsel %vm1090_vm10, %v2146_v24, -inf }
 0x95c   : > { %2167 = vmax.xlane.f32.xlu0 %v2166_v58 }
 0x9d7   : > { %v2153_v29 = vpop.xlane.xlu1 %2152 }
 0x9d8   : > { %v2173_v37 = vsub.f32 %v2141_v26, %v2153_v29  ;;  %v3447_v29 = vld [vmem:[%s6189_s1 + $0x270] sm:$0xff] }
 0x9d9   : > { %v2150_v30 = vpop.xlane.xlu0 %2149 }
 0x9da   : > { %v2182_v45 = vmul.f32 1.442695, %v2173_v37  ;;  %v2172_v35 = vsub.f32 %v2140_v6, %v2150_v30 }
 0x9db   : > { %v2159_v2 = vpop.xlane.xlu1 %2158 }
 0x9dc   : > { %4536 = vpow2.f32 %v2182_v45  ;;  %v2180_v49 = vmul.f32 1.442695, %v2172_v35  ;;  %v2175_v51 = vsub.f32 %v2143_v11, %v2159_v2  ;;  %v3446_v45 = vld [vmem:[%s6189_s1 + $0x268] sm:$0xff] }
 0x9dd   : > { %v2156_v57 = vpop.xlane.xlu0 %2155 }
 0x9de   : > { %4538 = vpow2.f32 %v2180_v49  ;;  %v2186_v62 = vmul.f32 1.442695, %v2175_v51  ;;  %v2174_v0 = vsub.f32 %v2142_v43, %v2156_v57  ;;  %v3445_v49 = vld [vmem:[%s6189_s1 + $0x260] sm:$0xff] }
 0x9df   : > { %v2165_v18 = vpop.xlane.xlu1 %2164 }
 0x9e0   : > { %4540 = vpow2.f32 %v2186_v62  ;;  %v2184_v55 = vmul.f32 1.442695, %v2174_v0  ;;  %v2177_v14 = vsub.f32 %v2145_v32, %v2165_v18  ;;  %v3444_v62 = vld [vmem:[%s6189_s1 + $0x258] sm:$0xff] }
 0x9e1   : > { %v2162_v10 = vpop.xlane.xlu0 %2161 }
 0x9e2   : > { %4542 = vpow2.f32 %v2184_v55  ;;  %v2190_v44 = vmul.f32 1.442695, %v2177_v14  ;;  %v2176_v5 = vsub.f32 %v2144_v40, %v2162_v10  ;;  %v3443_v55 = vld [vmem:[%s6189_s1 + $0x250] sm:$0xff] }
 0x9e3   : > { %v2171_v54 = vpop.xlane.xlu1 %2170 }
 0x9e4   : > { %4544 = vpow2.f32 %v2190_v44  ;;  %v2188_v42 = vmul.f32 1.442695, %v2176_v5  ;;  %v2179_v15 = vsub.f32 %v2147_v56, %v2171_v54  ;;  %v3442_v44 = vld [vmem:[%s6189_s1 + $0x248] sm:$0xff]  ;;  %v3441_v54 = vld [vmem:[%s6189_s1 + $0x240] sm:$0xff] }
 0x9e5   : > { %v2168_v3 = vpop.xlane.xlu0 %2167 }
 0x9e6   : > { %4546 = vpow2.f32 %v2188_v42  ;;  %v2194_v25 = vmul.f32 1.442695, %v2179_v15  ;;  %v2178_v8 = vsub.f32 %v2146_v24, %v2168_v3  ;;  %v3440_v42 = vld [vmem:[%s6189_s1 + $0x238] sm:$0xff]  ;;  %v3439_v15 = vld [vmem:[%s6189_s1 + $0x230] sm:$0xff]  ;;  %v3438_v3 = vld [vmem:[%s6189_s1 + $0x228] sm:$0xff] }
 0x9e8   : > { %4548 = vpow2.f32 %v2194_v25  ;;  %v2192_v7 = vmul.f32 1.442695, %v2178_v8  ;;  %v3437_v25 = vld [vmem:[%s6189_s1 + $0x220] sm:$0xff]  ;;  %v3436_v8 = vld [vmem:[%s6189_s1 + $0x218] sm:$0xff] }
 0x9e9   : > { %v4537_v33 = vpop.eup %4536 }
 0x9ea   : > { %4550 = vpow2.f32 %v2192_v7  ;;  %v2199_v4 = vsel %vm1090_vm10, %v4537_v33, 0.0  ;;  %v3435_v7 = vld [vmem:[%s6189_s1 + $0x210] sm:$0xff] }
 0x9eb   : > { %v4539_v19 = vpop.eup %4538  ;;  %2200 = vadd.xlane.f32.xlu1 %v2199_v4  ;;  %v3433_v4 = vld [vmem:[%s6189_s1 + $0x200] sm:$0xff] }
 0x9ec   : > { %v2196_v60 = vsel %vm1090_vm10, %v4539_v19, 0.0 }
 0x9ed   : > { %v4541_v36 = vpop.eup %4540  ;;  %2197 = vadd.xlane.f32.xlu0 %v2196_v60 }
 0x9ee   : > { %v2205_v39 = vsel %vm1090_vm10, %v4541_v36, 0.0 }
 0x9ef   : > { %v4543_v48 = vpop.eup %4542  ;;  %2206 = vadd.xlane.f32.xlu1 %v2205_v39 }
 0x9f0   : > { %v2202_v26 = vsel %vm1090_vm10, %v4543_v48, 0.0 }
 0x9f1   : > { %v4545_v53 = vpop.eup %4544  ;;  %2203 = vadd.xlane.f32.xlu0 %v2202_v26 }
 0x9f2   : > { %v2211_v6 = vsel %vm1090_vm10, %v4545_v53, 0.0 }
 0x9f3   : > { %v4547_v20 = vpop.eup %4546  ;;  %2212 = vadd.xlane.f32.xlu1 %v2211_v6 }
 0x9f4   : > { %v2208_v21 = vsel %vm1090_vm10, %v4547_v20, 0.0 }
 0x9f5   : > { %v4549_v11 = vpop.eup %4548  ;;  %2209 = vadd.xlane.f32.xlu0 %v2208_v21 }
 0x9f6   : > { %v2217_v23 = vsel %vm1090_vm10, %v4549_v11, 0.0 }
 0x9f7   : > { %v4551_v28 = vpop.eup %4550  ;;  %2218 = vadd.xlane.f32.xlu1 %v2217_v23 }
 0x9f8   : > { %v2214_v43 = vsel %vm1090_vm10, %v4551_v28, 0.0 }
 0x9f9   : > { %2215 = vadd.xlane.f32.xlu0 %v2214_v43 }
 0xa74   : > { %v2201_v41 = vpop.xlane.xlu1 %2200 }
 0xa75   : > { %4552 = vrcp.f32 %v2201_v41  ;;  %v6233_v41 = vld [vmem:[#allocation5_spill] sm:$0xff] }
 0xa76   : > { %v2198_v32 = vpop.xlane.xlu0 %2197 }
 0xa77   : > { %4554 = vrcp.f32 %v2198_v32 }
 0xa78   : > { %v2207_v12 = vpop.xlane.xlu1 %2206 }
 0xa79   : > { %4556 = vrcp.f32 %v2207_v12 }
 0xa7a   : > { %v2204_v13 = vpop.xlane.xlu0 %2203 }
 0xa7b   : > { %4558 = vrcp.f32 %v2204_v13  ;;  %v6234_v13 = vld [vmem:[#allocation4_spill] sm:$0xff] }
 0xa7c   : > { %v2213_v40 = vpop.xlane.xlu1 %2212 }
 0xa7d   : > { %4560 = vrcp.f32 %v2213_v40 }
 0xa7e   : > { %v2210_v61 = vpop.xlane.xlu0 %2209 }
 0xa7f   : > { %4562 = vrcp.f32 %v2210_v61 }
 0xa80   : > { %v2219_v38 = vpop.xlane.xlu1 %2218 }
 0xa81   : > { %4564 = vrcp.f32 %v2219_v38  ;;  %v6235_v38 = vld [vmem:[#allocation7_spill] sm:$0xff] }
 0xa82   : > { %v2216_v56 = vpop.xlane.xlu0 %2215  ;;  %v4553_v50 = vpop.eup %4552 }
 0xa83   : > { %4566 = vrcp.f32 %v2216_v56  ;;  %v2229_v34 = vmul.f32 %v4553_v50, %v4537_v33  ;;  %v3434_v33 = vld [vmem:[%s6189_s1 + $0x208] sm:$0xff] }
 0xa84   : > { %v4555_v22 = vpop.eup %4554 }
 0xa85   : > { %v2228_v24 = vmul.f32 %v4555_v22, %v4539_v19 }
 0xa86   : > { %v4557_v58 = vpop.eup %4556 }
 0xa87   : > { %4209 = vmatprep.mubr.msk.f32.mxu0 %vm1090_vm10, %v2228_v24  ;;  %v2231_v35 = vmul.f32 %v4557_v58, %v4541_v36  ;;  %v6236_v24 = vld [vmem:[#allocation6_spill] sm:$0xff] }
 0xa88   : > { %v4559_v37 = vpop.eup %4558  ;;  %4210 = vmatmul.mubr.msk.f32.vlgmr.msra.gmra.mxu0 %vm1090_vm10, %v2229_v34 }
 0xa89   : > { %v2230_v30 = vmul.f32 %v4559_v37, %v4543_v48  ;;  %4222 = vmatpush3.msra.mxu0 %v3448_v17  ;;  %v5787_v17 = vld [vmem:[%s6190_s2 + $0x8] sm:$0xff]  ;;  %v6237_v37 = vld [vmem:[#allocation9_spill] sm:$0xff] }
 0xa8a   : > { %4223 = vmatprep.subr.mxu0 %v3447_v29  ;;  %v4561_v2 = vpop.eup %4560 }
 0xa8b   : > { %4212 = vmatprep.mubr.msk.f32.mxu0 %vm1090_vm10, %v2230_v30  ;;  %4224 = vmatpush3.msra.mxu0 %v3447_v29  ;;  %v2233_v0 = vmul.f32 %v4561_v2, %v4545_v53  ;;  %v6238_v2 = vld [vmem:[#allocation8_spill] sm:$0xff] }
 0xa8c   : > { %v4563_v51 = vpop.eup %4562  ;;  %4213 = vmatmul.mubr.msk.f32.gmra.mxu0 %vm1090_vm10, %v2231_v35  ;;  %4225 = vmatprep.subr.mxu0 %v3446_v45 }
 0xa8d   : > { %v2232_v57 = vmul.f32 %v4563_v51, %v4547_v20  ;;  %4226 = vmatpush3.msra.mxu0 %v3446_v45 }
 0xa8e   : > { %4227 = vmatprep.subr.mxu0 %v3445_v49  ;;  %v4565_v18 = vpop.eup %4564 }
 0xa8f   : > { %4215 = vmatprep.mubr.msk.f32.mxu0 %vm1090_vm10, %v2232_v57  ;;  %4228 = vmatpush3.msra.mxu0 %v3445_v49  ;;  %v2235_v5 = vmul.f32 %v4565_v18, %v4549_v11  ;;  %v1658_v11 = vadd.f32 %v5677_v47, %v5503_v63  ;;  %v6231_v63 = vld [vmem:[#allocation2_spill] sm:$0xff] }
 0xa90   : > { %v4567_v14 = vpop.eup %4566  ;;  %4216 = vmatmul.mubr.msk.f32.gmra.mxu0 %vm1090_vm10, %v2233_v0  ;;  %4229 = vmatprep.subr.mxu0 %v3444_v62  ;;  %v6232_v47 = vsub.s32 0, %v6231_v63 }
 0xa91   : > { %v2234_v10 = vmul.f32 %v4567_v14, %v4551_v28  ;;  %4230 = vmatpush3.msra.mxu0 %v3444_v62  ;;  %v2022_v28 = vadd.f32 %v5700_v59, %v1658_v11  ;;  %v6239_v62 = vld [vmem:[#allocation11_spill] sm:$0xff]  ;;  %v6240_v14 = vld [vmem:[#allocation10_spill] sm:$0xff] }
 0xa92   : > { %4231 = vmatprep.subr.mxu0 %v3443_v55 }
 0xa93   : > { %4218 = vmatprep.mubr.msk.f32.mxu0 %vm1090_vm10, %v2234_v10  ;;  %4232 = vmatpush3.msra.mxu0 %v3443_v55 }
 0xa94   : > { %4219 = vmatmul.mubr.msk.f32.gmra.mxu0 %vm1090_vm10, %v2235_v5  ;;  %4233 = vmatprep.subr.mxu0 %v3442_v44  ;;  %v3464_v5 = vld [vmem:[%s6189_s1 + $0x2f8] sm:$0xff] }
 0xa95   : > { %4234 = vmatpush3.msra.mxu0 %v3442_v44  ;;  %4265 = vmatprep.subr.mxu1 %v3464_v5 }
 0xa96   : > { %4235 = vmatprep.subr.mxu0 %v3441_v54  ;;  %4266 = vmatpush3.msra.mxu1 %v3464_v5  ;;  %v3451_v5 = vld [vmem:[%s6189_s1 + $0x290] sm:$0xff] }
 0xa97   : > { %4236 = vmatpush3.msra.mxu0 %v3441_v54  ;;  %v3463_v54 = vld [vmem:[%s6189_s1 + $0x2f0] sm:$0xff] }
 0xa98   : > { %4237 = vmatprep.subr.mxu0 %v3440_v42  ;;  %4267 = vmatprep.subr.mxu1 %v3463_v54 }
 0xa99   : > { %4238 = vmatpush3.msra.mxu0 %v3440_v42  ;;  %v3462_v42 = vld [vmem:[%s6189_s1 + $0x2e8] sm:$0xff]  ;;  %4268 = vmatpush3.msra.mxu1 %v3463_v54 }
 0xa9a   : > { %4239 = vmatprep.subr.mxu0 %v3439_v15  ;;  %4269 = vmatprep.subr.mxu1 %v3462_v42  ;;  %v3450_v54 = vld [vmem:[%s6189_s1 + $0x288] sm:$0xff] }
 0xa9b   : > { %4240 = vmatpush3.msra.mxu0 %v3439_v15  ;;  %4270 = vmatpush3.msra.mxu1 %v3462_v42  ;;  %v3449_v42 = vld [vmem:[%s6189_s1 + $0x280] sm:$0xff] }
 0xa9c   : > { %4241 = vmatprep.subr.mxu0 %v3438_v3 }
 0xa9d   : > { %4242 = vmatpush3.msra.mxu0 %v3438_v3 }
 0xa9e   : > { %4243 = vmatprep.subr.mxu0 %v3437_v25 }
 0xa9f   : > { %4244 = vmatpush3.msra.mxu0 %v3437_v25 }
 0xaa0   : > { %4245 = vmatprep.subr.mxu0 %v3436_v8 }
 0xaa1   : > { %4246 = vmatpush3.msra.mxu0 %v3436_v8 }
 0xaa2   : > { %4247 = vmatprep.subr.mxu0 %v3435_v7 }
 0xaa3   : > { %4248 = vmatpush3.msra.mxu0 %v3435_v7 }
 0xaa4   : > { %4249 = vmatprep.subr.mxu0 %v3434_v33 }
 0xaa5   : > { %4250 = vmatpush3.msra.mxu0 %v3434_v33 }
 0xaa6   : > { %4251 = vmatprep.subr.mxu0 %v3433_v4 }
 0xaa7   : > { %4252 = vmatpush3.msra.mxu0 %v3433_v4  ;;  %v3491_v4 = vld [vmem:[%s6189_s1 + $0x3d0] sm:$0xff] }
 0xb48   : > { %v4211_v19 = vpop.f32.mrf.mxu0 }
 0xb49   : > { %v2374_v39 = vadd.f32 %v4211_v19, %v5681_v16 }
 0xb4a   : > { %v2334_v60 = vpop.f32.mrf.mxu0 }
 0xb4b   : > { %v2373_v36 = vadd.f32 %v2334_v60, %v5684_v9 }
 0xb4c   : > { %v4214_v48 = vpop.f32.mrf.mxu0 }
 0xb4d   : > { %4253 = vmatprep.mubr.f32.mxu0 %v2373_v36  ;;  %v2376_v6 = vadd.f32 %v4214_v48, %v5687_v1 }
 0xb4e   : > { %v2344_v26 = vpop.f32.mrf.mxu0  ;;  %4254 = vmatmul.mubr.f32.vlgmr.msra.gmra.mxu0 %v2374_v39 }
 0xb4f   : > { %v2375_v53 = vadd.f32 %v2344_v26, %v5690_v27 }
 0xb50   : > { %v4217_v20 = vpop.f32.mrf.mxu0 }
 0xb51   : > { %4256 = vmatprep.mubr.f32.mxu0 %v2375_v53  ;;  %v2378_v9 = vadd.f32 %v4217_v20, %v5693_v46  ;;  %v2514_v46 = vrot.slane %v5787_v17, %v6232_v47 }
 0xb52   : > { %v2354_v21 = vpop.f32.mrf.mxu0  ;;  %4257 = vmatmul.mubr.f32.gmra.mxu0 %v2376_v6 }
 0xb53   : > { %v2377_v23 = vadd.f32 %v2354_v21, %v5696_v52 }
 0xb54   : > { %v4220_v16 = vpop.f32.mrf.mxu0 }
 0xb55   : > { %4259 = vmatprep.mubr.f32.mxu0 %v2377_v23  ;;  %v2380_v1 = vadd.f32 %v4220_v16, %v5698_v31 }
 0xb56   : > { %v2364_v43 = vpop.f32.mrf.mxu0  ;;  %4260 = vmatmul.mubr.f32.gmra.mxu0 %v2378_v9 }
 0xb57   : > { %v2379_v27 = vadd.f32 %v2364_v43, %v2022_v28 }
 0xb59   : > { %4262 = vmatprep.mubr.f32.mxu0 %v2379_v27 }
 0xb5a   : > { %4263 = vmatmul.mubr.f32.gmra.mxu0 %v2380_v1 }
 0xc0e   : > { %v4255_v52 = vpop.f32.mrf.mxu0 }
 0xc0f   : > { %v2504_v59 = vadd.f32 %v4255_v52, %v6233_v41 }
 0xc10   : > { %v2464_v32 = vpop.f32.mrf.mxu0 }
 0xc11   : > { %v5793_v12 = vadd.f32 %v2514_v46, %v2504_v59  ;;  %v2503_v40 = vadd.f32 %v2464_v32, %v6234_v13 }
 0xc12   : > { %v4258_v31 = vpop.f32.mrf.mxu0 }
 0xc13   : > { %v5796_v61 = vadd.f32 %v2514_v46, %v2503_v40  ;;  %v2506_v56 = vadd.f32 %v4258_v31, %v6235_v38  ;;  %2525 = vadd.xlane.f32.xlu1 %v5793_v12 }
 0xc14   : > { %v2474_v50 = vpop.f32.mrf.mxu0 }
 0xc15   : > { %v5800_v22 = vadd.f32 %v2514_v46, %v2506_v56  ;;  %v2505_v34 = vadd.f32 %v2474_v50, %v6236_v24  ;;  %2523 = vadd.xlane.f32.xlu0 %v5796_v61 }
 0xc16   : > { %v4261_v58 = vpop.f32.mrf.mxu0 }
 0xc17   : > { %v5804_v29 = vadd.f32 %v2514_v46, %v2505_v34  ;;  %v2508_v30 = vadd.f32 %v4261_v58, %v6237_v37  ;;  %2529 = vadd.xlane.f32.xlu1 %v5800_v22 }
 0xc18   : > { %v2484_v45 = vpop.f32.mrf.mxu0 }
 0xc19   : > { %v5808_v35 = vadd.f32 %v2514_v46, %v2508_v30  ;;  %v2507_v49 = vadd.f32 %v2484_v45, %v6238_v2  ;;  %2527 = vadd.xlane.f32.xlu0 %v5804_v29  ;;  %v3461_v30 = vld [vmem:[%s6189_s1 + $0x2e0] sm:$0xff]  ;;  %v3460_v45 = vld [vmem:[%s6189_s1 + $0x2d8] sm:$0xff]  ;;  %v3459_v2 = vld [vmem:[%s6189_s1 + $0x2d0] sm:$0xff] }
 0xc1a   : > { %v4264_v51 = vpop.f32.mrf.mxu0  ;;  %4271 = vmatprep.subr.mxu1 %v3461_v30 }
 0xc1b   : > { %v5812_v57 = vadd.f32 %v2514_v46, %v2507_v49  ;;  %v2510_v0 = vadd.f32 %v4264_v51, %v6239_v62  ;;  %2533 = vadd.xlane.f32.xlu1 %v5808_v35  ;;  %4272 = vmatpush3.msra.mxu1 %v3461_v30  ;;  %v3458_v49 = vld [vmem:[%s6189_s1 + $0x2c8] sm:$0xff]  ;;  %v3457_v51 = vld [vmem:[%s6189_s1 + $0x2c0] sm:$0xff]  ;;  %v3456_v62 = vld [vmem:[%s6189_s1 + $0x2b8] sm:$0xff] }
 0xc1c   : > { %v2494_v18 = vpop.f32.mrf.mxu0  ;;  %4273 = vmatprep.subr.mxu1 %v3460_v45 }
 0xc1d   : > { %v5816_v55 = vadd.f32 %v2514_v46, %v2510_v0  ;;  %v2509_v10 = vadd.f32 %v2494_v18, %v6240_v14  ;;  %2531 = vadd.xlane.f32.xlu0 %v5812_v57  ;;  %4274 = vmatpush3.msra.mxu1 %v3460_v45  ;;  %v3455_v0 = vld [vmem:[%s6189_s1 + $0x2b0] sm:$0xff]  ;;  %v3454_v18 = vld [vmem:[%s6189_s1 + $0x2a8] sm:$0xff]  ;;  %v3453_v14 = vld [vmem:[%s6189_s1 + $0x2a0] sm:$0xff] }
 0xc1e   : > { %4275 = vmatprep.subr.mxu1 %v3459_v2 }
 0xc1f   : > { %v5820_v44 = vadd.f32 %v2514_v46, %v2509_v10  ;;  %2537 = vadd.xlane.f32.xlu1 %v5816_v55  ;;  %4276 = vmatpush3.msra.mxu1 %v3459_v2  ;;  %v3452_v10 = vld [vmem:[%s6189_s1 + $0x298] sm:$0xff] }
 0xc20   : > { %4277 = vmatprep.subr.mxu1 %v3458_v49 }
 0xc21   : > { %2535 = vadd.xlane.f32.xlu0 %v5820_v44  ;;  %4278 = vmatpush3.msra.mxu1 %v3458_v49 }
 0xc22   : > { %4279 = vmatprep.subr.mxu1 %v3457_v51 }
 0xc23   : > { %4280 = vmatpush3.msra.mxu1 %v3457_v51 }
 0xc24   : > { %4281 = vmatprep.subr.mxu1 %v3456_v62 }
 0xc25   : > { %4282 = vmatpush3.msra.mxu1 %v3456_v62 }
 0xc26   : > { %4283 = vmatprep.subr.mxu1 %v3455_v0 }
 0xc27   : > { %4284 = vmatpush3.msra.mxu1 %v3455_v0 }
 0xc28   : > { %4285 = vmatprep.subr.mxu1 %v3454_v18 }
 0xc29   : > { %4286 = vmatpush3.msra.mxu1 %v3454_v18 }
 0xc2a   : > { %4287 = vmatprep.subr.mxu1 %v3453_v14 }
 0xc2b   : > { %4288 = vmatpush3.msra.mxu1 %v3453_v14 }
 0xc2c   : > { %4289 = vmatprep.subr.mxu1 %v3452_v10 }
 0xc2d   : > { %4290 = vmatpush3.msra.mxu1 %v3452_v10 }
 0xc2e   : > { %4291 = vmatprep.subr.mxu1 %v3451_v5 }
 0xc2f   : > { %4292 = vmatpush3.msra.mxu1 %v3451_v5 }
 0xc30   : > { %4293 = vmatprep.subr.mxu1 %v3450_v54 }
 0xc31   : > { %4294 = vmatpush3.msra.mxu1 %v3450_v54 }
 0xc32   : > { %4295 = vmatprep.subr.mxu1 %v3449_v42 }
 0xc33   : > { %4296 = vmatpush3.msra.mxu1 %v3449_v42 }
 0xc9c   : > { %v2526_v15 = vpop.xlane.xlu1 %2525 }
 0xc9d   : > { %v2540_v3 = vmul.f32 0.03125, %v2526_v15 }
 0xc9e   : > { %v2524_v25 = vpop.xlane.xlu0 %2523 }
 0xc9f   : > { %v2548_v8 = vsub.f32 %v5793_v12, %v2540_v3  ;;  %v2539_v7 = vmul.f32 0.03125, %v2524_v25 }
 0xca0   : > { %v2530_v33 = vpop.xlane.xlu1 %2529 }
 0xca1   : > { %v5836_v19 = vsel %vm219_vm0, %v2548_v8, 0.0  ;;  %v2547_v60 = vsub.f32 %v5796_v61, %v2539_v7  ;;  %v2542_v36 = vmul.f32 0.03125, %v2530_v33 }
 0xca2   : > { %v2528_v39 = vpop.xlane.xlu0 %2527  ;;  %v2564_v48 = vmul.f32 %v5836_v19, %v5836_v19 }
 0xca3   : > { %v5843_v26 = vsel %vm219_vm0, %v2547_v60, 0.0  ;;  %v2550_v53 = vsub.f32 %v5800_v22, %v2542_v36  ;;  %v2541_v6 = vmul.f32 0.03125, %v2528_v39 }
 0xca4   : > { %v2534_v20 = vpop.xlane.xlu1 %2533  ;;  %2573 = vadd.xlane.f32.xlu1 %v2564_v48  ;;  %v2563_v21 = vmul.f32 %v5843_v26, %v5843_v26 }
 0xca5   : > { %v5850_v11 = vsel %vm219_vm0, %v2550_v53, 0.0  ;;  %v2549_v23 = vsub.f32 %v5804_v29, %v2541_v6  ;;  %v2544_v9 = vmul.f32 0.03125, %v2534_v20 }
 0xca6   : > { %v2532_v16 = vpop.xlane.xlu0 %2531  ;;  %2571 = vadd.xlane.f32.xlu0 %v2563_v21  ;;  %v2566_v28 = vmul.f32 %v5850_v11, %v5850_v11 }
 0xca7   : > { %v5857_v43 = vsel %vm219_vm0, %v2549_v23, 0.0  ;;  %v2552_v27 = vsub.f32 %v5808_v35, %v2544_v9  ;;  %v2543_v1 = vmul.f32 0.03125, %v2532_v16 }
 0xca8   : > { %2577 = vadd.xlane.f32.xlu1 %v2566_v28  ;;  %v2538_v47 = vpop.xlane.xlu1 %2537  ;;  %v2565_v46 = vmul.f32 %v5857_v43, %v5857_v43 }
 0xca9   : > { %v5864_v52 = vsel %vm219_vm0, %v2552_v27, 0.0  ;;  %v2551_v41 = vsub.f32 %v5812_v57, %v2543_v1  ;;  %v2546_v59 = vmul.f32 0.03125, %v2538_v47 }
 0xcaa   : > { %2575 = vadd.xlane.f32.xlu0 %v2565_v46  ;;  %v2536_v32 = vpop.xlane.xlu0 %2535  ;;  %v2568_v13 = vmul.f32 %v5864_v52, %v5864_v52 }
 0xcab   : > { %v5871_v40 = vsel %vm219_vm0, %v2551_v41, 0.0  ;;  %v2554_v31 = vsub.f32 %v5816_v55, %v2546_v59  ;;  %v2545_v38 = vmul.f32 0.03125, %v2536_v32 }
 0xcac   : > { %2581 = vadd.xlane.f32.xlu1 %v2568_v13  ;;  %v2567_v56 = vmul.f32 %v5871_v40, %v5871_v40  ;;  %v6242_v13 = vsub.s32 1, %v6231_v63 }
 0xcad   : > { %v5878_v50 = vsel %vm219_vm0, %v2554_v31, 0.0  ;;  %v2553_v24 = vsub.f32 %v5820_v44, %v2545_v38 }
 0xcae   : > { %2579 = vadd.xlane.f32.xlu0 %v2567_v56  ;;  %v2570_v34 = vmul.f32 %v5878_v50, %v5878_v50  ;;  %v2622_v31 = vrot.slane %v5787_v17, %v6242_v13 }
 0xcaf   : > { %v5885_v58 = vsel %vm219_vm0, %v2553_v24, 0.0 }
 0xcb0   : > { %2585 = vadd.xlane.f32.xlu1 %v2570_v34  ;;  %v2569_v37 = vmul.f32 %v5885_v58, %v5885_v58 }
 0xcb2   : > { %2583 = vadd.xlane.f32.xlu0 %v2569_v37  ;;  %v6243_v37 = vsub.s32 2, %v6231_v63 }
 0xcb4   : > { %v2634_v30 = vrot.slane %v5787_v17, %v6243_v37 }
 0xd2d   : > { %v2574_v15 = vpop.xlane.xlu1 %2573 }
 0xd2e   : > { %v2588_v3 = vmul.f32 0.03125, %v2574_v15 }
 0xd2f   : > { %v2572_v25 = vpop.xlane.xlu0 %2571 }
 0xd30   : > { %v2596_v8 = vadd.f32 1e-05, %v2588_v3  ;;  %v2587_v7 = vmul.f32 0.03125, %v2572_v25 }
 0xd31   : > { %v2578_v33 = vpop.xlane.xlu1 %2577 }
 0xd32   : > { %4568 = vrsqrt.f32 %v2596_v8  ;;  %v2595_v60 = vadd.f32 1e-05, %v2587_v7  ;;  %v2590_v36 = vmul.f32 0.03125, %v2578_v33 }
 0xd33   : > { %v2576_v39 = vpop.xlane.xlu0 %2575 }
 0xd34   : > { %4570 = vrsqrt.f32 %v2595_v60  ;;  %v2598_v48 = vadd.f32 1e-05, %v2590_v36  ;;  %v2589_v53 = vmul.f32 0.03125, %v2576_v39 }
 0xd35   : > { %v2582_v6 = vpop.xlane.xlu1 %2581 }
 0xd36   : > { %4572 = vrsqrt.f32 %v2598_v48  ;;  %v2597_v20 = vadd.f32 1e-05, %v2589_v53  ;;  %v2592_v21 = vmul.f32 0.03125, %v2582_v6  ;;  %v3477_v53 = vld [vmem:[%s6189_s1 + $0x360] sm:$0xff]  ;;  %v3476_v6 = vld [vmem:[%s6189_s1 + $0x358] sm:$0xff] }
 0xd37   : > { %v2580_v23 = vpop.xlane.xlu0 %2579 }
 0xd38   : > { %4574 = vrsqrt.f32 %v2597_v20  ;;  %v2600_v9 = vadd.f32 1e-05, %v2592_v21  ;;  %v2591_v16 = vmul.f32 0.03125, %v2580_v23  ;;  %v3475_v20 = vld [vmem:[%s6189_s1 + $0x350] sm:$0xff]  ;;  %v3474_v21 = vld [vmem:[%s6189_s1 + $0x348] sm:$0xff]  ;;  %v3473_v23 = vld [vmem:[%s6189_s1 + $0x340] sm:$0xff] }
 0xd39   : > { %v2586_v28 = vpop.xlane.xlu1 %2585 }
 0xd3a   : > { %4576 = vrsqrt.f32 %v2600_v9  ;;  %v2599_v27 = vadd.f32 1e-05, %v2591_v16  ;;  %v2594_v1 = vmul.f32 0.03125, %v2586_v28  ;;  %v3472_v9 = vld [vmem:[%s6189_s1 + $0x338] sm:$0xff]  ;;  %v3471_v16 = vld [vmem:[%s6189_s1 + $0x330] sm:$0xff]  ;;  %v3470_v28 = vld [vmem:[%s6189_s1 + $0x328] sm:$0xff] }
 0xd3b   : > { %v2584_v47 = vpop.xlane.xlu0 %2583 }
 0xd3c   : > { %4578 = vrsqrt.f32 %v2599_v27  ;;  %v2602_v46 = vadd.f32 1e-05, %v2594_v1  ;;  %v2593_v41 = vmul.f32 0.03125, %v2584_v47  ;;  %v3469_v27 = vld [vmem:[%s6189_s1 + $0x320] sm:$0xff]  ;;  %v3468_v1 = vld [vmem:[%s6189_s1 + $0x318] sm:$0xff]  ;;  %v3467_v47 = vld [vmem:[%s6189_s1 + $0x310] sm:$0xff] }
 0xd3e   : > { %4580 = vrsqrt.f32 %v2602_v46  ;;  %v2601_v59 = vadd.f32 1e-05, %v2593_v41  ;;  %v3466_v46 = vld [vmem:[%s6189_s1 + $0x308] sm:$0xff]  ;;  %v3465_v41 = vld [vmem:[%s6189_s1 + $0x300] sm:$0xff] }
 0xd3f   : > { %v4569_v32 = vpop.eup %4568 }
 0xd40   : > { %v2612_v38 = vmul.f32 %v4569_v32, %v5836_v19  ;;  %4582 = vrsqrt.f32 %v2601_v59  ;;  %v6244_v59 = vsub.s32 3, %v6231_v63 }
 0xd41   : > { %v4571_v56 = vpop.eup %4570 }
 0xd42   : > { %v2611_v24 = vmul.f32 %v4571_v56, %v5843_v26  ;;  %v2624_v45 = vmul.f32 %v2622_v31, %v2612_v38  ;;  %v2663_v32 = vrot.slane %v5787_v17, %v6244_v59 }
 0xd43   : > { %v4573_v34 = vpop.eup %4572 }
 0xd44   : > { %v2623_v2 = vmul.f32 %v2622_v31, %v2611_v24  ;;  %v2614_v49 = vmul.f32 %v4573_v34, %v5850_v11  ;;  %v2636_v14 = vadd.f32 %v2634_v30, %v2624_v45 }
 0xd45   : > { %v4575_v51 = vpop.eup %4574 }
 0xd46   : > { %v2635_v62 = vadd.f32 %v2634_v30, %v2623_v2  ;;  %v2613_v0 = vmul.f32 %v4575_v51, %v5857_v43  ;;  %v2626_v19 = vmul.f32 %v2622_v31, %v2614_v49 }
 0xd47   : > { %v4577_v18 = vpop.eup %4576 }
 0xd48   : > { %4297 = vmatprep.mubr.f32.mxu1 %v2635_v62  ;;  %v2625_v10 = vmul.f32 %v2622_v31, %v2613_v0  ;;  %v2616_v26 = vmul.f32 %v4577_v18, %v5864_v52  ;;  %v2638_v3 = vadd.f32 %v2634_v30, %v2626_v19 }
 0xd49   : > { %v4579_v5 = vpop.eup %4578  ;;  %4298 = vmatmul.mubr.f32.vlgmr.msra.gmra.mxu1 %v2636_v14 }
 0xd4a   : > { %v2637_v54 = vadd.f32 %v2634_v30, %v2625_v10  ;;  %v2615_v42 = vmul.f32 %v4579_v5, %v5871_v40  ;;  %v2628_v25 = vmul.f32 %v2622_v31, %v2616_v26  ;;  %v3480_v40 = vld [vmem:[%s6189_s1 + $0x378] sm:$0xff] }
 0xd4b   : > { %v4581_v15 = vpop.eup %4580  ;;  %4309 = vmatprep.subr.mxu0 %v3480_v40 }
 0xd4c   : > { %4300 = vmatprep.mubr.f32.mxu1 %v2637_v54  ;;  %v2627_v11 = vmul.f32 %v2622_v31, %v2615_v42  ;;  %v2618_v8 = vmul.f32 %v4581_v15, %v5878_v50  ;;  %v2640_v60 = vadd.f32 %v2634_v30, %v2628_v25  ;;  %4310 = vmatpush3.msra.mxu0 %v3480_v40  ;;  %v3479_v50 = vld [vmem:[%s6189_s1 + $0x370] sm:$0xff] }
 0xd4d   : > { %v4583_v43 = vpop.eup %4582  ;;  %4301 = vmatmul.mubr.f32.gmra.mxu1 %v2638_v3  ;;  %4311 = vmatprep.subr.mxu0 %v3479_v50 }
 0xd4e   : > { %v2639_v7 = vadd.f32 %v2634_v30, %v2627_v11  ;;  %v2617_v33 = vmul.f32 %v4583_v43, %v5885_v58  ;;  %v2630_v36 = vmul.f32 %v2622_v31, %v2618_v8  ;;  %4312 = vmatpush3.msra.mxu0 %v3479_v50  ;;  %v3478_v58 = vld [vmem:[%s6189_s1 + $0x368] sm:$0xff] }
 0xd4f   : > { %4313 = vmatprep.subr.mxu0 %v3478_v58 }
 0xd50   : > { %4303 = vmatprep.mubr.f32.mxu1 %v2639_v7  ;;  %v2629_v52 = vmul.f32 %v2622_v31, %v2617_v33  ;;  %v2642_v48 = vadd.f32 %v2634_v30, %v2630_v36  ;;  %4314 = vmatpush3.msra.mxu0 %v3478_v58 }
 0xd51   : > { %4304 = vmatmul.mubr.f32.gmra.mxu1 %v2640_v60  ;;  %4315 = vmatprep.subr.mxu0 %v3477_v53 }
 0xd52   : > { %v2641_v39 = vadd.f32 %v2634_v30, %v2629_v52  ;;  %4316 = vmatpush3.msra.mxu0 %v3477_v53 }
 0xd53   : > { %4317 = vmatprep.subr.mxu0 %v3476_v6 }
 0xd54   : > { %4306 = vmatprep.mubr.f32.mxu1 %v2641_v39  ;;  %4318 = vmatpush3.msra.mxu0 %v3476_v6 }
 0xd55   : > { %4307 = vmatmul.mubr.f32.gmra.mxu1 %v2642_v48  ;;  %4319 = vmatprep.subr.mxu0 %v3475_v20 }
 0xd56   : > { %4320 = vmatpush3.msra.mxu0 %v3475_v20 }
 0xd57   : > { %4321 = vmatprep.subr.mxu0 %v3474_v21 }
 0xd58   : > { %4322 = vmatpush3.msra.mxu0 %v3474_v21 }
 0xd59   : > { %4323 = vmatprep.subr.mxu0 %v3473_v23 }
 0xd5a   : > { %4324 = vmatpush3.msra.mxu0 %v3473_v23 }
 0xd5b   : > { %4325 = vmatprep.subr.mxu0 %v3472_v9 }
 0xd5c   : > { %4326 = vmatpush3.msra.mxu0 %v3472_v9 }
 0xd5d   : > { %4327 = vmatprep.subr.mxu0 %v3471_v16 }
 0xd5e   : > { %4328 = vmatpush3.msra.mxu0 %v3471_v16 }
 0xd5f   : > { %4329 = vmatprep.subr.mxu0 %v3470_v28 }
 0xd60   : > { %4330 = vmatpush3.msra.mxu0 %v3470_v28 }
 0xd61   : > { %4331 = vmatprep.subr.mxu0 %v3469_v27 }
 0xd62   : > { %4332 = vmatpush3.msra.mxu0 %v3469_v27 }
 0xd63   : > { %4333 = vmatprep.subr.mxu0 %v3468_v1 }
 0xd64   : > { %4334 = vmatpush3.msra.mxu0 %v3468_v1 }
 0xd65   : > { %4335 = vmatprep.subr.mxu0 %v3467_v47 }
 0xd66   : > { %4336 = vmatpush3.msra.mxu0 %v3467_v47 }
 0xd67   : > { %4337 = vmatprep.subr.mxu0 %v3466_v46 }
 0xd68   : > { %4338 = vmatpush3.msra.mxu0 %v3466_v46 }
 0xd69   : > { %4339 = vmatprep.subr.mxu0 %v3465_v41 }
 0xd6a   : > { %4340 = vmatpush3.msra.mxu0 %v3465_v41 }
 0xe09   : > { %v4299_v13 = vpop.f32.mrf.mxu1 }
 0xe0a   : > { %v5993_v31 = vadd.f32 %v4299_v13, %v2663_v32 }
 0xe0b   : > { %v2730_v38 = vpop.f32.mrf.mxu1 }
 0xe0c   : > { %v2770_v56 = vmul.f32 %v5993_v31, %v5993_v31  ;;  %v5997_v24 = vadd.f32 %v2730_v38, %v2663_v32 }
 0xe0d   : > { %v4302_v34 = vpop.f32.mrf.mxu1 }
 0xe0e   : > { %v2778_v37 = vmul.f32 %v2770_v56, %v5993_v31  ;;  %v2769_v30 = vmul.f32 %v5997_v24, %v5997_v24  ;;  %v6002_v45 = vadd.f32 %v4302_v34, %v2663_v32 }
 0xe0f   : > { %v2740_v2 = vpop.f32.mrf.mxu1 }
 0xe10   : > { %v2786_v49 = vmul.f32 0.044715, %v2778_v37  ;;  %v2777_v51 = vmul.f32 %v2769_v30, %v5997_v24  ;;  %v2772_v62 = vmul.f32 %v6002_v45, %v6002_v45  ;;  %v6007_v0 = vadd.f32 %v2740_v2, %v2663_v32 }
 0xe11   : > { %v4305_v18 = vpop.f32.mrf.mxu1 }
 0xe12   : > { %v2794_v14 = vadd.f32 %v2786_v49, %v5993_v31  ;;  %v2785_v19 = vmul.f32 0.044715, %v2777_v51  ;;  %v2780_v10 = vmul.f32 %v2772_v62, %v6002_v45  ;;  %v2771_v26 = vmul.f32 %v6007_v0, %v6007_v0 }
 0xe13   : > { %v6013_v5 = vadd.f32 %v4305_v18, %v2663_v32  ;;  %v2750_v54 = vpop.f32.mrf.mxu1 }
 0xe14   : > { %v2802_v42 = vmul.f32 0.7978846, %v2794_v14  ;;  %v2793_v15 = vadd.f32 %v2785_v19, %v5997_v24  ;;  %v2788_v3 = vmul.f32 0.044715, %v2780_v10  ;;  %v2779_v25 = vmul.f32 %v2771_v26, %v6007_v0 }
 0xe15   : > { %v2774_v11 = vmul.f32 %v6013_v5, %v6013_v5  ;;  %v6019_v8 = vadd.f32 %v2750_v54, %v2663_v32  ;;  %v4308_v43 = vpop.f32.mrf.mxu1 }
 0xe16   : > { %4584 = vtanh.f32 %v2802_v42  ;;  %v2801_v7 = vmul.f32 0.7978846, %v2793_v15  ;;  %v2796_v33 = vadd.f32 %v2788_v3, %v6002_v45  ;;  %v2787_v60 = vmul.f32 0.044715, %v2779_v25 }
 0xe17   : > { %v2782_v36 = vmul.f32 %v2774_v11, %v6013_v5  ;;  %v2773_v52 = vmul.f32 %v6019_v8, %v6019_v8  ;;  %v6025_v39 = vadd.f32 %v4308_v43, %v2663_v32  ;;  %v2760_v48 = vpop.f32.mrf.mxu1 }
 0xe18   : > { %4586 = vtanh.f32 %v2801_v7  ;;  %v2804_v40 = vmul.f32 0.7978846, %v2796_v33  ;;  %v2795_v50 = vadd.f32 %v2787_v60, %v6007_v0  ;;  %v2761_v58 = vadd.f32 %v2760_v48, %v2663_v32 }
 0xe19   : > { %v2790_v53 = vmul.f32 0.044715, %v2782_v36  ;;  %v2781_v6 = vmul.f32 %v2773_v52, %v6019_v8  ;;  %v2776_v20 = vmul.f32 %v6025_v39, %v6025_v39 }
 0xe1a   : > { %4588 = vtanh.f32 %v2804_v40  ;;  %v2803_v21 = vmul.f32 0.7978846, %v2795_v50  ;;  %v2775_v23 = vmul.f32 %v2761_v58, %v2761_v58 }
 0xe1b   : > { %v2798_v9 = vadd.f32 %v2790_v53, %v6013_v5  ;;  %v2789_v16 = vmul.f32 0.044715, %v2781_v6  ;;  %v2784_v28 = vmul.f32 %v2776_v20, %v6025_v39  ;;  %v6245_v6 = vsub.s32 4, %v6231_v63 }
 0xe1c   : > { %4590 = vtanh.f32 %v2803_v21  ;;  %v2783_v27 = vmul.f32 %v2775_v23, %v2761_v58 }
 0xe1d   : > { %v2806_v1 = vmul.f32 0.7978846, %v2798_v9  ;;  %v2797_v47 = vadd.f32 %v2789_v16, %v6019_v8  ;;  %v2792_v46 = vmul.f32 0.044715, %v2784_v28  ;;  %v2974_v20 = vrot.slane %v5787_v17, %v6245_v6 }
 0xe1e   : > { %v2791_v41 = vmul.f32 0.044715, %v2783_v27 }
 0xe1f   : > { %4592 = vtanh.f32 %v2806_v1  ;;  %v2805_v59 = vmul.f32 0.7978846, %v2797_v47  ;;  %v2800_v32 = vadd.f32 %v2792_v46, %v6025_v39 }
 0xe20   : > { %v2799_v13 = vadd.f32 %v2791_v41, %v2761_v58 }
 0xe21   : > { %4594 = vtanh.f32 %v2805_v59  ;;  %v2808_v38 = vmul.f32 0.7978846, %v2800_v32 }
 0xe22   : > { %v2807_v56 = vmul.f32 0.7978846, %v2799_v13 }
 0xe23   : > { %v4585_v34 = vpop.eup %4584  ;;  %4596 = vtanh.f32 %v2808_v38 }
 0xe24   : > { %v2818_v37 = vadd.f32 1.0, %v4585_v34  ;;  %4598 = vtanh.f32 %v2807_v56 }
 0xe25   : > { %v4587_v30 = vpop.eup %4586 }
 0xe26   : > { %v2817_v2 = vadd.f32 1.0, %v4587_v30  ;;  %v2826_v51 = vmul.f32 0.5, %v2818_v37 }
 0xe27   : > { %v4589_v49 = vpop.eup %4588 }
 0xe28   : > { %v2825_v62 = vmul.f32 0.5, %v2817_v2  ;;  %v2820_v18 = vadd.f32 1.0, %v4589_v49  ;;  %v2834_v26 = vmul.f32 %v2826_v51, %v5993_v31 }
 0xe29   : > { %v4591_v14 = vpop.eup %4590 }
 0xe2a   : > { %v2833_v19 = vmul.f32 %v2825_v62, %v5997_v24  ;;  %v2819_v10 = vadd.f32 1.0, %v4591_v14  ;;  %v2828_v54 = vmul.f32 0.5, %v2820_v18 }
 0xe2c   : > { %v4593_v42 = vpop.eup %4592  ;;  %4341 = vmatprep.mubr.f32.mxu0 %v2833_v19  ;;  %v2827_v15 = vmul.f32 0.5, %v2819_v10  ;;  %v2836_v43 = vmul.f32 %v2828_v54, %v6002_v45 }
 0xe2d   : > { %4342 = vmatmul.mubr.f32.vlgmr.msra.gmra.mxu0 %v2834_v26  ;;  %v2822_v3 = vadd.f32 1.0, %v4593_v42 }
 0xe2e   : > { %v4595_v25 = vpop.eup %4594  ;;  %v2835_v11 = vmul.f32 %v2827_v15, %v6007_v0 }
 0xe2f   : > { %v2821_v7 = vadd.f32 1.0, %v4595_v25  ;;  %v2830_v60 = vmul.f32 0.5, %v2822_v3 }
 0xe30   : > { %v4597_v33 = vpop.eup %4596  ;;  %4344 = vmatprep.mubr.f32.mxu0 %v2835_v11 }
 0xe31   : > { %v4599_v36 = vpop.eup %4598  ;;  %4345 = vmatmul.mubr.f32.gmra.mxu0 %v2836_v43  ;;  %v2829_v24 = vmul.f32 0.5, %v2821_v7  ;;  %v2824_v52 = vadd.f32 1.0, %v4597_v33  ;;  %v2838_v40 = vmul.f32 %v2830_v60, %v6013_v5 }
 0xe32   : > { %v2823_v31 = vadd.f32 1.0, %v4599_v36 }
 0xe33   : > { %v2837_v48 = vmul.f32 %v2829_v24, %v6019_v8  ;;  %v2832_v53 = vmul.f32 0.5, %v2824_v52 }
 0xe34   : > { %v2831_v50 = vmul.f32 0.5, %v2823_v31 }
 0xe35   : > { %4347 = vmatprep.mubr.f32.mxu0 %v2837_v48  ;;  %v2840_v45 = vmul.f32 %v2832_v53, %v6025_v39 }
 0xe36   : > { %4348 = vmatmul.mubr.f32.gmra.mxu0 %v2838_v40  ;;  %v2839_v0 = vmul.f32 %v2831_v50, %v2761_v58 }
 0xe38   : > { %4350 = vmatprep.mubr.f32.mxu0 %v2839_v0 }
 0xe3a   : > { %4351 = vmatmul.mubr.f32.gmra.mxu0 %v2840_v45 }
 0xeed   : > { %v4343_v21 = vpop.f32.mrf.mxu0 }
 0xeee   : > { %v2964_v23 = vadd.f32 %v4343_v21, %v5793_v12 }
 0xeef   : > { %v2924_v9 = vpop.f32.mrf.mxu0 }
 0xef0   : > { %v2976_v8 = vadd.f32 %v2974_v20, %v2964_v23  ;;  %v2963_v5 = vadd.f32 %v2924_v9, %v5796_v61 }
 0xef1   : > { %v4346_v16 = vpop.f32.mrf.mxu0 }
 0xef2   : > { %v2975_v28 = vadd.f32 %v2974_v20, %v2963_v5  ;;  %v2966_v27 = vadd.f32 %v4346_v16, %v5800_v22  ;;  %2985 = vadd.xlane.f32.xlu1 %v2976_v8  ;;  %v3493_v16 = vld [vmem:[%s6189_s1 + $0x3e0] sm:$0xff] }
 0xef3   : > { %v2934_v58 = vpop.f32.mrf.mxu0 }
 0xef4   : > { %v2978_v1 = vadd.f32 %v2974_v20, %v2966_v27  ;;  %v2965_v39 = vadd.f32 %v2934_v58, %v5804_v29  ;;  %2983 = vadd.xlane.f32.xlu0 %v2975_v28  ;;  %v3490_v27 = vld [vmem:[%s6189_s1 + $0x3c8] sm:$0xff]  ;;  %v3489_v58 = vld [vmem:[%s6189_s1 + $0x3c0] sm:$0xff] }
 0xef6   : > { %v2977_v47 = vadd.f32 %v2974_v20, %v2965_v39  ;;  %v4349_v46 = vpop.f32.mrf.mxu0  ;;  %2989 = vadd.xlane.f32.xlu1 %v2978_v1  ;;  %v3487_v39 = vld [vmem:[%s6189_s1 + $0x3b0] sm:$0xff] }
 0xef7   : > { %v2968_v17 = vadd.f32 %v4349_v46, %v5808_v35  ;;  %v3496_v35 = vld [vmem:[%s6189_s1 + $0x3f8] sm:$0xff]  ;;  %v3485_v46 = vld [vmem:[%s6189_s1 + $0x3a0] sm:$0xff] }
 0xef8   : > { %v2944_v12 = vpop.f32.mrf.mxu0  ;;  %2987 = vadd.xlane.f32.xlu0 %v2977_v47  ;;  %4353 = vmatprep.subr.mxu1 %v3496_v35 }
 0xef9   : > { %v2980_v41 = vadd.f32 %v2974_v20, %v2968_v17  ;;  %v2967_v61 = vadd.f32 %v2944_v12, %v5812_v57  ;;  %v3495_v57 = vld [vmem:[%s6189_s1 + $0x3f0] sm:$0xff]  ;;  %4354 = vmatpush3.msra.mxu1 %v3496_v35  ;;  %v3484_v17 = vld [vmem:[%s6189_s1 + $0x398] sm:$0xff] }
 0xefa   : > { %v4352_v59 = vpop.f32.mrf.mxu0  ;;  %4355 = vmatprep.subr.mxu1 %v3495_v57  ;;  %v3483_v12 = vld [vmem:[%s6189_s1 + $0x390] sm:$0xff] }
 0xefb   : > { %v2979_v32 = vadd.f32 %v2974_v20, %v2967_v61  ;;  %v2970_v22 = vadd.f32 %v4352_v59, %v5816_v55  ;;  %2993 = vadd.xlane.f32.xlu1 %v2980_v41  ;;  %v3494_v55 = vld [vmem:[%s6189_s1 + $0x3e8] sm:$0xff]  ;;  %4356 = vmatpush3.msra.mxu1 %v3495_v57  ;;  %v3481_v61 = vld [vmem:[%s6189_s1 + $0x380] sm:$0xff] }
 0xefc   : > { %v2954_v13 = vpop.f32.mrf.mxu0  ;;  %4357 = vmatprep.subr.mxu1 %v3494_v55 }
 0xefd   : > { %v2982_v38 = vadd.f32 %v2974_v20, %v2970_v22  ;;  %v2969_v29 = vadd.f32 %v2954_v13, %v5820_v44  ;;  %2991 = vadd.xlane.f32.xlu0 %v2979_v32  ;;  %4358 = vmatpush3.msra.mxu1 %v3494_v55 }
 0xefe   : > { %4359 = vmatprep.subr.mxu1 %v3493_v16 }
 0xeff   : > { %v2981_v56 = vadd.f32 %v2974_v20, %v2969_v29  ;;  %2997 = vadd.xlane.f32.xlu1 %v2982_v38  ;;  %4360 = vmatpush3.msra.mxu1 %v3493_v16 }
 0xf01   : > { %2995 = vadd.xlane.f32.xlu0 %v2981_v56 }
 0xf7b   : > { %v2986_v44 = vpop.xlane.xlu1 %2985 }
 0xf7c   : > { %v3000_v34 = vmul.f32 0.03125, %v2986_v44 }
 0xf7d   : > { %v2984_v37 = vpop.xlane.xlu0 %2983 }
 0xf7e   : > { %v3008_v30 = vsub.f32 %v2976_v8, %v3000_v34  ;;  %v2999_v2 = vmul.f32 0.03125, %v2984_v37 }
 0xf7f   : > { %v2990_v49 = vpop.xlane.xlu1 %2989 }
 0xf80   : > { %v6064_v51 = vsel %vm219_vm0, %v3008_v30, 0.0  ;;  %v3007_v62 = vsub.f32 %v2975_v28, %v2999_v2  ;;  %v3002_v18 = vmul.f32 0.03125, %v2990_v49  ;;  %v3492_v28 = vld [vmem:[%s6189_s1 + $0x3d8] sm:$0xff] }
 0xf81   : > { %v2988_v14 = vpop.xlane.xlu0 %2987  ;;  %v3024_v19 = vmul.f32 %v6064_v51, %v6064_v51  ;;  %4361 = vmatprep.subr.mxu1 %v3492_v28 }
 0xf82   : > { %v6070_v10 = vsel %vm219_vm0, %v3007_v62, 0.0  ;;  %v3010_v26 = vsub.f32 %v2978_v1, %v3002_v18  ;;  %v3001_v54 = vmul.f32 0.03125, %v2988_v14  ;;  %4362 = vmatpush3.msra.mxu1 %v3492_v28  ;;  %v3488_v1 = vld [vmem:[%s6189_s1 + $0x3b8] sm:$0xff] }
 0xf83   : > { %3033 = vadd.xlane.f32.xlu1 %v3024_v19  ;;  %v3023_v42 = vmul.f32 %v6070_v10, %v6070_v10  ;;  %4363 = vmatprep.subr.mxu1 %v3491_v4 }
 0xf84   : > { %v6076_v15 = vsel %vm219_vm0, %v3010_v26, 0.0  ;;  %v3009_v3 = vsub.f32 %v2977_v47, %v3001_v54  ;;  %v2994_v25 = vpop.xlane.xlu1 %2993  ;;  %4364 = vmatpush3.msra.mxu1 %v3491_v4  ;;  %v3486_v47 = vld [vmem:[%s6189_s1 + $0x3a8] sm:$0xff] }
 0xf85   : > { %v3004_v11 = vmul.f32 0.03125, %v2994_v25  ;;  %3031 = vadd.xlane.f32.xlu0 %v3023_v42  ;;  %v3026_v43 = vmul.f32 %v6076_v15, %v6076_v15  ;;  %4365 = vmatprep.subr.mxu1 %v3490_v27  ;;  %v4617_v25 = vld [vmem:[%s6190_s2 + $0x8] sm:$0xff] }
 0xf86   : > { %v6082_v7 = vsel %vm219_vm0, %v3009_v3, 0.0  ;;  %v2992_v33 = vpop.xlane.xlu0 %2991  ;;  %4366 = vmatpush3.msra.mxu1 %v3490_v27 }
 0xf87   : > { %v3012_v60 = vsub.f32 %v2980_v41, %v3004_v11  ;;  %v3003_v36 = vmul.f32 0.03125, %v2992_v33  ;;  %3037 = vadd.xlane.f32.xlu1 %v3026_v43  ;;  %v3025_v24 = vmul.f32 %v6082_v7, %v6082_v7  ;;  %4367 = vmatprep.subr.mxu1 %v3489_v58  ;;  %v3482_v41 = vld [vmem:[%s6189_s1 + $0x388] sm:$0xff]  ;;  %v6246_v11 = vsub.s32 5, %v6231_v63 }
 0xf88   : > { %v2998_v52 = vpop.xlane.xlu1 %2997  ;;  %4368 = vmatpush3.msra.mxu1 %v3489_v58 }
 0xf89   : > { %v6088_v31 = vsel %vm219_vm0, %v3012_v60, 0.0  ;;  %v3011_v48 = vsub.f32 %v2979_v32, %v3003_v36  ;;  %v3006_v40 = vmul.f32 0.03125, %v2998_v52  ;;  %3035 = vadd.xlane.f32.xlu0 %v3025_v24  ;;  %4369 = vmatprep.subr.mxu1 %v3488_v1  ;;  %v3082_v43 = vrot.slane %v4617_v25, %v6246_v11 }
 0xf8a   : > { %v2996_v50 = vpop.xlane.xlu0 %2995  ;;  %v3028_v53 = vmul.f32 %v6088_v31, %v6088_v31  ;;  %4370 = vmatpush3.msra.mxu1 %v3488_v1 }
 0xf8b   : > { %v6094_v0 = vsel %vm219_vm0, %v3011_v48, 0.0  ;;  %v3014_v45 = vsub.f32 %v2982_v38, %v3006_v40  ;;  %v3005_v6 = vmul.f32 0.03125, %v2996_v50  ;;  %4371 = vmatprep.subr.mxu1 %v3487_v39  ;;  %v6247_v48 = vsub.s32 6, %v6231_v63 }
 0xf8c   : > { %3041 = vadd.xlane.f32.xlu1 %v3028_v53  ;;  %v3027_v20 = vmul.f32 %v6094_v0, %v6094_v0  ;;  %4372 = vmatpush3.msra.mxu1 %v3487_v39 }
 0xf8d   : > { %v6100_v21 = vsel %vm219_vm0, %v3014_v45, 0.0  ;;  %v3013_v23 = vsub.f32 %v2981_v56, %v3005_v6  ;;  %4373 = vmatprep.subr.mxu1 %v3486_v47  ;;  %v3094_v40 = vrot.slane %v4617_v25, %v6247_v48 }
 0xf8e   : > { %3039 = vadd.xlane.f32.xlu0 %v3027_v20  ;;  %v3030_v9 = vmul.f32 %v6100_v21, %v6100_v21  ;;  %4374 = vmatpush3.msra.mxu1 %v3486_v47 }
 0xf8f   : > { %v6106_v8 = vsel %vm219_vm0, %v3013_v23, 0.0  ;;  %4375 = vmatprep.subr.mxu1 %v3485_v46 }
 0xf90   : > { %3045 = vadd.xlane.f32.xlu1 %v3030_v9  ;;  %v3029_v5 = vmul.f32 %v6106_v8, %v6106_v8  ;;  %4376 = vmatpush3.msra.mxu1 %v3485_v46 }
 0xf91   : > { %4377 = vmatprep.subr.mxu1 %v3484_v17 }
 0xf92   : > { %3043 = vadd.xlane.f32.xlu0 %v3029_v5  ;;  %4378 = vmatpush3.msra.mxu1 %v3484_v17 }
 0xf93   : > { %4379 = vmatprep.subr.mxu1 %v3483_v12 }
 0xf94   : > { %4380 = vmatpush3.msra.mxu1 %v3483_v12 }
 0xf95   : > { %4381 = vmatprep.subr.mxu1 %v3482_v41 }
 0xf96   : > { %4382 = vmatpush3.msra.mxu1 %v3482_v41 }
 0xf97   : > { %4383 = vmatprep.subr.mxu1 %v3481_v61 }
 0xf98   : > { %4384 = vmatpush3.msra.mxu1 %v3481_v61 }
0x100c   : > { %v3034_v59 = vpop.xlane.xlu1 %3033 }
0x100d   : > { %v3048_v32 = vmul.f32 0.03125, %v3034_v59 }
0x100e   : > { %v3032_v22 = vpop.xlane.xlu0 %3031 }
0x100f   : > { %v3056_v13 = vadd.f32 1e-05, %v3048_v32  ;;  %v3047_v38 = vmul.f32 0.03125, %v3032_v22 }
0x1010   : > { %v3038_v29 = vpop.xlane.xlu1 %3037 }
0x1011   : > { %4600 = vrsqrt.f32 %v3056_v13  ;;  %v3055_v56 = vadd.f32 1e-05, %v3047_v38  ;;  %v3050_v35 = vmul.f32 0.03125, %v3038_v29 }
0x1012   : > { %v3036_v57 = vpop.xlane.xlu0 %3035 }
0x1013   : > { %4602 = vrsqrt.f32 %v3055_v56  ;;  %v3058_v55 = vadd.f32 1e-05, %v3050_v35  ;;  %v3049_v44 = vmul.f32 0.03125, %v3036_v57 }
0x1015   : > { %4604 = vrsqrt.f32 %v3058_v55  ;;  %v3057_v34 = vadd.f32 1e-05, %v3049_v44  ;;  %v3042_v37 = vpop.xlane.xlu1 %3041 }
0x1016   : > { %v3052_v30 = vmul.f32 0.03125, %v3042_v37 }
0x1017   : > { %4606 = vrsqrt.f32 %v3057_v34  ;;  %v3040_v2 = vpop.xlane.xlu0 %3039 }
0x1018   : > { %v3060_v49 = vadd.f32 1e-05, %v3052_v30  ;;  %v3051_v62 = vmul.f32 0.03125, %v3040_v2 }
0x1019   : > { %v3046_v18 = vpop.xlane.xlu1 %3045 }
0x101a   : > { %4608 = vrsqrt.f32 %v3060_v49  ;;  %v3059_v14 = vadd.f32 1e-05, %v3051_v62  ;;  %v3054_v19 = vmul.f32 0.03125, %v3046_v18 }
0x101b   : > { %v3044_v26 = vpop.xlane.xlu0 %3043 }
0x101c   : > { %4610 = vrsqrt.f32 %v3059_v14  ;;  %v3062_v54 = vadd.f32 1e-05, %v3054_v19  ;;  %v3053_v42 = vmul.f32 0.03125, %v3044_v26 }
0x101e   : > { %v4601_v3 = vpop.eup %4600  ;;  %4612 = vrsqrt.f32 %v3062_v54  ;;  %v3061_v33 = vadd.f32 1e-05, %v3053_v42 }
0x101f   : > { %v3072_v60 = vmul.f32 %v4601_v3, %v6064_v51 }
0x1020   : > { %v4603_v36 = vpop.eup %4602  ;;  %4614 = vrsqrt.f32 %v3061_v33 }
0x1021   : > { %v3071_v24 = vmul.f32 %v4603_v36, %v6070_v10  ;;  %v3084_v50 = vmul.f32 %v3082_v43, %v3072_v60 }
0x1022   : > { %v4605_v52 = vpop.eup %4604 }
0x1023   : > { %v3083_v53 = vmul.f32 %v3082_v43, %v3071_v24  ;;  %v3074_v45 = vmul.f32 %v4605_v52, %v6076_v15  ;;  %v3096_v9 = vadd.f32 %v3094_v40, %v3084_v50 }
0x1024   : > { %v4607_v6 = vpop.eup %4606 }
0x1025   : > { %v3095_v20 = vadd.f32 %v3094_v40, %v3083_v53  ;;  %v3073_v23 = vmul.f32 %v4607_v6, %v6082_v7  ;;  %v3086_v5 = vmul.f32 %v3082_v43, %v3074_v45 }
0x1027   : > { %v4609_v16 = vpop.eup %4608  ;;  %4385 = vmatprep.mubr.f32.mxu1 %v3095_v20  ;;  %v3085_v51 = vmul.f32 %v3082_v43, %v3073_v23  ;;  %v3098_v27 = vadd.f32 %v3094_v40, %v3086_v5 }
0x1028   : > { %4386 = vmatmul.mubr.f32.vlgmr.msra.gmra.mxu1 %v3096_v9  ;;  %v3076_v10 = vmul.f32 %v4609_v16, %v6088_v31 }
0x1029   : > { %v4611_v28 = vpop.eup %4610  ;;  %v3097_v4 = vadd.f32 %v3094_v40, %v3085_v51 }
0x102a   : > { %v3075_v58 = vmul.f32 %v4611_v28, %v6094_v0  ;;  %v3088_v15 = vmul.f32 %v3082_v43, %v3076_v10  ;;  %v6248_v0 = vsub.s32 7, %v6231_v63 }
0x102b   : > { %v4613_v1 = vpop.eup %4612  ;;  %4388 = vmatprep.mubr.f32.mxu1 %v3097_v4 }
0x102c   : > { %4389 = vmatmul.mubr.f32.gmra.mxu1 %v3098_v27  ;;  %v3087_v39 = vmul.f32 %v3082_v43, %v3075_v58  ;;  %v3078_v7 = vmul.f32 %v4613_v1, %v6100_v21  ;;  %v3100_v12 = vadd.f32 %v3094_v40, %v3088_v15  ;;  %v3123_v32 = vrot.slane %v4617_v25, %v6248_v0 }
0x102d   : > { %v4615_v47 = vpop.eup %4614 }
0x102e   : > { %v3099_v46 = vadd.f32 %v3094_v40, %v3087_v39  ;;  %v3077_v17 = vmul.f32 %v4615_v47, %v6106_v8  ;;  %v3090_v41 = vmul.f32 %v3082_v43, %v3078_v7 }
0x1030   : > { %4391 = vmatprep.mubr.f32.mxu1 %v3099_v46  ;;  %v3089_v31 = vmul.f32 %v3082_v43, %v3077_v17  ;;  %v3102_v59 = vadd.f32 %v3094_v40, %v3090_v41 }
0x1031   : > { %4392 = vmatmul.mubr.f32.gmra.mxu1 %v3100_v12 }
0x1032   : > { %v3101_v61 = vadd.f32 %v3094_v40, %v3089_v31 }
0x1034   : > { %4394 = vmatprep.mubr.f32.mxu1 %v3101_v61 }
0x1035   : > { %4395 = vmatmul.mubr.f32.gmra.mxu1 %v3102_v59 }
0x10e8   : > { %v4387_v21 = vpop.f32.mrf.mxu1 }
0x10e9   : > { %v3196_v8 = vadd.f32 %v4387_v21, %v3123_v32 }
0x10ea   : > { %v3190_v22 = vpop.f32.mrf.mxu1 }
0x10eb   : > { %3230 = vst [vmem:[%s6171_s8 + $0x8] sm:$0xff] %v3196_v8  ;;  %v3191_v13 = vadd.f32 %v3190_v22, %v3123_v32  ;;  %v3238_v35 = vmul.f32 %v3196_v8, %v3196_v8 }
0x10ec   : > { %v4390_v38 = vpop.f32.mrf.mxu1 }
0x10ed   : > { %3229 = vst [vmem:[%s6171_s8] sm:$0xff] %v3191_v13  ;;  %v3237_v63 = vmul.f32 %v3191_v13, %v3191_v13  ;;  %v3206_v29 = vadd.f32 %v4390_v38, %v3123_v32 }
0x10ee   : > { %v3200_v56 = vpop.f32.mrf.mxu1 }
0x10ef   : > { %3232 = vst [vmem:[%s6171_s8 + $0x18] sm:$0xff] %v3206_v29  ;;  %v3201_v57 = vadd.f32 %v3200_v56, %v3123_v32  ;;  %v3245_v55 = vadd.f32 %v3238_v35, %v3237_v63  ;;  %v3240_v30 = vmul.f32 %v3206_v29, %v3206_v29 }
0x10f1   : > { %3231 = vst [vmem:[%s6171_s8 + $0x10] sm:$0xff] %v3201_v57  ;;  %v3239_v44 = vmul.f32 %v3201_v57, %v3201_v57  ;;  %v4393_v34 = vpop.f32.mrf.mxu1 }
0x10f2   : > { %v3216_v37 = vadd.f32 %v4393_v34, %v3123_v32 }
0x10f3   : > { %v3246_v2 = vadd.f32 %v3245_v55, %v3239_v44  ;;  %v3210_v49 = vpop.f32.mrf.mxu1 }
0x10f4   : > { %3234 = vst [vmem:[%s6171_s8 + $0x28] sm:$0xff] %v3216_v37  ;;  %v3211_v62 = vadd.f32 %v3210_v49, %v3123_v32  ;;  %v3242_v42 = vmul.f32 %v3216_v37, %v3216_v37 }
0x10f5   : > { %v3247_v18 = vadd.f32 %v3246_v2, %v3240_v30  ;;  %v4396_v14 = vpop.f32.mrf.mxu1 }
0x10f6   : > { %3233 = vst [vmem:[%s6171_s8 + $0x20] sm:$0xff] %v3211_v62  ;;  %v3241_v19 = vmul.f32 %v3211_v62, %v3211_v62  ;;  %v3226_v26 = vadd.f32 %v4396_v14, %v3123_v32 }
0x10f7   : > { %v3220_v54 = vpop.f32.mrf.mxu1 }
0x10f8   : > { %v3248_v3 = vadd.f32 %v3247_v18, %v3241_v19  ;;  %3236 = vst [vmem:[%s6171_s8 + $0x38] sm:$0xff] %v3226_v26  ;;  %v3221_v25 = vadd.f32 %v3220_v54, %v3123_v32  ;;  %v3244_v33 = vmul.f32 %v3226_v26, %v3226_v26 }
0x10fa   : > { %3235 = vst [vmem:[%s6171_s8 + $0x30] sm:$0xff] %v3221_v25  ;;  %v3243_v11 = vmul.f32 %v3221_v25, %v3221_v25  ;;  %v3249_v43 = vadd.f32 %v3248_v3, %v3242_v42 }
0x10fc   : > { %v3250_v60 = vadd.f32 %v3249_v43, %v3243_v11 }
0x10fe   : > { %v3251_v36 = vadd.f32 %v3250_v60, %v3244_v33 }
0x1100   : > { %3252 = vadd.xlane.f32.xlu0 %v3251_v36 }
0x1189   : > { %v3253_v24 = vpop.xlane.xlu0 %3252 }
0x118a   : > { %v3254_v52 = vrot.slane %v3253_v24, 4 }
0x118c   : > { %v3255_v48 = vadd.f32 %v3254_v52, %v3253_v24 }
0x118e   : > { %v3256_v40 = vrot.slane %v3255_v48, 2 }
0x1190   : > { %v3257_v50 = vadd.f32 %v3256_v40, %v3255_v48 }
0x1192   : > { %v3258_v53 = vrot.slane %v3257_v50, 1 }
0x1194   : > { %v3259_v45 = vadd.f32 %v3258_v53, %v3257_v50 }
0x1196   : > { %4397 = vpush %v3259_v45 }
0x11c7   : > { %s4398_s11 = spop %4397 }
0x11c8   : > { %v3261_v6 = vstv %s4398_s11 }
0x11c9   : > { %3263 = vst.msk [vmem:[%s206_s10] sm:$0x1] %vm3262_vm11, %v3261_v6 }
0x11ca PF: > { %s15_s15 = sadd.s32 1, %s4624_s15  }
0x11cb   : > { %p12_p4 = scmp.ge.s32.totalorder %s15_s15, 4  }
0x11cd   :  { %14 = sbr.rel (!%p12_p4) target bundleno = 1 (0x1), region = 81 }

// kernel: swinjscc_forward.5
= control target key start
LH: loop header
LB: loop body
LE: loop exit
PB: predicated region body
PF: predicated region fallthrough
CT: control target
= control target key end

     0   :  { %s4751_s18 = smov 0   ;;  %s6301_s0 = inlined_call_operand.vmem [shape: f32[2,64,128], index: 0, kind: input, shape index: {}]   ;;  %s6302_s1 = inlined_call_operand.vmem [shape: f32[2,64,128], index: 1, kind: input, shape index: {}]   ;;  %s6303_s2 = inlined_call_operand.vmem [shape: f32[8,128,128], index: 2, kind: input, shape index: {}]   ;;  %s6304_s3 = inlined_call_operand.vmem [shape: f32[16,128], index: 3, kind: input, shape index: {}]   ;;  %s6305_s4 = inlined_call_operand.vmem [shape: f32[2,64,128], index: 4, kind: output, shape index: {0}]   ;;  %s6306_s5 = inlined_call_operand.vmem [shape: f32[2,1,1], index: 5, kind: output, shape index: {1}]  }
   0x1 LB: > { %s3435_s19 = sadd.s32 4294967295, %s4718_s18   ;;  %p3439_p0 = scmp.ge.s32.totalorder %s4718_s18, 1  ;;  %s4718_s18 = sphi %s4751_s18, %s16_s18  }
   0x2   : > { %p200_p1 = scmp.lt.s32.totalorder %s4718_s18, 3 }
   0x4   : > { %p201_p2 = pnand %p3439_p0, %p200_p1 }
   0x6   : > { %204 = sbr.rel (%p201_p2) target bundleno = 4560 (0x11d0), region = 36 }
   0xb   : > { %v282_v0 = vld [vmem:[%s6303_s2 + $0x78] sm:$0xff]  ;;  %v281_v1 = vld [vmem:[%s6303_s2 + $0x70] sm:$0xff]  ;;  %p236_p3 = scmp.lt.s32.totalorder %s3435_s19, 1  ;;  %v280_v2 = vld [vmem:[%s6303_s2 + $0x68] sm:$0xff]  ;;  %v264_v24 = vlaneseq  ;;  %vm1137_vm10 = vcmask 523264   ;;  %vm3341_vm11 = vcmask 0  }
   0xc   : > { %3915 = vmatprep.subr.mxu0 %v282_v0  ;;  %v279_v3 = vld [vmem:[%s6303_s2 + $0x60] sm:$0xff]  ;;  %v278_v4 = vld [vmem:[%s6303_s2 + $0x58] sm:$0xff]  ;;  %v277_v6 = vld [vmem:[%s6303_s2 + $0x50] sm:$0xff] }
   0xd   : > { %3916 = vmatpush3.msra.mxu0 %v282_v0  ;;  %s6364_s19 = smov (!%p236_p3, %s3435_s19), 1  ;;  %v276_v7 = vld [vmem:[%s6303_s2 + $0x48] sm:$0xff]  ;;  %v275_v8 = vld [vmem:[%s6303_s2 + $0x40] sm:$0xff]  ;;  %v274_v9 = vld [vmem:[%s6303_s2 + $0x38] sm:$0xff]  ;;  %v4826_v25 = vshrl.u32 %v264_v24, 7  ;;  %v4837_v45 = vand.u32 127, %v264_v24 }
   0xe   : > { %3917 = vmatprep.subr.mxu0 %v281_v1  ;;  %s4774_s28 = sshll.u32 %s6364_s19, 6  ;;  %v273_v10 = vld [vmem:[%s6303_s2 + $0x30] sm:$0xff]  ;;  %v272_v11 = vld [vmem:[%s6303_s2 + $0x28] sm:$0xff]  ;;  %v271_v12 = vld [vmem:[%s6303_s2 + $0x20] sm:$0xff]  ;;  %s253_s7 = scalar_lea.vmem %s6306_s5, %s6364_s19 }
   0xf   : > { %3918 = vmatpush3.msra.mxu0 %v281_v1  ;;  %s4780_s6 = scalar_lea.vmem %s6301_s0, %s4774_s28  ;;  %v270_v13 = vld [vmem:[%s6303_s2 + $0x18] sm:$0xff]  ;;  %v269_v14 = vld [vmem:[%s6303_s2 + $0x10] sm:$0xff]  ;;  %v268_v15 = vld [vmem:[%s6303_s2 + $0x8] sm:$0xff]  ;;  %6327 = vst [vmem:[#allocation2_spill] sm:$0xff] %v4826_v25  ;;  %v6314_v26 = vsub.s32 0, %v4826_v25  ;;  %vm266_vm0 = vcmp.lt.s32.totalorder %v4837_v45, 32  ;;  %s6270_s25 = scalar_lea.vmem %s6305_s4, %s4774_s28 }
  0x10   : > { %3919 = vmatprep.subr.mxu0 %v280_v2  ;;  %v254_v5 = vld [vmem:[%s4780_s6] sm:$0xff]  ;;  %v255_v17 = vld [vmem:[%s4780_s6 + $0x8] sm:$0xff]  ;;  %v256_v18 = vld [vmem:[%s4780_s6 + $0x10] sm:$0xff]  ;;  %6328 = vst [vmem:[#allocation3_spill] sm:$0xff] %v4837_v45  ;;  %vm1713_vm1 = vcmp.ge.s32.totalorder %v4837_v45, 16  ;;  %vm1714_vm2 = vcmp.lt.s32.totalorder %v4837_v45, 24  ;;  %s6276_s29 = scalar_lea.vmem %s6302_s1, %s4774_s28 }
  0x11   : > { %3920 = vmatpush3.msra.mxu0 %v280_v2  ;;  %3947 = vmatprep.mubr.f32.mxu0 %v254_v5  ;;  %v267_v16 = vld [vmem:[%s6303_s2] sm:$0xff]  ;;  %v257_v19 = vld [vmem:[%s4780_s6 + $0x18] sm:$0xff]  ;;  %v259_v21 = vld [vmem:[%s4780_s6 + $0x28] sm:$0xff]  ;;  %vm2071_vm3 = vcmp.ge.s32.totalorder %v4837_v45, 24  ;;  %vm1234_vm6 = vcmp.ge.s32.totalorder %v4837_v45, 8  ;;  %vm1235_vm7 = vcmp.lt.s32.totalorder %v4837_v45, 16 }
  0x12   : > { %3921 = vmatprep.subr.mxu0 %v279_v3  ;;  %v258_v20 = vld [vmem:[%s4780_s6 + $0x20] sm:$0xff]  ;;  %v260_v22 = vld [vmem:[%s4780_s6 + $0x30] sm:$0xff]  ;;  %v261_v23 = vld [vmem:[%s4780_s6 + $0x38] sm:$0xff]  ;;  %vm1013_vm8 = vcmp.lt.s32.totalorder %v4837_v45, 8 }
  0x13   : > { %3922 = vmatpush3.msra.mxu0 %v279_v3  ;;  %v4832_v27 = vld [vmem:[%s6304_s3] sm:$0xff]  ;;  %vm1715_vm4 = vmand %vm1713_vm1, %vm1714_vm2 }
  0x14   : > { %3923 = vmatprep.subr.mxu0 %v278_v4  ;;  %v286_v29 = vrot.slane %v4832_v27, %v6314_v26  ;;  %vm2072_vm5 = vmand %vm2071_vm3, %vm266_vm0 }
  0x15   : > { %3924 = vmatpush3.msra.mxu0 %v278_v4  ;;  %vm1236_vm9 = vmand %vm1234_vm6, %vm1235_vm7 }
  0x16   : > { %3925 = vmatprep.subr.mxu0 %v277_v6 }
  0x17   : > { %3926 = vmatpush3.msra.mxu0 %v277_v6 }
  0x18   : > { %3927 = vmatprep.subr.mxu0 %v276_v7 }
  0x19   : > { %3928 = vmatpush3.msra.mxu0 %v276_v7 }
  0x1a   : > { %3929 = vmatprep.subr.mxu0 %v275_v8 }
  0x1b   : > { %3930 = vmatpush3.msra.mxu0 %v275_v8 }
  0x1c   : > { %3931 = vmatprep.subr.mxu0 %v274_v9 }
  0x1d   : > { %3932 = vmatpush3.msra.mxu0 %v274_v9 }
  0x1e   : > { %3933 = vmatprep.subr.mxu0 %v273_v10 }
  0x1f   : > { %3934 = vmatpush3.msra.mxu0 %v273_v10 }
  0x20   : > { %3935 = vmatprep.subr.mxu0 %v272_v11 }
  0x21   : > { %3936 = vmatpush3.msra.mxu0 %v272_v11 }
  0x22   : > { %3937 = vmatprep.subr.mxu0 %v271_v12 }
  0x23   : > { %3938 = vmatpush3.msra.mxu0 %v271_v12 }
  0x24   : > { %3939 = vmatprep.subr.mxu0 %v270_v13 }
  0x25   : > { %3940 = vmatpush3.msra.mxu0 %v270_v13 }
  0x26   : > { %3941 = vmatprep.subr.mxu0 %v269_v14 }
  0x27   : > { %3942 = vmatpush3.msra.mxu0 %v269_v14 }
  0x28   : > { %3943 = vmatprep.subr.mxu0 %v268_v15 }
  0x29   : > { %3944 = vmatpush3.msra.mxu0 %v268_v15 }
  0x2a   : > { %3945 = vmatprep.subr.mxu0 %v267_v16 }
  0x2b   : > { %3946 = vmatpush3.msra.mxu0 %v267_v16 }
  0x2c   : > { %3948 = vmatmul.mubr.f32.vlgmr.msra.gmra.mxu0 %v255_v17 }
  0x2d   : > { %3950 = vmatprep.mubr.f32.mxu0 %v256_v18 }
  0x30   : > { %3951 = vmatmul.mubr.f32.gmra.mxu0 %v257_v19 }
  0x31   : > { %3953 = vmatprep.mubr.f32.mxu0 %v258_v20 }
  0x34   : > { %3954 = vmatmul.mubr.f32.gmra.mxu0 %v259_v21 }
  0x35   : > { %3956 = vmatprep.mubr.f32.mxu0 %v260_v22 }
  0x38   : > { %3957 = vmatmul.mubr.f32.gmra.mxu0 %v261_v23 }
  0xec   : > { %v3949_v28 = vpop.f32.mrf.mxu0 }
  0xed   : > { %v359_v34 = vadd.f32 %v3949_v28, %v286_v29 }
  0xee   : > { %v353_v30 = vpop.f32.mrf.mxu0 }
  0xef   : > { %v354_v31 = vadd.f32 %v353_v30, %v286_v29 }
  0xf0   : > { %v3952_v32 = vpop.f32.mrf.mxu0 }
  0xf1   : > { %392 = vadd.xlane.f32.xlu0 %v354_v31  ;;  %v369_v38 = vadd.f32 %v3952_v32, %v286_v29 }
  0xf2   : > { %v363_v33 = vpop.f32.mrf.mxu0 }
  0xf3   : > { %v364_v35 = vadd.f32 %v363_v33, %v286_v29 }
  0xf4   : > { %v3955_v36 = vpop.f32.mrf.mxu0 }
  0xf5   : > { %396 = vadd.xlane.f32.xlu1 %v364_v35  ;;  %394 = vadd.xlane.f32.xlu0 %v359_v34  ;;  %v379_v42 = vadd.f32 %v3955_v36, %v286_v29 }
  0xf6   : > { %v373_v37 = vpop.f32.mrf.mxu0 }
  0xf7   : > { %v374_v39 = vadd.f32 %v373_v37, %v286_v29 }
  0xf8   : > { %v3958_v40 = vpop.f32.mrf.mxu0 }
  0xf9   : > { %398 = vadd.xlane.f32.xlu1 %v369_v38  ;;  %400 = vadd.xlane.f32.xlu0 %v374_v39  ;;  %v389_v44 = vadd.f32 %v3958_v40, %v286_v29 }
  0xfa   : > { %v383_v41 = vpop.f32.mrf.mxu0 }
  0xfb   : > { %v384_v43 = vadd.f32 %v383_v41, %v286_v29 }
  0xfd   : > { %402 = vadd.xlane.f32.xlu1 %v379_v42  ;;  %404 = vadd.xlane.f32.xlu0 %v384_v43 }
 0x101   : > { %406 = vadd.xlane.f32.xlu1 %v389_v44 }
 0x17a   : > { %v393_v46 = vpop.xlane.xlu0 %392 }
 0x17b   : > { %v408_v47 = vmul.f32 0.03125, %v393_v46 }
 0x17d   : > { %v416_v48 = vsub.f32 %v354_v31, %v408_v47 }
 0x17e   : > { %v397_v49 = vpop.xlane.xlu1 %396  ;;  %v395_v50 = vpop.xlane.xlu0 %394 }
 0x17f   : > { %v410_v51 = vmul.f32 0.03125, %v397_v49  ;;  %v409_v52 = vmul.f32 0.03125, %v395_v50  ;;  %v4842_v53 = vsel %vm266_vm0, %v416_v48, 0.0  ;;  %v6312_v48 = vsub.s32 2, %v4826_v25 }
 0x180   : > { %v434_v54 = vmul.f32 %v4842_v53, %v4842_v53 }
 0x181   : > { %v418_v55 = vsub.f32 %v364_v35, %v410_v51  ;;  %v417_v56 = vsub.f32 %v359_v34, %v409_v52 }
 0x182   : > { %v399_v57 = vpop.xlane.xlu1 %398  ;;  %442 = vadd.xlane.f32.xlu0 %v434_v54  ;;  %v401_v58 = vpop.xlane.xlu0 %400 }
 0x183   : > { %v411_v59 = vmul.f32 0.03125, %v399_v57  ;;  %v412_v60 = vmul.f32 0.03125, %v401_v58  ;;  %v4848_v61 = vsel %vm266_vm0, %v418_v55, 0.0  ;;  %v4852_v62 = vsel %vm266_vm0, %v417_v56, 0.0 }
 0x184   : > { %v436_v63 = vmul.f32 %v4848_v61, %v4848_v61  ;;  %v435_v0 = vmul.f32 %v4852_v62, %v4852_v62  ;;  %v505_v56 = vrot.slane %v4832_v27, %v6312_v48 }
 0x185   : > { %v419_v1 = vsub.f32 %v369_v38, %v411_v59  ;;  %v420_v2 = vsub.f32 %v374_v39, %v412_v60 }
 0x186   : > { %v403_v3 = vpop.xlane.xlu1 %402  ;;  %446 = vadd.xlane.f32.xlu0 %v436_v63  ;;  %444 = vadd.xlane.f32.xlu1 %v435_v0  ;;  %v405_v4 = vpop.xlane.xlu0 %404 }
 0x187   : > { %v413_v5 = vmul.f32 0.03125, %v403_v3  ;;  %v414_v6 = vmul.f32 0.03125, %v405_v4  ;;  %v4860_v7 = vsel %vm266_vm0, %v419_v1, 0.0  ;;  %v4864_v8 = vsel %vm266_vm0, %v420_v2, 0.0 }
 0x188   : > { %v437_v9 = vmul.f32 %v4860_v7, %v4860_v7  ;;  %v438_v10 = vmul.f32 %v4864_v8, %v4864_v8 }
 0x189   : > { %v421_v11 = vsub.f32 %v379_v42, %v413_v5  ;;  %v422_v12 = vsub.f32 %v384_v43, %v414_v6 }
 0x18a   : > { %v407_v13 = vpop.xlane.xlu1 %406  ;;  %448 = vadd.xlane.f32.xlu1 %v437_v9  ;;  %450 = vadd.xlane.f32.xlu0 %v438_v10 }
 0x18b   : > { %v415_v14 = vmul.f32 0.03125, %v407_v13  ;;  %v4872_v15 = vsel %vm266_vm0, %v421_v11, 0.0  ;;  %v4876_v16 = vsel %vm266_vm0, %v422_v12, 0.0 }
 0x18c   : > { %v439_v17 = vmul.f32 %v4872_v15, %v4872_v15  ;;  %v440_v18 = vmul.f32 %v4876_v16, %v4876_v16 }
 0x18d   : > { %v423_v19 = vsub.f32 %v389_v44, %v415_v14  ;;  %v6313_v44 = vsub.s32 1, %v4826_v25 }
 0x18e   : > { %452 = vadd.xlane.f32.xlu1 %v439_v17  ;;  %454 = vadd.xlane.f32.xlu0 %v440_v18 }
 0x18f   : > { %v4884_v20 = vsel %vm266_vm0, %v423_v19, 0.0  ;;  %v493_v51 = vrot.slane %v4832_v27, %v6313_v44 }
 0x190   : > { %v441_v21 = vmul.f32 %v4884_v20, %v4884_v20 }
 0x192   : > { %456 = vadd.xlane.f32.xlu1 %v441_v21 }
 0x20b   : > { %v443_v22 = vpop.xlane.xlu0 %442 }
 0x20c   : > { %v458_v23 = vmul.f32 0.03125, %v443_v22 }
 0x20e   : > { %v466_v24 = vadd.f32 1e-05, %v458_v23 }
 0x20f   : > { %v445_v28 = vpop.xlane.xlu1 %444  ;;  %v447_v29 = vpop.xlane.xlu0 %446 }
 0x210   : > { %4502 = vrsqrt.f32 %v466_v24  ;;  %v459_v30 = vmul.f32 0.03125, %v445_v28  ;;  %v460_v31 = vmul.f32 0.03125, %v447_v29  ;;  %v3477_v24 = vld [vmem:[%s6303_s2 + $0x178] sm:$0xff]  ;;  %v3476_v28 = vld [vmem:[%s6303_s2 + $0x170] sm:$0xff]  ;;  %v3459_v29 = vld [vmem:[%s6303_s2 + $0xe8] sm:$0xff] }
 0x211   : > { %4003 = vmatprep.subr.mxu0 %v3477_v24 }
 0x212   : > { %v467_v32 = vadd.f32 1e-05, %v459_v30  ;;  %v468_v33 = vadd.f32 1e-05, %v460_v31  ;;  %4004 = vmatpush3.msra.mxu0 %v3477_v24  ;;  %v3472_v24 = vld [vmem:[%s6303_s2 + $0x150] sm:$0xff] }
 0x213   : > { %v449_v34 = vpop.xlane.xlu1 %448  ;;  %v451_v35 = vpop.xlane.xlu0 %450  ;;  %4005 = vmatprep.subr.mxu0 %v3476_v28 }
 0x214   : > { %4504 = vrsqrt.f32 %v467_v32  ;;  %v461_v36 = vmul.f32 0.03125, %v449_v34  ;;  %v462_v37 = vmul.f32 0.03125, %v451_v35  ;;  %4006 = vmatpush3.msra.mxu0 %v3476_v28  ;;  %v3471_v28 = vld [vmem:[%s6303_s2 + $0x148] sm:$0xff] }
 0x215   : > { %4506 = vrsqrt.f32 %v468_v33 }
 0x216   : > { %v469_v38 = vadd.f32 1e-05, %v461_v36  ;;  %v470_v39 = vadd.f32 1e-05, %v462_v37 }
 0x217   : > { %v453_v40 = vpop.xlane.xlu1 %452  ;;  %v455_v41 = vpop.xlane.xlu0 %454 }
 0x218   : > { %4508 = vrsqrt.f32 %v469_v38  ;;  %v463_v42 = vmul.f32 0.03125, %v453_v40  ;;  %v464_v43 = vmul.f32 0.03125, %v455_v41 }
 0x219   : > { %4510 = vrsqrt.f32 %v470_v39 }
 0x21a   : > { %v471_v46 = vadd.f32 1e-05, %v463_v42  ;;  %v472_v47 = vadd.f32 1e-05, %v464_v43 }
 0x21b   : > { %v457_v49 = vpop.xlane.xlu1 %456 }
 0x21c   : > { %4512 = vrsqrt.f32 %v471_v46  ;;  %v465_v50 = vmul.f32 0.03125, %v457_v49 }
 0x21d   : > { %v4503_v52 = vpop.eup %4502  ;;  %4514 = vrsqrt.f32 %v472_v47 }
 0x21e   : > { %v473_v54 = vadd.f32 1e-05, %v465_v50  ;;  %v482_v55 = vmul.f32 %v4503_v52, %v4842_v53 }
 0x220   : > { %4516 = vrsqrt.f32 %v473_v54  ;;  %v494_v57 = vmul.f32 %v493_v51, %v482_v55 }
 0x221   : > { %v4505_v58 = vpop.eup %4504 }
 0x222   : > { %v4507_v59 = vpop.eup %4506  ;;  %v4897_v60 = vadd.f32 %v505_v56, %v494_v57  ;;  %v483_v63 = vmul.f32 %v4505_v58, %v4852_v62 }
 0x223   : > { %v484_v0 = vmul.f32 %v4507_v59, %v4848_v61 }
 0x224   : > { %6329 = vst [vmem:[#allocation4_spill] sm:$0xff] %v4897_v60  ;;  %514 = vadd.xlane.f32.xlu0 %v4897_v60  ;;  %v495_v1 = vmul.f32 %v493_v51, %v483_v63 }
 0x225   : > { %v4509_v2 = vpop.eup %4508  ;;  %v496_v3 = vmul.f32 %v493_v51, %v484_v0 }
 0x226   : > { %v4511_v53 = vpop.eup %4510  ;;  %v4902_v4 = vadd.f32 %v505_v56, %v495_v1  ;;  %v485_v5 = vmul.f32 %v4509_v2, %v4860_v7 }
 0x227   : > { %v4905_v6 = vadd.f32 %v505_v56, %v496_v3  ;;  %v486_v9 = vmul.f32 %v4511_v53, %v4864_v8 }
 0x228   : > { %6330 = vst [vmem:[#allocation5_spill] sm:$0xff] %v4902_v4  ;;  %516 = vadd.xlane.f32.xlu1 %v4902_v4  ;;  %v497_v10 = vmul.f32 %v493_v51, %v485_v5 }
 0x229   : > { %6331 = vst [vmem:[#allocation6_spill] sm:$0xff] %v4905_v6  ;;  %v4513_v62 = vpop.eup %4512  ;;  %518 = vadd.xlane.f32.xlu0 %v4905_v6  ;;  %v498_v61 = vmul.f32 %v493_v51, %v486_v9 }
 0x22a   : > { %v4515_v11 = vpop.eup %4514  ;;  %v4910_v12 = vadd.f32 %v505_v56, %v497_v10  ;;  %v487_v13 = vmul.f32 %v4513_v62, %v4872_v15 }
 0x22b   : > { %v4913_v14 = vadd.f32 %v505_v56, %v498_v61  ;;  %v488_v7 = vmul.f32 %v4515_v11, %v4876_v16  ;;  %v3461_v16 = vld [vmem:[%s6303_s2 + $0xf8] sm:$0xff]  ;;  %v3475_v61 = vld [vmem:[%s6303_s2 + $0x168] sm:$0xff] }
 0x22c   : > { %6332 = vst [vmem:[#allocation7_spill] sm:$0xff] %v4910_v12  ;;  %520 = vadd.xlane.f32.xlu1 %v4910_v12  ;;  %v499_v17 = vmul.f32 %v493_v51, %v487_v13  ;;  %3959 = vmatprep.subr.mxu1 %v3461_v16 }
 0x22d   : > { %6333 = vst [vmem:[#allocation8_spill] sm:$0xff] %v4913_v14  ;;  %v4517_v8 = vpop.eup %4516  ;;  %522 = vadd.xlane.f32.xlu0 %v4913_v14  ;;  %v500_v18 = vmul.f32 %v493_v51, %v488_v7  ;;  %3960 = vmatpush3.msra.mxu1 %v3461_v16  ;;  %v3458_v7 = vld [vmem:[%s6303_s2 + $0xe0] sm:$0xff]  ;;  %v3456_v16 = vld [vmem:[%s6303_s2 + $0xd0] sm:$0xff] }
 0x22e   : > { %v4918_v19 = vadd.f32 %v505_v56, %v499_v17  ;;  %v489_v21 = vmul.f32 %v4517_v8, %v4884_v20  ;;  %v3460_v20 = vld [vmem:[%s6303_s2 + $0xf0] sm:$0xff]  ;;  %4007 = vmatprep.subr.mxu0 %v3475_v61  ;;  %v3474_v17 = vld [vmem:[%s6303_s2 + $0x160] sm:$0xff] }
 0x22f   : > { %v4921_v22 = vadd.f32 %v505_v56, %v500_v18  ;;  %3961 = vmatprep.subr.mxu1 %v3460_v20  ;;  %4008 = vmatpush3.msra.mxu0 %v3475_v61  ;;  %v3457_v18 = vld [vmem:[%s6303_s2 + $0xd8] sm:$0xff] }
 0x230   : > { %6334 = vst [vmem:[#allocation9_spill] sm:$0xff] %v4918_v19  ;;  %524 = vadd.xlane.f32.xlu1 %v4918_v19  ;;  %v501_v15 = vmul.f32 %v493_v51, %v489_v21  ;;  %3962 = vmatpush3.msra.mxu1 %v3460_v20  ;;  %v3455_v20 = vld [vmem:[%s6303_s2 + $0xc8] sm:$0xff] }
 0x231   : > { %6335 = vst [vmem:[#allocation10_spill] sm:$0xff] %v4921_v22  ;;  %526 = vadd.xlane.f32.xlu0 %v4921_v22  ;;  %3963 = vmatprep.subr.mxu1 %v3459_v29 }
 0x232   : > { %v4925_v23 = vadd.f32 %v505_v56, %v501_v15  ;;  %3964 = vmatpush3.msra.mxu1 %v3459_v29  ;;  %4009 = vmatprep.subr.mxu0 %v3474_v17  ;;  %v3473_v15 = vld [vmem:[%s6303_s2 + $0x158] sm:$0xff]  ;;  %v3454_v29 = vld [vmem:[%s6303_s2 + $0xc0] sm:$0xff] }
 0x233   : > { %3965 = vmatprep.subr.mxu1 %v3458_v7  ;;  %4010 = vmatpush3.msra.mxu0 %v3474_v17 }
 0x234   : > { %6336 = vst [vmem:[#allocation11_spill] sm:$0xff] %v4925_v23  ;;  %528 = vadd.xlane.f32.xlu1 %v4925_v23  ;;  %3966 = vmatpush3.msra.mxu1 %v3458_v7 }
 0x235   : > { %3967 = vmatprep.subr.mxu1 %v3457_v18  ;;  %4011 = vmatprep.subr.mxu0 %v3473_v15 }
 0x236   : > { %3968 = vmatpush3.msra.mxu1 %v3457_v18  ;;  %4012 = vmatpush3.msra.mxu0 %v3473_v15  ;;  %v6311_v15 = vsub.s32 3, %v4826_v25 }
 0x237   : > { %3969 = vmatprep.subr.mxu1 %v3456_v16  ;;  %4013 = vmatprep.subr.mxu0 %v3472_v24 }
 0x238   : > { %3970 = vmatpush3.msra.mxu1 %v3456_v16  ;;  %4014 = vmatpush3.msra.mxu0 %v3472_v24 }
 0x239   : > { %3971 = vmatprep.subr.mxu1 %v3455_v20  ;;  %4015 = vmatprep.subr.mxu0 %v3471_v28 }
 0x23a   : > { %3972 = vmatpush3.msra.mxu1 %v3455_v20  ;;  %4016 = vmatpush3.msra.mxu0 %v3471_v28  ;;  %v6310_v20 = vsub.s32 4, %v4826_v25 }
 0x23b   : > { %3973 = vmatprep.subr.mxu1 %v3454_v29 }
 0x23c   : > { %3974 = vmatpush3.msra.mxu1 %v3454_v29 }
 0x2ad   : > { %v515_v30 = vpop.xlane.xlu0 %514 }
 0x2ae   : > { %v530_v31 = vmul.f32 0.03125, %v515_v30  ;;  %v3470_v30 = vld [vmem:[%s6303_s2 + $0x140] sm:$0xff] }
 0x2af   : > { %4017 = vmatprep.subr.mxu0 %v3470_v30 }
 0x2b0   : > { %v538_v32 = vsub.f32 %v4897_v60, %v530_v31  ;;  %v3453_v31 = vld [vmem:[%s6303_s2 + $0xb8] sm:$0xff]  ;;  %4018 = vmatpush3.msra.mxu0 %v3470_v30 }
 0x2b1   : > { %v517_v33 = vpop.xlane.xlu1 %516  ;;  %3975 = vmatprep.subr.mxu1 %v3453_v31 }
 0x2b2   : > { %v531_v34 = vmul.f32 0.03125, %v517_v33  ;;  %v519_v35 = vpop.xlane.xlu0 %518  ;;  %v4946_v36 = vsel %vm266_vm0, %v538_v32, 0.0  ;;  %v3469_v32 = vld [vmem:[%s6303_s2 + $0x138] sm:$0xff]  ;;  %v3452_v33 = vld [vmem:[%s6303_s2 + $0xb0] sm:$0xff]  ;;  %3976 = vmatpush3.msra.mxu1 %v3453_v31  ;;  %v613_v31 = vrot.slane %v4832_v27, %v6311_v15 }
 0x2b3   : > { %v532_v37 = vmul.f32 0.03125, %v519_v35  ;;  %v554_v38 = vmul.f32 %v4946_v36, %v4946_v36  ;;  %4019 = vmatprep.subr.mxu0 %v3469_v32  ;;  %3977 = vmatprep.subr.mxu1 %v3452_v33  ;;  %v3451_v35 = vld [vmem:[%s6303_s2 + $0xa8] sm:$0xff] }
 0x2b4   : > { %v539_v39 = vsub.f32 %v4902_v4, %v531_v34  ;;  %v3468_v34 = vld [vmem:[%s6303_s2 + $0x130] sm:$0xff]  ;;  %4020 = vmatpush3.msra.mxu0 %v3469_v32  ;;  %3978 = vmatpush3.msra.mxu1 %v3452_v33 }
 0x2b5   : > { %v540_v40 = vsub.f32 %v4905_v6, %v532_v37  ;;  %v521_v41 = vpop.xlane.xlu1 %520  ;;  %562 = vadd.xlane.f32.xlu0 %v554_v38  ;;  %v3467_v37 = vld [vmem:[%s6303_s2 + $0x128] sm:$0xff]  ;;  %4021 = vmatprep.subr.mxu0 %v3468_v34  ;;  %v3450_v38 = vld [vmem:[%s6303_s2 + $0xa0] sm:$0xff] }
 0x2b6   : > { %v533_v42 = vmul.f32 0.03125, %v521_v41  ;;  %v523_v43 = vpop.xlane.xlu0 %522  ;;  %v4954_v46 = vsel %vm266_vm0, %v539_v39, 0.0  ;;  %3979 = vmatprep.subr.mxu1 %v3451_v35  ;;  %4022 = vmatpush3.msra.mxu0 %v3468_v34  ;;  %v3466_v39 = vld [vmem:[%s6303_s2 + $0x120] sm:$0xff]  ;;  %v3465_v41 = vld [vmem:[%s6303_s2 + $0x118] sm:$0xff] }
 0x2b7   : > { %v534_v47 = vmul.f32 0.03125, %v523_v43  ;;  %v555_v49 = vmul.f32 %v4954_v46, %v4954_v46  ;;  %v4960_v50 = vsel %vm266_vm0, %v540_v40, 0.0  ;;  %3980 = vmatpush3.msra.mxu1 %v3451_v35  ;;  %4023 = vmatprep.subr.mxu0 %v3467_v37  ;;  %v3449_v40 = vld [vmem:[%s6303_s2 + $0x98] sm:$0xff]  ;;  %v3464_v43 = vld [vmem:[%s6303_s2 + $0x110] sm:$0xff]  ;;  %v625_v35 = vrot.slane %v4832_v27, %v6310_v20 }
 0x2b8   : > { %v541_v51 = vsub.f32 %v4910_v12, %v533_v42  ;;  %v556_v52 = vmul.f32 %v4960_v50, %v4960_v50  ;;  %3981 = vmatprep.subr.mxu1 %v3450_v38  ;;  %4024 = vmatpush3.msra.mxu0 %v3467_v37  ;;  %v3448_v42 = vld [vmem:[%s6303_s2 + $0x90] sm:$0xff] }
 0x2b9   : > { %v542_v54 = vsub.f32 %v4913_v14, %v534_v47  ;;  %564 = vadd.xlane.f32.xlu1 %v555_v49  ;;  %v525_v55 = vpop.xlane.xlu1 %524  ;;  %3982 = vmatpush3.msra.mxu1 %v3450_v38  ;;  %v3447_v47 = vld [vmem:[%s6303_s2 + $0x88] sm:$0xff] }
 0x2ba   : > { %v535_v56 = vmul.f32 0.03125, %v525_v55  ;;  %566 = vadd.xlane.f32.xlu0 %v556_v52  ;;  %v527_v57 = vpop.xlane.xlu0 %526  ;;  %v4968_v58 = vsel %vm266_vm0, %v541_v51, 0.0  ;;  %4025 = vmatprep.subr.mxu0 %v3466_v39  ;;  %v3463_v49 = vld [vmem:[%s6303_s2 + $0x108] sm:$0xff]  ;;  %v3446_v51 = vld [vmem:[%s6303_s2 + $0x80] sm:$0xff] }
 0x2bb   : > { %v536_v59 = vmul.f32 0.03125, %v527_v57  ;;  %v557_v63 = vmul.f32 %v4968_v58, %v4968_v58  ;;  %v4974_v0 = vsel %vm266_vm0, %v542_v54, 0.0  ;;  %3983 = vmatprep.subr.mxu1 %v3449_v40  ;;  %4026 = vmatpush3.msra.mxu0 %v3466_v39  ;;  %v3462_v52 = vld [vmem:[%s6303_s2 + $0x100] sm:$0xff]  ;;  %v5083_v54 = vld [vmem:[%s6303_s2 + $0x1f8] sm:$0xff] }
 0x2bc   : > { %v543_v1 = vsub.f32 %v4918_v19, %v535_v56  ;;  %v558_v2 = vmul.f32 %v4974_v0, %v4974_v0  ;;  %3984 = vmatpush3.msra.mxu1 %v3449_v40  ;;  %4027 = vmatprep.subr.mxu0 %v3465_v41 }
 0x2bd   : > { %v544_v3 = vsub.f32 %v4921_v22, %v536_v59  ;;  %568 = vadd.xlane.f32.xlu1 %v557_v63  ;;  %v529_v53 = vpop.xlane.xlu1 %528  ;;  %3985 = vmatprep.subr.mxu1 %v3448_v42 }
 0x2be   : > { %v537_v5 = vmul.f32 0.03125, %v529_v53  ;;  %570 = vadd.xlane.f32.xlu0 %v558_v2  ;;  %v4982_v9 = vsel %vm266_vm0, %v543_v1, 0.0  ;;  %4028 = vmatpush3.msra.mxu0 %v3465_v41 }
 0x2bf   : > { %v559_v10 = vmul.f32 %v4982_v9, %v4982_v9  ;;  %v4988_v62 = vsel %vm266_vm0, %v544_v3, 0.0  ;;  %3986 = vmatpush3.msra.mxu1 %v3448_v42  ;;  %4029 = vmatprep.subr.mxu0 %v3464_v43 }
 0x2c0   : > { %v545_v11 = vsub.f32 %v4925_v23, %v537_v5  ;;  %v560_v13 = vmul.f32 %v4988_v62, %v4988_v62  ;;  %3987 = vmatprep.subr.mxu1 %v3447_v47  ;;  %4030 = vmatpush3.msra.mxu0 %v3464_v43 }
 0x2c1   : > { %572 = vadd.xlane.f32.xlu1 %v559_v10  ;;  %3988 = vmatpush3.msra.mxu1 %v3447_v47 }
 0x2c2   : > { %574 = vadd.xlane.f32.xlu0 %v560_v13  ;;  %v5004_v8 = vsel %vm266_vm0, %v545_v11, 0.0  ;;  %4031 = vmatprep.subr.mxu0 %v3463_v49 }
 0x2c3   : > { %v561_v21 = vmul.f32 %v5004_v8, %v5004_v8  ;;  %3989 = vmatprep.subr.mxu1 %v3446_v51  ;;  %4032 = vmatpush3.msra.mxu0 %v3463_v49 }
 0x2c4   : > { %3990 = vmatpush3.msra.mxu1 %v3446_v51  ;;  %4033 = vmatprep.subr.mxu0 %v3462_v52 }
 0x2c5   : > { %576 = vadd.xlane.f32.xlu1 %v561_v21  ;;  %4047 = vmatprep.subr.mxu1 %v5083_v54 }
 0x2c6   : > { %4034 = vmatpush3.msra.mxu0 %v3462_v52 }
 0x33e   : > { %v563_v55 = vpop.xlane.xlu0 %562 }
 0x33f   : > { %v578_v56 = vmul.f32 0.03125, %v563_v55 }
 0x341   : > { %v586_v57 = vadd.f32 1e-05, %v578_v56 }
 0x342   : > { %v565_v59 = vpop.xlane.xlu1 %564 }
 0x343   : > { %4518 = vrsqrt.f32 %v586_v57  ;;  %v579_v63 = vmul.f32 0.03125, %v565_v59  ;;  %v567_v1 = vpop.xlane.xlu0 %566 }
 0x344   : > { %v580_v2 = vmul.f32 0.03125, %v567_v1 }
 0x345   : > { %v587_v3 = vadd.f32 1e-05, %v579_v63 }
 0x346   : > { %v588_v53 = vadd.f32 1e-05, %v580_v2  ;;  %v569_v5 = vpop.xlane.xlu1 %568 }
 0x347   : > { %4520 = vrsqrt.f32 %v587_v3  ;;  %v581_v10 = vmul.f32 0.03125, %v569_v5  ;;  %v571_v61 = vpop.xlane.xlu0 %570  ;;  %v3490_v3 = vld [vmem:[%s6303_s2 + $0x1e0] sm:$0xff] }
 0x348   : > { %4522 = vrsqrt.f32 %v588_v53  ;;  %v582_v11 = vmul.f32 0.03125, %v571_v61 }
 0x349   : > { %v589_v13 = vadd.f32 1e-05, %v581_v10 }
 0x34a   : > { %v590_v7 = vadd.f32 1e-05, %v582_v11  ;;  %v573_v17 = vpop.xlane.xlu1 %572 }
 0x34b   : > { %4524 = vrsqrt.f32 %v589_v13  ;;  %v583_v18 = vmul.f32 0.03125, %v573_v17  ;;  %v575_v21 = vpop.xlane.xlu0 %574 }
 0x34c   : > { %4526 = vrsqrt.f32 %v590_v7  ;;  %v584_v16 = vmul.f32 0.03125, %v575_v21  ;;  %v3488_v7 = vld [vmem:[%s6303_s2 + $0x1d0] sm:$0xff]  ;;  %v3485_v21 = vld [vmem:[%s6303_s2 + $0x1b8] sm:$0xff] }
 0x34d   : > { %v591_v24 = vadd.f32 1e-05, %v583_v18  ;;  %v3487_v18 = vld [vmem:[%s6303_s2 + $0x1c8] sm:$0xff] }
 0x34e   : > { %v592_v28 = vadd.f32 1e-05, %v584_v16  ;;  %v577_v29 = vpop.xlane.xlu1 %576  ;;  %v3484_v16 = vld [vmem:[%s6303_s2 + $0x1b0] sm:$0xff] }
 0x34f   : > { %4528 = vrsqrt.f32 %v591_v24  ;;  %v585_v30 = vmul.f32 0.03125, %v577_v29  ;;  %v3483_v24 = vld [vmem:[%s6303_s2 + $0x1a8] sm:$0xff]  ;;  %v3481_v29 = vld [vmem:[%s6303_s2 + $0x198] sm:$0xff] }
 0x350   : > { %v4519_v32 = vpop.eup %4518  ;;  %4530 = vrsqrt.f32 %v592_v28  ;;  %v3482_v28 = vld [vmem:[%s6303_s2 + $0x1a0] sm:$0xff] }
 0x351   : > { %v593_v33 = vadd.f32 1e-05, %v585_v30  ;;  %v602_v34 = vmul.f32 %v4519_v32, %v4946_v36  ;;  %v3480_v30 = vld [vmem:[%s6303_s2 + $0x190] sm:$0xff]  ;;  %v3478_v32 = vld [vmem:[%s6303_s2 + $0x180] sm:$0xff] }
 0x353   : > { %4532 = vrsqrt.f32 %v593_v33  ;;  %v614_v37 = vmul.f32 %v613_v31, %v602_v34  ;;  %v6309_v33 = vsub.s32 5, %v4826_v25 }
 0x354   : > { %v4521_v38 = vpop.eup %4520 }
 0x355   : > { %v4523_v39 = vpop.eup %4522  ;;  %v5095_v40 = vadd.f32 %v625_v35, %v614_v37  ;;  %v603_v41 = vmul.f32 %v4521_v38, %v4954_v46  ;;  %v3492_v46 = vld [vmem:[%s6303_s2 + $0x1f0] sm:$0xff]  ;;  %v654_v34 = vrot.slane %v4832_v27, %v6309_v33  ;;  %v4720_v37 = vmov 0.0  }
 0x356   : > { %v604_v42 = vmul.f32 %v4523_v39, %v4960_v50  ;;  %v5184_v38 = vsel %vm1715_vm4, 1.0, %v4720_v37  ;;  %v5186_v39 = vsel %vm2072_vm5, 1.0, %v4720_v37 }
 0x357   : > { %3991 = vmatprep.mubr.f32.mxu1 %v5095_v40  ;;  %4035 = vmatprep.mubr.f32.mxu0 %v5095_v40  ;;  %v615_v43 = vmul.f32 %v613_v31, %v603_v41 }
 0x358   : > { %v4525_v36 = vpop.eup %4524  ;;  %v616_v47 = vmul.f32 %v613_v31, %v604_v42 }
 0x359   : > { %v4527_v49 = vpop.eup %4526  ;;  %v5101_v51 = vadd.f32 %v625_v35, %v615_v43  ;;  %v605_v52 = vmul.f32 %v4525_v36, %v4968_v58  ;;  %v3491_v58 = vld [vmem:[%s6303_s2 + $0x1e8] sm:$0xff] }
 0x35a   : > { %v5104_v55 = vadd.f32 %v625_v35, %v616_v47  ;;  %v606_v50 = vmul.f32 %v4527_v49, %v4974_v0 }
 0x35b   : > { %3992 = vmatmul.mubr.f32.vlgmr.msra.gmra.mxu1 %v5101_v51  ;;  %4036 = vmatmul.mubr.f32.vlgmr.msra.gmra.mxu0 %v5101_v51  ;;  %v617_v56 = vmul.f32 %v613_v31, %v605_v52  ;;  %v5203_v52 = vsel %vm1013_vm8, 1.0, %v4720_v37 }
 0x35c   : > { %v4529_v57 = vpop.eup %4528  ;;  %4048 = vmatpush3.msra.mxu1 %v5083_v54  ;;  %3994 = vmatprep.mubr.f32.mxu1 %v5104_v55  ;;  %v618_v59 = vmul.f32 %v613_v31, %v606_v50 }
 0x35d   : > { %v4531_v63 = vpop.eup %4530  ;;  %4038 = vmatprep.mubr.f32.mxu0 %v5104_v55  ;;  %4049 = vmatprep.subr.mxu1 %v3492_v46  ;;  %v5118_v0 = vadd.f32 %v625_v35, %v617_v56  ;;  %v607_v1 = vmul.f32 %v4529_v57, %v4982_v9  ;;  %v3489_v9 = vld [vmem:[%s6303_s2 + $0x1d8] sm:$0xff] }
 0x35e   : > { %4050 = vmatpush3.msra.mxu1 %v3492_v46  ;;  %v5121_v2 = vadd.f32 %v625_v35, %v618_v59  ;;  %v608_v54 = vmul.f32 %v4531_v63, %v4988_v62 }
 0x35f   : > { %4051 = vmatprep.subr.mxu1 %v3491_v58  ;;  %3995 = vmatmul.mubr.f32.gmra.mxu1 %v5118_v0  ;;  %v619_v53 = vmul.f32 %v613_v31, %v607_v1 }
 0x360   : > { %v4533_v5 = vpop.eup %4532  ;;  %4039 = vmatmul.mubr.f32.gmra.mxu0 %v5118_v0  ;;  %4052 = vmatpush3.msra.mxu1 %v3491_v58  ;;  %v620_v10 = vmul.f32 %v613_v31, %v608_v54 }
 0x361   : > { %3997 = vmatprep.mubr.f32.mxu1 %v5121_v2  ;;  %4041 = vmatprep.mubr.f32.mxu0 %v5121_v2  ;;  %v631_v62 = vadd.f32 %v625_v35, %v619_v53  ;;  %v609_v61 = vmul.f32 %v4533_v5, %v5004_v8  ;;  %v3486_v8 = vld [vmem:[%s6303_s2 + $0x1c0] sm:$0xff] }
 0x362   : > { %4053 = vmatprep.subr.mxu1 %v3490_v3  ;;  %v632_v11 = vadd.f32 %v625_v35, %v620_v10  ;;  %v6308_v10 = vsub.s32 6, %v4826_v25 }
 0x363   : > { %4054 = vmatpush3.msra.mxu1 %v3490_v3  ;;  %v621_v13 = vmul.f32 %v613_v31, %v609_v61  ;;  %v3479_v31 = vld [vmem:[%s6303_s2 + $0x188] sm:$0xff] }
 0x364   : > { %4055 = vmatprep.subr.mxu1 %v3489_v9  ;;  %3998 = vmatmul.mubr.f32.gmra.mxu1 %v631_v62 }
 0x365   : > { %4042 = vmatmul.mubr.f32.gmra.mxu0 %v631_v62  ;;  %4056 = vmatpush3.msra.mxu1 %v3489_v9  ;;  %v633_v17 = vadd.f32 %v625_v35, %v621_v13 }
 0x366   : > { %4000 = vmatprep.mubr.f32.mxu1 %v632_v11  ;;  %4044 = vmatprep.mubr.f32.mxu0 %v632_v11 }
 0x367   : > { %4057 = vmatprep.subr.mxu1 %v3488_v7 }
 0x368   : > { %4058 = vmatpush3.msra.mxu1 %v3488_v7 }
 0x369   : > { %4059 = vmatprep.subr.mxu1 %v3487_v18  ;;  %4001 = vmatmul.mubr.f32.gmra.mxu1 %v633_v17 }
 0x36a   : > { %4045 = vmatmul.mubr.f32.gmra.mxu0 %v633_v17  ;;  %4060 = vmatpush3.msra.mxu1 %v3487_v18  ;;  %v780_v18 = vrot.slane %v4832_v27, %v6308_v10 }
 0x36b   : > { %4061 = vmatprep.subr.mxu1 %v3486_v8  ;;  %4079 = vmatprep.mubr.f32.mxu1 %v5095_v40 }
 0x36c   : > { %4062 = vmatpush3.msra.mxu1 %v3486_v8 }
 0x36d   : > { %4063 = vmatprep.subr.mxu1 %v3485_v21 }
 0x36e   : > { %4064 = vmatpush3.msra.mxu1 %v3485_v21 }
 0x36f   : > { %4065 = vmatprep.subr.mxu1 %v3484_v16 }
 0x370   : > { %4066 = vmatpush3.msra.mxu1 %v3484_v16 }
 0x371   : > { %4067 = vmatprep.subr.mxu1 %v3483_v24 }
 0x372   : > { %4068 = vmatpush3.msra.mxu1 %v3483_v24 }
 0x373   : > { %4069 = vmatprep.subr.mxu1 %v3482_v28 }
 0x374   : > { %4070 = vmatpush3.msra.mxu1 %v3482_v28 }
 0x375   : > { %4071 = vmatprep.subr.mxu1 %v3481_v29 }
 0x376   : > { %4072 = vmatpush3.msra.mxu1 %v3481_v29 }
 0x377   : > { %4073 = vmatprep.subr.mxu1 %v3480_v30 }
 0x378   : > { %4074 = vmatpush3.msra.mxu1 %v3480_v30 }
 0x379   : > { %4075 = vmatprep.subr.mxu1 %v3479_v31 }
 0x37a   : > { %4076 = vmatpush3.msra.mxu1 %v3479_v31 }
 0x37b   : > { %4077 = vmatprep.subr.mxu1 %v3478_v32 }
 0x37c   : > { %4078 = vmatpush3.msra.mxu1 %v3478_v32 }
 0x37d   : > { %4080 = vmatmul.mubr.f32.vlgmr.msra.gmra.mxu1 %v5101_v51 }
 0x37e   : > { %4082 = vmatprep.mubr.f32.mxu1 %v5104_v55  ;;  %v5205_v55 = vsel %vm1236_vm9, 1.0, %v4720_v37 }
 0x381   : > { %4083 = vmatmul.mubr.f32.gmra.mxu1 %v5118_v0 }
 0x382   : > { %4085 = vmatprep.mubr.f32.mxu1 %v5121_v2 }
 0x385   : > { %4086 = vmatmul.mubr.f32.gmra.mxu1 %v631_v62 }
 0x386   : > { %4088 = vmatprep.mubr.f32.mxu1 %v632_v11 }
 0x389   : > { %4089 = vmatmul.mubr.f32.gmra.mxu1 %v633_v17 }
 0x41b   : > { %v3993_v35 = vpop.f32.mrf.mxu1  ;;  %v5188_v40 = vpop.f32.mrf.mxu0 }
 0x41c   : > { %v5190_v41 = vadd.f32 %v3993_v35, %v654_v34 }
 0x41d   : > { %v721_v42 = vpop.f32.mrf.mxu1  ;;  %v5193_v43 = vpop.f32.mrf.mxu0 }
 0x41e   : > { %v5197_v36 = vmul.f32 %v5184_v38, %v5190_v41  ;;  %v5201_v47 = vmul.f32 %v5186_v39, %v5190_v41  ;;  %v722_v49 = vadd.f32 %v721_v42, %v654_v34  ;;  %v5355_v10 = vadd.f32 %v5193_v43, %v780_v18 }
 0x41f   : > { %v3996_v51 = vpop.f32.mrf.mxu1  ;;  %v1017_v45 = vmul.f32 %v5203_v52, %v5190_v41  ;;  %v1239_v23 = vmul.f32 %v5205_v55, %v5190_v41 }
 0x420   : > { %v5207_v46 = vadd.f32 %v3996_v51, %v654_v34  ;;  %v4040_v50 = vpop.f32.mrf.mxu0  ;;  %v1016_v57 = vmul.f32 %v5203_v52, %v722_v49  ;;  %v1238_v58 = vmul.f32 %v5205_v55, %v722_v49  ;;  %v5212_v59 = vmul.f32 %v5184_v38, %v722_v49 }
 0x421   : > { %v731_v56 = vpop.f32.mrf.mxu1  ;;  %v5221_v2 = vmul.f32 %v5186_v39, %v722_v49 }
 0x422   : > { %v5214_v63 = vadd.f32 %v731_v56, %v654_v34  ;;  %v857_v0 = vpop.f32.mrf.mxu0  ;;  %v5218_v1 = vmul.f32 %v5184_v38, %v5207_v46  ;;  %4107 = vmatprep.mubr.f32.mxu0 %v1016_v57  ;;  %4135 = vmatprep.mubr.f32.mxu1 %v1238_v58  ;;  %v5225_v54 = vmul.f32 %v5186_v39, %v5207_v46  ;;  %v6307_v56 = vsub.s32 7, %v4826_v25  ;;  %v4710_v58 = vld [vmem:[%s6304_s3] sm:$0xff] }
 0x423   : > { %v5302_v57 = vadd.f32 %v4040_v50, %v780_v18 }
 0x424   : > { %v3999_v3 = vpop.f32.mrf.mxu1  ;;  %v5229_v53 = vmul.f32 %v5184_v38, %v5214_v63  ;;  %v5233_v5 = vmul.f32 %v5186_v39, %v5214_v63  ;;  %v1018_v14 = vmul.f32 %v5203_v52, %v5214_v63 }
 0x425   : > { %v5236_v9 = vadd.f32 %v3999_v3, %v654_v34  ;;  %v4043_v62 = vpop.f32.mrf.mxu0  ;;  %v906_v3 = vrot.slane %v4710_v58, %v6307_v56 }
 0x426   : > { %v741_v61 = vpop.f32.mrf.mxu1  ;;  %v5289_v49 = vadd.f32 %v4043_v62, %v780_v18  ;;  %v5313_v62 = vadd.f32 %v857_v0, %v780_v18  ;;  %v5328_v0 = vadd.f32 %v5188_v40, %v780_v18 }
 0x427   : > { %v5238_v11 = vadd.f32 %v741_v61, %v654_v34  ;;  %v867_v13 = vpop.f32.mrf.mxu0  ;;  %v5242_v7 = vmul.f32 %v5184_v38, %v5236_v9  ;;  %v5246_v17 = vmul.f32 %v5186_v39, %v5236_v9 }
 0x428   : > { %v5295_v51 = vadd.f32 %v867_v13, %v780_v18 }
 0x429   : > { %6337 = vst [vmem:[#allocation12_spill] sm:$0xff] %v5246_v17  ;;  %v4002_v8 = vpop.f32.mrf.mxu1  ;;  %v5253_v21 = vmul.f32 %v5184_v38, %v5238_v11  ;;  %v5257_v16 = vmul.f32 %v5186_v39, %v5238_v11 }
 0x42a   : > { %v5259_v24 = vadd.f32 %v4002_v8, %v654_v34  ;;  %v4046_v28 = vpop.f32.mrf.mxu0 }
 0x42b   : > { %6338 = vst [vmem:[#allocation13_spill] sm:$0xff] %v5257_v16  ;;  %v5261_v29 = vadd.f32 %v4046_v28, %v780_v18  ;;  %v751_v30 = vpop.f32.mrf.mxu1 }
 0x42c   : > { %v5263_v31 = vadd.f32 %v751_v30, %v654_v34  ;;  %v877_v32 = vpop.f32.mrf.mxu0  ;;  %v5267_v27 = vmul.f32 %v5184_v38, %v5259_v24  ;;  %v5275_v37 = vmul.f32 %v5186_v39, %v5259_v24 }
 0x42d   : > { %v5269_v35 = vadd.f32 %v877_v32, %v780_v18  ;;  %4091 = vmatprep.subr.mxu0 %v5261_v29  ;;  %4119 = vmatprep.subr.mxu1 %v5261_v29 }
 0x42e   : > { %6339 = vst [vmem:[#allocation14_spill] sm:$0xff] %v5275_v37  ;;  %4092 = vmatpush3.xpose.msra.mxu0 %v5261_v29  ;;  %4120 = vmatpush3.xpose.msra.mxu1 %v5261_v29  ;;  %v5281_v34 = vmul.f32 %v5184_v38, %v5263_v31  ;;  %v5287_v42 = vmul.f32 %v5186_v39, %v5263_v31 }
 0x42f   : > { %4093 = vmatprep.subr.mxu0 %v5269_v35  ;;  %4121 = vmatprep.subr.mxu1 %v5269_v35 }
 0x430   : > { %6340 = vst [vmem:[#allocation15_spill] sm:$0xff] %v5287_v42 }
 0x432   : > { %4094 = vmatpush3.xpose.msra.mxu0 %v5269_v35  ;;  %4122 = vmatpush3.xpose.msra.mxu1 %v5269_v35 }
 0x433   : > { %4095 = vmatprep.subr.mxu0 %v5289_v49  ;;  %4123 = vmatprep.subr.mxu1 %v5289_v49 }
 0x436   : > { %4096 = vmatpush3.xpose.msra.mxu0 %v5289_v49  ;;  %4124 = vmatpush3.xpose.msra.mxu1 %v5289_v49 }
 0x437   : > { %4097 = vmatprep.subr.mxu0 %v5295_v51  ;;  %4125 = vmatprep.subr.mxu1 %v5295_v51 }
 0x43a   : > { %4098 = vmatpush3.xpose.msra.mxu0 %v5295_v51  ;;  %4126 = vmatpush3.xpose.msra.mxu1 %v5295_v51 }
 0x43b   : > { %4099 = vmatprep.subr.mxu0 %v5302_v57  ;;  %4127 = vmatprep.subr.mxu1 %v5302_v57 }
 0x43d   : > { %v4081_v61 = vpop.f32.mrf.mxu1 }
 0x43e   : > { %v5315_v50 = vadd.f32 %v4081_v61, %v906_v3  ;;  %4100 = vmatpush3.xpose.msra.mxu0 %v5302_v57  ;;  %4128 = vmatpush3.xpose.msra.mxu1 %v5302_v57 }
 0x43f   : > { %v973_v13 = vpop.f32.mrf.mxu1  ;;  %4101 = vmatprep.subr.mxu0 %v5313_v62  ;;  %4129 = vmatprep.subr.mxu1 %v5313_v62 }
 0x440   : > { %v5321_v8 = vadd.f32 %v973_v13, %v906_v3  ;;  %v5325_v28 = vmul.f32 %v5186_v39, %v5315_v50  ;;  %v5332_v32 = vmul.f32 %v5184_v38, %v5315_v50 }
 0x441   : > { %v4084_v30 = vpop.f32.mrf.mxu1 }
 0x442   : > { %v5334_v58 = vadd.f32 %v4084_v30, %v906_v3  ;;  %4102 = vmatpush3.xpose.msra.mxu0 %v5313_v62  ;;  %4130 = vmatpush3.xpose.msra.mxu1 %v5313_v62  ;;  %v5342_v40 = vmul.f32 %v5186_v39, %v5321_v8  ;;  %v5346_v13 = vmul.f32 %v5184_v38, %v5321_v8 }
 0x443   : > { %v983_v61 = vpop.f32.mrf.mxu1  ;;  %4103 = vmatprep.subr.mxu0 %v5328_v0  ;;  %4131 = vmatprep.subr.mxu1 %v5328_v0 }
 0x444   : > { %v5348_v56 = vadd.f32 %v983_v61, %v906_v3  ;;  %v5352_v30 = vmul.f32 %v5186_v39, %v5334_v58  ;;  %v5359_v20 = vmul.f32 %v5184_v38, %v5334_v58 }
 0x445   : > { %v4087_v33 = vpop.f32.mrf.mxu1 }
 0x446   : > { %v999_v15 = vadd.f32 %v4087_v33, %v906_v3  ;;  %4104 = vmatpush3.xpose.msra.mxu0 %v5328_v0  ;;  %4132 = vmatpush3.xpose.msra.mxu1 %v5328_v0  ;;  %v5367_v61 = vmul.f32 %v5186_v39, %v5348_v56  ;;  %v5371_v43 = vmul.f32 %v5184_v38, %v5348_v56 }
 0x447   : > { %v993_v48 = vpop.f32.mrf.mxu1  ;;  %4105 = vmatprep.subr.mxu0 %v5355_v10  ;;  %4133 = vmatprep.subr.mxu1 %v5355_v10 }
 0x448   : > { %v994_v18 = vadd.f32 %v993_v48, %v906_v3  ;;  %v5374_v33 = vmul.f32 %v5186_v39, %v999_v15  ;;  %v5377_v26 = vmul.f32 %v5184_v38, %v999_v15 }
 0x449   : > { %v4090_v44 = vpop.f32.mrf.mxu1 }
 0x44a   : > { %v5381_v22 = vadd.f32 %v4090_v44, %v906_v3  ;;  %4106 = vmatpush3.xpose.msra.mxu0 %v5355_v10  ;;  %4134 = vmatpush3.xpose.msra.mxu1 %v5355_v10  ;;  %v5390_v19 = vmul.f32 %v5186_v39, %v994_v18  ;;  %v5393_v6 = vmul.f32 %v5184_v38, %v994_v18 }
 0x44b   : > { %v1003_v48 = vpop.f32.mrf.mxu1  ;;  %v1240_v44 = vmul.f32 %v5205_v55, %v5214_v63 }
 0x44c   : > { %v1004_v12 = vadd.f32 %v1003_v48, %v906_v3  ;;  %v1454_v60 = vmul.f32 %v5205_v55, %v5381_v22  ;;  %v1233_v41 = vmul.f32 %v5203_v52, %v5381_v22  ;;  %v5403_v4 = vmul.f32 %v5186_v39, %v5381_v22 }
 0x44d   : > { %4108 = vmatmul.mubr.f32.vlgmr.msra.gmra.mxu0 %v1017_v45  ;;  %4136 = vmatmul.mubr.f32.vlgmr.msra.gmra.mxu1 %v1239_v23  ;;  %v1019_v45 = vmul.f32 %v5203_v52, %v5207_v46  ;;  %v1020_v23 = vmul.f32 %v5203_v52, %v5238_v11 }
 0x44e   : > { %4110 = vmatprep.mubr.f32.mxu0 %v1018_v14  ;;  %4138 = vmatprep.mubr.f32.mxu1 %v1240_v44  ;;  %v1453_v25 = vmul.f32 %v5205_v55, %v1004_v12  ;;  %v1232_v3 = vmul.f32 %v5203_v52, %v1004_v12  ;;  %v5408_v63 = vmul.f32 %v5186_v39, %v1004_v12 }
 0x44f   : > { %4147 = vmatprep.subr.mxu0 %v1454_v60  ;;  %4175 = vmatprep.subr.mxu1 %v1233_v41  ;;  %v5411_v48 = vmul.f32 %v5184_v38, %v1004_v12  ;;  %v1241_v14 = vmul.f32 %v5205_v55, %v5207_v46  ;;  %v1242_v39 = vmul.f32 %v5205_v55, %v5238_v11 }
 0x450   : > { %4148 = vmatpush3.msra.mxu0 %v1454_v60  ;;  %4176 = vmatpush3.msra.mxu1 %v1233_v41  ;;  %v1452_v60 = vmul.f32 %v5205_v55, %v999_v15  ;;  %v1231_v12 = vmul.f32 %v5203_v52, %v999_v15  ;;  %v1451_v46 = vmul.f32 %v5205_v55, %v994_v18 }
 0x451   : > { %4149 = vmatprep.subr.mxu0 %v1453_v25  ;;  %4177 = vmatprep.subr.mxu1 %v1232_v3  ;;  %v1230_v44 = vmul.f32 %v5203_v52, %v994_v18  ;;  %v1021_v41 = vmul.f32 %v5203_v52, %v5236_v9  ;;  %v1022_v15 = vmul.f32 %v5203_v52, %v5263_v31 }
 0x452   : > { %4111 = vmatmul.mubr.f32.gmra.mxu0 %v1019_v45  ;;  %4139 = vmatmul.mubr.f32.gmra.mxu1 %v1241_v14  ;;  %v1244_v11 = vmul.f32 %v5205_v55, %v5263_v31  ;;  %v1450_v18 = vmul.f32 %v5205_v55, %v5334_v58  ;;  %v1228_v45 = vmul.f32 %v5203_v52, %v5348_v56 }
 0x453   : > { %4150 = vmatpush3.msra.mxu0 %v1453_v25  ;;  %4178 = vmatpush3.msra.mxu1 %v1232_v3  ;;  %v1243_v25 = vmul.f32 %v5205_v55, %v5236_v9  ;;  %v1229_v3 = vmul.f32 %v5203_v52, %v5334_v58  ;;  %v1449_v9 = vmul.f32 %v5205_v55, %v5348_v56 }
 0x454   : > { %4113 = vmatprep.mubr.f32.mxu0 %v1020_v23  ;;  %4141 = vmatprep.mubr.f32.mxu1 %v1242_v39  ;;  %v1023_v31 = vmul.f32 %v5203_v52, %v5259_v24  ;;  %v1245_v14 = vmul.f32 %v5205_v55, %v5259_v24  ;;  %v1448_v58 = vmul.f32 %v5205_v55, %v5315_v50 }
 0x455   : > { %4151 = vmatprep.subr.mxu0 %v1452_v60  ;;  %4179 = vmatprep.subr.mxu1 %v1231_v12  ;;  %v1227_v23 = vmul.f32 %v5203_v52, %v5315_v50  ;;  %v1447_v56 = vmul.f32 %v5205_v55, %v5321_v8  ;;  %v1226_v24 = vmul.f32 %v5203_v52, %v5321_v8 }
 0x456   : > { %4152 = vmatpush3.msra.mxu0 %v1452_v60  ;;  %4180 = vmatpush3.msra.mxu1 %v1231_v12  ;;  %v5455_v39 = vmul.f32 %v5184_v38, %v5381_v22 }
 0x457   : > { %4153 = vmatprep.subr.mxu0 %v1451_v46  ;;  %4181 = vmatprep.subr.mxu1 %v1230_v44 }
 0x458   : > { %4114 = vmatmul.mubr.f32.gmra.mxu0 %v1021_v41  ;;  %4142 = vmatmul.mubr.f32.gmra.mxu1 %v1243_v25 }
 0x459   : > { %4154 = vmatpush3.msra.mxu0 %v1451_v46  ;;  %4182 = vmatpush3.msra.mxu1 %v1230_v44 }
 0x45a   : > { %4116 = vmatprep.mubr.f32.mxu0 %v1022_v15  ;;  %4144 = vmatprep.mubr.f32.mxu1 %v1244_v11 }
 0x45b   : > { %4155 = vmatprep.subr.mxu0 %v1450_v18  ;;  %4183 = vmatprep.subr.mxu1 %v1229_v3 }
 0x45c   : > { %4156 = vmatpush3.msra.mxu0 %v1450_v18  ;;  %4184 = vmatpush3.msra.mxu1 %v1229_v3 }
 0x45d   : > { %4157 = vmatprep.subr.mxu0 %v1449_v9  ;;  %4185 = vmatprep.subr.mxu1 %v1228_v45 }
 0x45e   : > { %4117 = vmatmul.mubr.f32.gmra.mxu0 %v1023_v31  ;;  %4145 = vmatmul.mubr.f32.gmra.mxu1 %v1245_v14 }
 0x45f   : > { %4158 = vmatpush3.msra.mxu0 %v1449_v9  ;;  %4186 = vmatpush3.msra.mxu1 %v1228_v45 }
 0x460   : > { %4159 = vmatprep.subr.mxu0 %v1448_v58  ;;  %4187 = vmatprep.subr.mxu1 %v1227_v23 }
 0x461   : > { %4160 = vmatpush3.msra.mxu0 %v1448_v58  ;;  %4188 = vmatpush3.msra.mxu1 %v1227_v23 }
 0x462   : > { %4161 = vmatprep.subr.mxu0 %v1447_v56  ;;  %4189 = vmatprep.subr.mxu1 %v1226_v24 }
 0x463   : > { %4162 = vmatpush3.msra.mxu0 %v1447_v56  ;;  %4190 = vmatpush3.msra.mxu1 %v1226_v24 }
 0x464   : > { %4203 = vmatprep.subr.mxu0 %v5261_v29  ;;  %4231 = vmatprep.subr.mxu1 %v5455_v39 }
 0x50d   : > { %v4137_v50 = vpop.f32.mrf.mxu1 }
 0x50e   : > { %v1352_v55 = vmul.f32 0.35355338, %v4137_v50 }
 0x50f   : > { %v1312_v60 = vpop.f32.mrf.mxu1 }
 0x510   : > { %v1351_v12 = vmul.f32 0.35355338, %v1312_v60  ;;  %v1362_v52 = vsel %vm1137_vm10, %v1352_v55, -inf }
 0x511   : > { %1363 = vmax.xlane.f32.xlu1 %v1362_v52 }
 0x512   : > { %v4140_v8 = vpop.f32.mrf.mxu1  ;;  %v1359_v46 = vsel %vm1137_vm10, %v1351_v12, -inf }
 0x513   : > { %v1354_v44 = vmul.f32 0.35355338, %v4140_v8  ;;  %1360 = vmax.xlane.f32.xlu0 %v1359_v46 }
 0x514   : > { %v1322_v22 = vpop.f32.mrf.mxu1 }
 0x515   : > { %v1353_v38 = vmul.f32 0.35355338, %v1322_v22  ;;  %v1368_v41 = vsel %vm1137_vm10, %v1354_v44, -inf }
 0x516   : > { %1369 = vmax.xlane.f32.xlu1 %v1368_v41 }
 0x517   : > { %v1365_v25 = vsel %vm1137_vm10, %v1353_v38, -inf }
 0x518   : > { %v4143_v15 = vpop.f32.mrf.mxu1  ;;  %1366 = vmax.xlane.f32.xlu0 %v1365_v25 }
 0x519   : > { %v1356_v11 = vmul.f32 0.35355338, %v4143_v15 }
 0x51a   : > { %v1332_v18 = vpop.f32.mrf.mxu1 }
 0x51b   : > { %v1355_v3 = vmul.f32 0.35355338, %v1332_v18  ;;  %v1374_v9 = vsel %vm1137_vm10, %v1356_v11, -inf }
 0x51c   : > { %1375 = vmax.xlane.f32.xlu1 %v1374_v9 }
 0x51d   : > { %v1371_v45 = vsel %vm1137_vm10, %v1355_v3, -inf }
 0x51e   : > { %v4146_v31 = vpop.f32.mrf.mxu1  ;;  %1372 = vmax.xlane.f32.xlu0 %v1371_v45 }
 0x51f   : > { %v1358_v14 = vmul.f32 0.35355338, %v4146_v31 }
 0x520   : > { %v1342_v58 = vpop.f32.mrf.mxu1 }
 0x521   : > { %v1357_v23 = vmul.f32 0.35355338, %v1342_v58  ;;  %v1380_v56 = vsel %vm1137_vm10, %v1358_v14, -inf }
 0x522   : > { %1381 = vmax.xlane.f32.xlu1 %v1380_v56 }
 0x523   : > { %v1377_v24 = vsel %vm1137_vm10, %v1357_v23, -inf }
 0x524   : > { %1378 = vmax.xlane.f32.xlu0 %v1377_v24 }
 0x59a   : > { %v1364_v50 = vpop.xlane.xlu1 %1363 }
 0x59b   : > { %v1384_v60 = vsub.f32 %v1352_v55, %v1364_v50 }
 0x59c   : > { %v1361_v52 = vpop.xlane.xlu0 %1360 }
 0x59d   : > { %v1393_v8 = vmul.f32 1.442695, %v1384_v60  ;;  %v1383_v46 = vsub.f32 %v1351_v12, %v1361_v52 }
 0x59f   : > { %4534 = vpow2.f32 %v1393_v8  ;;  %v1391_v22 = vmul.f32 1.442695, %v1383_v46  ;;  %v1370_v41 = vpop.xlane.xlu1 %1369 }
 0x5a0   : > { %v1386_v25 = vsub.f32 %v1354_v44, %v1370_v41  ;;  %v4109_v44 = vpop.f32.mrf.mxu0 }
 0x5a1   : > { %4536 = vpow2.f32 %v1391_v22  ;;  %v1367_v15 = vpop.xlane.xlu0 %1366 }
 0x5a2   : > { %v1397_v18 = vmul.f32 1.442695, %v1386_v25  ;;  %v1385_v9 = vsub.f32 %v1353_v38, %v1367_v15  ;;  %v1090_v41 = vpop.f32.mrf.mxu0 }
 0x5a4   : > { %4538 = vpow2.f32 %v1397_v18  ;;  %v1395_v45 = vmul.f32 1.442695, %v1385_v9  ;;  %v4112_v15 = vpop.f32.mrf.mxu0 }
 0x5a5   : > { %v1376_v31 = vpop.xlane.xlu1 %1375 }
 0x5a6   : > { %4540 = vpow2.f32 %v1395_v45  ;;  %v1388_v58 = vsub.f32 %v1356_v11, %v1376_v31  ;;  %v1100_v31 = vpop.f32.mrf.mxu0 }
 0x5a7   : > { %v1373_v56 = vpop.xlane.xlu0 %1372 }
 0x5a8   : > { %v1401_v24 = vmul.f32 1.442695, %v1388_v58  ;;  %v1387_v37 = vsub.f32 %v1355_v3, %v1373_v56 }
 0x5aa   : > { %4542 = vpow2.f32 %v1401_v24  ;;  %v1399_v55 = vmul.f32 1.442695, %v1387_v37  ;;  %v4115_v24 = vpop.f32.mrf.mxu0 }
 0x5ab   : > { %v1382_v50 = vpop.xlane.xlu1 %1381 }
 0x5ac   : > { %v5467_v12 = vpop.eup %4534  ;;  %4544 = vpow2.f32 %v1399_v55  ;;  %v1390_v60 = vsub.f32 %v1358_v14, %v1382_v50  ;;  %v5493_v55 = vmul.f32 0.35355338, %v4109_v44  ;;  %v5507_v44 = vmul.f32 0.35355338, %v1100_v31 }
 0x5ad   : > { %v1379_v52 = vpop.xlane.xlu0 %1378  ;;  %v1410_v38 = vsel %vm1137_vm10, %v5467_v12, 0.0 }
 0x5ae   : > { %v5471_v8 = vpop.eup %4536  ;;  %v1405_v46 = vmul.f32 1.442695, %v1390_v60  ;;  %v1389_v22 = vsub.f32 %v1357_v23, %v1379_v52  ;;  %1411 = vadd.xlane.f32.xlu1 %v1410_v38  ;;  %v5499_v52 = vmul.f32 0.35355338, %v1090_v41  ;;  %v5511_v41 = vmul.f32 0.35355338, %v4115_v24 }
 0x5af   : > { %v1407_v11 = vsel %vm1137_vm10, %v5471_v8, 0.0 }
 0x5b0   : > { %4546 = vpow2.f32 %v1405_v46  ;;  %v1403_v37 = vmul.f32 1.442695, %v1389_v22  ;;  %1408 = vadd.xlane.f32.xlu0 %v1407_v11  ;;  %v1110_v46 = vpop.f32.mrf.mxu0  ;;  %v5503_v22 = vmul.f32 0.35355338, %v4112_v15  ;;  %v1141_v11 = vsel %vm1137_vm10, %v5493_v55, -inf }
 0x5b1   : > { %v5475_v3 = vpop.eup %4538  ;;  %v1144_v15 = vsel %vm1137_vm10, %v5507_v44, -inf }
 0x5b2   : > { %4548 = vpow2.f32 %v1403_v37  ;;  %v1416_v14 = vsel %vm1137_vm10, %v5475_v3, 0.0  ;;  %v1138_v37 = vsel %vm1137_vm10, %v5499_v52, -inf }
 0x5b3   : > { %v5479_v25 = vpop.eup %4540  ;;  %1417 = vadd.xlane.f32.xlu1 %v1416_v14  ;;  %v4118_v14 = vpop.f32.mrf.mxu0 }
 0x5b4   : > { %v1413_v23 = vsel %vm1137_vm10, %v5479_v25, 0.0  ;;  %v5519_v31 = vmul.f32 0.35355338, %v4118_v14 }
 0x5b5   : > { %1414 = vadd.xlane.f32.xlu0 %v1413_v23  ;;  %v1147_v23 = vsel %vm1137_vm10, %v5503_v22, -inf }
 0x5b7   : > { %v5483_v18 = vpop.eup %4542 }
 0x5b8   : > { %v1422_v9 = vsel %vm1137_vm10, %v5483_v18, 0.0 }
 0x5b9   : > { %v5487_v45 = vpop.eup %4544  ;;  %1423 = vadd.xlane.f32.xlu1 %v1422_v9  ;;  %v5515_v9 = vmul.f32 0.35355338, %v1110_v46  ;;  %v1159_v46 = vsel %vm1137_vm10, %v5519_v31, -inf }
 0x5ba   : > { %v1419_v58 = vsel %vm1137_vm10, %v5487_v45, 0.0 }
 0x5bb   : > { %1420 = vadd.xlane.f32.xlu0 %v1419_v58  ;;  %v1120_v58 = vpop.f32.mrf.mxu0  ;;  %v1150_v24 = vsel %vm1137_vm10, %v5515_v9, -inf }
 0x5bd   : > { %v5491_v56 = vpop.eup %4546 }
 0x5be   : > { %v1428_v50 = vsel %vm1137_vm10, %v5491_v56, 0.0 }
 0x5bf   : > { %v5497_v60 = vpop.eup %4548  ;;  %1429 = vadd.xlane.f32.xlu1 %v1428_v50  ;;  %v1153_v50 = vsel %vm1137_vm10, %v5511_v41, -inf }
 0x5c0   : > { %v1425_v38 = vsel %vm1137_vm10, %v5497_v60, 0.0 }
 0x5c1   : > { %1426 = vadd.xlane.f32.xlu0 %v1425_v38  ;;  %v5523_v38 = vmul.f32 0.35355338, %v1120_v58 }
 0x5c3   : > { %1142 = vmax.xlane.f32.xlu1 %v1141_v11  ;;  %v1156_v11 = vsel %vm1137_vm10, %v5523_v38, -inf }
 0x5c5   : > { %1139 = vmax.xlane.f32.xlu0 %v1138_v37 }
 0x5c7   : > { %1148 = vmax.xlane.f32.xlu1 %v1147_v23 }
 0x5c9   : > { %1145 = vmax.xlane.f32.xlu0 %v1144_v15 }
 0x5cb   : > { %1154 = vmax.xlane.f32.xlu1 %v1153_v50 }
 0x5cd   : > { %1151 = vmax.xlane.f32.xlu0 %v1150_v24 }
 0x5cf   : > { %1160 = vmax.xlane.f32.xlu1 %v1159_v46 }
 0x5d1   : > { %1157 = vmax.xlane.f32.xlu0 %v1156_v11 }
 0x637   : > { %v1412_v37 = vpop.xlane.xlu1 %1411 }
 0x638   : > { %4550 = vrcp.f32 %v1412_v37 }
 0x639   : > { %v1409_v14 = vpop.xlane.xlu0 %1408 }
 0x63a   : > { %4552 = vrcp.f32 %v1409_v14 }
 0x63c   : > { %v1418_v23 = vpop.xlane.xlu1 %1417 }
 0x63d   : > { %4554 = vrcp.f32 %v1418_v23 }
 0x63e   : > { %v1415_v15 = vpop.xlane.xlu0 %1414 }
 0x63f   : > { %4556 = vrcp.f32 %v1415_v15 }
 0x642   : > { %v1424_v58 = vpop.xlane.xlu1 %1423 }
 0x643   : > { %4558 = vrcp.f32 %v1424_v58 }
 0x644   : > { %v1421_v50 = vpop.xlane.xlu0 %1420 }
 0x645   : > { %4560 = vrcp.f32 %v1421_v50  ;;  %v4551_v24 = vpop.eup %4550 }
 0x646   : > { %v1440_v16 = vmul.f32 %v4551_v24, %v5467_v12 }
 0x647   : > { %v4553_v42 = vpop.eup %4552 }
 0x648   : > { %v1430_v17 = vpop.xlane.xlu1 %1429  ;;  %v1439_v46 = vmul.f32 %v4553_v42, %v5471_v8 }
 0x649   : > { %4562 = vrcp.f32 %v1430_v17 }
 0x64a   : > { %v1427_v11 = vpop.xlane.xlu0 %1426  ;;  %4163 = vmatprep.mubr.msk.f32.mxu0 %vm1137_vm10, %v1439_v46  ;;  %v4555_v37 = vpop.eup %4554 }
 0x64b   : > { %4564 = vrcp.f32 %v1427_v11  ;;  %4164 = vmatmul.mubr.msk.f32.vlgmr.msra.gmra.mxu0 %vm1137_vm10, %v1440_v16  ;;  %v1442_v15 = vmul.f32 %v4555_v37, %v5475_v3 }
 0x64c   : > { %v4557_v14 = vpop.eup %4556  ;;  %4204 = vmatpush3.xpose.msra.mxu0 %v5261_v29 }
 0x64d   : > { %4205 = vmatprep.subr.mxu0 %v5269_v35  ;;  %v1441_v23 = vmul.f32 %v4557_v14, %v5479_v25 }
 0x64f   : > { %4166 = vmatprep.mubr.msk.f32.mxu0 %vm1137_vm10, %v1441_v23 }
 0x650   : > { %4167 = vmatmul.mubr.msk.f32.gmra.mxu0 %vm1137_vm10, %v1442_v15  ;;  %v4559_v17 = vpop.eup %4558 }
 0x651   : > { %4206 = vmatpush3.xpose.msra.mxu0 %v5269_v35  ;;  %v1444_v12 = vmul.f32 %v4559_v17, %v5483_v18 }
 0x652   : > { %v4561_v42 = vpop.eup %4560  ;;  %4207 = vmatprep.subr.mxu0 %v5289_v49 }
 0x653   : > { %v1443_v16 = vmul.f32 %v4561_v42, %v5487_v45 }
 0x655   : > { %4169 = vmatprep.mubr.msk.f32.mxu0 %vm1137_vm10, %v1443_v16  ;;  %4208 = vmatpush3.xpose.msra.mxu0 %v5289_v49 }
 0x656   : > { %4170 = vmatmul.mubr.msk.f32.gmra.mxu0 %vm1137_vm10, %v1444_v12  ;;  %4209 = vmatprep.subr.mxu0 %v5295_v51  ;;  %v4563_v8 = vpop.eup %4562 }
 0x657   : > { %v1446_v58 = vmul.f32 %v4563_v8, %v5491_v56 }
 0x658   : > { %v4565_v3 = vpop.eup %4564 }
 0x659   : > { %v1445_v25 = vmul.f32 %v4565_v3, %v5497_v60  ;;  %4210 = vmatpush3.xpose.msra.mxu0 %v5295_v51 }
 0x65a   : > { %4211 = vmatprep.subr.mxu0 %v5302_v57 }
 0x65b   : > { %4172 = vmatprep.mubr.msk.f32.mxu0 %vm1137_vm10, %v1445_v25 }
 0x65c   : > { %4173 = vmatmul.mubr.msk.f32.gmra.mxu0 %vm1137_vm10, %v1446_v58 }
 0x65d   : > { %4219 = vmatprep.mubr.f32.mxu0 %v5212_v59  ;;  %4212 = vmatpush3.xpose.msra.mxu0 %v5302_v57 }
 0x65e   : > { %4213 = vmatprep.subr.mxu0 %v5313_v62 }
 0x661   : > { %4214 = vmatpush3.xpose.msra.mxu0 %v5313_v62 }
 0x662   : > { %4215 = vmatprep.subr.mxu0 %v5328_v0 }
 0x665   : > { %4216 = vmatpush3.xpose.msra.mxu0 %v5328_v0 }
 0x666   : > { %4217 = vmatprep.subr.mxu0 %v5355_v10 }
 0x669   : > { %4218 = vmatpush3.xpose.msra.mxu0 %v5355_v10 }
 0x66a   : > { %4287 = vmatprep.subr.mxu0 %v5403_v4 }
 0x66c   : > { %4220 = vmatmul.mubr.f32.vlgmr.msra.gmra.mxu0 %v5197_v36 }
 0x66d   : > { %4222 = vmatprep.mubr.f32.mxu0 %v5229_v53  ;;  %4288 = vmatpush3.msra.mxu0 %v5403_v4 }
 0x66e   : > { %4289 = vmatprep.subr.mxu0 %v5408_v63 }
 0x66f   : > { %4290 = vmatpush3.msra.mxu0 %v5408_v63 }
 0x670   : > { %4223 = vmatmul.mubr.f32.gmra.mxu0 %v5218_v1  ;;  %4291 = vmatprep.subr.mxu0 %v5374_v33  ;;  %v1143_v1 = vpop.xlane.xlu1 %1142 }
 0x671   : > { %4225 = vmatprep.mubr.f32.mxu0 %v5253_v21  ;;  %4292 = vmatpush3.msra.mxu0 %v5374_v33 }
 0x672   : > { %4293 = vmatprep.subr.mxu0 %v5390_v19 }
 0x673   : > { %4294 = vmatpush3.msra.mxu0 %v5390_v19 }
 0x674   : > { %4226 = vmatmul.mubr.f32.gmra.mxu0 %v5242_v7  ;;  %4295 = vmatprep.subr.mxu0 %v5352_v30  ;;  %v1140_v7 = vpop.xlane.xlu0 %1139 }
 0x675   : > { %4228 = vmatprep.mubr.f32.mxu0 %v5281_v34  ;;  %4296 = vmatpush3.msra.mxu0 %v5352_v30  ;;  %v1162_v30 = vsub.f32 %v5499_v52, %v1140_v7 }
 0x676   : > { %4297 = vmatprep.subr.mxu0 %v5367_v61 }
 0x677   : > { %4298 = vmatpush3.msra.mxu0 %v5367_v61  ;;  %v1170_v50 = vmul.f32 1.442695, %v1162_v30 }
 0x678   : > { %4229 = vmatmul.mubr.f32.gmra.mxu0 %v5267_v27  ;;  %4299 = vmatprep.subr.mxu0 %v5325_v28  ;;  %v1149_v27 = vpop.xlane.xlu1 %1148  ;;  %v1146_v34 = vpop.xlane.xlu0 %1145 }
 0x679   : > { %4300 = vmatpush3.msra.mxu0 %v5325_v28  ;;  %v1165_v61 = vsub.f32 %v5503_v22, %v1149_v27  ;;  %v1164_v45 = vsub.f32 %v5507_v44, %v1146_v34 }
 0x67a   : > { %4301 = vmatprep.subr.mxu0 %v5342_v40 }
 0x67b   : > { %4302 = vmatpush3.msra.mxu0 %v5342_v40  ;;  %v1163_v40 = vsub.f32 %v5493_v55, %v1143_v1  ;;  %v1176_v46 = vmul.f32 1.442695, %v1165_v61  ;;  %v1174_v22 = vmul.f32 1.442695, %v1164_v45 }
 0x67c   : > { %v1155_v33 = vpop.xlane.xlu1 %1154  ;;  %v1152_v56 = vpop.xlane.xlu0 %1151 }
 0x67d   : > { %v1172_v18 = vmul.f32 1.442695, %v1163_v40  ;;  %v1167_v55 = vsub.f32 %v5511_v41, %v1155_v33  ;;  %v1166_v44 = vsub.f32 %v5515_v9, %v1152_v56 }
 0x67f   : > { %4566 = vpow2.f32 %v1172_v18  ;;  %v1180_v16 = vmul.f32 1.442695, %v1167_v55  ;;  %v1178_v25 = vmul.f32 1.442695, %v1166_v44 }
 0x680   : > { %v1161_v14 = vpop.xlane.xlu1 %1160  ;;  %4568 = vpow2.f32 %v1170_v50  ;;  %v1158_v42 = vpop.xlane.xlu0 %1157 }
 0x681   : > { %4570 = vpow2.f32 %v1176_v46  ;;  %v1169_v12 = vsub.f32 %v5519_v31, %v1161_v14  ;;  %v1168_v58 = vsub.f32 %v5523_v38, %v1158_v42 }
 0x682   : > { %4572 = vpow2.f32 %v1174_v22 }
 0x683   : > { %4574 = vpow2.f32 %v1180_v16  ;;  %v1184_v31 = vmul.f32 1.442695, %v1169_v12  ;;  %v1182_v61 = vmul.f32 1.442695, %v1168_v58 }
 0x684   : > { %4576 = vpow2.f32 %v1178_v25 }
 0x685   : > { %4578 = vpow2.f32 %v1184_v31 }
 0x686   : > { %4580 = vpow2.f32 %v1182_v61 }
 0x70b   : > { %v5586_v4 = vpop.f32.mrf.mxu0 }
 0x70d   : > { %v5588_v19 = vpop.f32.mrf.mxu0 }
 0x710   : > { %v5590_v36 = vpop.f32.mrf.mxu0 }
 0x712   : > { %v5592_v59 = vpop.f32.mrf.mxu0 }
 0x716   : > { %v5594_v53 = vpop.f32.mrf.mxu0 }
 0x718   : > { %v5596_v21 = vpop.f32.mrf.mxu0 }
 0x71c   : > { %v5598_v28 = vpop.f32.mrf.mxu0 }
 0x71e   : > { %v5603_v63 = vpop.f32.mrf.mxu0 }
 0x72c   : > { %v4221_v60 = vpop.f32.mrf.mxu0 }
 0x72d   : > { %v5606_v24 = vmul.f32 0.35355338, %v4221_v60  ;;  %v5635_v60 = vpop.eup %4566 }
 0x72e   : > { %v1791_v11 = vpop.f32.mrf.mxu0  ;;  %v5638_v46 = vpop.eup %4568  ;;  %v1189_v55 = vsel %vm1137_vm10, %v5635_v60, 0.0 }
 0x72f   : > { %v5609_v37 = vmul.f32 0.35355338, %v1791_v11  ;;  %v1841_v52 = vsel %vm1137_vm10, %v5606_v24, -inf  ;;  %v5640_v11 = vpop.eup %4570  ;;  %v1186_v22 = vsel %vm1137_vm10, %v5638_v46, 0.0 }
 0x730   : > { %1842 = vmax.xlane.f32.xlu1 %v1841_v52  ;;  %v4224_v23 = vpop.f32.mrf.mxu0  ;;  %v5644_v52 = vpop.eup %4572  ;;  %v1195_v14 = vsel %vm1137_vm10, %v5640_v11, 0.0 }
 0x731   : > { %v5614_v15 = vmul.f32 0.35355338, %v4224_v23  ;;  %v1838_v17 = vsel %vm1137_vm10, %v5609_v37, -inf  ;;  %v5650_v23 = vpop.eup %4574  ;;  %v1192_v44 = vsel %vm1137_vm10, %v5644_v52, 0.0 }
 0x732   : > { %v1801_v41 = vpop.f32.mrf.mxu0  ;;  %1839 = vmax.xlane.f32.xlu0 %v1838_v17  ;;  %v5654_v17 = vpop.eup %4576  ;;  %v1201_v42 = vsel %vm1137_vm10, %v5650_v23, 0.0 }
 0x733   : > { %v5619_v8 = vmul.f32 0.35355338, %v1801_v41  ;;  %v1847_v3 = vsel %vm1137_vm10, %v5614_v15, -inf  ;;  %v5658_v41 = vpop.eup %4578  ;;  %v1198_v16 = vsel %vm1137_vm10, %v5654_v17, 0.0 }
 0x734   : > { %1848 = vmax.xlane.f32.xlu1 %v1847_v3  ;;  %v4227_v9 = vpop.f32.mrf.mxu0  ;;  %v5662_v12 = vpop.eup %4580  ;;  %v1207_v3 = vsel %vm1137_vm10, %v5658_v41, 0.0 }
 0x735   : > { %v5624_v1 = vmul.f32 0.35355338, %v4227_v9  ;;  %v1844_v7 = vsel %vm1137_vm10, %v5619_v8, -inf  ;;  %v1204_v9 = vsel %vm1137_vm10, %v5662_v12, 0.0 }
 0x736   : > { %v1811_v27 = vpop.f32.mrf.mxu0  ;;  %1845 = vmax.xlane.f32.xlu0 %v1844_v7 }
 0x737   : > { %v5628_v34 = vmul.f32 0.35355338, %v1811_v27  ;;  %v1853_v40 = vsel %vm1137_vm10, %v5624_v1, -inf }
 0x738   : > { %1854 = vmax.xlane.f32.xlu1 %v1853_v40  ;;  %v4230_v30 = vpop.f32.mrf.mxu0 }
 0x739   : > { %v1837_v33 = vmul.f32 0.35355338, %v4230_v30  ;;  %v1850_v38 = vsel %vm1137_vm10, %v5628_v34, -inf }
 0x73a   : > { %v1821_v18 = vpop.f32.mrf.mxu0  ;;  %1851 = vmax.xlane.f32.xlu0 %v1850_v38 }
 0x73b   : > { %v1836_v45 = vmul.f32 0.35355338, %v1821_v18  ;;  %v1859_v56 = vsel %vm1137_vm10, %v1837_v33, -inf }
 0x73c   : > { %1860 = vmax.xlane.f32.xlu1 %v1859_v56 }
 0x73d   : > { %v1856_v50 = vsel %vm1137_vm10, %v1836_v45, -inf }
 0x73e   : > { %1857 = vmax.xlane.f32.xlu0 %v1856_v50 }
 0x740   : > { %1190 = vadd.xlane.f32.xlu1 %v1189_v55 }
 0x742   : > { %1187 = vadd.xlane.f32.xlu0 %v1186_v22 }
 0x744   : > { %1196 = vadd.xlane.f32.xlu1 %v1195_v14 }
 0x746   : > { %1193 = vadd.xlane.f32.xlu0 %v1192_v44 }
 0x748   : > { %1202 = vadd.xlane.f32.xlu1 %v1201_v42 }
 0x74a   : > { %1199 = vadd.xlane.f32.xlu0 %v1198_v16 }
 0x74c   : > { %1208 = vadd.xlane.f32.xlu1 %v1207_v3 }
 0x74e   : > { %1205 = vadd.xlane.f32.xlu0 %v1204_v9 }
 0x7b9   : > { %v1843_v25 = vpop.xlane.xlu1 %1842 }
 0x7ba   : > { %v1863_v58 = vsub.f32 %v5606_v24, %v1843_v25 }
 0x7bb   : > { %v1840_v7 = vpop.xlane.xlu0 %1839 }
 0x7bc   : > { %v1872_v27 = vmul.f32 1.442695, %v1863_v58  ;;  %v1862_v31 = vsub.f32 %v5609_v37, %v1840_v7 }
 0x7bd   : > { %v1849_v40 = vpop.xlane.xlu1 %1848 }
 0x7be   : > { %4582 = vpow2.f32 %v1872_v27  ;;  %v1870_v30 = vmul.f32 1.442695, %v1862_v31  ;;  %v1865_v61 = vsub.f32 %v5614_v15, %v1849_v40 }
 0x7bf   : > { %v1846_v38 = vpop.xlane.xlu0 %1845 }
 0x7c0   : > { %4584 = vpow2.f32 %v1870_v30  ;;  %v1876_v18 = vmul.f32 1.442695, %v1865_v61  ;;  %v1864_v56 = vsub.f32 %v5619_v8, %v1846_v38 }
 0x7c1   : > { %v1855_v50 = vpop.xlane.xlu1 %1854 }
 0x7c2   : > { %4586 = vpow2.f32 %v1876_v18  ;;  %v1874_v55 = vmul.f32 1.442695, %v1864_v56  ;;  %v1867_v22 = vsub.f32 %v5624_v1, %v1855_v50 }
 0x7c3   : > { %v1852_v24 = vpop.xlane.xlu0 %1851 }
 0x7c4   : > { %4588 = vpow2.f32 %v1874_v55  ;;  %v1880_v14 = vmul.f32 1.442695, %v1867_v22  ;;  %v1866_v37 = vsub.f32 %v5628_v34, %v1852_v24 }
 0x7c5   : > { %v1861_v44 = vpop.xlane.xlu1 %1860 }
 0x7c6   : > { %4590 = vpow2.f32 %v1880_v14  ;;  %v1878_v42 = vmul.f32 1.442695, %v1866_v37  ;;  %v1869_v16 = vsub.f32 %v1837_v33, %v1861_v44 }
 0x7c7   : > { %v1858_v15 = vpop.xlane.xlu0 %1857 }
 0x7c8   : > { %4592 = vpow2.f32 %v1878_v42  ;;  %v1884_v3 = vmul.f32 1.442695, %v1869_v16  ;;  %v1868_v9 = vsub.f32 %v1836_v45, %v1858_v15 }
 0x7c9   : > { %v1191_v25 = vpop.xlane.xlu1 %1190 }
 0x7ca   : > { %4594 = vpow2.f32 %v1884_v3  ;;  %v1882_v8 = vmul.f32 1.442695, %v1868_v9 }
 0x7cb   : > { %v5674_v58 = vpop.eup %4582  ;;  %4596 = vrcp.f32 %v1191_v25  ;;  %v1188_v1 = vpop.xlane.xlu0 %1187 }
 0x7cc   : > { %4598 = vpow2.f32 %v1882_v8  ;;  %v1889_v7 = vsel %vm1137_vm10, %v5674_v58, 0.0 }
 0x7cd   : > { %v5678_v34 = vpop.eup %4584  ;;  %4600 = vrcp.f32 %v1188_v1  ;;  %1890 = vadd.xlane.f32.xlu1 %v1889_v7  ;;  %v1197_v33 = vpop.xlane.xlu1 %1196 }
 0x7ce   : > { %v1886_v27 = vsel %vm1137_vm10, %v5678_v34, 0.0  ;;  %4602 = vrcp.f32 %v1197_v33 }
 0x7cf   : > { %v5682_v45 = vpop.eup %4586  ;;  %1887 = vadd.xlane.f32.xlu0 %v1886_v27  ;;  %v1194_v31 = vpop.xlane.xlu0 %1193 }
 0x7d0   : > { %4604 = vrcp.f32 %v1194_v31  ;;  %v1895_v40 = vsel %vm1137_vm10, %v5682_v45, 0.0 }
 0x7d1   : > { %v5686_v30 = vpop.eup %4588  ;;  %1896 = vadd.xlane.f32.xlu1 %v1895_v40  ;;  %v1203_v61 = vpop.xlane.xlu1 %1202 }
 0x7d2   : > { %v1892_v38 = vsel %vm1137_vm10, %v5686_v30, 0.0  ;;  %4606 = vrcp.f32 %v1203_v61 }
 0x7d3   : > { %v5690_v18 = vpop.eup %4590  ;;  %1893 = vadd.xlane.f32.xlu0 %v1892_v38  ;;  %v1200_v56 = vpop.xlane.xlu0 %1199 }
 0x7d4   : > { %4608 = vrcp.f32 %v1200_v56  ;;  %v1901_v50 = vsel %vm1137_vm10, %v5690_v18, 0.0 }
 0x7d5   : > { %v5694_v55 = vpop.eup %4592  ;;  %1902 = vadd.xlane.f32.xlu1 %v1901_v50  ;;  %v1209_v22 = vpop.xlane.xlu1 %1208 }
 0x7d6   : > { %v1898_v24 = vsel %vm1137_vm10, %v5694_v55, 0.0  ;;  %4610 = vrcp.f32 %v1209_v22 }
 0x7d7   : > { %v5698_v14 = vpop.eup %4594  ;;  %1899 = vadd.xlane.f32.xlu0 %v1898_v24  ;;  %v1206_v37 = vpop.xlane.xlu0 %1205 }
 0x7d8   : > { %v4597_v44 = vpop.eup %4596  ;;  %4612 = vrcp.f32 %v1206_v37  ;;  %v1907_v42 = vsel %vm1137_vm10, %v5698_v14, 0.0 }
 0x7d9   : > { %v5702_v16 = vpop.eup %4598  ;;  %1908 = vadd.xlane.f32.xlu1 %v1907_v42  ;;  %v1219_v8 = vmul.f32 %v4597_v44, %v5635_v60 }
 0x7da   : > { %v4601_v15 = vpop.eup %4600  ;;  %v1904_v3 = vsel %vm1137_vm10, %v5702_v16, 0.0 }
 0x7db   : > { %1905 = vadd.xlane.f32.xlu0 %v1904_v3  ;;  %v1218_v9 = vmul.f32 %v4601_v15, %v5638_v46  ;;  %v4603_v25 = vpop.eup %4602 }
 0x7dc   : > { %v1221_v27 = vmul.f32 %v4603_v25, %v5640_v11 }
 0x7dd   : > { %v4605_v1 = vpop.eup %4604  ;;  %4191 = vmatprep.mubr.msk.f32.mxu1 %vm1137_vm10, %v1218_v9 }
 0x7de   : > { %4192 = vmatmul.mubr.msk.f32.vlgmr.msra.gmra.mxu1 %vm1137_vm10, %v1219_v8  ;;  %v1220_v7 = vmul.f32 %v4605_v1, %v5644_v52 }
 0x7df   : > { %4232 = vmatpush3.msra.mxu1 %v5455_v39  ;;  %v4607_v33 = vpop.eup %4606 }
 0x7e0   : > { %4233 = vmatprep.subr.mxu1 %v5411_v48  ;;  %4194 = vmatprep.mubr.msk.f32.mxu1 %vm1137_vm10, %v1220_v7  ;;  %v1223_v39 = vmul.f32 %v4607_v33, %v5650_v23 }
 0x7e1   : > { %v4609_v46 = vpop.eup %4608  ;;  %4234 = vmatpush3.msra.mxu1 %v5411_v48 }
 0x7e2   : > { %4235 = vmatprep.subr.mxu1 %v5377_v26  ;;  %4195 = vmatmul.mubr.msk.f32.gmra.mxu1 %vm1137_vm10, %v1221_v27  ;;  %v1222_v60 = vmul.f32 %v4609_v46, %v5654_v17 }
 0x7e3   : > { %4236 = vmatpush3.msra.mxu1 %v5377_v26  ;;  %v4611_v52 = vpop.eup %4610 }
 0x7e4   : > { %4237 = vmatprep.subr.mxu1 %v5393_v6  ;;  %4197 = vmatprep.mubr.msk.f32.mxu1 %vm1137_vm10, %v1222_v60  ;;  %v1225_v26 = vmul.f32 %v4611_v52, %v5658_v41 }
 0x7e5   : > { %v4613_v31 = vpop.eup %4612  ;;  %4238 = vmatpush3.msra.mxu1 %v5393_v6 }
 0x7e6   : > { %4239 = vmatprep.subr.mxu1 %v5359_v20  ;;  %4198 = vmatmul.mubr.msk.f32.gmra.mxu1 %vm1137_vm10, %v1223_v39  ;;  %v1224_v48 = vmul.f32 %v4613_v31, %v5662_v12 }
 0x7e7   : > { %4240 = vmatpush3.msra.mxu1 %v5359_v20 }
 0x7e8   : > { %4241 = vmatprep.subr.mxu1 %v5371_v43  ;;  %4200 = vmatprep.mubr.msk.f32.mxu1 %vm1137_vm10, %v1224_v48 }
 0x7e9   : > { %4242 = vmatpush3.msra.mxu1 %v5371_v43 }
 0x7ea   : > { %4243 = vmatprep.subr.mxu1 %v5332_v32  ;;  %4201 = vmatmul.mubr.msk.f32.gmra.mxu1 %vm1137_vm10, %v1225_v26 }
 0x7eb   : > { %4244 = vmatpush3.msra.mxu1 %v5332_v32 }
 0x7ec   : > { %4245 = vmatprep.subr.mxu1 %v5346_v13 }
 0x7ed   : > { %4246 = vmatpush3.msra.mxu1 %v5346_v13 }
 0x7ee   : > { %4259 = vmatprep.subr.mxu1 %v5261_v29 }
 0x856   : > { %v1891_v6 = vpop.xlane.xlu1 %1890 }
 0x857   : > { %4614 = vrcp.f32 %v1891_v6 }
 0x858   : > { %v1888_v20 = vpop.xlane.xlu0 %1887 }
 0x859   : > { %4616 = vrcp.f32 %v1888_v20 }
 0x85a   : > { %v1897_v11 = vpop.xlane.xlu1 %1896 }
 0x85b   : > { %4618 = vrcp.f32 %v1897_v11 }
 0x85c   : > { %v1894_v23 = vpop.xlane.xlu0 %1893 }
 0x85d   : > { %4620 = vrcp.f32 %v1894_v23 }
 0x85e   : > { %v1903_v43 = vpop.xlane.xlu1 %1902 }
 0x85f   : > { %4622 = vrcp.f32 %v1903_v43 }
 0x860   : > { %v1900_v17 = vpop.xlane.xlu0 %1899 }
 0x861   : > { %4624 = vrcp.f32 %v1900_v17 }
 0x862   : > { %v1909_v41 = vpop.xlane.xlu1 %1908 }
 0x863   : > { %4626 = vrcp.f32 %v1909_v41 }
 0x864   : > { %v1906_v32 = vpop.xlane.xlu0 %1905  ;;  %v4615_v12 = vpop.eup %4614 }
 0x865   : > { %4628 = vrcp.f32 %v1906_v32  ;;  %v1919_v61 = vmul.f32 %v4615_v12, %v5674_v58 }
 0x866   : > { %v4617_v13 = vpop.eup %4616 }
 0x867   : > { %v1918_v40 = vmul.f32 %v4617_v13, %v5678_v34 }
 0x868   : > { %v4619_v38 = vpop.eup %4618 }
 0x869   : > { %4247 = vmatprep.mubr.msk.f32.mxu1 %vm1137_vm10, %v1918_v40  ;;  %v1921_v22 = vmul.f32 %v4619_v38, %v5682_v45 }
 0x86a   : > { %v4621_v56 = vpop.eup %4620  ;;  %4248 = vmatmul.mubr.msk.f32.vlgmr.msra.gmra.mxu1 %vm1137_vm10, %v1919_v61 }
 0x86b   : > { %4260 = vmatpush3.xpose.msra.mxu1 %v5261_v29  ;;  %v1920_v50 = vmul.f32 %v4621_v56, %v5686_v30 }
 0x86c   : > { %4261 = vmatprep.subr.mxu1 %v5269_v35  ;;  %v4623_v24 = vpop.eup %4622 }
 0x86d   : > { %4250 = vmatprep.mubr.msk.f32.mxu1 %vm1137_vm10, %v1920_v50  ;;  %v1923_v29 = vmul.f32 %v4623_v24, %v5690_v18 }
 0x86e   : > { %v4625_v34 = vpop.eup %4624  ;;  %4251 = vmatmul.mubr.msk.f32.gmra.mxu1 %vm1137_vm10, %v1921_v22 }
 0x86f   : > { %4262 = vmatpush3.xpose.msra.mxu1 %v5269_v35  ;;  %v1922_v58 = vmul.f32 %v4625_v34, %v5694_v55 }
 0x870   : > { %4263 = vmatprep.subr.mxu1 %v5289_v49  ;;  %v4627_v37 = vpop.eup %4626 }
 0x871   : > { %4253 = vmatprep.mubr.msk.f32.mxu1 %vm1137_vm10, %v1922_v58  ;;  %v1925_v35 = vmul.f32 %v4627_v37, %v5698_v14 }
 0x872   : > { %v4629_v30 = vpop.eup %4628  ;;  %4254 = vmatmul.mubr.msk.f32.gmra.mxu1 %vm1137_vm10, %v1923_v29 }
 0x873   : > { %4264 = vmatpush3.xpose.msra.mxu1 %v5289_v49  ;;  %v1924_v45 = vmul.f32 %v4629_v30, %v5702_v16  ;;  %v6342_v49 = vld [vmem:[#allocation12_spill] sm:$0xff] }
 0x874   : > { %4265 = vmatprep.subr.mxu1 %v5295_v51 }
 0x875   : > { %4256 = vmatprep.mubr.msk.f32.mxu1 %vm1137_vm10, %v1924_v45 }
 0x876   : > { %4257 = vmatmul.mubr.msk.f32.gmra.mxu1 %vm1137_vm10, %v1925_v35 }
 0x877   : > { %4266 = vmatpush3.xpose.msra.mxu1 %v5295_v51  ;;  %4275 = vmatprep.mubr.f32.mxu1 %v5221_v2  ;;  %v6341_v2 = vld [vmem:[#allocation13_spill] sm:$0xff]  ;;  %v6343_v51 = vld [vmem:[#allocation15_spill] sm:$0xff] }
 0x878   : > { %4267 = vmatprep.subr.mxu1 %v5302_v57 }
 0x87b   : > { %4268 = vmatpush3.xpose.msra.mxu1 %v5302_v57  ;;  %v6344_v57 = vld [vmem:[#allocation14_spill] sm:$0xff] }
 0x87c   : > { %4269 = vmatprep.subr.mxu1 %v5313_v62 }
 0x87f   : > { %4270 = vmatpush3.xpose.msra.mxu1 %v5313_v62 }
 0x880   : > { %4271 = vmatprep.subr.mxu1 %v5328_v0 }
 0x883   : > { %4272 = vmatpush3.xpose.msra.mxu1 %v5328_v0 }
 0x884   : > { %4273 = vmatprep.subr.mxu1 %v5355_v10 }
 0x887   : > { %4274 = vmatpush3.xpose.msra.mxu1 %v5355_v10 }
 0x88a   : > { %4276 = vmatmul.mubr.f32.vlgmr.msra.gmra.mxu1 %v5201_v47 }
 0x88b   : > { %4278 = vmatprep.mubr.f32.mxu1 %v5233_v5 }
 0x88e   : > { %4279 = vmatmul.mubr.f32.gmra.mxu1 %v5225_v54 }
 0x88f   : > { %4281 = vmatprep.mubr.f32.mxu1 %v6341_v2 }
 0x892   : > { %4282 = vmatmul.mubr.f32.gmra.mxu1 %v6342_v49 }
 0x893   : > { %4284 = vmatprep.mubr.f32.mxu1 %v6343_v51 }
 0x896   : > { %4285 = vmatmul.mubr.f32.gmra.mxu1 %v6344_v57 }
 0x89e   : > { %v4193_v62 = vpop.f32.mrf.mxu1 }
 0x89f   : > { %v1680_v5 = vadd.f32 %v4193_v62, %v5586_v4 }
 0x8a0   : > { %v1674_v0 = vpop.f32.mrf.mxu1 }
 0x8a1   : > { %v1675_v42 = vadd.f32 %v1674_v0, %v5588_v19 }
 0x8a2   : > { %v4196_v18 = vpop.f32.mrf.mxu1 }
 0x8a3   : > { %v1690_v3 = vadd.f32 %v4196_v18, %v5590_v36 }
 0x8a4   : > { %v1684_v55 = vpop.f32.mrf.mxu1 }
 0x8a5   : > { %v1685_v8 = vadd.f32 %v1684_v55, %v5592_v59 }
 0x8a6   : > { %v4199_v14 = vpop.f32.mrf.mxu1 }
 0x8a7   : > { %v1700_v33 = vadd.f32 %v4199_v14, %v5594_v53 }
 0x8a8   : > { %v1694_v10 = vpop.f32.mrf.mxu1 }
 0x8a9   : > { %v1695_v19 = vadd.f32 %v1694_v10, %v5596_v21 }
 0x8aa   : > { %v4202_v44 = vpop.f32.mrf.mxu1 }
 0x8ab   : > { %v1710_v36 = vadd.f32 %v4202_v44, %v5598_v28 }
 0x8ac   : > { %v5777_v47 = vpop.f32.mrf.mxu1 }
 0x92a   : > { %v4249_v54 = vpop.f32.mrf.mxu1 }
 0x92b   : > { %v5781_v16 = vadd.f32 %v4249_v54, %v1680_v5 }
 0x92c   : > { %v2024_v15 = vpop.f32.mrf.mxu1 }
 0x92d   : > { %v5784_v9 = vadd.f32 %v2024_v15, %v1675_v42 }
 0x92e   : > { %v4252_v25 = vpop.f32.mrf.mxu1 }
 0x92f   : > { %v5787_v1 = vadd.f32 %v4252_v25, %v1690_v3 }
 0x930   : > { %v2034_v7 = vpop.f32.mrf.mxu1 }
 0x931   : > { %v5790_v27 = vadd.f32 %v2034_v7, %v1685_v8 }
 0x932   : > { %v4255_v4 = vpop.f32.mrf.mxu1 }
 0x933   : > { %v5793_v46 = vadd.f32 %v4255_v4, %v1700_v33 }
 0x934   : > { %v2044_v60 = vpop.f32.mrf.mxu1 }
 0x935   : > { %v5796_v52 = vadd.f32 %v2044_v60, %v1695_v19 }
 0x936   : > { %v4258_v39 = vpop.f32.mrf.mxu1 }
 0x937   : > { %v5798_v31 = vadd.f32 %v4258_v39, %v1710_v36 }
 0x938   : > { %v5800_v59 = vpop.f32.mrf.mxu1 }
 0x94a   : > { %v4277_v48 = vpop.f32.mrf.mxu1 }
 0x94b   : > { %v2188_v26 = vmul.f32 0.35355338, %v4277_v48 }
 0x94c   : > { %v2148_v53 = vpop.f32.mrf.mxu1 }
 0x94d   : > { %v2187_v6 = vmul.f32 0.35355338, %v2148_v53  ;;  %v2198_v20 = vsel %vm1137_vm10, %v2188_v26, -inf }
 0x94e   : > { %2199 = vmax.xlane.f32.xlu1 %v2198_v20  ;;  %v4280_v21 = vpop.f32.mrf.mxu1 }
 0x94f   : > { %v2190_v11 = vmul.f32 0.35355338, %v4280_v21  ;;  %v2195_v23 = vsel %vm1137_vm10, %v2187_v6, -inf }
 0x950   : > { %2196 = vmax.xlane.f32.xlu0 %v2195_v23  ;;  %v2158_v28 = vpop.f32.mrf.mxu1 }
 0x951   : > { %v2189_v43 = vmul.f32 0.35355338, %v2158_v28  ;;  %v2204_v17 = vsel %vm1137_vm10, %v2190_v11, -inf }
 0x952   : > { %2205 = vmax.xlane.f32.xlu1 %v2204_v17  ;;  %v4283_v41 = vpop.f32.mrf.mxu1  ;;  %v3541_v17 = vld [vmem:[%s6303_s2 + $0x278] sm:$0xff] }
 0x953   : > { %v2192_v32 = vmul.f32 0.35355338, %v4283_v41  ;;  %v2201_v12 = vsel %vm1137_vm10, %v2189_v43, -inf  ;;  %4315 = vmatprep.subr.mxu0 %v3541_v17 }
 0x954   : > { %2202 = vmax.xlane.f32.xlu0 %v2201_v12  ;;  %v2168_v13 = vpop.f32.mrf.mxu1 }
 0x955   : > { %v2191_v40 = vmul.f32 0.35355338, %v2168_v13  ;;  %v2210_v61 = vsel %vm1137_vm10, %v2192_v32, -inf }
 0x956   : > { %2211 = vmax.xlane.f32.xlu1 %v2210_v61  ;;  %v4286_v38 = vpop.f32.mrf.mxu1 }
 0x957   : > { %v2194_v56 = vmul.f32 0.35355338, %v4286_v38  ;;  %v2207_v50 = vsel %vm1137_vm10, %v2191_v40, -inf }
 0x958   : > { %2208 = vmax.xlane.f32.xlu0 %v2207_v50  ;;  %v2178_v22 = vpop.f32.mrf.mxu1 }
 0x959   : > { %v2193_v24 = vmul.f32 0.35355338, %v2178_v22  ;;  %v2216_v34 = vsel %vm1137_vm10, %v2194_v56, -inf }
 0x95a   : > { %2217 = vmax.xlane.f32.xlu1 %v2216_v34 }
 0x95b   : > { %v2213_v58 = vsel %vm1137_vm10, %v2193_v24, -inf }
 0x95c   : > { %2214 = vmax.xlane.f32.xlu0 %v2213_v58 }
 0x9d7   : > { %v2200_v29 = vpop.xlane.xlu1 %2199 }
 0x9d8   : > { %v2220_v37 = vsub.f32 %v2188_v26, %v2200_v29  ;;  %v3540_v29 = vld [vmem:[%s6303_s2 + $0x270] sm:$0xff] }
 0x9d9   : > { %v2197_v30 = vpop.xlane.xlu0 %2196 }
 0x9da   : > { %v2229_v45 = vmul.f32 1.442695, %v2220_v37  ;;  %v2219_v35 = vsub.f32 %v2187_v6, %v2197_v30 }
 0x9db   : > { %v2206_v2 = vpop.xlane.xlu1 %2205 }
 0x9dc   : > { %4630 = vpow2.f32 %v2229_v45  ;;  %v2227_v49 = vmul.f32 1.442695, %v2219_v35  ;;  %v2222_v51 = vsub.f32 %v2190_v11, %v2206_v2  ;;  %v3539_v45 = vld [vmem:[%s6303_s2 + $0x268] sm:$0xff] }
 0x9dd   : > { %v2203_v57 = vpop.xlane.xlu0 %2202 }
 0x9de   : > { %4632 = vpow2.f32 %v2227_v49  ;;  %v2233_v62 = vmul.f32 1.442695, %v2222_v51  ;;  %v2221_v0 = vsub.f32 %v2189_v43, %v2203_v57  ;;  %v3538_v49 = vld [vmem:[%s6303_s2 + $0x260] sm:$0xff] }
 0x9df   : > { %v2212_v18 = vpop.xlane.xlu1 %2211 }
 0x9e0   : > { %4634 = vpow2.f32 %v2233_v62  ;;  %v2231_v55 = vmul.f32 1.442695, %v2221_v0  ;;  %v2224_v14 = vsub.f32 %v2192_v32, %v2212_v18  ;;  %v3537_v62 = vld [vmem:[%s6303_s2 + $0x258] sm:$0xff] }
 0x9e1   : > { %v2209_v10 = vpop.xlane.xlu0 %2208 }
 0x9e2   : > { %4636 = vpow2.f32 %v2231_v55  ;;  %v2237_v44 = vmul.f32 1.442695, %v2224_v14  ;;  %v2223_v5 = vsub.f32 %v2191_v40, %v2209_v10  ;;  %v3536_v55 = vld [vmem:[%s6303_s2 + $0x250] sm:$0xff] }
 0x9e3   : > { %v2218_v54 = vpop.xlane.xlu1 %2217 }
 0x9e4   : > { %4638 = vpow2.f32 %v2237_v44  ;;  %v2235_v42 = vmul.f32 1.442695, %v2223_v5  ;;  %v2226_v15 = vsub.f32 %v2194_v56, %v2218_v54  ;;  %v3535_v44 = vld [vmem:[%s6303_s2 + $0x248] sm:$0xff]  ;;  %v3534_v54 = vld [vmem:[%s6303_s2 + $0x240] sm:$0xff] }
 0x9e5   : > { %v2215_v3 = vpop.xlane.xlu0 %2214 }
 0x9e6   : > { %4640 = vpow2.f32 %v2235_v42  ;;  %v2241_v25 = vmul.f32 1.442695, %v2226_v15  ;;  %v2225_v8 = vsub.f32 %v2193_v24, %v2215_v3  ;;  %v3533_v42 = vld [vmem:[%s6303_s2 + $0x238] sm:$0xff]  ;;  %v3532_v15 = vld [vmem:[%s6303_s2 + $0x230] sm:$0xff]  ;;  %v3531_v3 = vld [vmem:[%s6303_s2 + $0x228] sm:$0xff] }
 0x9e8   : > { %4642 = vpow2.f32 %v2241_v25  ;;  %v2239_v7 = vmul.f32 1.442695, %v2225_v8  ;;  %v3530_v25 = vld [vmem:[%s6303_s2 + $0x220] sm:$0xff]  ;;  %v3529_v8 = vld [vmem:[%s6303_s2 + $0x218] sm:$0xff] }
 0x9e9   : > { %v4631_v33 = vpop.eup %4630 }
 0x9ea   : > { %4644 = vpow2.f32 %v2239_v7  ;;  %v2246_v4 = vsel %vm1137_vm10, %v4631_v33, 0.0  ;;  %v3528_v7 = vld [vmem:[%s6303_s2 + $0x210] sm:$0xff] }
 0x9eb   : > { %v4633_v19 = vpop.eup %4632  ;;  %2247 = vadd.xlane.f32.xlu1 %v2246_v4  ;;  %v3526_v4 = vld [vmem:[%s6303_s2 + $0x200] sm:$0xff] }
 0x9ec   : > { %v2243_v60 = vsel %vm1137_vm10, %v4633_v19, 0.0 }
 0x9ed   : > { %v4635_v36 = vpop.eup %4634  ;;  %2244 = vadd.xlane.f32.xlu0 %v2243_v60 }
 0x9ee   : > { %v2252_v39 = vsel %vm1137_vm10, %v4635_v36, 0.0 }
 0x9ef   : > { %v4637_v48 = vpop.eup %4636  ;;  %2253 = vadd.xlane.f32.xlu1 %v2252_v39 }
 0x9f0   : > { %v2249_v26 = vsel %vm1137_vm10, %v4637_v48, 0.0 }
 0x9f1   : > { %v4639_v53 = vpop.eup %4638  ;;  %2250 = vadd.xlane.f32.xlu0 %v2249_v26 }
 0x9f2   : > { %v2258_v6 = vsel %vm1137_vm10, %v4639_v53, 0.0 }
 0x9f3   : > { %v4641_v20 = vpop.eup %4640  ;;  %2259 = vadd.xlane.f32.xlu1 %v2258_v6 }
 0x9f4   : > { %v2255_v21 = vsel %vm1137_vm10, %v4641_v20, 0.0 }
 0x9f5   : > { %v4643_v11 = vpop.eup %4642  ;;  %2256 = vadd.xlane.f32.xlu0 %v2255_v21 }
 0x9f6   : > { %v2264_v23 = vsel %vm1137_vm10, %v4643_v11, 0.0 }
 0x9f7   : > { %v4645_v28 = vpop.eup %4644  ;;  %2265 = vadd.xlane.f32.xlu1 %v2264_v23 }
 0x9f8   : > { %v2261_v43 = vsel %vm1137_vm10, %v4645_v28, 0.0 }
 0x9f9   : > { %2262 = vadd.xlane.f32.xlu0 %v2261_v43 }
 0xa74   : > { %v2248_v41 = vpop.xlane.xlu1 %2247 }
 0xa75   : > { %4646 = vrcp.f32 %v2248_v41  ;;  %v6347_v41 = vld [vmem:[#allocation5_spill] sm:$0xff] }
 0xa76   : > { %v2245_v32 = vpop.xlane.xlu0 %2244 }
 0xa77   : > { %4648 = vrcp.f32 %v2245_v32 }
 0xa78   : > { %v2254_v12 = vpop.xlane.xlu1 %2253 }
 0xa79   : > { %4650 = vrcp.f32 %v2254_v12 }
 0xa7a   : > { %v2251_v13 = vpop.xlane.xlu0 %2250 }
 0xa7b   : > { %4652 = vrcp.f32 %v2251_v13  ;;  %v6348_v13 = vld [vmem:[#allocation4_spill] sm:$0xff] }
 0xa7c   : > { %v2260_v40 = vpop.xlane.xlu1 %2259 }
 0xa7d   : > { %4654 = vrcp.f32 %v2260_v40 }
 0xa7e   : > { %v2257_v61 = vpop.xlane.xlu0 %2256 }
 0xa7f   : > { %4656 = vrcp.f32 %v2257_v61 }
 0xa80   : > { %v2266_v38 = vpop.xlane.xlu1 %2265 }
 0xa81   : > { %4658 = vrcp.f32 %v2266_v38  ;;  %v6349_v38 = vld [vmem:[#allocation7_spill] sm:$0xff] }
 0xa82   : > { %v2263_v56 = vpop.xlane.xlu0 %2262  ;;  %v4647_v50 = vpop.eup %4646 }
 0xa83   : > { %4660 = vrcp.f32 %v2263_v56  ;;  %v2276_v34 = vmul.f32 %v4647_v50, %v4631_v33  ;;  %v3527_v33 = vld [vmem:[%s6303_s2 + $0x208] sm:$0xff] }
 0xa84   : > { %v4649_v22 = vpop.eup %4648 }
 0xa85   : > { %v2275_v24 = vmul.f32 %v4649_v22, %v4633_v19 }
 0xa86   : > { %v4651_v58 = vpop.eup %4650 }
 0xa87   : > { %4303 = vmatprep.mubr.msk.f32.mxu0 %vm1137_vm10, %v2275_v24  ;;  %v2278_v35 = vmul.f32 %v4651_v58, %v4635_v36  ;;  %v6350_v24 = vld [vmem:[#allocation6_spill] sm:$0xff] }
 0xa88   : > { %v4653_v37 = vpop.eup %4652  ;;  %4304 = vmatmul.mubr.msk.f32.vlgmr.msra.gmra.mxu0 %vm1137_vm10, %v2276_v34 }
 0xa89   : > { %v2277_v30 = vmul.f32 %v4653_v37, %v4637_v48  ;;  %4316 = vmatpush3.msra.mxu0 %v3541_v17  ;;  %v5887_v17 = vld [vmem:[%s6304_s3 + $0x8] sm:$0xff]  ;;  %v6351_v37 = vld [vmem:[#allocation9_spill] sm:$0xff] }
 0xa8a   : > { %4317 = vmatprep.subr.mxu0 %v3540_v29  ;;  %v4655_v2 = vpop.eup %4654 }
 0xa8b   : > { %4306 = vmatprep.mubr.msk.f32.mxu0 %vm1137_vm10, %v2277_v30  ;;  %4318 = vmatpush3.msra.mxu0 %v3540_v29  ;;  %v2280_v0 = vmul.f32 %v4655_v2, %v4639_v53  ;;  %v6352_v2 = vld [vmem:[#allocation8_spill] sm:$0xff] }
 0xa8c   : > { %v4657_v51 = vpop.eup %4656  ;;  %4307 = vmatmul.mubr.msk.f32.gmra.mxu0 %vm1137_vm10, %v2278_v35  ;;  %4319 = vmatprep.subr.mxu0 %v3539_v45 }
 0xa8d   : > { %v2279_v57 = vmul.f32 %v4657_v51, %v4641_v20  ;;  %4320 = vmatpush3.msra.mxu0 %v3539_v45 }
 0xa8e   : > { %4321 = vmatprep.subr.mxu0 %v3538_v49  ;;  %v4659_v18 = vpop.eup %4658 }
 0xa8f   : > { %4309 = vmatprep.mubr.msk.f32.mxu0 %vm1137_vm10, %v2279_v57  ;;  %4322 = vmatpush3.msra.mxu0 %v3538_v49  ;;  %v2282_v5 = vmul.f32 %v4659_v18, %v4643_v11  ;;  %v1705_v11 = vadd.f32 %v5777_v47, %v5603_v63  ;;  %v6345_v63 = vld [vmem:[#allocation2_spill] sm:$0xff] }
 0xa90   : > { %v4661_v14 = vpop.eup %4660  ;;  %4310 = vmatmul.mubr.msk.f32.gmra.mxu0 %vm1137_vm10, %v2280_v0  ;;  %4323 = vmatprep.subr.mxu0 %v3537_v62  ;;  %v6346_v47 = vsub.s32 0, %v6345_v63 }
 0xa91   : > { %v2281_v10 = vmul.f32 %v4661_v14, %v4645_v28  ;;  %4324 = vmatpush3.msra.mxu0 %v3537_v62  ;;  %v2069_v28 = vadd.f32 %v5800_v59, %v1705_v11  ;;  %v6353_v62 = vld [vmem:[#allocation11_spill] sm:$0xff]  ;;  %v6354_v14 = vld [vmem:[#allocation10_spill] sm:$0xff] }
 0xa92   : > { %4325 = vmatprep.subr.mxu0 %v3536_v55 }
 0xa93   : > { %4312 = vmatprep.mubr.msk.f32.mxu0 %vm1137_vm10, %v2281_v10  ;;  %4326 = vmatpush3.msra.mxu0 %v3536_v55 }
 0xa94   : > { %4313 = vmatmul.mubr.msk.f32.gmra.mxu0 %vm1137_vm10, %v2282_v5  ;;  %4327 = vmatprep.subr.mxu0 %v3535_v44  ;;  %v3557_v5 = vld [vmem:[%s6303_s2 + $0x2f8] sm:$0xff] }
 0xa95   : > { %4328 = vmatpush3.msra.mxu0 %v3535_v44  ;;  %4359 = vmatprep.subr.mxu1 %v3557_v5 }
 0xa96   : > { %4329 = vmatprep.subr.mxu0 %v3534_v54  ;;  %4360 = vmatpush3.msra.mxu1 %v3557_v5  ;;  %v3544_v5 = vld [vmem:[%s6303_s2 + $0x290] sm:$0xff] }
 0xa97   : > { %4330 = vmatpush3.msra.mxu0 %v3534_v54  ;;  %v3556_v54 = vld [vmem:[%s6303_s2 + $0x2f0] sm:$0xff] }
 0xa98   : > { %4331 = vmatprep.subr.mxu0 %v3533_v42  ;;  %4361 = vmatprep.subr.mxu1 %v3556_v54 }
 0xa99   : > { %4332 = vmatpush3.msra.mxu0 %v3533_v42  ;;  %v3555_v42 = vld [vmem:[%s6303_s2 + $0x2e8] sm:$0xff]  ;;  %4362 = vmatpush3.msra.mxu1 %v3556_v54 }
 0xa9a   : > { %4333 = vmatprep.subr.mxu0 %v3532_v15  ;;  %4363 = vmatprep.subr.mxu1 %v3555_v42  ;;  %v3543_v54 = vld [vmem:[%s6303_s2 + $0x288] sm:$0xff] }
 0xa9b   : > { %4334 = vmatpush3.msra.mxu0 %v3532_v15  ;;  %4364 = vmatpush3.msra.mxu1 %v3555_v42  ;;  %v3542_v42 = vld [vmem:[%s6303_s2 + $0x280] sm:$0xff] }
 0xa9c   : > { %4335 = vmatprep.subr.mxu0 %v3531_v3 }
 0xa9d   : > { %4336 = vmatpush3.msra.mxu0 %v3531_v3 }
 0xa9e   : > { %4337 = vmatprep.subr.mxu0 %v3530_v25 }
 0xa9f   : > { %4338 = vmatpush3.msra.mxu0 %v3530_v25 }
 0xaa0   : > { %4339 = vmatprep.subr.mxu0 %v3529_v8 }
 0xaa1   : > { %4340 = vmatpush3.msra.mxu0 %v3529_v8 }
 0xaa2   : > { %4341 = vmatprep.subr.mxu0 %v3528_v7 }
 0xaa3   : > { %4342 = vmatpush3.msra.mxu0 %v3528_v7 }
 0xaa4   : > { %4343 = vmatprep.subr.mxu0 %v3527_v33 }
 0xaa5   : > { %4344 = vmatpush3.msra.mxu0 %v3527_v33 }
 0xaa6   : > { %4345 = vmatprep.subr.mxu0 %v3526_v4 }
 0xaa7   : > { %4346 = vmatpush3.msra.mxu0 %v3526_v4  ;;  %v3584_v4 = vld [vmem:[%s6303_s2 + $0x3d0] sm:$0xff] }
 0xb48   : > { %v4305_v19 = vpop.f32.mrf.mxu0 }
 0xb49   : > { %v2421_v39 = vadd.f32 %v4305_v19, %v5781_v16 }
 0xb4a   : > { %v2381_v60 = vpop.f32.mrf.mxu0 }
 0xb4b   : > { %v2420_v36 = vadd.f32 %v2381_v60, %v5784_v9 }
 0xb4c   : > { %v4308_v48 = vpop.f32.mrf.mxu0 }
 0xb4d   : > { %4347 = vmatprep.mubr.f32.mxu0 %v2420_v36  ;;  %v2423_v6 = vadd.f32 %v4308_v48, %v5787_v1 }
 0xb4e   : > { %v2391_v26 = vpop.f32.mrf.mxu0  ;;  %4348 = vmatmul.mubr.f32.vlgmr.msra.gmra.mxu0 %v2421_v39 }
 0xb4f   : > { %v2422_v53 = vadd.f32 %v2391_v26, %v5790_v27 }
 0xb50   : > { %v4311_v20 = vpop.f32.mrf.mxu0 }
 0xb51   : > { %4350 = vmatprep.mubr.f32.mxu0 %v2422_v53  ;;  %v2425_v9 = vadd.f32 %v4311_v20, %v5793_v46  ;;  %v2561_v46 = vrot.slane %v5887_v17, %v6346_v47 }
 0xb52   : > { %v2401_v21 = vpop.f32.mrf.mxu0  ;;  %4351 = vmatmul.mubr.f32.gmra.mxu0 %v2423_v6 }
 0xb53   : > { %v2424_v23 = vadd.f32 %v2401_v21, %v5796_v52 }
 0xb54   : > { %v4314_v16 = vpop.f32.mrf.mxu0 }
 0xb55   : > { %4353 = vmatprep.mubr.f32.mxu0 %v2424_v23  ;;  %v2427_v1 = vadd.f32 %v4314_v16, %v5798_v31 }
 0xb56   : > { %v2411_v43 = vpop.f32.mrf.mxu0  ;;  %4354 = vmatmul.mubr.f32.gmra.mxu0 %v2425_v9 }
 0xb57   : > { %v2426_v27 = vadd.f32 %v2411_v43, %v2069_v28 }
 0xb59   : > { %4356 = vmatprep.mubr.f32.mxu0 %v2426_v27 }
 0xb5a   : > { %4357 = vmatmul.mubr.f32.gmra.mxu0 %v2427_v1 }
 0xc0e   : > { %v4349_v52 = vpop.f32.mrf.mxu0 }
 0xc0f   : > { %v2551_v59 = vadd.f32 %v4349_v52, %v6347_v41 }
 0xc10   : > { %v2511_v32 = vpop.f32.mrf.mxu0 }
 0xc11   : > { %v5893_v12 = vadd.f32 %v2561_v46, %v2551_v59  ;;  %v2550_v40 = vadd.f32 %v2511_v32, %v6348_v13 }
 0xc12   : > { %v4352_v31 = vpop.f32.mrf.mxu0 }
 0xc13   : > { %v5896_v61 = vadd.f32 %v2561_v46, %v2550_v40  ;;  %v2553_v56 = vadd.f32 %v4352_v31, %v6349_v38  ;;  %2572 = vadd.xlane.f32.xlu1 %v5893_v12 }
 0xc14   : > { %v2521_v50 = vpop.f32.mrf.mxu0 }
 0xc15   : > { %v5900_v22 = vadd.f32 %v2561_v46, %v2553_v56  ;;  %v2552_v34 = vadd.f32 %v2521_v50, %v6350_v24  ;;  %2570 = vadd.xlane.f32.xlu0 %v5896_v61 }
 0xc16   : > { %v4355_v58 = vpop.f32.mrf.mxu0 }
 0xc17   : > { %v5904_v29 = vadd.f32 %v2561_v46, %v2552_v34  ;;  %v2555_v30 = vadd.f32 %v4355_v58, %v6351_v37  ;;  %2576 = vadd.xlane.f32.xlu1 %v5900_v22 }
 0xc18   : > { %v2531_v45 = vpop.f32.mrf.mxu0 }
 0xc19   : > { %v5908_v35 = vadd.f32 %v2561_v46, %v2555_v30  ;;  %v2554_v49 = vadd.f32 %v2531_v45, %v6352_v2  ;;  %2574 = vadd.xlane.f32.xlu0 %v5904_v29  ;;  %v3554_v30 = vld [vmem:[%s6303_s2 + $0x2e0] sm:$0xff]  ;;  %v3553_v45 = vld [vmem:[%s6303_s2 + $0x2d8] sm:$0xff]  ;;  %v3552_v2 = vld [vmem:[%s6303_s2 + $0x2d0] sm:$0xff] }
 0xc1a   : > { %v4358_v51 = vpop.f32.mrf.mxu0  ;;  %4365 = vmatprep.subr.mxu1 %v3554_v30 }
 0xc1b   : > { %v5912_v57 = vadd.f32 %v2561_v46, %v2554_v49  ;;  %v2557_v0 = vadd.f32 %v4358_v51, %v6353_v62  ;;  %2580 = vadd.xlane.f32.xlu1 %v5908_v35  ;;  %4366 = vmatpush3.msra.mxu1 %v3554_v30  ;;  %v3551_v49 = vld [vmem:[%s6303_s2 + $0x2c8] sm:$0xff]  ;;  %v3550_v51 = vld [vmem:[%s6303_s2 + $0x2c0] sm:$0xff]  ;;  %v3549_v62 = vld [vmem:[%s6303_s2 + $0x2b8] sm:$0xff] }
 0xc1c   : > { %v2541_v18 = vpop.f32.mrf.mxu0  ;;  %4367 = vmatprep.subr.mxu1 %v3553_v45 }
 0xc1d   : > { %v5916_v55 = vadd.f32 %v2561_v46, %v2557_v0  ;;  %v2556_v10 = vadd.f32 %v2541_v18, %v6354_v14  ;;  %2578 = vadd.xlane.f32.xlu0 %v5912_v57  ;;  %4368 = vmatpush3.msra.mxu1 %v3553_v45  ;;  %v3548_v0 = vld [vmem:[%s6303_s2 + $0x2b0] sm:$0xff]  ;;  %v3547_v18 = vld [vmem:[%s6303_s2 + $0x2a8] sm:$0xff]  ;;  %v3546_v14 = vld [vmem:[%s6303_s2 + $0x2a0] sm:$0xff] }
 0xc1e   : > { %4369 = vmatprep.subr.mxu1 %v3552_v2 }
 0xc1f   : > { %v5920_v44 = vadd.f32 %v2561_v46, %v2556_v10  ;;  %2584 = vadd.xlane.f32.xlu1 %v5916_v55  ;;  %4370 = vmatpush3.msra.mxu1 %v3552_v2  ;;  %v3545_v10 = vld [vmem:[%s6303_s2 + $0x298] sm:$0xff] }
 0xc20   : > { %4371 = vmatprep.subr.mxu1 %v3551_v49 }
 0xc21   : > { %2582 = vadd.xlane.f32.xlu0 %v5920_v44  ;;  %4372 = vmatpush3.msra.mxu1 %v3551_v49 }
 0xc22   : > { %4373 = vmatprep.subr.mxu1 %v3550_v51 }
 0xc23   : > { %4374 = vmatpush3.msra.mxu1 %v3550_v51 }
 0xc24   : > { %4375 = vmatprep.subr.mxu1 %v3549_v62 }
 0xc25   : > { %4376 = vmatpush3.msra.mxu1 %v3549_v62 }
 0xc26   : > { %4377 = vmatprep.subr.mxu1 %v3548_v0 }
 0xc27   : > { %4378 = vmatpush3.msra.mxu1 %v3548_v0 }
 0xc28   : > { %4379 = vmatprep.subr.mxu1 %v3547_v18 }
 0xc29   : > { %4380 = vmatpush3.msra.mxu1 %v3547_v18 }
 0xc2a   : > { %4381 = vmatprep.subr.mxu1 %v3546_v14 }
 0xc2b   : > { %4382 = vmatpush3.msra.mxu1 %v3546_v14 }
 0xc2c   : > { %4383 = vmatprep.subr.mxu1 %v3545_v10 }
 0xc2d   : > { %4384 = vmatpush3.msra.mxu1 %v3545_v10 }
 0xc2e   : > { %4385 = vmatprep.subr.mxu1 %v3544_v5 }
 0xc2f   : > { %4386 = vmatpush3.msra.mxu1 %v3544_v5 }
 0xc30   : > { %4387 = vmatprep.subr.mxu1 %v3543_v54 }
 0xc31   : > { %4388 = vmatpush3.msra.mxu1 %v3543_v54 }
 0xc32   : > { %4389 = vmatprep.subr.mxu1 %v3542_v42 }
 0xc33   : > { %4390 = vmatpush3.msra.mxu1 %v3542_v42 }
 0xc9c   : > { %v2573_v15 = vpop.xlane.xlu1 %2572 }
 0xc9d   : > { %v2587_v3 = vmul.f32 0.03125, %v2573_v15 }
 0xc9e   : > { %v2571_v25 = vpop.xlane.xlu0 %2570 }
 0xc9f   : > { %v2595_v8 = vsub.f32 %v5893_v12, %v2587_v3  ;;  %v2586_v7 = vmul.f32 0.03125, %v2571_v25 }
 0xca0   : > { %v2577_v33 = vpop.xlane.xlu1 %2576 }
 0xca1   : > { %v5936_v19 = vsel %vm266_vm0, %v2595_v8, 0.0  ;;  %v2594_v60 = vsub.f32 %v5896_v61, %v2586_v7  ;;  %v2589_v36 = vmul.f32 0.03125, %v2577_v33 }
 0xca2   : > { %v2575_v39 = vpop.xlane.xlu0 %2574  ;;  %v2611_v48 = vmul.f32 %v5936_v19, %v5936_v19 }
 0xca3   : > { %v5943_v26 = vsel %vm266_vm0, %v2594_v60, 0.0  ;;  %v2597_v53 = vsub.f32 %v5900_v22, %v2589_v36  ;;  %v2588_v6 = vmul.f32 0.03125, %v2575_v39 }
 0xca4   : > { %v2581_v20 = vpop.xlane.xlu1 %2580  ;;  %2620 = vadd.xlane.f32.xlu1 %v2611_v48  ;;  %v2610_v21 = vmul.f32 %v5943_v26, %v5943_v26 }
 0xca5   : > { %v5950_v11 = vsel %vm266_vm0, %v2597_v53, 0.0  ;;  %v2596_v23 = vsub.f32 %v5904_v29, %v2588_v6  ;;  %v2591_v9 = vmul.f32 0.03125, %v2581_v20 }
 0xca6   : > { %v2579_v16 = vpop.xlane.xlu0 %2578  ;;  %2618 = vadd.xlane.f32.xlu0 %v2610_v21  ;;  %v2613_v28 = vmul.f32 %v5950_v11, %v5950_v11 }
 0xca7   : > { %v5957_v43 = vsel %vm266_vm0, %v2596_v23, 0.0  ;;  %v2599_v27 = vsub.f32 %v5908_v35, %v2591_v9  ;;  %v2590_v1 = vmul.f32 0.03125, %v2579_v16 }
 0xca8   : > { %2624 = vadd.xlane.f32.xlu1 %v2613_v28  ;;  %v2585_v47 = vpop.xlane.xlu1 %2584  ;;  %v2612_v46 = vmul.f32 %v5957_v43, %v5957_v43 }
 0xca9   : > { %v5964_v52 = vsel %vm266_vm0, %v2599_v27, 0.0  ;;  %v2598_v41 = vsub.f32 %v5912_v57, %v2590_v1  ;;  %v2593_v59 = vmul.f32 0.03125, %v2585_v47 }
 0xcaa   : > { %2622 = vadd.xlane.f32.xlu0 %v2612_v46  ;;  %v2583_v32 = vpop.xlane.xlu0 %2582  ;;  %v2615_v13 = vmul.f32 %v5964_v52, %v5964_v52 }
 0xcab   : > { %v5971_v40 = vsel %vm266_vm0, %v2598_v41, 0.0  ;;  %v2601_v31 = vsub.f32 %v5916_v55, %v2593_v59  ;;  %v2592_v38 = vmul.f32 0.03125, %v2583_v32 }
 0xcac   : > { %2628 = vadd.xlane.f32.xlu1 %v2615_v13  ;;  %v2614_v56 = vmul.f32 %v5971_v40, %v5971_v40  ;;  %v6356_v13 = vsub.s32 1, %v6345_v63 }
 0xcad   : > { %v5978_v50 = vsel %vm266_vm0, %v2601_v31, 0.0  ;;  %v2600_v24 = vsub.f32 %v5920_v44, %v2592_v38 }
 0xcae   : > { %2626 = vadd.xlane.f32.xlu0 %v2614_v56  ;;  %v2617_v34 = vmul.f32 %v5978_v50, %v5978_v50  ;;  %v2669_v31 = vrot.slane %v5887_v17, %v6356_v13 }
 0xcaf   : > { %v5985_v58 = vsel %vm266_vm0, %v2600_v24, 0.0 }
 0xcb0   : > { %2632 = vadd.xlane.f32.xlu1 %v2617_v34  ;;  %v2616_v37 = vmul.f32 %v5985_v58, %v5985_v58 }
 0xcb2   : > { %2630 = vadd.xlane.f32.xlu0 %v2616_v37  ;;  %v6357_v37 = vsub.s32 2, %v6345_v63 }
 0xcb4   : > { %v2681_v30 = vrot.slane %v5887_v17, %v6357_v37 }
 0xd2d   : > { %v2621_v15 = vpop.xlane.xlu1 %2620 }
 0xd2e   : > { %v2635_v3 = vmul.f32 0.03125, %v2621_v15 }
 0xd2f   : > { %v2619_v25 = vpop.xlane.xlu0 %2618 }
 0xd30   : > { %v2643_v8 = vadd.f32 1e-05, %v2635_v3  ;;  %v2634_v7 = vmul.f32 0.03125, %v2619_v25 }
 0xd31   : > { %v2625_v33 = vpop.xlane.xlu1 %2624 }
 0xd32   : > { %4662 = vrsqrt.f32 %v2643_v8  ;;  %v2642_v60 = vadd.f32 1e-05, %v2634_v7  ;;  %v2637_v36 = vmul.f32 0.03125, %v2625_v33 }
 0xd33   : > { %v2623_v39 = vpop.xlane.xlu0 %2622 }
 0xd34   : > { %4664 = vrsqrt.f32 %v2642_v60  ;;  %v2645_v48 = vadd.f32 1e-05, %v2637_v36  ;;  %v2636_v53 = vmul.f32 0.03125, %v2623_v39 }
 0xd35   : > { %v2629_v6 = vpop.xlane.xlu1 %2628 }
 0xd36   : > { %4666 = vrsqrt.f32 %v2645_v48  ;;  %v2644_v20 = vadd.f32 1e-05, %v2636_v53  ;;  %v2639_v21 = vmul.f32 0.03125, %v2629_v6  ;;  %v3570_v53 = vld [vmem:[%s6303_s2 + $0x360] sm:$0xff]  ;;  %v3569_v6 = vld [vmem:[%s6303_s2 + $0x358] sm:$0xff] }
 0xd37   : > { %v2627_v23 = vpop.xlane.xlu0 %2626 }
 0xd38   : > { %4668 = vrsqrt.f32 %v2644_v20  ;;  %v2647_v9 = vadd.f32 1e-05, %v2639_v21  ;;  %v2638_v16 = vmul.f32 0.03125, %v2627_v23  ;;  %v3568_v20 = vld [vmem:[%s6303_s2 + $0x350] sm:$0xff]  ;;  %v3567_v21 = vld [vmem:[%s6303_s2 + $0x348] sm:$0xff]  ;;  %v3566_v23 = vld [vmem:[%s6303_s2 + $0x340] sm:$0xff] }
 0xd39   : > { %v2633_v28 = vpop.xlane.xlu1 %2632 }
 0xd3a   : > { %4670 = vrsqrt.f32 %v2647_v9  ;;  %v2646_v27 = vadd.f32 1e-05, %v2638_v16  ;;  %v2641_v1 = vmul.f32 0.03125, %v2633_v28  ;;  %v3565_v9 = vld [vmem:[%s6303_s2 + $0x338] sm:$0xff]  ;;  %v3564_v16 = vld [vmem:[%s6303_s2 + $0x330] sm:$0xff]  ;;  %v3563_v28 = vld [vmem:[%s6303_s2 + $0x328] sm:$0xff] }
 0xd3b   : > { %v2631_v47 = vpop.xlane.xlu0 %2630 }
 0xd3c   : > { %4672 = vrsqrt.f32 %v2646_v27  ;;  %v2649_v46 = vadd.f32 1e-05, %v2641_v1  ;;  %v2640_v41 = vmul.f32 0.03125, %v2631_v47  ;;  %v3562_v27 = vld [vmem:[%s6303_s2 + $0x320] sm:$0xff]  ;;  %v3561_v1 = vld [vmem:[%s6303_s2 + $0x318] sm:$0xff]  ;;  %v3560_v47 = vld [vmem:[%s6303_s2 + $0x310] sm:$0xff] }
 0xd3e   : > { %4674 = vrsqrt.f32 %v2649_v46  ;;  %v2648_v59 = vadd.f32 1e-05, %v2640_v41  ;;  %v3559_v46 = vld [vmem:[%s6303_s2 + $0x308] sm:$0xff]  ;;  %v3558_v41 = vld [vmem:[%s6303_s2 + $0x300] sm:$0xff] }
 0xd3f   : > { %v4663_v32 = vpop.eup %4662 }
 0xd40   : > { %v2659_v38 = vmul.f32 %v4663_v32, %v5936_v19  ;;  %4676 = vrsqrt.f32 %v2648_v59  ;;  %v6358_v59 = vsub.s32 3, %v6345_v63 }
 0xd41   : > { %v4665_v56 = vpop.eup %4664 }
 0xd42   : > { %v2658_v24 = vmul.f32 %v4665_v56, %v5943_v26  ;;  %v2671_v45 = vmul.f32 %v2669_v31, %v2659_v38  ;;  %v2710_v32 = vrot.slane %v5887_v17, %v6358_v59 }
 0xd43   : > { %v4667_v34 = vpop.eup %4666 }
 0xd44   : > { %v2670_v2 = vmul.f32 %v2669_v31, %v2658_v24  ;;  %v2661_v49 = vmul.f32 %v4667_v34, %v5950_v11  ;;  %v2683_v14 = vadd.f32 %v2681_v30, %v2671_v45 }
 0xd45   : > { %v4669_v51 = vpop.eup %4668 }
 0xd46   : > { %v2682_v62 = vadd.f32 %v2681_v30, %v2670_v2  ;;  %v2660_v0 = vmul.f32 %v4669_v51, %v5957_v43  ;;  %v2673_v19 = vmul.f32 %v2669_v31, %v2661_v49 }
 0xd47   : > { %v4671_v18 = vpop.eup %4670 }
 0xd48   : > { %4391 = vmatprep.mubr.f32.mxu1 %v2682_v62  ;;  %v2672_v10 = vmul.f32 %v2669_v31, %v2660_v0  ;;  %v2663_v26 = vmul.f32 %v4671_v18, %v5964_v52  ;;  %v2685_v3 = vadd.f32 %v2681_v30, %v2673_v19 }
 0xd49   : > { %v4673_v5 = vpop.eup %4672  ;;  %4392 = vmatmul.mubr.f32.vlgmr.msra.gmra.mxu1 %v2683_v14 }
 0xd4a   : > { %v2684_v54 = vadd.f32 %v2681_v30, %v2672_v10  ;;  %v2662_v42 = vmul.f32 %v4673_v5, %v5971_v40  ;;  %v2675_v25 = vmul.f32 %v2669_v31, %v2663_v26  ;;  %v3573_v40 = vld [vmem:[%s6303_s2 + $0x378] sm:$0xff] }
 0xd4b   : > { %v4675_v15 = vpop.eup %4674  ;;  %4403 = vmatprep.subr.mxu0 %v3573_v40 }
 0xd4c   : > { %4394 = vmatprep.mubr.f32.mxu1 %v2684_v54  ;;  %v2674_v11 = vmul.f32 %v2669_v31, %v2662_v42  ;;  %v2665_v8 = vmul.f32 %v4675_v15, %v5978_v50  ;;  %v2687_v60 = vadd.f32 %v2681_v30, %v2675_v25  ;;  %4404 = vmatpush3.msra.mxu0 %v3573_v40  ;;  %v3572_v50 = vld [vmem:[%s6303_s2 + $0x370] sm:$0xff] }
 0xd4d   : > { %v4677_v43 = vpop.eup %4676  ;;  %4395 = vmatmul.mubr.f32.gmra.mxu1 %v2685_v3  ;;  %4405 = vmatprep.subr.mxu0 %v3572_v50 }
 0xd4e   : > { %v2686_v7 = vadd.f32 %v2681_v30, %v2674_v11  ;;  %v2664_v33 = vmul.f32 %v4677_v43, %v5985_v58  ;;  %v2677_v36 = vmul.f32 %v2669_v31, %v2665_v8  ;;  %4406 = vmatpush3.msra.mxu0 %v3572_v50  ;;  %v3571_v58 = vld [vmem:[%s6303_s2 + $0x368] sm:$0xff] }
 0xd4f   : > { %4407 = vmatprep.subr.mxu0 %v3571_v58 }
 0xd50   : > { %4397 = vmatprep.mubr.f32.mxu1 %v2686_v7  ;;  %v2676_v52 = vmul.f32 %v2669_v31, %v2664_v33  ;;  %v2689_v48 = vadd.f32 %v2681_v30, %v2677_v36  ;;  %4408 = vmatpush3.msra.mxu0 %v3571_v58 }
 0xd51   : > { %4398 = vmatmul.mubr.f32.gmra.mxu1 %v2687_v60  ;;  %4409 = vmatprep.subr.mxu0 %v3570_v53 }
 0xd52   : > { %v2688_v39 = vadd.f32 %v2681_v30, %v2676_v52  ;;  %4410 = vmatpush3.msra.mxu0 %v3570_v53 }
 0xd53   : > { %4411 = vmatprep.subr.mxu0 %v3569_v6 }
 0xd54   : > { %4400 = vmatprep.mubr.f32.mxu1 %v2688_v39  ;;  %4412 = vmatpush3.msra.mxu0 %v3569_v6 }
 0xd55   : > { %4401 = vmatmul.mubr.f32.gmra.mxu1 %v2689_v48  ;;  %4413 = vmatprep.subr.mxu0 %v3568_v20 }
 0xd56   : > { %4414 = vmatpush3.msra.mxu0 %v3568_v20 }
 0xd57   : > { %4415 = vmatprep.subr.mxu0 %v3567_v21 }
 0xd58   : > { %4416 = vmatpush3.msra.mxu0 %v3567_v21 }
 0xd59   : > { %4417 = vmatprep.subr.mxu0 %v3566_v23 }
 0xd5a   : > { %4418 = vmatpush3.msra.mxu0 %v3566_v23 }
 0xd5b   : > { %4419 = vmatprep.subr.mxu0 %v3565_v9 }
 0xd5c   : > { %4420 = vmatpush3.msra.mxu0 %v3565_v9 }
 0xd5d   : > { %4421 = vmatprep.subr.mxu0 %v3564_v16 }
 0xd5e   : > { %4422 = vmatpush3.msra.mxu0 %v3564_v16 }
 0xd5f   : > { %4423 = vmatprep.subr.mxu0 %v3563_v28 }
 0xd60   : > { %4424 = vmatpush3.msra.mxu0 %v3563_v28 }
 0xd61   : > { %4425 = vmatprep.subr.mxu0 %v3562_v27 }
 0xd62   : > { %4426 = vmatpush3.msra.mxu0 %v3562_v27 }
 0xd63   : > { %4427 = vmatprep.subr.mxu0 %v3561_v1 }
 0xd64   : > { %4428 = vmatpush3.msra.mxu0 %v3561_v1 }
 0xd65   : > { %4429 = vmatprep.subr.mxu0 %v3560_v47 }
 0xd66   : > { %4430 = vmatpush3.msra.mxu0 %v3560_v47 }
 0xd67   : > { %4431 = vmatprep.subr.mxu0 %v3559_v46 }
 0xd68   : > { %4432 = vmatpush3.msra.mxu0 %v3559_v46 }
 0xd69   : > { %4433 = vmatprep.subr.mxu0 %v3558_v41 }
 0xd6a   : > { %4434 = vmatpush3.msra.mxu0 %v3558_v41 }
 0xe09   : > { %v4393_v13 = vpop.f32.mrf.mxu1 }
 0xe0a   : > { %v6093_v31 = vadd.f32 %v4393_v13, %v2710_v32 }
 0xe0b   : > { %v2777_v38 = vpop.f32.mrf.mxu1 }
 0xe0c   : > { %v2817_v56 = vmul.f32 %v6093_v31, %v6093_v31  ;;  %v6097_v24 = vadd.f32 %v2777_v38, %v2710_v32 }
 0xe0d   : > { %v4396_v34 = vpop.f32.mrf.mxu1 }
 0xe0e   : > { %v2825_v37 = vmul.f32 %v2817_v56, %v6093_v31  ;;  %v2816_v30 = vmul.f32 %v6097_v24, %v6097_v24  ;;  %v6102_v45 = vadd.f32 %v4396_v34, %v2710_v32 }
 0xe0f   : > { %v2787_v2 = vpop.f32.mrf.mxu1 }
 0xe10   : > { %v2833_v49 = vmul.f32 0.044715, %v2825_v37  ;;  %v2824_v51 = vmul.f32 %v2816_v30, %v6097_v24  ;;  %v2819_v62 = vmul.f32 %v6102_v45, %v6102_v45  ;;  %v6107_v0 = vadd.f32 %v2787_v2, %v2710_v32 }
 0xe11   : > { %v4399_v18 = vpop.f32.mrf.mxu1 }
 0xe12   : > { %v2841_v14 = vadd.f32 %v2833_v49, %v6093_v31  ;;  %v2832_v19 = vmul.f32 0.044715, %v2824_v51  ;;  %v2827_v10 = vmul.f32 %v2819_v62, %v6102_v45  ;;  %v2818_v26 = vmul.f32 %v6107_v0, %v6107_v0 }
 0xe13   : > { %v6113_v5 = vadd.f32 %v4399_v18, %v2710_v32  ;;  %v2797_v54 = vpop.f32.mrf.mxu1 }
 0xe14   : > { %v2849_v42 = vmul.f32 0.7978846, %v2841_v14  ;;  %v2840_v15 = vadd.f32 %v2832_v19, %v6097_v24  ;;  %v2835_v3 = vmul.f32 0.044715, %v2827_v10  ;;  %v2826_v25 = vmul.f32 %v2818_v26, %v6107_v0 }
 0xe15   : > { %v2821_v11 = vmul.f32 %v6113_v5, %v6113_v5  ;;  %v6119_v8 = vadd.f32 %v2797_v54, %v2710_v32  ;;  %v4402_v43 = vpop.f32.mrf.mxu1 }
 0xe16   : > { %4678 = vtanh.f32 %v2849_v42  ;;  %v2848_v7 = vmul.f32 0.7978846, %v2840_v15  ;;  %v2843_v33 = vadd.f32 %v2835_v3, %v6102_v45  ;;  %v2834_v60 = vmul.f32 0.044715, %v2826_v25 }
 0xe17   : > { %v2829_v36 = vmul.f32 %v2821_v11, %v6113_v5  ;;  %v2820_v52 = vmul.f32 %v6119_v8, %v6119_v8  ;;  %v6125_v39 = vadd.f32 %v4402_v43, %v2710_v32  ;;  %v2807_v48 = vpop.f32.mrf.mxu1 }
 0xe18   : > { %4680 = vtanh.f32 %v2848_v7  ;;  %v2851_v40 = vmul.f32 0.7978846, %v2843_v33  ;;  %v2842_v50 = vadd.f32 %v2834_v60, %v6107_v0  ;;  %v2808_v58 = vadd.f32 %v2807_v48, %v2710_v32 }
 0xe19   : > { %v2837_v53 = vmul.f32 0.044715, %v2829_v36  ;;  %v2828_v6 = vmul.f32 %v2820_v52, %v6119_v8  ;;  %v2823_v20 = vmul.f32 %v6125_v39, %v6125_v39 }
 0xe1a   : > { %4682 = vtanh.f32 %v2851_v40  ;;  %v2850_v21 = vmul.f32 0.7978846, %v2842_v50  ;;  %v2822_v23 = vmul.f32 %v2808_v58, %v2808_v58 }
 0xe1b   : > { %v2845_v9 = vadd.f32 %v2837_v53, %v6113_v5  ;;  %v2836_v16 = vmul.f32 0.044715, %v2828_v6  ;;  %v2831_v28 = vmul.f32 %v2823_v20, %v6125_v39  ;;  %v6359_v6 = vsub.s32 4, %v6345_v63 }
 0xe1c   : > { %4684 = vtanh.f32 %v2850_v21  ;;  %v2830_v27 = vmul.f32 %v2822_v23, %v2808_v58 }
 0xe1d   : > { %v2853_v1 = vmul.f32 0.7978846, %v2845_v9  ;;  %v2844_v47 = vadd.f32 %v2836_v16, %v6119_v8  ;;  %v2839_v46 = vmul.f32 0.044715, %v2831_v28  ;;  %v3021_v20 = vrot.slane %v5887_v17, %v6359_v6 }
 0xe1e   : > { %v2838_v41 = vmul.f32 0.044715, %v2830_v27 }
 0xe1f   : > { %4686 = vtanh.f32 %v2853_v1  ;;  %v2852_v59 = vmul.f32 0.7978846, %v2844_v47  ;;  %v2847_v32 = vadd.f32 %v2839_v46, %v6125_v39 }
 0xe20   : > { %v2846_v13 = vadd.f32 %v2838_v41, %v2808_v58 }
 0xe21   : > { %4688 = vtanh.f32 %v2852_v59  ;;  %v2855_v38 = vmul.f32 0.7978846, %v2847_v32 }
 0xe22   : > { %v2854_v56 = vmul.f32 0.7978846, %v2846_v13 }
 0xe23   : > { %v4679_v34 = vpop.eup %4678  ;;  %4690 = vtanh.f32 %v2855_v38 }
 0xe24   : > { %v2865_v37 = vadd.f32 1.0, %v4679_v34  ;;  %4692 = vtanh.f32 %v2854_v56 }
 0xe25   : > { %v4681_v30 = vpop.eup %4680 }
 0xe26   : > { %v2864_v2 = vadd.f32 1.0, %v4681_v30  ;;  %v2873_v51 = vmul.f32 0.5, %v2865_v37 }
 0xe27   : > { %v4683_v49 = vpop.eup %4682 }
 0xe28   : > { %v2872_v62 = vmul.f32 0.5, %v2864_v2  ;;  %v2867_v18 = vadd.f32 1.0, %v4683_v49  ;;  %v2881_v26 = vmul.f32 %v2873_v51, %v6093_v31 }
 0xe29   : > { %v4685_v14 = vpop.eup %4684 }
 0xe2a   : > { %v2880_v19 = vmul.f32 %v2872_v62, %v6097_v24  ;;  %v2866_v10 = vadd.f32 1.0, %v4685_v14  ;;  %v2875_v54 = vmul.f32 0.5, %v2867_v18 }
 0xe2c   : > { %v4687_v42 = vpop.eup %4686  ;;  %4435 = vmatprep.mubr.f32.mxu0 %v2880_v19  ;;  %v2874_v15 = vmul.f32 0.5, %v2866_v10  ;;  %v2883_v43 = vmul.f32 %v2875_v54, %v6102_v45 }
 0xe2d   : > { %4436 = vmatmul.mubr.f32.vlgmr.msra.gmra.mxu0 %v2881_v26  ;;  %v2869_v3 = vadd.f32 1.0, %v4687_v42 }
 0xe2e   : > { %v4689_v25 = vpop.eup %4688  ;;  %v2882_v11 = vmul.f32 %v2874_v15, %v6107_v0 }
 0xe2f   : > { %v2868_v7 = vadd.f32 1.0, %v4689_v25  ;;  %v2877_v60 = vmul.f32 0.5, %v2869_v3 }
 0xe30   : > { %v4691_v33 = vpop.eup %4690  ;;  %4438 = vmatprep.mubr.f32.mxu0 %v2882_v11 }
 0xe31   : > { %v4693_v36 = vpop.eup %4692  ;;  %4439 = vmatmul.mubr.f32.gmra.mxu0 %v2883_v43  ;;  %v2876_v24 = vmul.f32 0.5, %v2868_v7  ;;  %v2871_v52 = vadd.f32 1.0, %v4691_v33  ;;  %v2885_v40 = vmul.f32 %v2877_v60, %v6113_v5 }
 0xe32   : > { %v2870_v31 = vadd.f32 1.0, %v4693_v36 }
 0xe33   : > { %v2884_v48 = vmul.f32 %v2876_v24, %v6119_v8  ;;  %v2879_v53 = vmul.f32 0.5, %v2871_v52 }
 0xe34   : > { %v2878_v50 = vmul.f32 0.5, %v2870_v31 }
 0xe35   : > { %4441 = vmatprep.mubr.f32.mxu0 %v2884_v48  ;;  %v2887_v45 = vmul.f32 %v2879_v53, %v6125_v39 }
 0xe36   : > { %4442 = vmatmul.mubr.f32.gmra.mxu0 %v2885_v40  ;;  %v2886_v0 = vmul.f32 %v2878_v50, %v2808_v58 }
 0xe38   : > { %4444 = vmatprep.mubr.f32.mxu0 %v2886_v0 }
 0xe3a   : > { %4445 = vmatmul.mubr.f32.gmra.mxu0 %v2887_v45 }
 0xeed   : > { %v4437_v21 = vpop.f32.mrf.mxu0 }
 0xeee   : > { %v3011_v23 = vadd.f32 %v4437_v21, %v5893_v12 }
 0xeef   : > { %v2971_v9 = vpop.f32.mrf.mxu0 }
 0xef0   : > { %v3023_v8 = vadd.f32 %v3021_v20, %v3011_v23  ;;  %v3010_v5 = vadd.f32 %v2971_v9, %v5896_v61 }
 0xef1   : > { %v4440_v16 = vpop.f32.mrf.mxu0 }
 0xef2   : > { %v3022_v28 = vadd.f32 %v3021_v20, %v3010_v5  ;;  %v3013_v27 = vadd.f32 %v4440_v16, %v5900_v22  ;;  %3032 = vadd.xlane.f32.xlu1 %v3023_v8  ;;  %v3586_v16 = vld [vmem:[%s6303_s2 + $0x3e0] sm:$0xff] }
 0xef3   : > { %v2981_v58 = vpop.f32.mrf.mxu0 }
 0xef4   : > { %v3025_v1 = vadd.f32 %v3021_v20, %v3013_v27  ;;  %v3012_v39 = vadd.f32 %v2981_v58, %v5904_v29  ;;  %3030 = vadd.xlane.f32.xlu0 %v3022_v28  ;;  %v3583_v27 = vld [vmem:[%s6303_s2 + $0x3c8] sm:$0xff]  ;;  %v3582_v58 = vld [vmem:[%s6303_s2 + $0x3c0] sm:$0xff] }
 0xef6   : > { %v3024_v47 = vadd.f32 %v3021_v20, %v3012_v39  ;;  %v4443_v46 = vpop.f32.mrf.mxu0  ;;  %3036 = vadd.xlane.f32.xlu1 %v3025_v1  ;;  %v3580_v39 = vld [vmem:[%s6303_s2 + $0x3b0] sm:$0xff] }
 0xef7   : > { %v3015_v17 = vadd.f32 %v4443_v46, %v5908_v35  ;;  %v3589_v35 = vld [vmem:[%s6303_s2 + $0x3f8] sm:$0xff]  ;;  %v3578_v46 = vld [vmem:[%s6303_s2 + $0x3a0] sm:$0xff] }
 0xef8   : > { %v2991_v12 = vpop.f32.mrf.mxu0  ;;  %3034 = vadd.xlane.f32.xlu0 %v3024_v47  ;;  %4447 = vmatprep.subr.mxu1 %v3589_v35 }
 0xef9   : > { %v3027_v41 = vadd.f32 %v3021_v20, %v3015_v17  ;;  %v3014_v61 = vadd.f32 %v2991_v12, %v5912_v57  ;;  %v3588_v57 = vld [vmem:[%s6303_s2 + $0x3f0] sm:$0xff]  ;;  %4448 = vmatpush3.msra.mxu1 %v3589_v35  ;;  %v3577_v17 = vld [vmem:[%s6303_s2 + $0x398] sm:$0xff] }
 0xefa   : > { %v4446_v59 = vpop.f32.mrf.mxu0  ;;  %4449 = vmatprep.subr.mxu1 %v3588_v57  ;;  %v3576_v12 = vld [vmem:[%s6303_s2 + $0x390] sm:$0xff] }
 0xefb   : > { %v3026_v32 = vadd.f32 %v3021_v20, %v3014_v61  ;;  %v3017_v22 = vadd.f32 %v4446_v59, %v5916_v55  ;;  %3040 = vadd.xlane.f32.xlu1 %v3027_v41  ;;  %v3587_v55 = vld [vmem:[%s6303_s2 + $0x3e8] sm:$0xff]  ;;  %4450 = vmatpush3.msra.mxu1 %v3588_v57  ;;  %v3574_v61 = vld [vmem:[%s6303_s2 + $0x380] sm:$0xff] }
 0xefc   : > { %v3001_v13 = vpop.f32.mrf.mxu0  ;;  %4451 = vmatprep.subr.mxu1 %v3587_v55 }
 0xefd   : > { %v3029_v38 = vadd.f32 %v3021_v20, %v3017_v22  ;;  %v3016_v29 = vadd.f32 %v3001_v13, %v5920_v44  ;;  %3038 = vadd.xlane.f32.xlu0 %v3026_v32  ;;  %4452 = vmatpush3.msra.mxu1 %v3587_v55 }
 0xefe   : > { %4453 = vmatprep.subr.mxu1 %v3586_v16 }
 0xeff   : > { %v3028_v56 = vadd.f32 %v3021_v20, %v3016_v29  ;;  %3044 = vadd.xlane.f32.xlu1 %v3029_v38  ;;  %4454 = vmatpush3.msra.mxu1 %v3586_v16 }
 0xf01   : > { %3042 = vadd.xlane.f32.xlu0 %v3028_v56 }
 0xf7b   : > { %v3033_v44 = vpop.xlane.xlu1 %3032 }
 0xf7c   : > { %v3047_v34 = vmul.f32 0.03125, %v3033_v44 }
 0xf7d   : > { %v3031_v37 = vpop.xlane.xlu0 %3030 }
 0xf7e   : > { %v3055_v30 = vsub.f32 %v3023_v8, %v3047_v34  ;;  %v3046_v2 = vmul.f32 0.03125, %v3031_v37 }
 0xf7f   : > { %v3037_v49 = vpop.xlane.xlu1 %3036 }
 0xf80   : > { %v6164_v51 = vsel %vm266_vm0, %v3055_v30, 0.0  ;;  %v3054_v62 = vsub.f32 %v3022_v28, %v3046_v2  ;;  %v3049_v18 = vmul.f32 0.03125, %v3037_v49  ;;  %v3585_v28 = vld [vmem:[%s6303_s2 + $0x3d8] sm:$0xff] }
 0xf81   : > { %v3035_v14 = vpop.xlane.xlu0 %3034  ;;  %v3071_v19 = vmul.f32 %v6164_v51, %v6164_v51  ;;  %4455 = vmatprep.subr.mxu1 %v3585_v28 }
 0xf82   : > { %v6170_v10 = vsel %vm266_vm0, %v3054_v62, 0.0  ;;  %v3057_v26 = vsub.f32 %v3025_v1, %v3049_v18  ;;  %v3048_v54 = vmul.f32 0.03125, %v3035_v14  ;;  %4456 = vmatpush3.msra.mxu1 %v3585_v28  ;;  %v3581_v1 = vld [vmem:[%s6303_s2 + $0x3b8] sm:$0xff] }
 0xf83   : > { %3080 = vadd.xlane.f32.xlu1 %v3071_v19  ;;  %v3070_v42 = vmul.f32 %v6170_v10, %v6170_v10  ;;  %4457 = vmatprep.subr.mxu1 %v3584_v4 }
 0xf84   : > { %v6176_v15 = vsel %vm266_vm0, %v3057_v26, 0.0  ;;  %v3056_v3 = vsub.f32 %v3024_v47, %v3048_v54  ;;  %v3041_v25 = vpop.xlane.xlu1 %3040  ;;  %4458 = vmatpush3.msra.mxu1 %v3584_v4  ;;  %v3579_v47 = vld [vmem:[%s6303_s2 + $0x3a8] sm:$0xff] }
 0xf85   : > { %v3051_v11 = vmul.f32 0.03125, %v3041_v25  ;;  %3078 = vadd.xlane.f32.xlu0 %v3070_v42  ;;  %v3073_v43 = vmul.f32 %v6176_v15, %v6176_v15  ;;  %4459 = vmatprep.subr.mxu1 %v3583_v27  ;;  %v4711_v25 = vld [vmem:[%s6304_s3 + $0x8] sm:$0xff] }
 0xf86   : > { %v6182_v7 = vsel %vm266_vm0, %v3056_v3, 0.0  ;;  %v3039_v33 = vpop.xlane.xlu0 %3038  ;;  %4460 = vmatpush3.msra.mxu1 %v3583_v27 }
 0xf87   : > { %v3059_v60 = vsub.f32 %v3027_v41, %v3051_v11  ;;  %v3050_v36 = vmul.f32 0.03125, %v3039_v33  ;;  %3084 = vadd.xlane.f32.xlu1 %v3073_v43  ;;  %v3072_v24 = vmul.f32 %v6182_v7, %v6182_v7  ;;  %4461 = vmatprep.subr.mxu1 %v3582_v58  ;;  %v3575_v41 = vld [vmem:[%s6303_s2 + $0x388] sm:$0xff]  ;;  %v6360_v11 = vsub.s32 5, %v6345_v63 }
 0xf88   : > { %v3045_v52 = vpop.xlane.xlu1 %3044  ;;  %4462 = vmatpush3.msra.mxu1 %v3582_v58 }
 0xf89   : > { %v6188_v31 = vsel %vm266_vm0, %v3059_v60, 0.0  ;;  %v3058_v48 = vsub.f32 %v3026_v32, %v3050_v36  ;;  %v3053_v40 = vmul.f32 0.03125, %v3045_v52  ;;  %3082 = vadd.xlane.f32.xlu0 %v3072_v24  ;;  %4463 = vmatprep.subr.mxu1 %v3581_v1  ;;  %v3129_v43 = vrot.slane %v4711_v25, %v6360_v11 }
 0xf8a   : > { %v3043_v50 = vpop.xlane.xlu0 %3042  ;;  %v3075_v53 = vmul.f32 %v6188_v31, %v6188_v31  ;;  %4464 = vmatpush3.msra.mxu1 %v3581_v1 }
 0xf8b   : > { %v6194_v0 = vsel %vm266_vm0, %v3058_v48, 0.0  ;;  %v3061_v45 = vsub.f32 %v3029_v38, %v3053_v40  ;;  %v3052_v6 = vmul.f32 0.03125, %v3043_v50  ;;  %4465 = vmatprep.subr.mxu1 %v3580_v39  ;;  %v6361_v48 = vsub.s32 6, %v6345_v63 }
 0xf8c   : > { %3088 = vadd.xlane.f32.xlu1 %v3075_v53  ;;  %v3074_v20 = vmul.f32 %v6194_v0, %v6194_v0  ;;  %4466 = vmatpush3.msra.mxu1 %v3580_v39 }
 0xf8d   : > { %v6200_v21 = vsel %vm266_vm0, %v3061_v45, 0.0  ;;  %v3060_v23 = vsub.f32 %v3028_v56, %v3052_v6  ;;  %4467 = vmatprep.subr.mxu1 %v3579_v47  ;;  %v3141_v40 = vrot.slane %v4711_v25, %v6361_v48 }
 0xf8e   : > { %3086 = vadd.xlane.f32.xlu0 %v3074_v20  ;;  %v3077_v9 = vmul.f32 %v6200_v21, %v6200_v21  ;;  %4468 = vmatpush3.msra.mxu1 %v3579_v47 }
 0xf8f   : > { %v6206_v8 = vsel %vm266_vm0, %v3060_v23, 0.0  ;;  %4469 = vmatprep.subr.mxu1 %v3578_v46 }
 0xf90   : > { %3092 = vadd.xlane.f32.xlu1 %v3077_v9  ;;  %v3076_v5 = vmul.f32 %v6206_v8, %v6206_v8  ;;  %4470 = vmatpush3.msra.mxu1 %v3578_v46 }
 0xf91   : > { %4471 = vmatprep.subr.mxu1 %v3577_v17 }
 0xf92   : > { %3090 = vadd.xlane.f32.xlu0 %v3076_v5  ;;  %4472 = vmatpush3.msra.mxu1 %v3577_v17 }
 0xf93   : > { %4473 = vmatprep.subr.mxu1 %v3576_v12 }
 0xf94   : > { %4474 = vmatpush3.msra.mxu1 %v3576_v12 }
 0xf95   : > { %4475 = vmatprep.subr.mxu1 %v3575_v41 }
 0xf96   : > { %4476 = vmatpush3.msra.mxu1 %v3575_v41 }
 0xf97   : > { %4477 = vmatprep.subr.mxu1 %v3574_v61 }
 0xf98   : > { %4478 = vmatpush3.msra.mxu1 %v3574_v61 }
0x100c   : > { %v3081_v59 = vpop.xlane.xlu1 %3080 }
0x100d   : > { %v3095_v32 = vmul.f32 0.03125, %v3081_v59  ;;  %v6362_v59 = vsub.s32 7, %v6345_v63 }
0x100e   : > { %v3079_v22 = vpop.xlane.xlu0 %3078 }
0x100f   : > { %v3103_v13 = vadd.f32 1e-05, %v3095_v32  ;;  %v3094_v38 = vmul.f32 0.03125, %v3079_v22  ;;  %v3170_v32 = vrot.slane %v4711_v25, %v6362_v59 }
0x1010   : > { %v3085_v29 = vpop.xlane.xlu1 %3084 }
0x1011   : > { %4694 = vrsqrt.f32 %v3103_v13  ;;  %v3102_v56 = vadd.f32 1e-05, %v3094_v38  ;;  %v3097_v35 = vmul.f32 0.03125, %v3085_v29 }
0x1012   : > { %v3083_v57 = vpop.xlane.xlu0 %3082 }
0x1013   : > { %4696 = vrsqrt.f32 %v3102_v56  ;;  %v3105_v55 = vadd.f32 1e-05, %v3097_v35  ;;  %v3096_v44 = vmul.f32 0.03125, %v3083_v57  ;;  %v3285_v57 = vld [vmem:[%s6276_s29 + $0x8] sm:$0xff] }
0x1015   : > { %4698 = vrsqrt.f32 %v3105_v55  ;;  %v3104_v34 = vadd.f32 1e-05, %v3096_v44  ;;  %v3089_v37 = vpop.xlane.xlu1 %3088  ;;  %v3284_v55 = vld [vmem:[%s6276_s29] sm:$0xff] }
0x1016   : > { %v3099_v30 = vmul.f32 0.03125, %v3089_v37 }
0x1017   : > { %4700 = vrsqrt.f32 %v3104_v34  ;;  %v3087_v2 = vpop.xlane.xlu0 %3086 }
0x1018   : > { %v3107_v49 = vadd.f32 1e-05, %v3099_v30  ;;  %v3098_v62 = vmul.f32 0.03125, %v3087_v2 }
0x1019   : > { %v3093_v18 = vpop.xlane.xlu1 %3092 }
0x101a   : > { %4702 = vrsqrt.f32 %v3107_v49  ;;  %v3106_v14 = vadd.f32 1e-05, %v3098_v62  ;;  %v3101_v19 = vmul.f32 0.03125, %v3093_v18 }
0x101b   : > { %v3091_v26 = vpop.xlane.xlu0 %3090 }
0x101c   : > { %4704 = vrsqrt.f32 %v3106_v14  ;;  %v3109_v54 = vadd.f32 1e-05, %v3101_v19  ;;  %v3100_v42 = vmul.f32 0.03125, %v3091_v26  ;;  %v3287_v19 = vld [vmem:[%s6276_s29 + $0x18] sm:$0xff]  ;;  %v3286_v26 = vld [vmem:[%s6276_s29 + $0x10] sm:$0xff] }
0x101e   : > { %v4695_v3 = vpop.eup %4694  ;;  %4706 = vrsqrt.f32 %v3109_v54  ;;  %v3108_v33 = vadd.f32 1e-05, %v3100_v42 }
0x101f   : > { %v3119_v60 = vmul.f32 %v4695_v3, %v6164_v51 }
0x1020   : > { %v4697_v36 = vpop.eup %4696  ;;  %4708 = vrsqrt.f32 %v3108_v33 }
0x1021   : > { %v3118_v24 = vmul.f32 %v4697_v36, %v6170_v10  ;;  %v3131_v50 = vmul.f32 %v3129_v43, %v3119_v60 }
0x1022   : > { %v4699_v52 = vpop.eup %4698 }
0x1023   : > { %v3130_v53 = vmul.f32 %v3129_v43, %v3118_v24  ;;  %v3121_v45 = vmul.f32 %v4699_v52, %v6176_v15  ;;  %v3143_v9 = vadd.f32 %v3141_v40, %v3131_v50 }
0x1024   : > { %v4701_v6 = vpop.eup %4700 }
0x1025   : > { %v3142_v20 = vadd.f32 %v3141_v40, %v3130_v53  ;;  %v3120_v23 = vmul.f32 %v4701_v6, %v6182_v7  ;;  %v3133_v5 = vmul.f32 %v3129_v43, %v3121_v45  ;;  %v3289_v45 = vld [vmem:[%s6276_s29 + $0x28] sm:$0xff]  ;;  %v3288_v6 = vld [vmem:[%s6276_s29 + $0x20] sm:$0xff] }
0x1027   : > { %v4703_v16 = vpop.eup %4702  ;;  %4479 = vmatprep.mubr.f32.mxu1 %v3142_v20  ;;  %v3132_v51 = vmul.f32 %v3129_v43, %v3120_v23  ;;  %v3145_v27 = vadd.f32 %v3141_v40, %v3133_v5 }
0x1028   : > { %4480 = vmatmul.mubr.f32.vlgmr.msra.gmra.mxu1 %v3143_v9  ;;  %v3123_v10 = vmul.f32 %v4703_v16, %v6188_v31 }
0x1029   : > { %v4705_v28 = vpop.eup %4704  ;;  %v3144_v4 = vadd.f32 %v3141_v40, %v3132_v51 }
0x102a   : > { %v3122_v58 = vmul.f32 %v4705_v28, %v6194_v0  ;;  %v3135_v15 = vmul.f32 %v3129_v43, %v3123_v10 }
0x102b   : > { %v4707_v1 = vpop.eup %4706  ;;  %4482 = vmatprep.mubr.f32.mxu1 %v3144_v4 }
0x102c   : > { %4483 = vmatmul.mubr.f32.gmra.mxu1 %v3145_v27  ;;  %v3134_v39 = vmul.f32 %v3129_v43, %v3122_v58  ;;  %v3125_v7 = vmul.f32 %v4707_v1, %v6200_v21  ;;  %v3147_v12 = vadd.f32 %v3141_v40, %v3135_v15  ;;  %v3291_v1 = vld [vmem:[%s6276_s29 + $0x38] sm:$0xff]  ;;  %v3290_v15 = vld [vmem:[%s6276_s29 + $0x30] sm:$0xff] }
0x102d   : > { %v4709_v47 = vpop.eup %4708 }
0x102e   : > { %v3146_v46 = vadd.f32 %v3141_v40, %v3134_v39  ;;  %v3124_v17 = vmul.f32 %v4709_v47, %v6206_v8  ;;  %v3137_v31 = vmul.f32 %v3129_v43, %v3125_v7 }
0x1030   : > { %4485 = vmatprep.mubr.f32.mxu1 %v3146_v46  ;;  %v3136_v41 = vmul.f32 %v3129_v43, %v3124_v17  ;;  %v3149_v0 = vadd.f32 %v3141_v40, %v3137_v31 }
0x1031   : > { %4486 = vmatmul.mubr.f32.gmra.mxu1 %v3147_v12 }
0x1032   : > { %v3148_v61 = vadd.f32 %v3141_v40, %v3136_v41 }
0x1034   : > { %4488 = vmatprep.mubr.f32.mxu1 %v3148_v61 }
0x1035   : > { %4489 = vmatmul.mubr.f32.gmra.mxu1 %v3149_v0 }
0x10e8   : > { %v4481_v21 = vpop.f32.mrf.mxu1 }
0x10e9   : > { %v3243_v8 = vadd.f32 %v4481_v21, %v3170_v32 }
0x10ea   : > { %v3237_v22 = vpop.f32.mrf.mxu1 }
0x10eb   : > { %3277 = vst [vmem:[%s6270_s25 + $0x8] sm:$0xff] %v3243_v8  ;;  %v3293_v63 = vmax.f32 %v3243_v8, 0.0  ;;  %v3238_v13 = vadd.f32 %v3237_v22, %v3170_v32 }
0x10ec   : > { %v4484_v38 = vpop.f32.mrf.mxu1 }
0x10ed   : > { %v3301_v29 = vmin.f32 %v3293_v63, 1.0  ;;  %3276 = vst [vmem:[%s6270_s25] sm:$0xff] %v3238_v13  ;;  %v3292_v56 = vmax.f32 %v3238_v13, 0.0  ;;  %v3253_v35 = vadd.f32 %v4484_v38, %v3170_v32 }
0x10ee   : > { %v3247_v44 = vpop.f32.mrf.mxu1 }
0x10ef   : > { %v3300_v34 = vmin.f32 %v3292_v56, 1.0  ;;  %3279 = vst [vmem:[%s6270_s25 + $0x18] sm:$0xff] %v3253_v35  ;;  %v3295_v37 = vmax.f32 %v3253_v35, 0.0  ;;  %v3248_v30 = vadd.f32 %v3247_v44, %v3170_v32  ;;  %v3309_v2 = vsub.f32 %v3285_v57, %v3301_v29 }
0x10f1   : > { %v3308_v49 = vsub.f32 %v3284_v55, %v3300_v34  ;;  %v3303_v62 = vmin.f32 %v3295_v37, 1.0  ;;  %3278 = vst [vmem:[%s6270_s25 + $0x10] sm:$0xff] %v3248_v30  ;;  %v3294_v18 = vmax.f32 %v3248_v30, 0.0  ;;  %v4487_v14 = vpop.f32.mrf.mxu1  ;;  %v3317_v33 = vmul.f32 %v3309_v2, %v3309_v2 }
0x10f2   : > { %v3263_v54 = vadd.f32 %v4487_v14, %v3170_v32 }
0x10f3   : > { %v3316_v42 = vmul.f32 %v3308_v49, %v3308_v49  ;;  %v3302_v3 = vmin.f32 %v3294_v18, 1.0  ;;  %v3257_v25 = vpop.f32.mrf.mxu1  ;;  %v3311_v60 = vsub.f32 %v3287_v19, %v3303_v62 }
0x10f4   : > { %3281 = vst [vmem:[%s6270_s25 + $0x28] sm:$0xff] %v3263_v54  ;;  %v3297_v11 = vmax.f32 %v3263_v54, 0.0  ;;  %v3258_v43 = vadd.f32 %v3257_v25, %v3170_v32 }
0x10f5   : > { %v3310_v36 = vsub.f32 %v3286_v26, %v3302_v3  ;;  %v4490_v24 = vpop.f32.mrf.mxu1  ;;  %v3324_v50 = vadd.f32 %v3317_v33, %v3316_v42  ;;  %v3319_v16 = vmul.f32 %v3311_v60, %v3311_v60 }
0x10f6   : > { %v3305_v52 = vmin.f32 %v3297_v11, 1.0  ;;  %3280 = vst [vmem:[%s6270_s25 + $0x20] sm:$0xff] %v3258_v43  ;;  %v3296_v48 = vmax.f32 %v3258_v43, 0.0  ;;  %v3273_v40 = vadd.f32 %v4490_v24, %v3170_v32 }
0x10f7   : > { %v3318_v53 = vmul.f32 %v3310_v36, %v3310_v36  ;;  %v3267_v20 = vpop.f32.mrf.mxu1 }
0x10f8   : > { %v3304_v23 = vmin.f32 %v3296_v48, 1.0  ;;  %3283 = vst [vmem:[%s6270_s25 + $0x38] sm:$0xff] %v3273_v40  ;;  %v3299_v9 = vmax.f32 %v3273_v40, 0.0  ;;  %v3268_v5 = vadd.f32 %v3267_v20, %v3170_v32  ;;  %v3313_v10 = vsub.f32 %v3289_v45, %v3305_v52 }
0x10f9   : > { %v3325_v51 = vadd.f32 %v3324_v50, %v3318_v53 }
0x10fa   : > { %v3312_v28 = vsub.f32 %v3288_v6, %v3304_v23  ;;  %v3307_v4 = vmin.f32 %v3299_v9, 1.0  ;;  %3282 = vst [vmem:[%s6270_s25 + $0x30] sm:$0xff] %v3268_v5  ;;  %v3298_v27 = vmax.f32 %v3268_v5, 0.0  ;;  %v3321_v47 = vmul.f32 %v3313_v10, %v3313_v10 }
0x10fb   : > { %v3326_v58 = vadd.f32 %v3325_v51, %v3319_v16 }
0x10fc   : > { %v3320_v39 = vmul.f32 %v3312_v28, %v3312_v28  ;;  %v3306_v7 = vmin.f32 %v3298_v27, 1.0  ;;  %v3315_v17 = vsub.f32 %v3291_v1, %v3307_v4 }
0x10fe   : > { %v3327_v46 = vadd.f32 %v3326_v58, %v3320_v39  ;;  %v3314_v12 = vsub.f32 %v3290_v15, %v3306_v7  ;;  %v3323_v61 = vmul.f32 %v3315_v17, %v3315_v17 }
0x1100   : > { %v3322_v31 = vmul.f32 %v3314_v12, %v3314_v12  ;;  %v3328_v41 = vadd.f32 %v3327_v46, %v3321_v47 }
0x1102   : > { %v3329_v0 = vadd.f32 %v3328_v41, %v3322_v31 }
0x1104   : > { %v3330_v59 = vadd.f32 %v3329_v0, %v3323_v61 }
0x1106   : > { %3331 = vadd.xlane.f32.xlu0 %v3330_v59 }
0x118f   : > { %v3332_v32 = vpop.xlane.xlu0 %3331 }
0x1190   : > { %v3333_v21 = vrot.slane %v3332_v32, 4 }
0x1192   : > { %v3334_v8 = vadd.f32 %v3333_v21, %v3332_v32 }
0x1194   : > { %v3335_v22 = vrot.slane %v3334_v8, 2 }
0x1196   : > { %v3336_v63 = vadd.f32 %v3335_v22, %v3334_v8 }
0x1198   : > { %v3337_v13 = vrot.slane %v3336_v63, 1 }
0x119a   : > { %v3338_v38 = vadd.f32 %v3337_v13, %v3336_v63 }
0x119c   : > { %4491 = vpush %v3338_v38 }
0x11cd   : > { %s4492_s8 = spop %4491 }
0x11ce   : > { %v3340_v29 = vstv %s4492_s8 }
0x11cf   : > { %3342 = vst.msk [vmem:[%s253_s7] sm:$0x1] %vm3341_vm11, %v3340_v29 }
0x11d0 PF: > { %s16_s18 = sadd.s32 1, %s4718_s18  }
0x11d1   : > { %p13_p4 = scmp.ge.s32.totalorder %s16_s18, 4  }
0x11d3   :  { %15 = sbr.rel (!%p13_p4) target bundleno = 1 (0x1), region = 88 }

</bundles_post_ra>
